<compile_context>
chip_gen: v7x
topology: tpu7x:2x2x1
jax: 0.10.0
libtpu: 0.0.40
codegen_flags: <defaults>
</compile_context>

<pallas_src>
import functools
import math

import jax
import jax.numpy as jnp
import numpy as np
from jax import lax
from jax.experimental import pallas as pl
from jax.experimental.pallas import tpu as pltpu

KH = KW = 7
KK = KH * KW
PAD = 3
BN_EPS = 1e-5


# ---------------------------------------------------------------------------
# helpers
# ---------------------------------------------------------------------------
def _fold_bn(gamma, beta, mean, var):
    scale = gamma / jnp.sqrt(var + BN_EPS)
    shift = beta - mean * scale
    return scale, shift


def _gelu_erf(x):
    # exact (erf-based) GELU; erf via Abramowitz & Stegun 7.1.26 (|err| < 1.5e-7).
    # Exact divide here (approx reciprocal is only used in the softmax denominator).
    a1, a2, a3, a4, a5 = 0.254829592, -0.284496736, 1.421413741, -1.453152027, 1.061405429
    pc = 0.3275911
    z = x * (1.0 / math.sqrt(2.0))
    az = jnp.abs(z)
    sgn = jnp.where(z >= 0.0, 1.0, -1.0)
    t = 1.0 / (1.0 + pc * az)
    poly = ((((a5 * t + a4) * t + a3) * t + a2) * t + a1) * t
    erf = sgn * (1.0 - poly * jnp.exp(-az * az))
    return 0.5 * x * (1.0 + erf)


def _vmem_limit_bytes():
    # Generation-aware cap (review item): actual per-image footprint is < 1 MiB,
    # so request at most half of the smallest per-core VMEM (v7x: 64 MiB/TC).
    try:
        return int(min(pltpu.get_tpu_info().vmem_capacity_bytes // 2, 64 * 1024 * 1024))
    except Exception:
        return 32 * 1024 * 1024


# ---------------------------------------------------------------------------
# Fused kernel: 7x7 qkv conv (+ folded bias/BN)  ->  per-channel attention
#               -> focusing_factor * GELU  ->  1x1 proj conv (+ folded bias/BN)
# One image per grid step.  All intermediates stay in VMEM.
#
#   ff_ref     : (1,)            f32  SMEM   focusing_factor
#   x_ref      : (Cin, Hp*Wp)    bf16        zero-padded, spatially flattened image
#   w1_ref     : (3C, 49*Cin)    bf16        qkv conv weight, BN scale folded
#   shift1_ref : (3C, 1)         f32         conv bias * bn_scale + bn_shift
#   w2_ref     : (Cout, Cin)     f32         1x1 proj weight, BN scale folded
#   shift2_ref : (Cout, 1)       f32
#   o_ref      : (Cout, H*W)     f32         lane-dense (H*W = 256) output tile
#   col_ref    : (49*Cin, H*Wp)  bf16  VMEM  im2col scratch (flat, with width gap)
#   qkv_ref    : (3C, H, W)      bf16  VMEM  gap-compacted qkv
#   g_ref      : (Cout, H*W)     f32   VMEM  lane-dense attention output
# ---------------------------------------------------------------------------
def _fused_kernel(ff_ref, x_ref, w1_ref, shift1_ref, w2_ref, shift2_ref,
                  o_ref, col_ref, qkv_ref, g_ref, *, C, H, W, inv_scale):
    Wp = W + KW - 1
    NP = H * Wp
    Cin = x_ref.shape[0]

    # --- 1) in-VMEM im2col: 49 shifted flat slices -> (49*Cin, NP) --------------
    # (Static, fully unrolled: fine at Cin=8.  TODO(synk): switch to a fori_loop /
    #  grid K axis if Cin grows to production sizes.)
    for kh in range(KH):
        for kw in range(KW):
            t = kh * KW + kw
            off = kh * Wp + kw
            col_ref[pl.ds(t * Cin, Cin), :] = x_ref[:, pl.ds(off, NP)]

    # --- 2) 7x7 conv as ONE deep matmul (K = 49*Cin), f32 accumulation ----------
    acc = jnp.dot(w1_ref[...], col_ref[...], preferred_element_type=jnp.float32)
    acc = (acc + shift1_ref[...]).astype(jnp.bfloat16)                 # (3C, NP)

    # --- 3) drop the width gap -> dense (3C, H, W) scratch (no in-kernel reshape)
    for h in range(H):
        qkv_ref[:, h, :] = acc[:, h * Wp:h * Wp + W]

    qkv = qkv_ref[...]
    q, k, v = qkv[0:C], qkv[C:2 * C], qkv[2 * C:3 * C]                 # (C, H, W) bf16

    # --- 4) per-channel attention: batched dot_generals, softmax in f32 ---------
    s = lax.dot_general(q, k, (((2,), (2,)), ((0,), (0,))),
                        preferred_element_type=jnp.float32) * inv_scale   # (C, H, H)
    s = s - jnp.max(s, axis=-1, keepdims=True)
    e = jnp.exp(s)
    p = e * pl.reciprocal(jnp.sum(e, axis=-1, keepdims=True), approx=True)
    o3 = lax.dot_general(p.astype(jnp.bfloat16), v, (((2,), (1,)), ((0,), (0,))),
                         preferred_element_type=jnp.float32)              # (C, H, W)

    # --- 5) compact to lane-dense (C, H*W=256) then ff * GELU (f32) -------------
    for h in range(H):
        g_ref[:, pl.ds(h * W, W)] = o3[:, h, :]
    g = _gelu_erf(ff_ref[0] * g_ref[...])                                 # (C, 256)

    # --- 6) 1x1 proj conv + folded bias/BN, f32 operands, lane-dense store ------
    o_ref[...] = (jnp.dot(w2_ref[...], g, preferred_element_type=jnp.float32)
                  + shift2_ref[...])


# ---------------------------------------------------------------------------
# Forward
# ---------------------------------------------------------------------------
def elevit_attn_forward(x, params):
    B, Cin, H, W = x.shape
    w_qkv = params["w_qkv"]                      # (3*Cout, Cin, 7, 7)
    C3 = w_qkv.shape[0]
    Cout = C3 // 3
    if Cin != Cout:
        # The module's proj = Conv2d(in_channels, out_channels, 1) is applied to the
        # out_channels-wide attention output -> it only works when Cin == Cout.
        raise ValueError("EleViT_Attn requires in_channels == out_channels")

    Wp = W + KW - 1                              # width incl. conv padding (gap trick)
    Hp = H + KH                                  # height padded (3, 4): one spare zero row
    PF = Hp * Wp
    NP = H * Wp
    HW = H * W
    inv_scale = 1.0 / math.sqrt(Cout)            # scale = sqrt(head_dim) = sqrt(out_channels)

    # ---- trace-time folding: conv bias + BatchNorm into weights / single shift ----
    s1, sh1 = _fold_bn(*params["bn1"])
    s2, sh2 = _fold_bn(*params["bn2"])
    # qkv conv weight -> (3C, 49*Cin), column order (kh, kw, cin) to match im2col rows.
    w1 = (w_qkv * s1[:, None, None, None]).transpose(0, 2, 3, 1).reshape(C3, KK * Cin)
    w1 = w1.astype(jnp.bfloat16)
    shift1 = (params["b_qkv"] * s1 + sh1).reshape(C3, 1).astype(jnp.float32)
    w2 = (params["w_proj"][:, :, 0, 0] * s2[:, None]).astype(jnp.float32)   # (Cout, Cin)
    shift2 = (params["b_proj"] * s2 + sh2).reshape(Cout, 1).astype(jnp.float32)
    ff = params["focusing_factor"].astype(jnp.float32)                      # (1,)

    # ---- pad NCHW input and flatten spatially (no transpose, no host im2col) ----
    xp = jnp.pad(x, ((0, 0), (0, 0), (PAD, KH - PAD), (PAD, PAD)))          # (B, Cin, H+7, W+6)
    xflat = xp.reshape(B, Cin, PF).astype(jnp.bfloat16)

    y = pl.pallas_call(
        functools.partial(_fused_kernel, C=Cout, H=H, W=W, inv_scale=inv_scale),
        out_shape=jax.ShapeDtypeStruct((B, Cout, HW), jnp.float32),
        grid=(B,),
        in_specs=[
            pl.BlockSpec(memory_space=pltpu.MemorySpace.SMEM),       # focusing_factor (1,)
            pl.BlockSpec((None, Cin, PF), lambda b: (b, 0, 0)),
            pl.BlockSpec((C3, KK * Cin), lambda b: (0, 0)),
            pl.BlockSpec((C3, 1), lambda b: (0, 0)),
            pl.BlockSpec((Cout, Cin), lambda b: (0, 0)),
            pl.BlockSpec((Cout, 1), lambda b: (0, 0)),
        ],
        out_specs=pl.BlockSpec((None, Cout, HW), lambda b: (b, 0, 0)),
        scratch_shapes=[
            pltpu.VMEM((KK * Cin, NP), jnp.bfloat16),   # im2col (~276 KiB at these shapes)
            pltpu.VMEM((C3, H, W), jnp.bfloat16),       # gap-compacted qkv
            pltpu.VMEM((Cout, HW), jnp.float32),        # lane-dense attention output
        ],
        compiler_params=pltpu.CompilerParams(
            dimension_semantics=("parallel",),          # batch axis -> 2-TC sharding on v7x
            vmem_limit_bytes=_vmem_limit_bytes(),
        ),
    )(ff, xflat, w1, shift1, w2, shift2)

    return y.reshape(B, Cout, H, W)                     # NCHW, free metadata reshape


# ---------------------------------------------------------------------------
# Pure-JAX (f32) reference for the correctness check
# ---------------------------------------------------------------------------
def elevit_attn_reference(x, params):
    Cout = params["w_proj"].shape[0]
    s1, sh1 = _fold_bn(*params["bn1"])
    s2, sh2 = _fold_bn(*params["bn2"])
    qkv = lax.conv_general_dilated(
        x, params["w_qkv"], (1, 1), ((PAD, PAD), (PAD, PAD)),
        dimension_numbers=("NCHW", "OIHW", "NCHW"))
    qkv = qkv + params["b_qkv"][None, :, None, None]
    qkv = qkv * s1[None, :, None, None] + sh1[None, :, None, None]
    q, k, v = jnp.split(qkv, 3, axis=1)
    attn = jnp.einsum("bchw,bcxw->bchx", q, k) / math.sqrt(Cout)
    attn = jax.nn.softmax(attn, axis=-1)
    out = params["focusing_factor"][0] * jnp.einsum("bchx,bcxw->bchw", attn, v)
    g = 0.5 * out * (1.0 + jax.scipy.special.erf(out / math.sqrt(2.0)))
    y = jnp.einsum("bchw,oc->bohw", g, params["w_proj"][:, :, 0, 0])
    y = y + params["b_proj"][None, :, None, None]
    return y * s2[None, :, None, None] + sh2[None, :, None, None]


def init_params(key, in_channels, out_channels):
    k = jax.random.split(key, 6)
    std = 0.02
    w_qkv = std * jax.random.truncated_normal(
        k[0], -2.0, 2.0, (3 * out_channels, in_channels, KH, KW), jnp.float32)
    b_qkv = 0.02 * jax.random.normal(k[1], (3 * out_channels,), jnp.float32)
    w_proj = std * jax.random.truncated_normal(
        k[2], -2.0, 2.0, (out_channels, in_channels, 1, 1), jnp.float32)
    b_proj = 0.02 * jax.random.normal(k[3], (out_channels,), jnp.float32)

    def bn_params(c, kk):
        k1, k2, k3, k4 = jax.random.split(kk, 4)
        gamma = 1.0 + 0.1 * jax.random.normal(k1, (c,), jnp.float32)
        beta = 0.05 * jax.random.normal(k2, (c,), jnp.float32)
        mean = 0.05 * jax.random.normal(k3, (c,), jnp.float32)
        var = 1.0 + 0.1 * jax.random.uniform(k4, (c,), jnp.float32)
        return gamma, beta, mean, var

    # Module __init__ sets focusing_factor = 0 (a learned parameter); use a
    # non-zero value so the attention path is actually exercised numerically.
    return dict(
        w_qkv=w_qkv, b_qkv=b_qkv, w_proj=w_proj, b_proj=b_proj,
        bn1=bn_params(3 * out_channels, k[4]),
        bn2=bn_params(out_channels, k[5]),
        focusing_factor=jnp.array([0.7], jnp.float32),
    )


if __name__ == "__main__":
    B, Cin, H, W = 2, 8, 16, 16
    Cout = Cin      # proj = Conv2d(in_channels, out_channels, 1) applied to the
                    # out_channels-wide attention output -> module needs Cin == Cout.

    key = jax.random.PRNGKey(0)
    kx, kp = jax.random.split(key)
    x = jax.random.normal(kx, (B, Cin, H, W), jnp.float32)
    params = init_params(kp, Cin, Cout)

    fwd = jax.jit(elevit_attn_forward)
    out = jax.block_until_ready(fwd(x, params))
    ref = jax.block_until_ready(elevit_attn_reference(x, params))

    assert out.shape == (B, Cout, H, W), out.shape
    # bf16 MXU operands for conv/attention (f32 accumulation, f32 proj) -> bf16-level tolerance.
    if not np.allclose(np.asarray(out), np.asarray(ref), rtol=2e-2, atol=1e-3):
        raise AssertionError(
            f"mismatch: max abs err = {float(jnp.max(jnp.abs(out - ref)))}")
    print("KERNEL_OK")
</pallas_src>

<mosaic_0001>
module attributes {stable_mosaic.version = 11 : i64} {
  func.func @_fused_kernel(%arg0: i32, %arg1: memref<1xf32, #tpu.memory_space<smem>>, %arg2: memref<1x8x506xbf16, #tpu.memory_space<vmem>>, %arg3: memref<24x392xbf16, #tpu.memory_space<vmem>>, %arg4: memref<24x1xf32, #tpu.memory_space<vmem>>, %arg5: memref<8x8xf32, #tpu.memory_space<vmem>>, %arg6: memref<8x1xf32, #tpu.memory_space<vmem>>, %arg7: memref<1x8x256xf32, #tpu.memory_space<vmem>>, %arg8: memref<392x352xbf16, #tpu.memory_space<vmem>>, %arg9: memref<24x16x16xbf16, #tpu.memory_space<vmem>>, %arg10: memref<8x256xf32, #tpu.memory_space<vmem>>) attributes {dimension_semantics = [#tpu.dimension_semantics<parallel>], iteration_bounds = array<i64: 2>, scalar_prefetch = 0 : i64, scratch_operands = 3 : i64, tpu.core_type = #tpu.core_type<tc>, window_params = [{transform_indices = @transform_0, window_bounds = array<i64: 1>}, {transform_indices = @transform_1, window_bounds = array<i64: 1, 8, 506>}, {pipeline_mode = #tpu.pipeline_mode<synchronous>, transform_indices = @transform_2, window_bounds = array<i64: 24, 392>}, {pipeline_mode = #tpu.pipeline_mode<synchronous>, transform_indices = @transform_3, window_bounds = array<i64: 24, 1>}, {pipeline_mode = #tpu.pipeline_mode<synchronous>, transform_indices = @transform_4, window_bounds = array<i64: 8, 8>}, {pipeline_mode = #tpu.pipeline_mode<synchronous>, transform_indices = @transform_5, window_bounds = array<i64: 8, 1>}, {transform_indices = @transform_6, window_bounds = array<i64: 1, 8, 256>}]} {
    %c0 = arith.constant 0 : index
    %c0_0 = arith.constant 0 : index
    %c0_1 = arith.constant 0 : index
    %0 = vector.load %arg2[%c0, %c0_0, %c0_1] : memref<1x8x506xbf16, #tpu.memory_space<vmem>>, vector<1x8x352xbf16>
    %1 = vector.shape_cast %0 : vector<1x8x352xbf16> to vector<8x352xbf16>
    %c0_2 = arith.constant 0 : index
    %c0_3 = arith.constant 0 : index
    %2 = vector.load %arg8[%c0_2, %c0_3] : memref<392x352xbf16, #tpu.memory_space<vmem>>, vector<8x352xbf16>
    tpu.vector_store %arg8[%c0_2, %c0_3], %1 {strides = array<i32>} : memref<392x352xbf16, #tpu.memory_space<vmem>>, vector<8x352xbf16>,
    %c0_4 = arith.constant 0 : index
    %c0_5 = arith.constant 0 : index
    %c1 = arith.constant 1 : index
    %3 = vector.load %arg2[%c0_4, %c0_5, %c1] : memref<1x8x506xbf16, #tpu.memory_space<vmem>>, vector<1x8x352xbf16>
    %4 = vector.shape_cast %3 : vector<1x8x352xbf16> to vector<8x352xbf16>
    %c8 = arith.constant 8 : index
    %c0_6 = arith.constant 0 : index
    %5 = vector.load %arg8[%c8, %c0_6] : memref<392x352xbf16, #tpu.memory_space<vmem>>, vector<8x352xbf16>
    tpu.vector_store %arg8[%c8, %c0_6], %4 {strides = array<i32>} : memref<392x352xbf16, #tpu.memory_space<vmem>>, vector<8x352xbf16>,
    %c0_7 = arith.constant 0 : index
    %c0_8 = arith.constant 0 : index
    %c2 = arith.constant 2 : index
    %6 = vector.load %arg2[%c0_7, %c0_8, %c2] : memref<1x8x506xbf16, #tpu.memory_space<vmem>>, vector<1x8x352xbf16>
    %7 = vector.shape_cast %6 : vector<1x8x352xbf16> to vector<8x352xbf16>
    %c16 = arith.constant 16 : index
    %c0_9 = arith.constant 0 : index
    %8 = vector.load %arg8[%c16, %c0_9] : memref<392x352xbf16, #tpu.memory_space<vmem>>, vector<8x352xbf16>
    tpu.vector_store %arg8[%c16, %c0_9], %7 {strides = array<i32>} : memref<392x352xbf16, #tpu.memory_space<vmem>>, vector<8x352xbf16>,
    %c0_10 = arith.constant 0 : index
    %c0_11 = arith.constant 0 : index
    %c3 = arith.constant 3 : index
    %9 = vector.load %arg2[%c0_10, %c0_11, %c3] : memref<1x8x506xbf16, #tpu.memory_space<vmem>>, vector<1x8x352xbf16>
    %10 = vector.shape_cast %9 : vector<1x8x352xbf16> to vector<8x352xbf16>
    %c24 = arith.constant 24 : index
    %c0_12 = arith.constant 0 : index
    %11 = vector.load %arg8[%c24, %c0_12] : memref<392x352xbf16, #tpu.memory_space<vmem>>, vector<8x352xbf16>
    tpu.vector_store %arg8[%c24, %c0_12], %10 {strides = array<i32>} : memref<392x352xbf16, #tpu.memory_space<vmem>>, vector<8x352xbf16>,
    %c0_13 = arith.constant 0 : index
    %c0_14 = arith.constant 0 : index
    %c4 = arith.constant 4 : index
    %12 = vector.load %arg2[%c0_13, %c0_14, %c4] : memref<1x8x506xbf16, #tpu.memory_space<vmem>>, vector<1x8x352xbf16>
    %13 = vector.shape_cast %12 : vector<1x8x352xbf16> to vector<8x352xbf16>
    %c32 = arith.constant 32 : index
    %c0_15 = arith.constant 0 : index
    %14 = vector.load %arg8[%c32, %c0_15] : memref<392x352xbf16, #tpu.memory_space<vmem>>, vector<8x352xbf16>
    tpu.vector_store %arg8[%c32, %c0_15], %13 {strides = array<i32>} : memref<392x352xbf16, #tpu.memory_space<vmem>>, vector<8x352xbf16>,
    %c0_16 = arith.constant 0 : index
    %c0_17 = arith.constant 0 : index
    %c5 = arith.constant 5 : index
    %15 = vector.load %arg2[%c0_16, %c0_17, %c5] : memref<1x8x506xbf16, #tpu.memory_space<vmem>>, vector<1x8x352xbf16>
    %16 = vector.shape_cast %15 : vector<1x8x352xbf16> to vector<8x352xbf16>
    %c40 = arith.constant 40 : index
    %c0_18 = arith.constant 0 : index
    %17 = vector.load %arg8[%c40, %c0_18] : memref<392x352xbf16, #tpu.memory_space<vmem>>, vector<8x352xbf16>
    tpu.vector_store %arg8[%c40, %c0_18], %16 {strides = array<i32>} : memref<392x352xbf16, #tpu.memory_space<vmem>>, vector<8x352xbf16>,
    %c0_19 = arith.constant 0 : index
    %c0_20 = arith.constant 0 : index
    %c6 = arith.constant 6 : index
    %18 = vector.load %arg2[%c0_19, %c0_20, %c6] : memref<1x8x506xbf16, #tpu.memory_space<vmem>>, vector<1x8x352xbf16>
    %19 = vector.shape_cast %18 : vector<1x8x352xbf16> to vector<8x352xbf16>
    %c48 = arith.constant 48 : index
    %c0_21 = arith.constant 0 : index
    %20 = vector.load %arg8[%c48, %c0_21] : memref<392x352xbf16, #tpu.memory_space<vmem>>, vector<8x352xbf16>
    tpu.vector_store %arg8[%c48, %c0_21], %19 {strides = array<i32>} : memref<392x352xbf16, #tpu.memory_space<vmem>>, vector<8x352xbf16>,
    %c0_22 = arith.constant 0 : index
    %c0_23 = arith.constant 0 : index
    %c22 = arith.constant 22 : index
    %21 = vector.load %arg2[%c0_22, %c0_23, %c22] : memref<1x8x506xbf16, #tpu.memory_space<vmem>>, vector<1x8x352xbf16>
    %22 = vector.shape_cast %21 : vector<1x8x352xbf16> to vector<8x352xbf16>
    %c56 = arith.constant 56 : index
    %c0_24 = arith.constant 0 : index
    %23 = vector.load %arg8[%c56, %c0_24] : memref<392x352xbf16, #tpu.memory_space<vmem>>, vector<8x352xbf16>
    tpu.vector_store %arg8[%c56, %c0_24], %22 {strides = array<i32>} : memref<392x352xbf16, #tpu.memory_space<vmem>>, vector<8x352xbf16>,
    %c0_25 = arith.constant 0 : index
    %c0_26 = arith.constant 0 : index
    %c23 = arith.constant 23 : index
    %24 = vector.load %arg2[%c0_25, %c0_26, %c23] : memref<1x8x506xbf16, #tpu.memory_space<vmem>>, vector<1x8x352xbf16>
    %25 = vector.shape_cast %24 : vector<1x8x352xbf16> to vector<8x352xbf16>
    %c64 = arith.constant 64 : index
    %c0_27 = arith.constant 0 : index
    %26 = vector.load %arg8[%c64, %c0_27] : memref<392x352xbf16, #tpu.memory_space<vmem>>, vector<8x352xbf16>
    tpu.vector_store %arg8[%c64, %c0_27], %25 {strides = array<i32>} : memref<392x352xbf16, #tpu.memory_space<vmem>>, vector<8x352xbf16>,
    %c0_28 = arith.constant 0 : index
    %c0_29 = arith.constant 0 : index
    %c24_30 = arith.constant 24 : index
    %27 = vector.load %arg2[%c0_28, %c0_29, %c24_30] : memref<1x8x506xbf16, #tpu.memory_space<vmem>>, vector<1x8x352xbf16>
    %28 = vector.shape_cast %27 : vector<1x8x352xbf16> to vector<8x352xbf16>
    %c72 = arith.constant 72 : index
    %c0_31 = arith.constant 0 : index
    %29 = vector.load %arg8[%c72, %c0_31] : memref<392x352xbf16, #tpu.memory_space<vmem>>, vector<8x352xbf16>
    tpu.vector_store %arg8[%c72, %c0_31], %28 {strides = array<i32>} : memref<392x352xbf16, #tpu.memory_space<vmem>>, vector<8x352xbf16>,
    %c0_32 = arith.constant 0 : index
    %c0_33 = arith.constant 0 : index
    %c25 = arith.constant 25 : index
    %30 = vector.load %arg2[%c0_32, %c0_33, %c25] : memref<1x8x506xbf16, #tpu.memory_space<vmem>>, vector<1x8x352xbf16>
    %31 = vector.shape_cast %30 : vector<1x8x352xbf16> to vector<8x352xbf16>
    %c80 = arith.constant 80 : index
    %c0_34 = arith.constant 0 : index
    %32 = vector.load %arg8[%c80, %c0_34] : memref<392x352xbf16, #tpu.memory_space<vmem>>, vector<8x352xbf16>
    tpu.vector_store %arg8[%c80, %c0_34], %31 {strides = array<i32>} : memref<392x352xbf16, #tpu.memory_space<vmem>>, vector<8x352xbf16>,
    %c0_35 = arith.constant 0 : index
    %c0_36 = arith.constant 0 : index
    %c26 = arith.constant 26 : index
    %33 = vector.load %arg2[%c0_35, %c0_36, %c26] : memref<1x8x506xbf16, #tpu.memory_space<vmem>>, vector<1x8x352xbf16>
    %34 = vector.shape_cast %33 : vector<1x8x352xbf16> to vector<8x352xbf16>
    %c88 = arith.constant 88 : index
    %c0_37 = arith.constant 0 : index
    %35 = vector.load %arg8[%c88, %c0_37] : memref<392x352xbf16, #tpu.memory_space<vmem>>, vector<8x352xbf16>
    tpu.vector_store %arg8[%c88, %c0_37], %34 {strides = array<i32>} : memref<392x352xbf16, #tpu.memory_space<vmem>>, vector<8x352xbf16>,
    %c0_38 = arith.constant 0 : index
    %c0_39 = arith.constant 0 : index
    %c27 = arith.constant 27 : index
    %36 = vector.load %arg2[%c0_38, %c0_39, %c27] : memref<1x8x506xbf16, #tpu.memory_space<vmem>>, vector<1x8x352xbf16>
    %37 = vector.shape_cast %36 : vector<1x8x352xbf16> to vector<8x352xbf16>
    %c96 = arith.constant 96 : index
    %c0_40 = arith.constant 0 : index
    %38 = vector.load %arg8[%c96, %c0_40] : memref<392x352xbf16, #tpu.memory_space<vmem>>, vector<8x352xbf16>
    tpu.vector_store %arg8[%c96, %c0_40], %37 {strides = array<i32>} : memref<392x352xbf16, #tpu.memory_space<vmem>>, vector<8x352xbf16>,
    %c0_41 = arith.constant 0 : index
    %c0_42 = arith.constant 0 : index
    %c28 = arith.constant 28 : index
    %39 = vector.load %arg2[%c0_41, %c0_42, %c28] : memref<1x8x506xbf16, #tpu.memory_space<vmem>>, vector<1x8x352xbf16>
    %40 = vector.shape_cast %39 : vector<1x8x352xbf16> to vector<8x352xbf16>
    %c104 = arith.constant 104 : index
    %c0_43 = arith.constant 0 : index
    %41 = vector.load %arg8[%c104, %c0_43] : memref<392x352xbf16, #tpu.memory_space<vmem>>, vector<8x352xbf16>
    tpu.vector_store %arg8[%c104, %c0_43], %40 {strides = array<i32>} : memref<392x352xbf16, #tpu.memory_space<vmem>>, vector<8x352xbf16>,
    %c0_44 = arith.constant 0 : index
    %c0_45 = arith.constant 0 : index
    %c44 = arith.constant 44 : index
    %42 = vector.load %arg2[%c0_44, %c0_45, %c44] : memref<1x8x506xbf16, #tpu.memory_space<vmem>>, vector<1x8x352xbf16>
    %43 = vector.shape_cast %42 : vector<1x8x352xbf16> to vector<8x352xbf16>
    %c112 = arith.constant 112 : index
    %c0_46 = arith.constant 0 : index
    %44 = vector.load %arg8[%c112, %c0_46] : memref<392x352xbf16, #tpu.memory_space<vmem>>, vector<8x352xbf16>
    tpu.vector_store %arg8[%c112, %c0_46], %43 {strides = array<i32>} : memref<392x352xbf16, #tpu.memory_space<vmem>>, vector<8x352xbf16>,
    %c0_47 = arith.constant 0 : index
    %c0_48 = arith.constant 0 : index
    %c45 = arith.constant 45 : index
    %45 = vector.load %arg2[%c0_47, %c0_48, %c45] : memref<1x8x506xbf16, #tpu.memory_space<vmem>>, vector<1x8x352xbf16>
    %46 = vector.shape_cast %45 : vector<1x8x352xbf16> to vector<8x352xbf16>
    %c120 = arith.constant 120 : index
    %c0_49 = arith.constant 0 : index
    %47 = vector.load %arg8[%c120, %c0_49] : memref<392x352xbf16, #tpu.memory_space<vmem>>, vector<8x352xbf16>
    tpu.vector_store %arg8[%c120, %c0_49], %46 {strides = array<i32>} : memref<392x352xbf16, #tpu.memory_space<vmem>>, vector<8x352xbf16>,
    %c0_50 = arith.constant 0 : index
    %c0_51 = arith.constant 0 : index
    %c46 = arith.constant 46 : index
    %48 = vector.load %arg2[%c0_50, %c0_51, %c46] : memref<1x8x506xbf16, #tpu.memory_space<vmem>>, vector<1x8x352xbf16>
    %49 = vector.shape_cast %48 : vector<1x8x352xbf16> to vector<8x352xbf16>
    %c128 = arith.constant 128 : index
    %c0_52 = arith.constant 0 : index
    %50 = vector.load %arg8[%c128, %c0_52] : memref<392x352xbf16, #tpu.memory_space<vmem>>, vector<8x352xbf16>
    tpu.vector_store %arg8[%c128, %c0_52], %49 {strides = array<i32>} : memref<392x352xbf16, #tpu.memory_space<vmem>>, vector<8x352xbf16>,
    %c0_53 = arith.constant 0 : index
    %c0_54 = arith.constant 0 : index
    %c47 = arith.constant 47 : index
    %51 = vector.load %arg2[%c0_53, %c0_54, %c47] : memref<1x8x506xbf16, #tpu.memory_space<vmem>>, vector<1x8x352xbf16>
    %52 = vector.shape_cast %51 : vector<1x8x352xbf16> to vector<8x352xbf16>
    %c136 = arith.constant 136 : index
    %c0_55 = arith.constant 0 : index
    %53 = vector.load %arg8[%c136, %c0_55] : memref<392x352xbf16, #tpu.memory_space<vmem>>, vector<8x352xbf16>
    tpu.vector_store %arg8[%c136, %c0_55], %52 {strides = array<i32>} : memref<392x352xbf16, #tpu.memory_space<vmem>>, vector<8x352xbf16>,
    %c0_56 = arith.constant 0 : index
    %c0_57 = arith.constant 0 : index
    %c48_58 = arith.constant 48 : index
    %54 = vector.load %arg2[%c0_56, %c0_57, %c48_58] : memref<1x8x506xbf16, #tpu.memory_space<vmem>>, vector<1x8x352xbf16>
    %55 = vector.shape_cast %54 : vector<1x8x352xbf16> to vector<8x352xbf16>
    %c144 = arith.constant 144 : index
    %c0_59 = arith.constant 0 : index
    %56 = vector.load %arg8[%c144, %c0_59] : memref<392x352xbf16, #tpu.memory_space<vmem>>, vector<8x352xbf16>
    tpu.vector_store %arg8[%c144, %c0_59], %55 {strides = array<i32>} : memref<392x352xbf16, #tpu.memory_space<vmem>>, vector<8x352xbf16>,
    %c0_60 = arith.constant 0 : index
    %c0_61 = arith.constant 0 : index
    %c49 = arith.constant 49 : index
    %57 = vector.load %arg2[%c0_60, %c0_61, %c49] : memref<1x8x506xbf16, #tpu.memory_space<vmem>>, vector<1x8x352xbf16>
    %58 = vector.shape_cast %57 : vector<1x8x352xbf16> to vector<8x352xbf16>
    %c152 = arith.constant 152 : index
    %c0_62 = arith.constant 0 : index
    %59 = vector.load %arg8[%c152, %c0_62] : memref<392x352xbf16, #tpu.memory_space<vmem>>, vector<8x352xbf16>
    tpu.vector_store %arg8[%c152, %c0_62], %58 {strides = array<i32>} : memref<392x352xbf16, #tpu.memory_space<vmem>>, vector<8x352xbf16>,
    %c0_63 = arith.constant 0 : index
    %c0_64 = arith.constant 0 : index
    %c50 = arith.constant 50 : index
    %60 = vector.load %arg2[%c0_63, %c0_64, %c50] : memref<1x8x506xbf16, #tpu.memory_space<vmem>>, vector<1x8x352xbf16>
    %61 = vector.shape_cast %60 : vector<1x8x352xbf16> to vector<8x352xbf16>
    %c160 = arith.constant 160 : index
    %c0_65 = arith.constant 0 : index
    %62 = vector.load %arg8[%c160, %c0_65] : memref<392x352xbf16, #tpu.memory_space<vmem>>, vector<8x352xbf16>
    tpu.vector_store %arg8[%c160, %c0_65], %61 {strides = array<i32>} : memref<392x352xbf16, #tpu.memory_space<vmem>>, vector<8x352xbf16>,
    %c0_66 = arith.constant 0 : index
    %c0_67 = arith.constant 0 : index
    %c66 = arith.constant 66 : index
    %63 = vector.load %arg2[%c0_66, %c0_67, %c66] : memref<1x8x506xbf16, #tpu.memory_space<vmem>>, vector<1x8x352xbf16>
    %64 = vector.shape_cast %63 : vector<1x8x352xbf16> to vector<8x352xbf16>
    %c168 = arith.constant 168 : index
    %c0_68 = arith.constant 0 : index
    %65 = vector.load %arg8[%c168, %c0_68] : memref<392x352xbf16, #tpu.memory_space<vmem>>, vector<8x352xbf16>
    tpu.vector_store %arg8[%c168, %c0_68], %64 {strides = array<i32>} : memref<392x352xbf16, #tpu.memory_space<vmem>>, vector<8x352xbf16>,
    %c0_69 = arith.constant 0 : index
    %c0_70 = arith.constant 0 : index
    %c67 = arith.constant 67 : index
    %66 = vector.load %arg2[%c0_69, %c0_70, %c67] : memref<1x8x506xbf16, #tpu.memory_space<vmem>>, vector<1x8x352xbf16>
    %67 = vector.shape_cast %66 : vector<1x8x352xbf16> to vector<8x352xbf16>
    %c176 = arith.constant 176 : index
    %c0_71 = arith.constant 0 : index
    %68 = vector.load %arg8[%c176, %c0_71] : memref<392x352xbf16, #tpu.memory_space<vmem>>, vector<8x352xbf16>
    tpu.vector_store %arg8[%c176, %c0_71], %67 {strides = array<i32>} : memref<392x352xbf16, #tpu.memory_space<vmem>>, vector<8x352xbf16>,
    %c0_72 = arith.constant 0 : index
    %c0_73 = arith.constant 0 : index
    %c68 = arith.constant 68 : index
    %69 = vector.load %arg2[%c0_72, %c0_73, %c68] : memref<1x8x506xbf16, #tpu.memory_space<vmem>>, vector<1x8x352xbf16>
    %70 = vector.shape_cast %69 : vector<1x8x352xbf16> to vector<8x352xbf16>
    %c184 = arith.constant 184 : index
    %c0_74 = arith.constant 0 : index
    %71 = vector.load %arg8[%c184, %c0_74] : memref<392x352xbf16, #tpu.memory_space<vmem>>, vector<8x352xbf16>
    tpu.vector_store %arg8[%c184, %c0_74], %70 {strides = array<i32>} : memref<392x352xbf16, #tpu.memory_space<vmem>>, vector<8x352xbf16>,
    %c0_75 = arith.constant 0 : index
    %c0_76 = arith.constant 0 : index
    %c69 = arith.constant 69 : index
    %72 = vector.load %arg2[%c0_75, %c0_76, %c69] : memref<1x8x506xbf16, #tpu.memory_space<vmem>>, vector<1x8x352xbf16>
    %73 = vector.shape_cast %72 : vector<1x8x352xbf16> to vector<8x352xbf16>
    %c192 = arith.constant 192 : index
    %c0_77 = arith.constant 0 : index
    %74 = vector.load %arg8[%c192, %c0_77] : memref<392x352xbf16, #tpu.memory_space<vmem>>, vector<8x352xbf16>
    tpu.vector_store %arg8[%c192, %c0_77], %73 {strides = array<i32>} : memref<392x352xbf16, #tpu.memory_space<vmem>>, vector<8x352xbf16>,
    %c0_78 = arith.constant 0 : index
    %c0_79 = arith.constant 0 : index
    %c70 = arith.constant 70 : index
    %75 = vector.load %arg2[%c0_78, %c0_79, %c70] : memref<1x8x506xbf16, #tpu.memory_space<vmem>>, vector<1x8x352xbf16>
    %76 = vector.shape_cast %75 : vector<1x8x352xbf16> to vector<8x352xbf16>
    %c200 = arith.constant 200 : index
    %c0_80 = arith.constant 0 : index
    %77 = vector.load %arg8[%c200, %c0_80] : memref<392x352xbf16, #tpu.memory_space<vmem>>, vector<8x352xbf16>
    tpu.vector_store %arg8[%c200, %c0_80], %76 {strides = array<i32>} : memref<392x352xbf16, #tpu.memory_space<vmem>>, vector<8x352xbf16>,
    %c0_81 = arith.constant 0 : index
    %c0_82 = arith.constant 0 : index
    %c71 = arith.constant 71 : index
    %78 = vector.load %arg2[%c0_81, %c0_82, %c71] : memref<1x8x506xbf16, #tpu.memory_space<vmem>>, vector<1x8x352xbf16>
    %79 = vector.shape_cast %78 : vector<1x8x352xbf16> to vector<8x352xbf16>
    %c208 = arith.constant 208 : index
    %c0_83 = arith.constant 0 : index
    %80 = vector.load %arg8[%c208, %c0_83] : memref<392x352xbf16, #tpu.memory_space<vmem>>, vector<8x352xbf16>
    tpu.vector_store %arg8[%c208, %c0_83], %79 {strides = array<i32>} : memref<392x352xbf16, #tpu.memory_space<vmem>>, vector<8x352xbf16>,
    %c0_84 = arith.constant 0 : index
    %c0_85 = arith.constant 0 : index
    %c72_86 = arith.constant 72 : index
    %81 = vector.load %arg2[%c0_84, %c0_85, %c72_86] : memref<1x8x506xbf16, #tpu.memory_space<vmem>>, vector<1x8x352xbf16>
    %82 = vector.shape_cast %81 : vector<1x8x352xbf16> to vector<8x352xbf16>
    %c216 = arith.constant 216 : index
    %c0_87 = arith.constant 0 : index
    %83 = vector.load %arg8[%c216, %c0_87] : memref<392x352xbf16, #tpu.memory_space<vmem>>, vector<8x352xbf16>
    tpu.vector_store %arg8[%c216, %c0_87], %82 {strides = array<i32>} : memref<392x352xbf16, #tpu.memory_space<vmem>>, vector<8x352xbf16>,
    %c0_88 = arith.constant 0 : index
    %c0_89 = arith.constant 0 : index
    %c88_90 = arith.constant 88 : index
    %84 = vector.load %arg2[%c0_88, %c0_89, %c88_90] : memref<1x8x506xbf16, #tpu.memory_space<vmem>>, vector<1x8x352xbf16>
    %85 = vector.shape_cast %84 : vector<1x8x352xbf16> to vector<8x352xbf16>
    %c224 = arith.constant 224 : index
    %c0_91 = arith.constant 0 : index
    %86 = vector.load %arg8[%c224, %c0_91] : memref<392x352xbf16, #tpu.memory_space<vmem>>, vector<8x352xbf16>
    tpu.vector_store %arg8[%c224, %c0_91], %85 {strides = array<i32>} : memref<392x352xbf16, #tpu.memory_space<vmem>>, vector<8x352xbf16>,
    %c0_92 = arith.constant 0 : index
    %c0_93 = arith.constant 0 : index
    %c89 = arith.constant 89 : index
    %87 = vector.load %arg2[%c0_92, %c0_93, %c89] : memref<1x8x506xbf16, #tpu.memory_space<vmem>>, vector<1x8x352xbf16>
    %88 = vector.shape_cast %87 : vector<1x8x352xbf16> to vector<8x352xbf16>
    %c232 = arith.constant 232 : index
    %c0_94 = arith.constant 0 : index
    %89 = vector.load %arg8[%c232, %c0_94] : memref<392x352xbf16, #tpu.memory_space<vmem>>, vector<8x352xbf16>
    tpu.vector_store %arg8[%c232, %c0_94], %88 {strides = array<i32>} : memref<392x352xbf16, #tpu.memory_space<vmem>>, vector<8x352xbf16>,
    %c0_95 = arith.constant 0 : index
    %c0_96 = arith.constant 0 : index
    %c90 = arith.constant 90 : index
    %90 = vector.load %arg2[%c0_95, %c0_96, %c90] : memref<1x8x506xbf16, #tpu.memory_space<vmem>>, vector<1x8x352xbf16>
    %91 = vector.shape_cast %90 : vector<1x8x352xbf16> to vector<8x352xbf16>
    %c240 = arith.constant 240 : index
    %c0_97 = arith.constant 0 : index
    %92 = vector.load %arg8[%c240, %c0_97] : memref<392x352xbf16, #tpu.memory_space<vmem>>, vector<8x352xbf16>
    tpu.vector_store %arg8[%c240, %c0_97], %91 {strides = array<i32>} : memref<392x352xbf16, #tpu.memory_space<vmem>>, vector<8x352xbf16>,
    %c0_98 = arith.constant 0 : index
    %c0_99 = arith.constant 0 : index
    %c91 = arith.constant 91 : index
    %93 = vector.load %arg2[%c0_98, %c0_99, %c91] : memref<1x8x506xbf16, #tpu.memory_space<vmem>>, vector<1x8x352xbf16>
    %94 = vector.shape_cast %93 : vector<1x8x352xbf16> to vector<8x352xbf16>
    %c248 = arith.constant 248 : index
    %c0_100 = arith.constant 0 : index
    %95 = vector.load %arg8[%c248, %c0_100] : memref<392x352xbf16, #tpu.memory_space<vmem>>, vector<8x352xbf16>
    tpu.vector_store %arg8[%c248, %c0_100], %94 {strides = array<i32>} : memref<392x352xbf16, #tpu.memory_space<vmem>>, vector<8x352xbf16>,
    %c0_101 = arith.constant 0 : index
    %c0_102 = arith.constant 0 : index
    %c92 = arith.constant 92 : index
    %96 = vector.load %arg2[%c0_101, %c0_102, %c92] : memref<1x8x506xbf16, #tpu.memory_space<vmem>>, vector<1x8x352xbf16>
    %97 = vector.shape_cast %96 : vector<1x8x352xbf16> to vector<8x352xbf16>
    %c256 = arith.constant 256 : index
    %c0_103 = arith.constant 0 : index
    %98 = vector.load %arg8[%c256, %c0_103] : memref<392x352xbf16, #tpu.memory_space<vmem>>, vector<8x352xbf16>
    tpu.vector_store %arg8[%c256, %c0_103], %97 {strides = array<i32>} : memref<392x352xbf16, #tpu.memory_space<vmem>>, vector<8x352xbf16>,
    %c0_104 = arith.constant 0 : index
    %c0_105 = arith.constant 0 : index
    %c93 = arith.constant 93 : index
    %99 = vector.load %arg2[%c0_104, %c0_105, %c93] : memref<1x8x506xbf16, #tpu.memory_space<vmem>>, vector<1x8x352xbf16>
    %100 = vector.shape_cast %99 : vector<1x8x352xbf16> to vector<8x352xbf16>
    %c264 = arith.constant 264 : index
    %c0_106 = arith.constant 0 : index
    %101 = vector.load %arg8[%c264, %c0_106] : memref<392x352xbf16, #tpu.memory_space<vmem>>, vector<8x352xbf16>
    tpu.vector_store %arg8[%c264, %c0_106], %100 {strides = array<i32>} : memref<392x352xbf16, #tpu.memory_space<vmem>>, vector<8x352xbf16>,
    %c0_107 = arith.constant 0 : index
    %c0_108 = arith.constant 0 : index
    %c94 = arith.constant 94 : index
    %102 = vector.load %arg2[%c0_107, %c0_108, %c94] : memref<1x8x506xbf16, #tpu.memory_space<vmem>>, vector<1x8x352xbf16>
    %103 = vector.shape_cast %102 : vector<1x8x352xbf16> to vector<8x352xbf16>
    %c272 = arith.constant 272 : index
    %c0_109 = arith.constant 0 : index
    %104 = vector.load %arg8[%c272, %c0_109] : memref<392x352xbf16, #tpu.memory_space<vmem>>, vector<8x352xbf16>
    tpu.vector_store %arg8[%c272, %c0_109], %103 {strides = array<i32>} : memref<392x352xbf16, #tpu.memory_space<vmem>>, vector<8x352xbf16>,
    %c0_110 = arith.constant 0 : index
    %c0_111 = arith.constant 0 : index
    %c110 = arith.constant 110 : index
    %105 = vector.load %arg2[%c0_110, %c0_111, %c110] : memref<1x8x506xbf16, #tpu.memory_space<vmem>>, vector<1x8x352xbf16>
    %106 = vector.shape_cast %105 : vector<1x8x352xbf16> to vector<8x352xbf16>
    %c280 = arith.constant 280 : index
    %c0_112 = arith.constant 0 : index
    %107 = vector.load %arg8[%c280, %c0_112] : memref<392x352xbf16, #tpu.memory_space<vmem>>, vector<8x352xbf16>
    tpu.vector_store %arg8[%c280, %c0_112], %106 {strides = array<i32>} : memref<392x352xbf16, #tpu.memory_space<vmem>>, vector<8x352xbf16>,
    %c0_113 = arith.constant 0 : index
    %c0_114 = arith.constant 0 : index
    %c111 = arith.constant 111 : index
    %108 = vector.load %arg2[%c0_113, %c0_114, %c111] : memref<1x8x506xbf16, #tpu.memory_space<vmem>>, vector<1x8x352xbf16>
    %109 = vector.shape_cast %108 : vector<1x8x352xbf16> to vector<8x352xbf16>
    %c288 = arith.constant 288 : index
    %c0_115 = arith.constant 0 : index
    %110 = vector.load %arg8[%c288, %c0_115] : memref<392x352xbf16, #tpu.memory_space<vmem>>, vector<8x352xbf16>
    tpu.vector_store %arg8[%c288, %c0_115], %109 {strides = array<i32>} : memref<392x352xbf16, #tpu.memory_space<vmem>>, vector<8x352xbf16>,
    %c0_116 = arith.constant 0 : index
    %c0_117 = arith.constant 0 : index
    %c112_118 = arith.constant 112 : index
    %111 = vector.load %arg2[%c0_116, %c0_117, %c112_118] : memref<1x8x506xbf16, #tpu.memory_space<vmem>>, vector<1x8x352xbf16>
    %112 = vector.shape_cast %111 : vector<1x8x352xbf16> to vector<8x352xbf16>
    %c296 = arith.constant 296 : index
    %c0_119 = arith.constant 0 : index
    %113 = vector.load %arg8[%c296, %c0_119] : memref<392x352xbf16, #tpu.memory_space<vmem>>, vector<8x352xbf16>
    tpu.vector_store %arg8[%c296, %c0_119], %112 {strides = array<i32>} : memref<392x352xbf16, #tpu.memory_space<vmem>>, vector<8x352xbf16>,
    %c0_120 = arith.constant 0 : index
    %c0_121 = arith.constant 0 : index
    %c113 = arith.constant 113 : index
    %114 = vector.load %arg2[%c0_120, %c0_121, %c113] : memref<1x8x506xbf16, #tpu.memory_space<vmem>>, vector<1x8x352xbf16>
    %115 = vector.shape_cast %114 : vector<1x8x352xbf16> to vector<8x352xbf16>
    %c304 = arith.constant 304 : index
    %c0_122 = arith.constant 0 : index
    %116 = vector.load %arg8[%c304, %c0_122] : memref<392x352xbf16, #tpu.memory_space<vmem>>, vector<8x352xbf16>
    tpu.vector_store %arg8[%c304, %c0_122], %115 {strides = array<i32>} : memref<392x352xbf16, #tpu.memory_space<vmem>>, vector<8x352xbf16>,
    %c0_123 = arith.constant 0 : index
    %c0_124 = arith.constant 0 : index
    %c114 = arith.constant 114 : index
    %117 = vector.load %arg2[%c0_123, %c0_124, %c114] : memref<1x8x506xbf16, #tpu.memory_space<vmem>>, vector<1x8x352xbf16>
    %118 = vector.shape_cast %117 : vector<1x8x352xbf16> to vector<8x352xbf16>
    %c312 = arith.constant 312 : index
    %c0_125 = arith.constant 0 : index
    %119 = vector.load %arg8[%c312, %c0_125] : memref<392x352xbf16, #tpu.memory_space<vmem>>, vector<8x352xbf16>
    tpu.vector_store %arg8[%c312, %c0_125], %118 {strides = array<i32>} : memref<392x352xbf16, #tpu.memory_space<vmem>>, vector<8x352xbf16>,
    %c0_126 = arith.constant 0 : index
    %c0_127 = arith.constant 0 : index
    %c115 = arith.constant 115 : index
    %120 = vector.load %arg2[%c0_126, %c0_127, %c115] : memref<1x8x506xbf16, #tpu.memory_space<vmem>>, vector<1x8x352xbf16>
    %121 = vector.shape_cast %120 : vector<1x8x352xbf16> to vector<8x352xbf16>
    %c320 = arith.constant 320 : index
    %c0_128 = arith.constant 0 : index
    %122 = vector.load %arg8[%c320, %c0_128] : memref<392x352xbf16, #tpu.memory_space<vmem>>, vector<8x352xbf16>
    tpu.vector_store %arg8[%c320, %c0_128], %121 {strides = array<i32>} : memref<392x352xbf16, #tpu.memory_space<vmem>>, vector<8x352xbf16>,
    %c0_129 = arith.constant 0 : index
    %c0_130 = arith.constant 0 : index
    %c116 = arith.constant 116 : index
    %123 = vector.load %arg2[%c0_129, %c0_130, %c116] : memref<1x8x506xbf16, #tpu.memory_space<vmem>>, vector<1x8x352xbf16>
    %124 = vector.shape_cast %123 : vector<1x8x352xbf16> to vector<8x352xbf16>
    %c328 = arith.constant 328 : index
    %c0_131 = arith.constant 0 : index
    %125 = vector.load %arg8[%c328, %c0_131] : memref<392x352xbf16, #tpu.memory_space<vmem>>, vector<8x352xbf16>
    tpu.vector_store %arg8[%c328, %c0_131], %124 {strides = array<i32>} : memref<392x352xbf16, #tpu.memory_space<vmem>>, vector<8x352xbf16>,
    %c0_132 = arith.constant 0 : index
    %c0_133 = arith.constant 0 : index
    %c132 = arith.constant 132 : index
    %126 = vector.load %arg2[%c0_132, %c0_133, %c132] : memref<1x8x506xbf16, #tpu.memory_space<vmem>>, vector<1x8x352xbf16>
    %127 = vector.shape_cast %126 : vector<1x8x352xbf16> to vector<8x352xbf16>
    %c336 = arith.constant 336 : index
    %c0_134 = arith.constant 0 : index
    %128 = vector.load %arg8[%c336, %c0_134] : memref<392x352xbf16, #tpu.memory_space<vmem>>, vector<8x352xbf16>
    tpu.vector_store %arg8[%c336, %c0_134], %127 {strides = array<i32>} : memref<392x352xbf16, #tpu.memory_space<vmem>>, vector<8x352xbf16>,
    %c0_135 = arith.constant 0 : index
    %c0_136 = arith.constant 0 : index
    %c133 = arith.constant 133 : index
    %129 = vector.load %arg2[%c0_135, %c0_136, %c133] : memref<1x8x506xbf16, #tpu.memory_space<vmem>>, vector<1x8x352xbf16>
    %130 = vector.shape_cast %129 : vector<1x8x352xbf16> to vector<8x352xbf16>
    %c344 = arith.constant 344 : index
    %c0_137 = arith.constant 0 : index
    %131 = vector.load %arg8[%c344, %c0_137] : memref<392x352xbf16, #tpu.memory_space<vmem>>, vector<8x352xbf16>
    tpu.vector_store %arg8[%c344, %c0_137], %130 {strides = array<i32>} : memref<392x352xbf16, #tpu.memory_space<vmem>>, vector<8x352xbf16>,
    %c0_138 = arith.constant 0 : index
    %c0_139 = arith.constant 0 : index
    %c134 = arith.constant 134 : index
    %132 = vector.load %arg2[%c0_138, %c0_139, %c134] : memref<1x8x506xbf16, #tpu.memory_space<vmem>>, vector<1x8x352xbf16>
    %133 = vector.shape_cast %132 : vector<1x8x352xbf16> to vector<8x352xbf16>
    %c352 = arith.constant 352 : index
    %c0_140 = arith.constant 0 : index
    %134 = vector.load %arg8[%c352, %c0_140] : memref<392x352xbf16, #tpu.memory_space<vmem>>, vector<8x352xbf16>
    tpu.vector_store %arg8[%c352, %c0_140], %133 {strides = array<i32>} : memref<392x352xbf16, #tpu.memory_space<vmem>>, vector<8x352xbf16>,
    %c0_141 = arith.constant 0 : index
    %c0_142 = arith.constant 0 : index
    %c135 = arith.constant 135 : index
    %135 = vector.load %arg2[%c0_141, %c0_142, %c135] : memref<1x8x506xbf16, #tpu.memory_space<vmem>>, vector<1x8x352xbf16>
    %136 = vector.shape_cast %135 : vector<1x8x352xbf16> to vector<8x352xbf16>
    %c360 = arith.constant 360 : index
    %c0_143 = arith.constant 0 : index
    %137 = vector.load %arg8[%c360, %c0_143] : memref<392x352xbf16, #tpu.memory_space<vmem>>, vector<8x352xbf16>
    tpu.vector_store %arg8[%c360, %c0_143], %136 {strides = array<i32>} : memref<392x352xbf16, #tpu.memory_space<vmem>>, vector<8x352xbf16>,
    %c0_144 = arith.constant 0 : index
    %c0_145 = arith.constant 0 : index
    %c136_146 = arith.constant 136 : index
    %138 = vector.load %arg2[%c0_144, %c0_145, %c136_146] : memref<1x8x506xbf16, #tpu.memory_space<vmem>>, vector<1x8x352xbf16>
    %139 = vector.shape_cast %138 : vector<1x8x352xbf16> to vector<8x352xbf16>
    %c368 = arith.constant 368 : index
    %c0_147 = arith.constant 0 : index
    %140 = vector.load %arg8[%c368, %c0_147] : memref<392x352xbf16, #tpu.memory_space<vmem>>, vector<8x352xbf16>
    tpu.vector_store %arg8[%c368, %c0_147], %139 {strides = array<i32>} : memref<392x352xbf16, #tpu.memory_space<vmem>>, vector<8x352xbf16>,
    %c0_148 = arith.constant 0 : index
    %c0_149 = arith.constant 0 : index
    %c137 = arith.constant 137 : index
    %141 = vector.load %arg2[%c0_148, %c0_149, %c137] : memref<1x8x506xbf16, #tpu.memory_space<vmem>>, vector<1x8x352xbf16>
    %142 = vector.shape_cast %141 : vector<1x8x352xbf16> to vector<8x352xbf16>
    %c376 = arith.constant 376 : index
    %c0_150 = arith.constant 0 : index
    %143 = vector.load %arg8[%c376, %c0_150] : memref<392x352xbf16, #tpu.memory_space<vmem>>, vector<8x352xbf16>
    tpu.vector_store %arg8[%c376, %c0_150], %142 {strides = array<i32>} : memref<392x352xbf16, #tpu.memory_space<vmem>>, vector<8x352xbf16>,
    %c0_151 = arith.constant 0 : index
    %c0_152 = arith.constant 0 : index
    %c138 = arith.constant 138 : index
    %144 = vector.load %arg2[%c0_151, %c0_152, %c138] : memref<1x8x506xbf16, #tpu.memory_space<vmem>>, vector<1x8x352xbf16>
    %145 = vector.shape_cast %144 : vector<1x8x352xbf16> to vector<8x352xbf16>
    %c384 = arith.constant 384 : index
    %c0_153 = arith.constant 0 : index
    %146 = vector.load %arg8[%c384, %c0_153] : memref<392x352xbf16, #tpu.memory_space<vmem>>, vector<8x352xbf16>
    tpu.vector_store %arg8[%c384, %c0_153], %145 {strides = array<i32>} : memref<392x352xbf16, #tpu.memory_space<vmem>>, vector<8x352xbf16>,
    %c0_154 = arith.constant 0 : index
    %c0_155 = arith.constant 0 : index
    %147 = vector.load %arg3[%c0_154, %c0_155] : memref<24x392xbf16, #tpu.memory_space<vmem>>, vector<24x392xbf16>
    %c0_156 = arith.constant 0 : index
    %c0_157 = arith.constant 0 : index
    %148 = vector.load %arg8[%c0_156, %c0_157] : memref<392x352xbf16, #tpu.memory_space<vmem>>, vector<392x352xbf16>
    %cst = arith.constant dense<0.000000e+00> : vector<24x352xf32>
    %149 = tpu.matmul %147, %148, %cst {dimension_numbers = #tpu.dot_dimension_numbers<[1], [0], [0], [1], [0, 0, 1, 1], [], []>} : vector<24x392xbf16>, vector<392x352xbf16>, vector<24x352xf32> -> vector<24x352xf32>
    %c0_158 = arith.constant 0 : index
    %c0_159 = arith.constant 0 : index
    %150 = vector.load %arg4[%c0_158, %c0_159] : memref<24x1xf32, #tpu.memory_space<vmem>>, vector<24x1xf32>
    %151 = vector.broadcast %150 : vector<24x1xf32> to vector<24x352xf32>
    %152 = arith.addf %149, %151 : vector<24x352xf32>
    %153 = arith.truncf %152 : vector<24x352xf32> to vector<24x352xbf16>
    %154 = vector.extract_strided_slice %153 {offsets = [0, 0], sizes = [24, 16], strides = [1, 1]} : vector<24x352xbf16> to vector<24x16xbf16>
    %c0_160 = arith.constant 0 : index
    %c0_161 = arith.constant 0 : index
    %c0_162 = arith.constant 0 : index
    %155 = vector.load %arg9[%c0_160, %c0_161, %c0_162] : memref<24x16x16xbf16, #tpu.memory_space<vmem>>, vector<24x1x16xbf16>
    %156 = vector.shape_cast %155 : vector<24x1x16xbf16> to vector<24x16xbf16>
    %157 = vector.shape_cast %154 : vector<24x16xbf16> to vector<24x1x16xbf16>
    tpu.vector_store %arg9[%c0_160, %c0_161, %c0_162], %157 {strides = array<i32>} : memref<24x16x16xbf16, #tpu.memory_space<vmem>>, vector<24x1x16xbf16>,
    %158 = vector.extract_strided_slice %153 {offsets = [0, 22], sizes = [24, 16], strides = [1, 1]} : vector<24x352xbf16> to vector<24x16xbf16>
    %c0_163 = arith.constant 0 : index
    %c1_164 = arith.constant 1 : index
    %c0_165 = arith.constant 0 : index
    %159 = vector.load %arg9[%c0_163, %c1_164, %c0_165] : memref<24x16x16xbf16, #tpu.memory_space<vmem>>, vector<24x1x16xbf16>
    %160 = vector.shape_cast %159 : vector<24x1x16xbf16> to vector<24x16xbf16>
    %161 = vector.shape_cast %158 : vector<24x16xbf16> to vector<24x1x16xbf16>
    tpu.vector_store %arg9[%c0_163, %c1_164, %c0_165], %161 {strides = array<i32>} : memref<24x16x16xbf16, #tpu.memory_space<vmem>>, vector<24x1x16xbf16>,
    %162 = vector.extract_strided_slice %153 {offsets = [0, 44], sizes = [24, 16], strides = [1, 1]} : vector<24x352xbf16> to vector<24x16xbf16>
    %c0_166 = arith.constant 0 : index
    %c2_167 = arith.constant 2 : index
    %c0_168 = arith.constant 0 : index
    %163 = vector.load %arg9[%c0_166, %c2_167, %c0_168] : memref<24x16x16xbf16, #tpu.memory_space<vmem>>, vector<24x1x16xbf16>
    %164 = vector.shape_cast %163 : vector<24x1x16xbf16> to vector<24x16xbf16>
    %165 = vector.shape_cast %162 : vector<24x16xbf16> to vector<24x1x16xbf16>
    tpu.vector_store %arg9[%c0_166, %c2_167, %c0_168], %165 {strides = array<i32>} : memref<24x16x16xbf16, #tpu.memory_space<vmem>>, vector<24x1x16xbf16>,
    %166 = vector.extract_strided_slice %153 {offsets = [0, 66], sizes = [24, 16], strides = [1, 1]} : vector<24x352xbf16> to vector<24x16xbf16>
    %c0_169 = arith.constant 0 : index
    %c3_170 = arith.constant 3 : index
    %c0_171 = arith.constant 0 : index
    %167 = vector.load %arg9[%c0_169, %c3_170, %c0_171] : memref<24x16x16xbf16, #tpu.memory_space<vmem>>, vector<24x1x16xbf16>
    %168 = vector.shape_cast %167 : vector<24x1x16xbf16> to vector<24x16xbf16>
    %169 = vector.shape_cast %166 : vector<24x16xbf16> to vector<24x1x16xbf16>
    tpu.vector_store %arg9[%c0_169, %c3_170, %c0_171], %169 {strides = array<i32>} : memref<24x16x16xbf16, #tpu.memory_space<vmem>>, vector<24x1x16xbf16>,
    %170 = vector.extract_strided_slice %153 {offsets = [0, 88], sizes = [24, 16], strides = [1, 1]} : vector<24x352xbf16> to vector<24x16xbf16>
    %c0_172 = arith.constant 0 : index
    %c4_173 = arith.constant 4 : index
    %c0_174 = arith.constant 0 : index
    %171 = vector.load %arg9[%c0_172, %c4_173, %c0_174] : memref<24x16x16xbf16, #tpu.memory_space<vmem>>, vector<24x1x16xbf16>
    %172 = vector.shape_cast %171 : vector<24x1x16xbf16> to vector<24x16xbf16>
    %173 = vector.shape_cast %170 : vector<24x16xbf16> to vector<24x1x16xbf16>
    tpu.vector_store %arg9[%c0_172, %c4_173, %c0_174], %173 {strides = array<i32>} : memref<24x16x16xbf16, #tpu.memory_space<vmem>>, vector<24x1x16xbf16>,
    %174 = vector.extract_strided_slice %153 {offsets = [0, 110], sizes = [24, 16], strides = [1, 1]} : vector<24x352xbf16> to vector<24x16xbf16>
    %c0_175 = arith.constant 0 : index
    %c5_176 = arith.constant 5 : index
    %c0_177 = arith.constant 0 : index
    %175 = vector.load %arg9[%c0_175, %c5_176, %c0_177] : memref<24x16x16xbf16, #tpu.memory_space<vmem>>, vector<24x1x16xbf16>
    %176 = vector.shape_cast %175 : vector<24x1x16xbf16> to vector<24x16xbf16>
    %177 = vector.shape_cast %174 : vector<24x16xbf16> to vector<24x1x16xbf16>
    tpu.vector_store %arg9[%c0_175, %c5_176, %c0_177], %177 {strides = array<i32>} : memref<24x16x16xbf16, #tpu.memory_space<vmem>>, vector<24x1x16xbf16>,
    %178 = vector.extract_strided_slice %153 {offsets = [0, 132], sizes = [24, 16], strides = [1, 1]} : vector<24x352xbf16> to vector<24x16xbf16>
    %c0_178 = arith.constant 0 : index
    %c6_179 = arith.constant 6 : index
    %c0_180 = arith.constant 0 : index
    %179 = vector.load %arg9[%c0_178, %c6_179, %c0_180] : memref<24x16x16xbf16, #tpu.memory_space<vmem>>, vector<24x1x16xbf16>
    %180 = vector.shape_cast %179 : vector<24x1x16xbf16> to vector<24x16xbf16>
    %181 = vector.shape_cast %178 : vector<24x16xbf16> to vector<24x1x16xbf16>
    tpu.vector_store %arg9[%c0_178, %c6_179, %c0_180], %181 {strides = array<i32>} : memref<24x16x16xbf16, #tpu.memory_space<vmem>>, vector<24x1x16xbf16>,
    %182 = vector.extract_strided_slice %153 {offsets = [0, 154], sizes = [24, 16], strides = [1, 1]} : vector<24x352xbf16> to vector<24x16xbf16>
    %c0_181 = arith.constant 0 : index
    %c7 = arith.constant 7 : index
    %c0_182 = arith.constant 0 : index
    %183 = vector.load %arg9[%c0_181, %c7, %c0_182] : memref<24x16x16xbf16, #tpu.memory_space<vmem>>, vector<24x1x16xbf16>
    %184 = vector.shape_cast %183 : vector<24x1x16xbf16> to vector<24x16xbf16>
    %185 = vector.shape_cast %182 : vector<24x16xbf16> to vector<24x1x16xbf16>
    tpu.vector_store %arg9[%c0_181, %c7, %c0_182], %185 {strides = array<i32>} : memref<24x16x16xbf16, #tpu.memory_space<vmem>>, vector<24x1x16xbf16>,
    %186 = vector.extract_strided_slice %153 {offsets = [0, 176], sizes = [24, 16], strides = [1, 1]} : vector<24x352xbf16> to vector<24x16xbf16>
    %c0_183 = arith.constant 0 : index
    %c8_184 = arith.constant 8 : index
    %c0_185 = arith.constant 0 : index
    %187 = vector.load %arg9[%c0_183, %c8_184, %c0_185] : memref<24x16x16xbf16, #tpu.memory_space<vmem>>, vector<24x1x16xbf16>
    %188 = vector.shape_cast %187 : vector<24x1x16xbf16> to vector<24x16xbf16>
    %189 = vector.shape_cast %186 : vector<24x16xbf16> to vector<24x1x16xbf16>
    tpu.vector_store %arg9[%c0_183, %c8_184, %c0_185], %189 {strides = array<i32>} : memref<24x16x16xbf16, #tpu.memory_space<vmem>>, vector<24x1x16xbf16>,
    %190 = vector.extract_strided_slice %153 {offsets = [0, 198], sizes = [24, 16], strides = [1, 1]} : vector<24x352xbf16> to vector<24x16xbf16>
    %c0_186 = arith.constant 0 : index
    %c9 = arith.constant 9 : index
    %c0_187 = arith.constant 0 : index
    %191 = vector.load %arg9[%c0_186, %c9, %c0_187] : memref<24x16x16xbf16, #tpu.memory_space<vmem>>, vector<24x1x16xbf16>
    %192 = vector.shape_cast %191 : vector<24x1x16xbf16> to vector<24x16xbf16>
    %193 = vector.shape_cast %190 : vector<24x16xbf16> to vector<24x1x16xbf16>
    tpu.vector_store %arg9[%c0_186, %c9, %c0_187], %193 {strides = array<i32>} : memref<24x16x16xbf16, #tpu.memory_space<vmem>>, vector<24x1x16xbf16>,
    %194 = vector.extract_strided_slice %153 {offsets = [0, 220], sizes = [24, 16], strides = [1, 1]} : vector<24x352xbf16> to vector<24x16xbf16>
    %c0_188 = arith.constant 0 : index
    %c10 = arith.constant 10 : index
    %c0_189 = arith.constant 0 : index
    %195 = vector.load %arg9[%c0_188, %c10, %c0_189] : memref<24x16x16xbf16, #tpu.memory_space<vmem>>, vector<24x1x16xbf16>
    %196 = vector.shape_cast %195 : vector<24x1x16xbf16> to vector<24x16xbf16>
    %197 = vector.shape_cast %194 : vector<24x16xbf16> to vector<24x1x16xbf16>
    tpu.vector_store %arg9[%c0_188, %c10, %c0_189], %197 {strides = array<i32>} : memref<24x16x16xbf16, #tpu.memory_space<vmem>>, vector<24x1x16xbf16>,
    %198 = vector.extract_strided_slice %153 {offsets = [0, 242], sizes = [24, 16], strides = [1, 1]} : vector<24x352xbf16> to vector<24x16xbf16>
    %c0_190 = arith.constant 0 : index
    %c11 = arith.constant 11 : index
    %c0_191 = arith.constant 0 : index
    %199 = vector.load %arg9[%c0_190, %c11, %c0_191] : memref<24x16x16xbf16, #tpu.memory_space<vmem>>, vector<24x1x16xbf16>
    %200 = vector.shape_cast %199 : vector<24x1x16xbf16> to vector<24x16xbf16>
    %201 = vector.shape_cast %198 : vector<24x16xbf16> to vector<24x1x16xbf16>
    tpu.vector_store %arg9[%c0_190, %c11, %c0_191], %201 {strides = array<i32>} : memref<24x16x16xbf16, #tpu.memory_space<vmem>>, vector<24x1x16xbf16>,
    %202 = vector.extract_strided_slice %153 {offsets = [0, 264], sizes = [24, 16], strides = [1, 1]} : vector<24x352xbf16> to vector<24x16xbf16>
    %c0_192 = arith.constant 0 : index
    %c12 = arith.constant 12 : index
    %c0_193 = arith.constant 0 : index
    %203 = vector.load %arg9[%c0_192, %c12, %c0_193] : memref<24x16x16xbf16, #tpu.memory_space<vmem>>, vector<24x1x16xbf16>
    %204 = vector.shape_cast %203 : vector<24x1x16xbf16> to vector<24x16xbf16>
    %205 = vector.shape_cast %202 : vector<24x16xbf16> to vector<24x1x16xbf16>
    tpu.vector_store %arg9[%c0_192, %c12, %c0_193], %205 {strides = array<i32>} : memref<24x16x16xbf16, #tpu.memory_space<vmem>>, vector<24x1x16xbf16>,
    %206 = vector.extract_strided_slice %153 {offsets = [0, 286], sizes = [24, 16], strides = [1, 1]} : vector<24x352xbf16> to vector<24x16xbf16>
    %c0_194 = arith.constant 0 : index
    %c13 = arith.constant 13 : index
    %c0_195 = arith.constant 0 : index
    %207 = vector.load %arg9[%c0_194, %c13, %c0_195] : memref<24x16x16xbf16, #tpu.memory_space<vmem>>, vector<24x1x16xbf16>
    %208 = vector.shape_cast %207 : vector<24x1x16xbf16> to vector<24x16xbf16>
    %209 = vector.shape_cast %206 : vector<24x16xbf16> to vector<24x1x16xbf16>
    tpu.vector_store %arg9[%c0_194, %c13, %c0_195], %209 {strides = array<i32>} : memref<24x16x16xbf16, #tpu.memory_space<vmem>>, vector<24x1x16xbf16>,
    %210 = vector.extract_strided_slice %153 {offsets = [0, 308], sizes = [24, 16], strides = [1, 1]} : vector<24x352xbf16> to vector<24x16xbf16>
    %c0_196 = arith.constant 0 : index
    %c14 = arith.constant 14 : index
    %c0_197 = arith.constant 0 : index
    %211 = vector.load %arg9[%c0_196, %c14, %c0_197] : memref<24x16x16xbf16, #tpu.memory_space<vmem>>, vector<24x1x16xbf16>
    %212 = vector.shape_cast %211 : vector<24x1x16xbf16> to vector<24x16xbf16>
    %213 = vector.shape_cast %210 : vector<24x16xbf16> to vector<24x1x16xbf16>
    tpu.vector_store %arg9[%c0_196, %c14, %c0_197], %213 {strides = array<i32>} : memref<24x16x16xbf16, #tpu.memory_space<vmem>>, vector<24x1x16xbf16>,
    %214 = vector.extract_strided_slice %153 {offsets = [0, 330], sizes = [24, 16], strides = [1, 1]} : vector<24x352xbf16> to vector<24x16xbf16>
    %c0_198 = arith.constant 0 : index
    %c15 = arith.constant 15 : index
    %c0_199 = arith.constant 0 : index
    %215 = vector.load %arg9[%c0_198, %c15, %c0_199] : memref<24x16x16xbf16, #tpu.memory_space<vmem>>, vector<24x1x16xbf16>
    %216 = vector.shape_cast %215 : vector<24x1x16xbf16> to vector<24x16xbf16>
    %217 = vector.shape_cast %214 : vector<24x16xbf16> to vector<24x1x16xbf16>
    tpu.vector_store %arg9[%c0_198, %c15, %c0_199], %217 {strides = array<i32>} : memref<24x16x16xbf16, #tpu.memory_space<vmem>>, vector<24x1x16xbf16>,
    %c0_200 = arith.constant 0 : index
    %c0_201 = arith.constant 0 : index
    %c0_202 = arith.constant 0 : index
    %218 = vector.load %arg9[%c0_200, %c0_201, %c0_202] : memref<24x16x16xbf16, #tpu.memory_space<vmem>>, vector<24x16x16xbf16>
    %219 = vector.extract_strided_slice %218 {offsets = [0, 0, 0], sizes = [8, 16, 16], strides = [1, 1, 1]} : vector<24x16x16xbf16> to vector<8x16x16xbf16>
    %220 = vector.extract_strided_slice %218 {offsets = [8, 0, 0], sizes = [8, 16, 16], strides = [1, 1, 1]} : vector<24x16x16xbf16> to vector<8x16x16xbf16>
    %221 = vector.extract_strided_slice %218 {offsets = [16, 0, 0], sizes = [8, 16, 16], strides = [1, 1, 1]} : vector<24x16x16xbf16> to vector<8x16x16xbf16>
    %cst_203 = arith.constant dense<0.000000e+00> : vector<8x16x16xf32>
    %222 = tpu.matmul %219, %220, %cst_203 {dimension_numbers = #tpu.dot_dimension_numbers<[2], [2], [1], [1], [0, 0, 0, 1, 1, 1], [0], [0]>} : vector<8x16x16xbf16>, vector<8x16x16xbf16>, vector<8x16x16xf32> -> vector<8x16x16xf32>
    %cst_204 = arith.constant 0.353553385 : f32
    %223 = vector.broadcast %cst_204 : f32 to vector<8x16x16xf32>
    %224 = arith.mulf %222, %223 : vector<8x16x16xf32>
    %cst_205 = arith.constant dense<0xFF800000> : vector<8x16xf32>
    %225 = vector.multi_reduction <maximumf>, %224, %cst_205 [2] : vector<8x16x16xf32> to vector<8x16xf32>
    %226 = vector.shape_cast %225 : vector<8x16xf32> to vector<8x16x1xf32>
    %227 = vector.broadcast %226 : vector<8x16x1xf32> to vector<8x16x16xf32>
    %228 = arith.subf %224, %227 : vector<8x16x16xf32>
    %229 = math.exp %228 : vector<8x16x16xf32>
    %cst_206 = arith.constant dense<0.000000e+00> : vector<8x16xf32>
    %230 = vector.multi_reduction <add>, %229, %cst_206 [2] : vector<8x16x16xf32> to vector<8x16xf32>
    %231 = vector.shape_cast %230 : vector<8x16xf32> to vector<8x16x1xf32>
    %232 = tpu.reciprocal %231 {approx = true} : vector<8x16x1xf32> -> vector<8x16x1xf32>
    %233 = vector.broadcast %232 : vector<8x16x1xf32> to vector<8x16x16xf32>
    %234 = arith.mulf %229, %233 : vector<8x16x16xf32>
    %235 = arith.truncf %234 : vector<8x16x16xf32> to vector<8x16x16xbf16>
    %cst_207 = arith.constant dense<0.000000e+00> : vector<8x16x16xf32>
    %236 = tpu.matmul %235, %221, %cst_207 {dimension_numbers = #tpu.dot_dimension_numbers<[2], [1], [1], [2], [0, 0, 0, 1, 1, 2], [0], [0]>} : vector<8x16x16xbf16>, vector<8x16x16xbf16>, vector<8x16x16xf32> -> vector<8x16x16xf32>
    %237 = vector.extract_strided_slice %236 {offsets = [0, 0, 0], sizes = [8, 1, 16], strides = [1, 1, 1]} : vector<8x16x16xf32> to vector<8x1x16xf32>
    %238 = vector.shape_cast %237 : vector<8x1x16xf32> to vector<8x16xf32>
    %c0_208 = arith.constant 0 : index
    %c0_209 = arith.constant 0 : index
    %239 = vector.load %arg10[%c0_208, %c0_209] : memref<8x256xf32, #tpu.memory_space<vmem>>, vector<8x16xf32>
    tpu.vector_store %arg10[%c0_208, %c0_209], %238 {strides = array<i32>} : memref<8x256xf32, #tpu.memory_space<vmem>>, vector<8x16xf32>,
    %240 = vector.extract_strided_slice %236 {offsets = [0, 1, 0], sizes = [8, 1, 16], strides = [1, 1, 1]} : vector<8x16x16xf32> to vector<8x1x16xf32>
    %241 = vector.shape_cast %240 : vector<8x1x16xf32> to vector<8x16xf32>
    %c0_210 = arith.constant 0 : index
    %c16_211 = arith.constant 16 : index
    %242 = vector.load %arg10[%c0_210, %c16_211] : memref<8x256xf32, #tpu.memory_space<vmem>>, vector<8x16xf32>
    tpu.vector_store %arg10[%c0_210, %c16_211], %241 {strides = array<i32>} : memref<8x256xf32, #tpu.memory_space<vmem>>, vector<8x16xf32>,
    %243 = vector.extract_strided_slice %236 {offsets = [0, 2, 0], sizes = [8, 1, 16], strides = [1, 1, 1]} : vector<8x16x16xf32> to vector<8x1x16xf32>
    %244 = vector.shape_cast %243 : vector<8x1x16xf32> to vector<8x16xf32>
    %c0_212 = arith.constant 0 : index
    %c32_213 = arith.constant 32 : index
    %245 = vector.load %arg10[%c0_212, %c32_213] : memref<8x256xf32, #tpu.memory_space<vmem>>, vector<8x16xf32>
    tpu.vector_store %arg10[%c0_212, %c32_213], %244 {strides = array<i32>} : memref<8x256xf32, #tpu.memory_space<vmem>>, vector<8x16xf32>,
    %246 = vector.extract_strided_slice %236 {offsets = [0, 3, 0], sizes = [8, 1, 16], strides = [1, 1, 1]} : vector<8x16x16xf32> to vector<8x1x16xf32>
    %247 = vector.shape_cast %246 : vector<8x1x16xf32> to vector<8x16xf32>
    %c0_214 = arith.constant 0 : index
    %c48_215 = arith.constant 48 : index
    %248 = vector.load %arg10[%c0_214, %c48_215] : memref<8x256xf32, #tpu.memory_space<vmem>>, vector<8x16xf32>
    tpu.vector_store %arg10[%c0_214, %c48_215], %247 {strides = array<i32>} : memref<8x256xf32, #tpu.memory_space<vmem>>, vector<8x16xf32>,
    %249 = vector.extract_strided_slice %236 {offsets = [0, 4, 0], sizes = [8, 1, 16], strides = [1, 1, 1]} : vector<8x16x16xf32> to vector<8x1x16xf32>
    %250 = vector.shape_cast %249 : vector<8x1x16xf32> to vector<8x16xf32>
    %c0_216 = arith.constant 0 : index
    %c64_217 = arith.constant 64 : index
    %251 = vector.load %arg10[%c0_216, %c64_217] : memref<8x256xf32, #tpu.memory_space<vmem>>, vector<8x16xf32>
    tpu.vector_store %arg10[%c0_216, %c64_217], %250 {strides = array<i32>} : memref<8x256xf32, #tpu.memory_space<vmem>>, vector<8x16xf32>,
    %252 = vector.extract_strided_slice %236 {offsets = [0, 5, 0], sizes = [8, 1, 16], strides = [1, 1, 1]} : vector<8x16x16xf32> to vector<8x1x16xf32>
    %253 = vector.shape_cast %252 : vector<8x1x16xf32> to vector<8x16xf32>
    %c0_218 = arith.constant 0 : index
    %c80_219 = arith.constant 80 : index
    %254 = vector.load %arg10[%c0_218, %c80_219] : memref<8x256xf32, #tpu.memory_space<vmem>>, vector<8x16xf32>
    tpu.vector_store %arg10[%c0_218, %c80_219], %253 {strides = array<i32>} : memref<8x256xf32, #tpu.memory_space<vmem>>, vector<8x16xf32>,
    %255 = vector.extract_strided_slice %236 {offsets = [0, 6, 0], sizes = [8, 1, 16], strides = [1, 1, 1]} : vector<8x16x16xf32> to vector<8x1x16xf32>
    %256 = vector.shape_cast %255 : vector<8x1x16xf32> to vector<8x16xf32>
    %c0_220 = arith.constant 0 : index
    %c96_221 = arith.constant 96 : index
    %257 = vector.load %arg10[%c0_220, %c96_221] : memref<8x256xf32, #tpu.memory_space<vmem>>, vector<8x16xf32>
    tpu.vector_store %arg10[%c0_220, %c96_221], %256 {strides = array<i32>} : memref<8x256xf32, #tpu.memory_space<vmem>>, vector<8x16xf32>,
    %258 = vector.extract_strided_slice %236 {offsets = [0, 7, 0], sizes = [8, 1, 16], strides = [1, 1, 1]} : vector<8x16x16xf32> to vector<8x1x16xf32>
    %259 = vector.shape_cast %258 : vector<8x1x16xf32> to vector<8x16xf32>
    %c0_222 = arith.constant 0 : index
    %c112_223 = arith.constant 112 : index
    %260 = vector.load %arg10[%c0_222, %c112_223] : memref<8x256xf32, #tpu.memory_space<vmem>>, vector<8x16xf32>
    tpu.vector_store %arg10[%c0_222, %c112_223], %259 {strides = array<i32>} : memref<8x256xf32, #tpu.memory_space<vmem>>, vector<8x16xf32>,
    %261 = vector.extract_strided_slice %236 {offsets = [0, 8, 0], sizes = [8, 1, 16], strides = [1, 1, 1]} : vector<8x16x16xf32> to vector<8x1x16xf32>
    %262 = vector.shape_cast %261 : vector<8x1x16xf32> to vector<8x16xf32>
    %c0_224 = arith.constant 0 : index
    %c128_225 = arith.constant 128 : index
    %263 = vector.load %arg10[%c0_224, %c128_225] : memref<8x256xf32, #tpu.memory_space<vmem>>, vector<8x16xf32>
    tpu.vector_store %arg10[%c0_224, %c128_225], %262 {strides = array<i32>} : memref<8x256xf32, #tpu.memory_space<vmem>>, vector<8x16xf32>,
    %264 = vector.extract_strided_slice %236 {offsets = [0, 9, 0], sizes = [8, 1, 16], strides = [1, 1, 1]} : vector<8x16x16xf32> to vector<8x1x16xf32>
    %265 = vector.shape_cast %264 : vector<8x1x16xf32> to vector<8x16xf32>
    %c0_226 = arith.constant 0 : index
    %c144_227 = arith.constant 144 : index
    %266 = vector.load %arg10[%c0_226, %c144_227] : memref<8x256xf32, #tpu.memory_space<vmem>>, vector<8x16xf32>
    tpu.vector_store %arg10[%c0_226, %c144_227], %265 {strides = array<i32>} : memref<8x256xf32, #tpu.memory_space<vmem>>, vector<8x16xf32>,
    %267 = vector.extract_strided_slice %236 {offsets = [0, 10, 0], sizes = [8, 1, 16], strides = [1, 1, 1]} : vector<8x16x16xf32> to vector<8x1x16xf32>
    %268 = vector.shape_cast %267 : vector<8x1x16xf32> to vector<8x16xf32>
    %c0_228 = arith.constant 0 : index
    %c160_229 = arith.constant 160 : index
    %269 = vector.load %arg10[%c0_228, %c160_229] : memref<8x256xf32, #tpu.memory_space<vmem>>, vector<8x16xf32>
    tpu.vector_store %arg10[%c0_228, %c160_229], %268 {strides = array<i32>} : memref<8x256xf32, #tpu.memory_space<vmem>>, vector<8x16xf32>,
    %270 = vector.extract_strided_slice %236 {offsets = [0, 11, 0], sizes = [8, 1, 16], strides = [1, 1, 1]} : vector<8x16x16xf32> to vector<8x1x16xf32>
    %271 = vector.shape_cast %270 : vector<8x1x16xf32> to vector<8x16xf32>
    %c0_230 = arith.constant 0 : index
    %c176_231 = arith.constant 176 : index
    %272 = vector.load %arg10[%c0_230, %c176_231] : memref<8x256xf32, #tpu.memory_space<vmem>>, vector<8x16xf32>
    tpu.vector_store %arg10[%c0_230, %c176_231], %271 {strides = array<i32>} : memref<8x256xf32, #tpu.memory_space<vmem>>, vector<8x16xf32>,
    %273 = vector.extract_strided_slice %236 {offsets = [0, 12, 0], sizes = [8, 1, 16], strides = [1, 1, 1]} : vector<8x16x16xf32> to vector<8x1x16xf32>
    %274 = vector.shape_cast %273 : vector<8x1x16xf32> to vector<8x16xf32>
    %c0_232 = arith.constant 0 : index
    %c192_233 = arith.constant 192 : index
    %275 = vector.load %arg10[%c0_232, %c192_233] : memref<8x256xf32, #tpu.memory_space<vmem>>, vector<8x16xf32>
    tpu.vector_store %arg10[%c0_232, %c192_233], %274 {strides = array<i32>} : memref<8x256xf32, #tpu.memory_space<vmem>>, vector<8x16xf32>,
    %276 = vector.extract_strided_slice %236 {offsets = [0, 13, 0], sizes = [8, 1, 16], strides = [1, 1, 1]} : vector<8x16x16xf32> to vector<8x1x16xf32>
    %277 = vector.shape_cast %276 : vector<8x1x16xf32> to vector<8x16xf32>
    %c0_234 = arith.constant 0 : index
    %c208_235 = arith.constant 208 : index
    %278 = vector.load %arg10[%c0_234, %c208_235] : memref<8x256xf32, #tpu.memory_space<vmem>>, vector<8x16xf32>
    tpu.vector_store %arg10[%c0_234, %c208_235], %277 {strides = array<i32>} : memref<8x256xf32, #tpu.memory_space<vmem>>, vector<8x16xf32>,
    %279 = vector.extract_strided_slice %236 {offsets = [0, 14, 0], sizes = [8, 1, 16], strides = [1, 1, 1]} : vector<8x16x16xf32> to vector<8x1x16xf32>
    %280 = vector.shape_cast %279 : vector<8x1x16xf32> to vector<8x16xf32>
    %c0_236 = arith.constant 0 : index
    %c224_237 = arith.constant 224 : index
    %281 = vector.load %arg10[%c0_236, %c224_237] : memref<8x256xf32, #tpu.memory_space<vmem>>, vector<8x16xf32>
    tpu.vector_store %arg10[%c0_236, %c224_237], %280 {strides = array<i32>} : memref<8x256xf32, #tpu.memory_space<vmem>>, vector<8x16xf32>,
    %282 = vector.extract_strided_slice %236 {offsets = [0, 15, 0], sizes = [8, 1, 16], strides = [1, 1, 1]} : vector<8x16x16xf32> to vector<8x1x16xf32>
    %283 = vector.shape_cast %282 : vector<8x1x16xf32> to vector<8x16xf32>
    %c0_238 = arith.constant 0 : index
    %c240_239 = arith.constant 240 : index
    %284 = vector.load %arg10[%c0_238, %c240_239] : memref<8x256xf32, #tpu.memory_space<vmem>>, vector<8x16xf32>
    tpu.vector_store %arg10[%c0_238, %c240_239], %283 {strides = array<i32>} : memref<8x256xf32, #tpu.memory_space<vmem>>, vector<8x16xf32>,
    %c0_240 = arith.constant 0 : index
    %285 = memref.load %arg1[%c0_240] : memref<1xf32, #tpu.memory_space<smem>>
    %c0_241 = arith.constant 0 : index
    %c0_242 = arith.constant 0 : index
    %286 = vector.load %arg10[%c0_241, %c0_242] : memref<8x256xf32, #tpu.memory_space<vmem>>, vector<8x256xf32>
    %287 = vector.broadcast %285 : f32 to vector<8x256xf32>
    %288 = arith.mulf %287, %286 : vector<8x256xf32>
    %cst_243 = arith.constant 0.707106769 : f32
    %289 = vector.broadcast %cst_243 : f32 to vector<8x256xf32>
    %290 = arith.mulf %288, %289 : vector<8x256xf32>
    %291 = math.absf %290 : vector<8x256xf32>
    %cst_244 = arith.constant 0.000000e+00 : f32
    %292 = vector.broadcast %cst_244 : f32 to vector<8x256xf32>
    %293 = arith.cmpf oge, %290, %292 : vector<8x256xf32>
    %cst_245 = arith.constant 1.000000e+00 : f32
    %cst_246 = arith.constant -1.000000e+00 : f32
    %294 = vector.broadcast %cst_245 : f32 to vector<8x256xf32>
    %295 = vector.broadcast %cst_246 : f32 to vector<8x256xf32>
    %296 = arith.select %293, %294, %295 : vector<8x256xi1>, vector<8x256xf32>
    %cst_247 = arith.constant 0.327591091 : f32
    %297 = vector.broadcast %cst_247 : f32 to vector<8x256xf32>
    %298 = arith.mulf %297, %291 : vector<8x256xf32>
    %cst_248 = arith.constant 1.000000e+00 : f32
    %299 = vector.broadcast %cst_248 : f32 to vector<8x256xf32>
    %300 = arith.addf %299, %298 : vector<8x256xf32>
    %cst_249 = arith.constant 1.000000e+00 : f32
    %301 = vector.broadcast %cst_249 : f32 to vector<8x256xf32>
    %302 = arith.divf %301, %300 : vector<8x256xf32>
    %cst_250 = arith.constant 1.06140542 : f32
    %303 = vector.broadcast %cst_250 : f32 to vector<8x256xf32>
    %304 = arith.mulf %303, %302 : vector<8x256xf32>
    %cst_251 = arith.constant -1.45315206 : f32
    %305 = vector.broadcast %cst_251 : f32 to vector<8x256xf32>
    %306 = arith.addf %304, %305 : vector<8x256xf32>
    %307 = arith.mulf %306, %302 : vector<8x256xf32>
    %cst_252 = arith.constant 1.42141378 : f32
    %308 = vector.broadcast %cst_252 : f32 to vector<8x256xf32>
    %309 = arith.addf %307, %308 : vector<8x256xf32>
    %310 = arith.mulf %309, %302 : vector<8x256xf32>
    %cst_253 = arith.constant -0.284496725 : f32
    %311 = vector.broadcast %cst_253 : f32 to vector<8x256xf32>
    %312 = arith.addf %310, %311 : vector<8x256xf32>
    %313 = arith.mulf %312, %302 : vector<8x256xf32>
    %cst_254 = arith.constant 0.254829586 : f32
    %314 = vector.broadcast %cst_254 : f32 to vector<8x256xf32>
    %315 = arith.addf %313, %314 : vector<8x256xf32>
    %316 = arith.mulf %315, %302 : vector<8x256xf32>
    %cst_255 = arith.constant 0.000000e+00 : f32
    %317 = vector.broadcast %cst_255 : f32 to vector<8x256xf32>
    %318 = arith.subf %317, %291 : vector<8x256xf32>
    %319 = arith.mulf %318, %291 : vector<8x256xf32>
    %320 = math.exp %319 : vector<8x256xf32>
    %321 = arith.mulf %316, %320 : vector<8x256xf32>
    %cst_256 = arith.constant 1.000000e+00 : f32
    %322 = vector.broadcast %cst_256 : f32 to vector<8x256xf32>
    %323 = arith.subf %322, %321 : vector<8x256xf32>
    %324 = arith.mulf %296, %323 : vector<8x256xf32>
    %cst_257 = arith.constant 5.000000e-01 : f32
    %325 = vector.broadcast %cst_257 : f32 to vector<8x256xf32>
    %326 = arith.mulf %325, %288 : vector<8x256xf32>
    %cst_258 = arith.constant 1.000000e+00 : f32
    %327 = vector.broadcast %cst_258 : f32 to vector<8x256xf32>
    %328 = arith.addf %327, %324 : vector<8x256xf32>
    %329 = arith.mulf %326, %328 : vector<8x256xf32>
    %c0_259 = arith.constant 0 : index
    %c0_260 = arith.constant 0 : index
    %330 = vector.load %arg5[%c0_259, %c0_260] : memref<8x8xf32, #tpu.memory_space<vmem>>, vector<8x8xf32>
    %cst_261 = arith.constant dense<0.000000e+00> : vector<8x256xf32>
    %331 = tpu.matmul %330, %329, %cst_261 {dimension_numbers = #tpu.dot_dimension_numbers<[1], [0], [0], [1], [0, 0, 1, 1], [], []>} : vector<8x8xf32>, vector<8x256xf32>, vector<8x256xf32> -> vector<8x256xf32>
    %c0_262 = arith.constant 0 : index
    %c0_263 = arith.constant 0 : index
    %332 = vector.load %arg6[%c0_262, %c0_263] : memref<8x1xf32, #tpu.memory_space<vmem>>, vector<8x1xf32>
    %333 = vector.broadcast %332 : vector<8x1xf32> to vector<8x256xf32>
    %334 = arith.addf %331, %333 : vector<8x256xf32>
    %c0_264 = arith.constant 0 : index
    %c0_265 = arith.constant 0 : index
    %c0_266 = arith.constant 0 : index
    %335 = vector.load %arg7[%c0_264, %c0_265, %c0_266] : memref<1x8x256xf32, #tpu.memory_space<vmem>>, vector<1x8x256xf32>
    %336 = vector.shape_cast %335 : vector<1x8x256xf32> to vector<8x256xf32>
    %337 = vector.shape_cast %334 : vector<8x256xf32> to vector<1x8x256xf32>
    tpu.vector_store %arg7[%c0_264, %c0_265, %c0_266], %337 {strides = array<i32>} : memref<1x8x256xf32, #tpu.memory_space<vmem>>, vector<1x8x256xf32>,
    return
  }
  func.func @transform_0(%arg0: i32) -> i32 {
    %c0_i32 = arith.constant 0 : i32
    %c0_i32_0 = arith.constant 0 : i32
    return %c0_i32 : i32
  }
  func.func @transform_1(%arg0: i32) -> (i32, i32, i32) {
    %c0_i32 = arith.constant 0 : i32
    %c0_i32_0 = arith.constant 0 : i32
    %c0_i32_1 = arith.constant 0 : i32
    return %arg0, %c0_i32, %c0_i32_0 : i32, i32, i32
  }
  func.func @transform_2(%arg0: i32) -> (i32, i32) {
    %c0_i32 = arith.constant 0 : i32
    %c0_i32_0 = arith.constant 0 : i32
    %c0_i32_1 = arith.constant 0 : i32
    return %c0_i32, %c0_i32_0 : i32, i32
  }
  func.func @transform_3(%arg0: i32) -> (i32, i32) {
    %c0_i32 = arith.constant 0 : i32
    %c0_i32_0 = arith.constant 0 : i32
    %c0_i32_1 = arith.constant 0 : i32
    return %c0_i32, %c0_i32_0 : i32, i32
  }
  func.func @transform_4(%arg0: i32) -> (i32, i32) {
    %c0_i32 = arith.constant 0 : i32
    %c0_i32_0 = arith.constant 0 : i32
    %c0_i32_1 = arith.constant 0 : i32
    return %c0_i32, %c0_i32_0 : i32, i32
  }
  func.func @transform_5(%arg0: i32) -> (i32, i32) {
    %c0_i32 = arith.constant 0 : i32
    %c0_i32_0 = arith.constant 0 : i32
    %c0_i32_1 = arith.constant 0 : i32
    return %c0_i32, %c0_i32_0 : i32, i32
  }
  func.func @transform_6(%arg0: i32) -> (i32, i32, i32) {
    %c0_i32 = arith.constant 0 : i32
    %c0_i32_0 = arith.constant 0 : i32
    %c0_i32_1 = arith.constant 0 : i32
    return %arg0, %c0_i32, %c0_i32_0 : i32, i32, i32
  }
}

</mosaic_0001>

<bundles_post_ra>
// kernel: elevit_attn_forward.1
= control target key start
LH: loop header
LB: loop body
LE: loop exit
PB: predicated region body
PF: predicated region fallthrough
CT: control target
= control target key end

     0   :  { %s7294_s23 = smov 0   ;;  %s10334_s0 = inlined_call_operand.<no memory space> [shape: f32[1], index: 0, kind: input, shape index: {}]   ;;  %s10335_s1 = inlined_call_operand.vmem [shape: bf16[2,8,506], index: 1, kind: input, shape index: {}]   ;;  %s10336_s2 = inlined_call_operand.vmem [shape: bf16[24,392], index: 2, kind: input, shape index: {}]   ;;  %s10337_s3 = inlined_call_operand.vmem [shape: f32[24,1], index: 3, kind: input, shape index: {}]   ;;  %s10338_s4 = inlined_call_operand.vmem [shape: f32[8,8], index: 4, kind: input, shape index: {}]   ;;  %s10339_s5 = inlined_call_operand.vmem [shape: f32[8,1], index: 5, kind: input, shape index: {}]   ;;  %s10340_s6 = inlined_call_operand.vmem [shape: f32[2,8,256], index: 6, kind: output, shape index: {}]  }
   0x1   :  { %11 = sst [smem:[#allocation5]] %s10334_s0 }
   0x2 LB: > { %s6673_s24 = sadd.s32 4294967295, %s7196_s23   ;;  %p6677_p0 = scmp.ge.s32.totalorder %s7196_s23, 1  ;;  %s7196_s23 = sphi %s7294_s23, %s17_s23  }
   0x3   : > { %p213_p1 = scmp.lt.s32.totalorder %s7196_s23, 3 }
   0x5   : > { %p214_p2 = pnand %p6677_p0, %p213_p1 }
   0x7   : > { %217 = sbr.rel (%p214_p2) target bundleno = 2711 (0xa97), region = 44 }
   0xe   : > { %p243_p3 = scmp.lt.s32.totalorder %s6673_s24, 1  ;;  %s7198_s28 = smov 126   ;;  %vm257_vm0 = vcmask 781312   ;;  %vm269_vm1 = vcmask 1043456   ;;  %vm288_vm2 = vcmask 1031168   ;;  %vm271_vm3 = vcmask 1039360  }
   0xf   : > { %s7199_s29 = smov 127   ;;  %s7200_s30 = smov 125   ;;  %v7101_v24 = vld [vmem:[%s10336_s2 + $0x4] ss:$16 sps:$4 sm:$0xff]   ;;  %vm305_vm4 = vcmask 1022976   ;;  %vm322_vm5 = vcmask 1014784  }
  0x10   : > { %s10549_s24 = smov (!%p243_p3, %s6673_s24), 1  ;;  %s7201_s7 = smov 124   ;;  %1798 = vmatprep.mubr.bf16.mxu1 %v7101_v24  ;;  %1696 = vmatprep.mubr.bf16.mxu0 %v7101_v24  ;;  %v7230_v39 = vmov 0   ;;  %vm339_vm6 = vcmask 1006592   ;;  %vm356_vm7 = vcmask 998400   ;;  %vm373_vm8 = vcmask 867328  }
  0x11   : > { %s6843_s0 = sshll.u32 %s10549_s24, 4  ;;  %s7202_s8 = smov 123   ;;  %7082 = vset.pattern.permute.xlu1 %v7230_v39  ;;  %7081 = vset.pattern.permute.xlu0 %v7230_v39  ;;  %vm390_vm9 = vcmask 859136   ;;  %vm407_vm10 = vcmask 850944   ;;  %vm424_vm11 = vcmask 842752   ;;  %vm441_vm12 = vcmask 834560  }
  0x12   : > { %s7310_s27 = scalar_lea.vmem %s10335_s1, %s6843_s0  ;;  %s7203_s9 = smov 122   ;;  %vm458_vm13 = vcmask 826368   ;;  %vm475_vm14 = vcmask 818176   ;;  %vm492_vm15 = vcmask 687104  }
  0x13   : > { %v7313_v0 = vld [vmem:[%s7310_s27] sm:$0xff]  ;;  %v278_v1 = vld [vmem:[%s7310_s27 + $0x8] sm:$0xf]  ;;  %s7204_s10 = smov 106   ;;  %s7205_s11 = smov 105  }
  0x14   : > { %281 = vrot.lane.b32.xlu1 %v7313_v0, %s7198_s28  ;;  %263 = vrot.lane.b32.xlu0 %v7313_v0, %s7199_s29  ;;  %v260_v2 = vld [vmem:[%s7310_s27 + $0x8] sm:$0xf]  ;;  %s7206_s12 = smov 104   ;;  %s7207_s13 = smov 103  }
  0x15   : > { %v295_v3 = vld [vmem:[%s7310_s27 + $0x8] sm:$0xf]  ;;  %s7208_s14 = smov 102   ;;  %s7209_s15 = smov 101  }
  0x16   : > { %v312_v4 = vld [vmem:[%s7310_s27 + $0x8] sm:$0xf]  ;;  %s7210_s16 = smov 100   ;;  %s7211_s17 = smov 84  }
  0x17   : > { %v329_v5 = vld [vmem:[%s7310_s27 + $0x8] sm:$0xf]  ;;  %s7212_s18 = smov 83   ;;  %s7213_s19 = smov 82  }
  0x18   : > { %283 = vrot.lane.b32.xlu1 %v278_v1, %s7198_s28  ;;  %265 = vrot.lane.b32.xlu0 %v260_v2, %s7199_s29  ;;  %v346_v6 = vld [vmem:[%s7310_s27 + $0x8] sm:$0xf]  ;;  %s7214_s20 = smov 81   ;;  %s7215_s21 = smov 80  }
  0x19   : > { %v363_v7 = vld [vmem:[%s7310_s27 + $0x8] sm:$0xf]  ;;  %s7216_s22 = smov 79   ;;  %s7217_s25 = smov 78  }
  0x1a   : > { %v380_v8 = vld [vmem:[%s7310_s27 + $0x8] sm:$0xf]  ;;  %s7218_s26 = smov 62   ;;  %s7219_s28 = smov 61  }
  0x1b   : > { %v397_v9 = vld [vmem:[%s7310_s27 + $0x8] sm:$0xf]  ;;  %s7220_s29 = smov 60  }
  0x1c   : > { %300 = vrot.lane.b32.xlu1 %v295_v3, %s7200_s30  ;;  %298 = vrot.lane.b32.xlu0 %v7313_v0, %s7200_s30  ;;  %v414_v10 = vld [vmem:[%s7310_s27 + $0x8] sm:$0xf]  ;;  %s7221_s30 = smov 59  }
  0x1d   : > { %v431_v11 = vld [vmem:[%s7310_s27 + $0x8] sm:$0xf] }
  0x1e   : > { %v448_v12 = vld [vmem:[%s7310_s27 + $0x8] sm:$0xf] }
  0x1f   : > { %v465_v13 = vld [vmem:[%s7310_s27 + $0x8] sm:$0xf] }
  0x20   : > { %317 = vrot.lane.b32.xlu1 %v312_v4, %s7201_s7  ;;  %315 = vrot.lane.b32.xlu0 %v7313_v0, %s7201_s7  ;;  %v7352_v14 = vld [vmem:[%s7310_s27 + $0x8] sm:$0xff] }
  0x21   : > { %v255_v15 = vld [vmem:[%s7310_s27 + $0x8] sm:$0xf] }
  0x22   : > { %258 = vst.msk [vmem:[#allocation2 + $0x8] sm:$0xf] %vm257_vm0, %v255_v15 }
  0x24   : > { %334 = vrot.lane.b32.xlu1 %v329_v5, %s7202_s8  ;;  %332 = vrot.lane.b32.xlu0 %v7313_v0, %s7202_s8 }
  0x28   : > { %351 = vrot.lane.b32.xlu1 %v346_v6, %s7203_s9  ;;  %349 = vrot.lane.b32.xlu0 %v7313_v0, %s7203_s9 }
  0x2c   : > { %368 = vrot.lane.b32.xlu1 %v363_v7, %s7204_s10  ;;  %366 = vrot.lane.b32.xlu0 %v7313_v0, %s7204_s10 }
  0x30   : > { %385 = vrot.lane.b32.xlu1 %v380_v8, %s7205_s11  ;;  %383 = vrot.lane.b32.xlu0 %v7313_v0, %s7205_s11  ;;  %s7222_s11 = smov 58  }
  0x34   : > { %402 = vrot.lane.b32.xlu1 %v397_v9, %s7206_s12  ;;  %400 = vrot.lane.b32.xlu0 %v7313_v0, %s7206_s12  ;;  %s7223_s12 = smov 57  }
  0x38   : > { %419 = vrot.lane.b32.xlu1 %v414_v10, %s7207_s13  ;;  %417 = vrot.lane.b32.xlu0 %v7313_v0, %s7207_s13  ;;  %s7224_s13 = smov 56  }
  0x3c   : > { %436 = vrot.lane.b32.xlu1 %v431_v11, %s7208_s14  ;;  %434 = vrot.lane.b32.xlu0 %v7313_v0, %s7208_s14 }
  0x40   : > { %453 = vrot.lane.b32.xlu1 %v448_v12, %s7209_s15  ;;  %451 = vrot.lane.b32.xlu0 %v7313_v0, %s7209_s15  ;;  %s7225_s15 = smov 40  }
  0x44   : > { %470 = vrot.lane.b32.xlu1 %v465_v13, %s7210_s16  ;;  %468 = vrot.lane.b32.xlu0 %v7313_v0, %s7210_s16  ;;  %s7226_s16 = smov 39  }
  0x48   : > { %487 = vrot.lane.b32.xlu1 %v7352_v14, %s7211_s17  ;;  %485 = vrot.lane.b32.xlu0 %v7313_v0, %s7211_s17 }
  0x4c   : > { %505 = vrot.lane.b32.xlu1 %v7352_v14, %s7212_s18  ;;  %503 = vrot.lane.b32.xlu0 %v7313_v0, %s7212_s18  ;;  %s7227_s18 = smov 38  }
  0x50   : > { %523 = vrot.lane.b32.xlu1 %v7352_v14, %s7213_s19  ;;  %521 = vrot.lane.b32.xlu0 %v7313_v0, %s7213_s19  ;;  %s7238_s19 = smov 13  }
  0x54   : > { %541 = vrot.lane.b32.xlu1 %v7352_v14, %s7214_s20  ;;  %539 = vrot.lane.b32.xlu0 %v7313_v0, %s7214_s20  ;;  %s7239_s20 = smov 12  }
  0x58   : > { %559 = vrot.lane.b32.xlu1 %v7352_v14, %s7215_s21  ;;  %557 = vrot.lane.b32.xlu0 %v7313_v0, %s7215_s21 }
  0x5c   : > { %577 = vrot.lane.b32.xlu1 %v7352_v14, %s7216_s22  ;;  %575 = vrot.lane.b32.xlu0 %v7313_v0, %s7216_s22  ;;  %s7228_s22 = smov 37  }
  0x60   : > { %595 = vrot.lane.b32.xlu1 %v7352_v14, %s7217_s25  ;;  %593 = vrot.lane.b32.xlu0 %v7313_v0, %s7217_s25  ;;  %s7229_s25 = smov 36  }
  0x64   : > { %613 = vrot.lane.b32.xlu1 %v7352_v14, %s7218_s26  ;;  %611 = vrot.lane.b32.xlu0 %v7313_v0, %s7218_s26 }
  0x68   : > { %631 = vrot.lane.b32.xlu1 %v7352_v14, %s7219_s28  ;;  %629 = vrot.lane.b32.xlu0 %v7313_v0, %s7219_s28  ;;  %s7231_s28 = smov 35  }
  0x6c   : > { %649 = vrot.lane.b32.xlu1 %v7352_v14, %s7220_s29  ;;  %647 = vrot.lane.b32.xlu0 %v7313_v0, %s7220_s29  ;;  %s7232_s29 = smov 34  }
  0x70   : > { %667 = vrot.lane.b32.xlu1 %v7352_v14, %s7221_s30  ;;  %665 = vrot.lane.b32.xlu0 %v7313_v0, %s7221_s30  ;;  %s7233_s30 = smov 18  }
  0x74   : > { %685 = vrot.lane.b32.xlu1 %v7352_v14, %s7222_s11  ;;  %683 = vrot.lane.b32.xlu0 %v7313_v0, %s7222_s11 }
  0x78   : > { %703 = vrot.lane.b32.xlu1 %v7352_v14, %s7223_s12  ;;  %701 = vrot.lane.b32.xlu0 %v7313_v0, %s7223_s12  ;;  %s7234_s12 = smov 17  }
  0x7c   : > { %721 = vrot.lane.b32.xlu1 %v7352_v14, %s7224_s13  ;;  %719 = vrot.lane.b32.xlu0 %v7313_v0, %s7224_s13  ;;  %s7235_s13 = smov 16  }
  0x80   : > { %739 = vrot.lane.b32.xlu1 %v7352_v14, %s7225_s15  ;;  %737 = vrot.lane.b32.xlu0 %v7313_v0, %s7225_s15 }
  0x84   : > { %757 = vrot.lane.b32.xlu1 %v7352_v14, %s7226_s16  ;;  %755 = vrot.lane.b32.xlu0 %v7313_v0, %s7226_s16  ;;  %s7236_s16 = smov 15  }
  0x86   : > { %v282_v16 = vpop.permute.xlu1 %281  ;;  %v264_v17 = vpop.permute.xlu0 %263 }
  0x87   : > { %v267_v18 = vrot.slane %v264_v17, 4  ;;  %v285_v21 = vrot.slane %v282_v16, 4 }
  0x88   : > { %775 = vrot.lane.b32.xlu1 %v7352_v14, %s7227_s18  ;;  %773 = vrot.lane.b32.xlu0 %v7313_v0, %s7227_s18  ;;  %s7237_s18 = smov 14  }
  0x8a   : > { %v284_v19 = vpop.permute.xlu1 %283  ;;  %v266_v20 = vpop.permute.xlu0 %265 }
  0x8b   : > { %v286_v22 = vrot.slane %v284_v19, 4  ;;  %293 = vst.msk [vmem:[#allocation2 + $0x20] sm:$0xf] %vm257_vm0, %v284_v19  ;;  %v268_v23 = vrot.slane %v266_v20, 4  ;;  %276 = vst.msk [vmem:[#allocation2 + $0x14] sm:$0xf] %vm257_vm0, %v266_v20 }
  0x8c   : > { %793 = vrot.lane.b32.xlu1 %v7352_v14, %s7228_s22  ;;  %791 = vrot.lane.b32.xlu0 %v7313_v0, %s7228_s22  ;;  %s7242_s22 = smov 119  }
  0x8d   : > { %v287_v25 = vsel %vm269_vm1, %v285_v21, %v286_v22  ;;  %v270_v26 = vsel %vm269_vm1, %v267_v18, %v268_v23 }
  0x8e   : > { %v289_v27 = vsel %vm288_vm2, %v282_v16, %v287_v25  ;;  %v272_v28 = vsel %vm271_vm3, %v264_v17, %v270_v26  ;;  %v301_v29 = vpop.permute.xlu1 %300  ;;  %v299_v30 = vpop.permute.xlu0 %298  ;;  %vm510_vm2 = vcmask 678912   ;;  %vm528_vm3 = vcmask 670720  }
  0x8f   : > { %v303_v31 = vrot.slane %v301_v29, 4  ;;  %310 = vst.msk [vmem:[#allocation2 + $0x2c] sm:$0xf] %vm257_vm0, %v301_v29  ;;  %v302_v32 = vrot.slane %v299_v30, 4  ;;  %v6691_v33 = vcombine.high %v7313_v0, %v272_v28  ;;  %v6690_v34 = vcombine.low %v7313_v0, %v272_v28 }
  0x90   : > { %811 = vrot.lane.b32.xlu1 %v7352_v14, %s7229_s25  ;;  %809 = vrot.lane.b32.xlu0 %v7313_v0, %s7229_s25 }
  0x91   : > { %v304_v35 = vsel %vm269_vm1, %v302_v32, %v303_v31  ;;  %1664 = vmatprep.subr.bf16.mxu0 %v6691_v33 }
  0x92   : > { %v306_v36 = vsel %vm305_vm4, %v299_v30, %v304_v35  ;;  %v318_v37 = vpop.permute.xlu1 %317  ;;  %v316_v38 = vpop.permute.xlu0 %315  ;;  %1665 = vmatpush1.bf16.msra.mxu0 %v6690_v34  ;;  %vm546_vm4 = vcmask 662528  }
  0x93   : > { %v320_v40 = vrot.slane %v318_v37, 4  ;;  %327 = vst.msk [vmem:[#allocation2 + $0x38] sm:$0xf] %vm257_vm0, %v318_v37  ;;  %v319_v41 = vrot.slane %v316_v38, 4  ;;  %v6694_v42 = vcombine.high %v289_v27, %v306_v36  ;;  %v6693_v43 = vcombine.low %v289_v27, %v306_v36 }
  0x94   : > { %829 = vrot.lane.b32.xlu1 %v7352_v14, %s7231_s28  ;;  %827 = vrot.lane.b32.xlu0 %v7313_v0, %s7231_s28  ;;  %s7243_s28 = smov 118  }
  0x95   : > { %v321_v44 = vsel %vm269_vm1, %v319_v41, %v320_v40  ;;  %1666 = vmatprep.subr.bf16.mxu0 %v6694_v42  ;;  %v986_v40 = vld [vmem:[%s7310_s27 + $0xc] sm:$0xf]  ;;  %v7467_v41 = vld [vmem:[%s7310_s27 + $0x4] sm:$0xff] }
  0x96   : > { %v323_v45 = vsel %vm322_vm5, %v316_v38, %v321_v44  ;;  %v335_v46 = vpop.permute.xlu1 %334  ;;  %v333_v47 = vpop.permute.xlu0 %332  ;;  %1667 = vmatpush1.bf16.msra.mxu0 %v6693_v43 }
  0x97   : > { %v337_v48 = vrot.slane %v335_v46, 4  ;;  %344 = vst.msk [vmem:[#allocation2 + $0x44] sm:$0xf] %vm257_vm0, %v335_v46  ;;  %v336_v49 = vrot.slane %v333_v47, 4 }
  0x98   : > { %847 = vrot.lane.b32.xlu1 %v7352_v14, %s7232_s29  ;;  %845 = vrot.lane.b32.xlu0 %v7313_v0, %s7232_s29 }
  0x99   : > { %v338_v50 = vsel %vm269_vm1, %v336_v49, %v337_v48 }
  0x9a   : > { %v340_v51 = vsel %vm339_vm6, %v333_v47, %v338_v50  ;;  %v352_v52 = vpop.permute.xlu1 %351  ;;  %v350_v53 = vpop.permute.xlu0 %349 }
  0x9b   : > { %v354_v54 = vrot.slane %v352_v52, 4  ;;  %361 = vst.msk [vmem:[#allocation2 + $0x50] sm:$0xf] %vm257_vm0, %v352_v52  ;;  %v353_v55 = vrot.slane %v350_v53, 4  ;;  %v6697_v56 = vcombine.high %v323_v45, %v340_v51  ;;  %v6696_v57 = vcombine.low %v323_v45, %v340_v51 }
  0x9c   : > { %865 = vrot.lane.b32.xlu1 %v7352_v14, %s7233_s30  ;;  %863 = vrot.lane.b32.xlu0 %v7313_v0, %s7233_s30 }
  0x9d   : > { %v355_v58 = vsel %vm269_vm1, %v353_v55, %v354_v54  ;;  %1668 = vmatprep.subr.bf16.mxu0 %v6697_v56  ;;  %v1018_v56 = vld [vmem:[%s7310_s27 + $0xc] sm:$0xf] }
  0x9e   : > { %v357_v59 = vsel %vm356_vm7, %v350_v53, %v355_v58  ;;  %v369_v60 = vpop.permute.xlu1 %368  ;;  %v367_v61 = vpop.permute.xlu0 %366  ;;  %1669 = vmatpush1.bf16.msra.mxu0 %v6696_v57 }
  0x9f   : > { %v371_v62 = vrot.slane %v369_v60, 4  ;;  %378 = vst.msk [vmem:[#allocation2 + $0x5c] sm:$0xf] %vm257_vm0, %v369_v60  ;;  %v370_v63 = vrot.slane %v367_v61, 4 }
  0xa0   : > { %883 = vrot.lane.b32.xlu1 %v7352_v14, %s7234_s12  ;;  %881 = vrot.lane.b32.xlu0 %v7313_v0, %s7234_s12 }
  0xa1   : > { %v372_v1 = vsel %vm269_vm1, %v370_v63, %v371_v62 }
  0xa2   : > { %v374_v2 = vsel %vm373_vm8, %v367_v61, %v372_v1  ;;  %v386_v3 = vpop.permute.xlu1 %385  ;;  %v384_v4 = vpop.permute.xlu0 %383  ;;  %v1034_v1 = vld [vmem:[%s7310_s27 + $0xc] sm:$0xf]  ;;  %vm564_vm8 = vcmask 654336  }
  0xa3   : > { %v388_v5 = vrot.slane %v386_v3, 4  ;;  %395 = vst.msk [vmem:[#allocation2 + $0x68] sm:$0xf] %vm257_vm0, %v386_v3  ;;  %v387_v6 = vrot.slane %v384_v4, 4  ;;  %v6700_v7 = vcombine.high %v357_v59, %v374_v2  ;;  %v6699_v8 = vcombine.low %v357_v59, %v374_v2 }
  0xa4   : > { %901 = vrot.lane.b32.xlu1 %v7352_v14, %s7235_s13  ;;  %899 = vrot.lane.b32.xlu0 %v7313_v0, %s7235_s13 }
  0xa5   : > { %v389_v9 = vsel %vm269_vm1, %v387_v6, %v388_v5  ;;  %1670 = vmatprep.subr.bf16.mxu0 %v6700_v7 }
  0xa6   : > { %v391_v10 = vsel %vm390_vm9, %v384_v4, %v389_v9  ;;  %v403_v11 = vpop.permute.xlu1 %402  ;;  %v401_v12 = vpop.permute.xlu0 %400  ;;  %1671 = vmatpush1.bf16.msra.mxu0 %v6699_v8  ;;  %vm582_vm9 = vcmask 646144  }
  0xa7   : > { %v405_v13 = vrot.slane %v403_v11, 4  ;;  %412 = vst.msk [vmem:[#allocation2 + $0x74] sm:$0xf] %vm257_vm0, %v403_v11  ;;  %v404_v15 = vrot.slane %v401_v12, 4  ;;  %v1051_v11 = vld [vmem:[%s7310_s27 + $0xc] sm:$0xf] }
  0xa8   : > { %919 = vrot.lane.b32.xlu1 %v7352_v14, %s7236_s16  ;;  %917 = vrot.lane.b32.xlu0 %v7313_v0, %s7236_s16 }
  0xa9   : > { %v406_v16 = vsel %vm269_vm1, %v404_v15, %v405_v13 }
  0xaa   : > { %v408_v17 = vsel %vm407_vm10, %v401_v12, %v406_v16  ;;  %v420_v18 = vpop.permute.xlu1 %419  ;;  %v418_v19 = vpop.permute.xlu0 %417  ;;  %vm600_vm10 = vcmask 637952  }
  0xab   : > { %v422_v20 = vrot.slane %v420_v18, 4  ;;  %429 = vst.msk [vmem:[#allocation2 + $0x80] sm:$0xf] %vm257_vm0, %v420_v18  ;;  %v421_v21 = vrot.slane %v418_v19, 4  ;;  %v6703_v22 = vcombine.high %v391_v10, %v408_v17  ;;  %v6702_v23 = vcombine.low %v391_v10, %v408_v17 }
  0xac   : > { %937 = vrot.lane.b32.xlu1 %v7352_v14, %s7237_s18  ;;  %935 = vrot.lane.b32.xlu0 %v7313_v0, %s7237_s18 }
  0xad   : > { %v423_v24 = vsel %vm269_vm1, %v421_v21, %v422_v20  ;;  %1672 = vmatprep.subr.bf16.mxu0 %v6703_v22  ;;  %v1068_v20 = vld [vmem:[%s7310_s27 + $0xc] sm:$0xf] }
  0xae   : > { %v425_v25 = vsel %vm424_vm11, %v418_v19, %v423_v24  ;;  %v437_v26 = vpop.permute.xlu1 %436  ;;  %v435_v27 = vpop.permute.xlu0 %434  ;;  %1673 = vmatpush1.bf16.msra.mxu0 %v6702_v23  ;;  %vm618_vm11 = vcmask 506880  }
  0xaf   : > { %v439_v28 = vrot.slane %v437_v26, 4  ;;  %446 = vst.msk [vmem:[#allocation2 + $0x8c] sm:$0xf] %vm257_vm0, %v437_v26  ;;  %v438_v29 = vrot.slane %v435_v27, 4 }
  0xb0   : > { %955 = vrot.lane.b32.xlu1 %v7352_v14, %s7238_s19  ;;  %953 = vrot.lane.b32.xlu0 %v7313_v0, %s7238_s19 }
  0xb1   : > { %v440_v30 = vsel %vm269_vm1, %v438_v29, %v439_v28 }
  0xb2   : > { %v442_v31 = vsel %vm441_vm12, %v435_v27, %v440_v30  ;;  %v454_v32 = vpop.permute.xlu1 %453  ;;  %v452_v33 = vpop.permute.xlu0 %451  ;;  %v1085_v30 = vld [vmem:[%s7310_s27 + $0xc] sm:$0xf]  ;;  %vm636_vm12 = vcmask 498688  }
  0xb3   : > { %v456_v34 = vrot.slane %v454_v32, 4  ;;  %463 = vst.msk [vmem:[#allocation2 + $0x98] sm:$0xf] %vm257_vm0, %v454_v32  ;;  %v455_v35 = vrot.slane %v452_v33, 4  ;;  %v6706_v36 = vcombine.high %v425_v25, %v442_v31  ;;  %v6705_v37 = vcombine.low %v425_v25, %v442_v31 }
  0xb4   : > { %973 = vrot.lane.b32.xlu1 %v7352_v14, %s7239_s20  ;;  %971 = vrot.lane.b32.xlu0 %v7313_v0, %s7239_s20  ;;  %v1002_v14 = vld [vmem:[%s7310_s27 + $0xc] sm:$0xf]  ;;  %s7245_s20 = smov 76  }
  0xb5   : > { %v457_v38 = vsel %vm269_vm1, %v455_v35, %v456_v34  ;;  %1674 = vmatprep.subr.bf16.mxu0 %v6706_v36  ;;  %v7084_v36 = vld [vmem:[#allocation2 + $0x8] ss:$12 sps:$4 sm:$0xff]  }
  0xb6   : > { %v459_v42 = vsel %vm458_vm13, %v452_v33, %v457_v38  ;;  %v471_v43 = vpop.permute.xlu1 %470  ;;  %v469_v44 = vpop.permute.xlu0 %468  ;;  %1675 = vmatpush1.bf16.msra.mxu0 %v6705_v37  ;;  %vm654_vm13 = vcmask 490496  }
  0xb7   : > { %v473_v45 = vrot.slane %v471_v43, 4  ;;  %480 = vst.msk [vmem:[#allocation2 + $0xa4] sm:$0xf] %vm257_vm0, %v471_v43  ;;  %v472_v46 = vrot.slane %v469_v44, 4 }
  0xb8   : > { %991 = vrot.lane.b32.xlu1 %v986_v40, %s7201_s7  ;;  %989 = vrot.lane.b32.xlu0 %v7467_v41, %s7201_s7 }
  0xb9   : > { %v474_v0 = vsel %vm269_vm1, %v472_v46, %v473_v45  ;;  %v1206_v46 = vld [vmem:[%s10337_s3 + $0x8] sm:$0xff] }
  0xba   : > { %v476_v47 = vsel %vm475_vm14, %v469_v44, %v474_v0  ;;  %v488_v48 = vpop.permute.xlu1 %487  ;;  %v486_v49 = vpop.permute.xlu0 %485  ;;  %vm672_vm14 = vcmask 482304  }
  0xbb   : > { %v490_v50 = vrot.slane %v488_v48, 4  ;;  %v489_v51 = vrot.slane %v486_v49, 4  ;;  %v6709_v52 = vcombine.high %v459_v42, %v476_v47  ;;  %v6708_v53 = vcombine.low %v459_v42, %v476_v47  ;;  %v1205_v42 = vld [vmem:[%s10337_s3] sm:$0xff] }
  0xbc   : > { %1007 = vrot.lane.b32.xlu1 %v1002_v14, %s7202_s8  ;;  %1005 = vrot.lane.b32.xlu0 %v7467_v41, %s7202_s8  ;;  %s7240_s8 = smov 121  }
  0xbd   : > { %v494_v54 = vsel %vm492_vm15, %v488_v48, %v490_v50  ;;  %v491_v55 = vsel %vm269_vm1, %v489_v51, %v490_v50  ;;  %1676 = vmatprep.subr.bf16.mxu0 %v6709_v52 }
  0xbe   : > { %498 = vst.msk [vmem:[#allocation2 + $0xb0] sm:$0xf] %vm257_vm0, %v494_v54  ;;  %v493_v57 = vsel %vm492_vm15, %v486_v49, %v491_v55  ;;  %v506_v58 = vpop.permute.xlu1 %505  ;;  %v504_v59 = vpop.permute.xlu0 %503  ;;  %1677 = vmatpush1.bf16.msra.mxu0 %v6708_v53  ;;  %vm690_vm15 = vcmask 474112  }
  0xbf   : > { %v508_v60 = vrot.slane %v506_v58, 4  ;;  %v507_v61 = vrot.slane %v504_v59, 4 }
  0xc0   : > { %1023 = vrot.lane.b32.xlu1 %v1018_v56, %s7203_s9  ;;  %1021 = vrot.lane.b32.xlu0 %v7467_v41, %s7203_s9  ;;  %s7241_s9 = smov 120  }
  0xc1   : > { %v512_v62 = vsel %vm510_vm2, %v506_v58, %v508_v60  ;;  %v509_v63 = vsel %vm269_vm1, %v507_v61, %v508_v60  ;;  %v7086_v61 = vld [vmem:[#allocation2 + $0x20] ss:$12 sps:$4 sm:$0xff]  }
  0xc2   : > { %516 = vst.msk [vmem:[#allocation2 + $0xbc] sm:$0xf] %vm257_vm0, %v512_v62  ;;  %v511_v2 = vsel %vm510_vm2, %v504_v59, %v509_v63  ;;  %v524_v3 = vpop.permute.xlu1 %523  ;;  %v522_v4 = vpop.permute.xlu0 %521  ;;  %vm708_vm2 = vcmask 465920  }
  0xc3   : > { %v526_v5 = vrot.slane %v524_v3, 4  ;;  %v525_v6 = vrot.slane %v522_v4, 4  ;;  %v6712_v7 = vcombine.high %v493_v57, %v511_v2  ;;  %v6711_v8 = vcombine.low %v493_v57, %v511_v2 }
  0xc4   : > { %1039 = vrot.lane.b32.xlu1 %v1034_v1, %s7240_s8  ;;  %1037 = vrot.lane.b32.xlu0 %v7467_v41, %s7240_s8  ;;  %s7246_s8 = smov 98  }
  0xc5   : > { %v530_v9 = vsel %vm528_vm3, %v524_v3, %v526_v5  ;;  %v527_v10 = vsel %vm269_vm1, %v525_v6, %v526_v5  ;;  %1678 = vmatprep.subr.bf16.mxu0 %v6712_v7 }
  0xc6   : > { %534 = vst.msk [vmem:[#allocation2 + $0xc8] sm:$0xf] %vm257_vm0, %v530_v9  ;;  %v529_v12 = vsel %vm528_vm3, %v522_v4, %v527_v10  ;;  %v542_v13 = vpop.permute.xlu1 %541  ;;  %v540_v15 = vpop.permute.xlu0 %539  ;;  %1679 = vmatpush1.bf16.msra.mxu0 %v6711_v8  ;;  %vm726_vm3 = vcmask 457728  }
  0xc7   : > { %v544_v16 = vrot.slane %v542_v13, 4  ;;  %v543_v17 = vrot.slane %v540_v15, 4 }
  0xc8   : > { %1056 = vrot.lane.b32.xlu1 %v1051_v11, %s7241_s9  ;;  %1054 = vrot.lane.b32.xlu0 %v7467_v41, %s7241_s9 }
  0xc9   : > { %v548_v18 = vsel %vm546_vm4, %v542_v13, %v544_v16  ;;  %v545_v19 = vsel %vm269_vm1, %v543_v17, %v544_v16  ;;  %v7088_v17 = vld [vmem:[#allocation2 + $0x38] ss:$12 sps:$4 sm:$0xff]  }
  0xca   : > { %552 = vst.msk [vmem:[#allocation2 + $0xd4] sm:$0xf] %vm257_vm0, %v548_v18  ;;  %v547_v21 = vsel %vm546_vm4, %v540_v15, %v545_v19  ;;  %v560_v22 = vpop.permute.xlu1 %559  ;;  %v558_v23 = vpop.permute.xlu0 %557  ;;  %vm744_vm4 = vcmask 326656  }
  0xcb   : > { %v562_v24 = vrot.slane %v560_v22, 4  ;;  %v561_v25 = vrot.slane %v558_v23, 4  ;;  %v6715_v26 = vcombine.high %v529_v12, %v547_v21  ;;  %v6714_v27 = vcombine.low %v529_v12, %v547_v21 }
  0xcc   : > { %1073 = vrot.lane.b32.xlu1 %v1068_v20, %s7242_s22  ;;  %1071 = vrot.lane.b32.xlu0 %v7467_v41, %s7242_s22  ;;  %s7247_s22 = smov 54  }
  0xcd   : > { %v566_v28 = vsel %vm564_vm8, %v560_v22, %v562_v24  ;;  %v563_v29 = vsel %vm269_vm1, %v561_v25, %v562_v24  ;;  %1680 = vmatprep.subr.bf16.mxu0 %v6715_v26 }
  0xce   : > { %570 = vst.msk [vmem:[#allocation2 + $0xe0] sm:$0xf] %vm257_vm0, %v566_v28  ;;  %v565_v31 = vsel %vm564_vm8, %v558_v23, %v563_v29  ;;  %v578_v32 = vpop.permute.xlu1 %577  ;;  %v576_v33 = vpop.permute.xlu0 %575  ;;  %1681 = vmatpush1.bf16.msra.mxu0 %v6714_v27  ;;  %vm762_vm8 = vcmask 318464  }
  0xcf   : > { %v580_v34 = vrot.slane %v578_v32, 4  ;;  %v579_v35 = vrot.slane %v576_v33, 4 }
  0xd0   : > { %1090 = vrot.lane.b32.xlu1 %v1085_v30, %s7243_s28  ;;  %1088 = vrot.lane.b32.xlu0 %v7467_v41, %s7243_s28 }
  0xd1   : > { %v584_v37 = vsel %vm582_vm9, %v578_v32, %v580_v34  ;;  %v581_v38 = vsel %vm269_vm1, %v579_v35, %v580_v34  ;;  %v7083_v40 = vld [vmem:[#allocation2 + $0xc8] ss:$12 sps:$4 sm:$0xff]   ;;  %v7090_v35 = vld [vmem:[#allocation2 + $0x50] ss:$12 sps:$4 sm:$0xff]  }
  0xd2   : > { %588 = vst.msk [vmem:[#allocation2 + $0xec] sm:$0xf] %vm257_vm0, %v584_v37  ;;  %v583_v43 = vsel %vm582_vm9, %v576_v33, %v581_v38  ;;  %v596_v44 = vpop.permute.xlu1 %595  ;;  %v594_v45 = vpop.permute.xlu0 %593  ;;  %6845 = vmatprep.subr.bf16.mxu1 %v7083_v40  ;;  %vm780_vm9 = vcmask 310272  }
  0xd3   : > { %v598_v41 = vrot.slane %v596_v44, 4  ;;  %v597_v0 = vrot.slane %v594_v45, 4  ;;  %v6718_v14 = vcombine.high %v565_v31, %v583_v43  ;;  %v6717_v47 = vcombine.low %v565_v31, %v583_v43  ;;  %6846 = vmatpush3.bf16.msra.mxu1 %v7084_v36 }
  0xd4   : > { %1210 = vperm.xlu1 %7082, %v1205_v42   ;;  %1215 = vperm.xlu0 %7081, %v1206_v46  }
  0xd5   : > { %v602_v48 = vsel %vm600_vm10, %v596_v44, %v598_v41  ;;  %v599_v49 = vsel %vm269_vm1, %v597_v0, %v598_v41  ;;  %1682 = vmatprep.subr.bf16.mxu0 %v6718_v14 }
  0xd6   : > { %606 = vst.msk [vmem:[#allocation2 + $0xf8] sm:$0xf] %vm257_vm0, %v602_v48  ;;  %v601_v50 = vsel %vm600_vm10, %v594_v45, %v599_v49  ;;  %v614_v51 = vpop.permute.xlu1 %613  ;;  %v612_v52 = vpop.permute.xlu0 %611  ;;  %1683 = vmatpush1.bf16.msra.mxu0 %v6717_v47  ;;  %vm798_vm10 = vcmask 302080  }
  0xd7   : > { %v616_v53 = vrot.slane %v614_v51, 4  ;;  %v615_v54 = vrot.slane %v612_v52, 4 }
  0xd9   : > { %v620_v55 = vsel %vm618_vm11, %v614_v51, %v616_v53  ;;  %v617_v56 = vsel %vm269_vm1, %v615_v54, %v616_v53  ;;  %v7085_v57 = vld [vmem:[#allocation2 + $0xe0] ss:$12 sps:$4 sm:$0xff]  }
  0xda   : > { %624 = vst.msk [vmem:[#allocation2 + $0x104] sm:$0xf] %vm257_vm0, %v620_v55  ;;  %v619_v58 = vsel %vm618_vm11, %v612_v52, %v617_v56  ;;  %v632_v59 = vpop.permute.xlu1 %631  ;;  %v630_v60 = vpop.permute.xlu0 %629  ;;  %6847 = vmatprep.subr.bf16.mxu1 %v7085_v57  ;;  %v7092_v52 = vld [vmem:[#allocation2 + $0x68] ss:$12 sps:$4 sm:$0xff]   ;;  %vm816_vm11 = vcmask 293888  }
  0xdb   : > { %v634_v62 = vrot.slane %v632_v59, 4  ;;  %v633_v63 = vrot.slane %v630_v60, 4  ;;  %v6721_v1 = vcombine.high %v601_v50, %v619_v58  ;;  %v6720_v2 = vcombine.low %v601_v50, %v619_v58  ;;  %6848 = vmatpush3.bf16.msra.mxu1 %v7086_v61 }
  0xdd   : > { %v638_v3 = vsel %vm636_vm12, %v632_v59, %v634_v62  ;;  %v635_v4 = vsel %vm269_vm1, %v633_v63, %v634_v62  ;;  %1684 = vmatprep.subr.bf16.mxu0 %v6721_v1 }
  0xde   : > { %642 = vst.msk [vmem:[#allocation2 + $0x110] sm:$0xf] %vm257_vm0, %v638_v3  ;;  %v637_v5 = vsel %vm636_vm12, %v630_v60, %v635_v4  ;;  %v650_v6 = vpop.permute.xlu1 %649  ;;  %v648_v7 = vpop.permute.xlu0 %647  ;;  %1685 = vmatpush1.bf16.msra.mxu0 %v6720_v2  ;;  %vm834_vm12 = vcmask 285696  }
  0xdf   : > { %v652_v8 = vrot.slane %v650_v6, 4  ;;  %v651_v9 = vrot.slane %v648_v7, 4 }
  0xe1   : > { %v656_v10 = vsel %vm654_vm13, %v650_v6, %v652_v8  ;;  %v653_v11 = vsel %vm269_vm1, %v651_v9, %v652_v8  ;;  %v7087_v12 = vld [vmem:[#allocation2 + $0xf8] ss:$12 sps:$4 sm:$0xff]  }
  0xe2   : > { %660 = vst.msk [vmem:[#allocation2 + $0x11c] sm:$0xf] %vm257_vm0, %v656_v10  ;;  %v655_v13 = vsel %vm654_vm13, %v648_v7, %v653_v11  ;;  %v668_v15 = vpop.permute.xlu1 %667  ;;  %v666_v16 = vpop.permute.xlu0 %665  ;;  %6849 = vmatprep.subr.bf16.mxu1 %v7087_v12  ;;  %v7094_v7 = vld [vmem:[#allocation2 + $0x80] ss:$12 sps:$4 sm:$0xff]   ;;  %vm852_vm13 = vcmask 277504  }
  0xe3   : > { %v670_v18 = vrot.slane %v668_v15, 4  ;;  %v669_v19 = vrot.slane %v666_v16, 4  ;;  %v6724_v20 = vcombine.high %v637_v5, %v655_v13  ;;  %v6723_v21 = vcombine.low %v637_v5, %v655_v13  ;;  %6850 = vmatpush3.bf16.msra.mxu1 %v7088_v17 }
  0xe5   : > { %v674_v22 = vsel %vm672_vm14, %v668_v15, %v670_v18  ;;  %v671_v23 = vsel %vm269_vm1, %v669_v19, %v670_v18  ;;  %1686 = vmatprep.subr.bf16.mxu0 %v6724_v20 }
  0xe6   : > { %678 = vst.msk [vmem:[#allocation2 + $0x128] sm:$0xf] %vm257_vm0, %v674_v22  ;;  %v673_v24 = vsel %vm672_vm14, %v666_v16, %v671_v23  ;;  %v686_v25 = vpop.permute.xlu1 %685  ;;  %v684_v26 = vpop.permute.xlu0 %683  ;;  %1687 = vmatpush1.bf16.msra.mxu0 %v6723_v21  ;;  %vm870_vm14 = vcmask 146432  }
  0xe7   : > { %v688_v27 = vrot.slane %v686_v25, 4  ;;  %v687_v28 = vrot.slane %v684_v26, 4 }
  0xe9   : > { %v692_v29 = vsel %vm690_vm15, %v686_v25, %v688_v27  ;;  %v689_v30 = vsel %vm269_vm1, %v687_v28, %v688_v27  ;;  %v7089_v31 = vld [vmem:[#allocation2 + $0x110] ss:$12 sps:$4 sm:$0xff]  }
  0xea   : > { %696 = vst.msk [vmem:[#allocation2 + $0x134] sm:$0xf] %vm257_vm0, %v692_v29  ;;  %v691_v32 = vsel %vm690_vm15, %v684_v26, %v689_v30  ;;  %v704_v33 = vpop.permute.xlu1 %703  ;;  %v702_v34 = vpop.permute.xlu0 %701  ;;  %6851 = vmatprep.subr.bf16.mxu1 %v7089_v31  ;;  %v7096_v26 = vld [vmem:[#allocation2 + $0x98] ss:$12 sps:$4 sm:$0xff]   ;;  %vm10341_vm15 = vcmask 64512  }
  0xeb   : > { %v706_v36 = vrot.slane %v704_v33, 4  ;;  %v705_v37 = vrot.slane %v702_v34, 4  ;;  %v6727_v38 = vcombine.high %v673_v24, %v691_v32  ;;  %v6726_v40 = vcombine.low %v673_v24, %v691_v32  ;;  %6852 = vmatpush3.bf16.msra.mxu1 %v7090_v35  ;;  %v1105_v31 = vld [vmem:[%s10336_s2 + $0x20] sm:$0xff] }
  0xed   : > { %v710_v42 = vsel %vm708_vm2, %v704_v33, %v706_v36  ;;  %v707_v43 = vsel %vm269_vm1, %v705_v37, %v706_v36  ;;  %1688 = vmatprep.subr.bf16.mxu0 %v6727_v38  ;;  %v6687_v38 = vcombine.high %v1105_v31, %v1105_v31 }
  0xee   : > { %714 = vst.msk [vmem:[#allocation2 + $0x140] sm:$0xf] %vm257_vm0, %v710_v42  ;;  %v709_v44 = vsel %vm708_vm2, %v702_v34, %v707_v43  ;;  %v722_v45 = vpop.permute.xlu1 %721  ;;  %v720_v46 = vpop.permute.xlu0 %719  ;;  %1689 = vmatpush1.bf16.msra.mxu0 %v6726_v40  ;;  %v7099_v34 = vld [vmem:[%s10336_s2] ss:$16 sps:$4 sm:$0xff]   ;;  %vm888_vm2 = vcmask 138240  }
  0xef   : > { %v724_v41 = vrot.slane %v722_v45, 4  ;;  %v723_v0 = vrot.slane %v720_v46, 4 }
  0xf1   : > { %v728_v14 = vsel %vm726_vm3, %v722_v45, %v724_v41  ;;  %v725_v47 = vsel %vm269_vm1, %v723_v0, %v724_v41  ;;  %v7091_v48 = vld [vmem:[#allocation2 + $0x128] ss:$12 sps:$4 sm:$0xff]  }
  0xf2   : > { %732 = vst.msk [vmem:[#allocation2 + $0x14c] sm:$0xf] %vm257_vm0, %v728_v14  ;;  %v727_v49 = vsel %vm726_vm3, %v720_v46, %v725_v47  ;;  %v740_v50 = vpop.permute.xlu1 %739  ;;  %v738_v51 = vpop.permute.xlu0 %737  ;;  %6853 = vmatprep.subr.bf16.mxu1 %v7091_v48  ;;  %v7098_v14 = vld [vmem:[#allocation2 + $0xb0] ss:$12 sps:$4 sm:$0xff]   ;;  %vm10344_vm3 = vcmask 130048  }
  0xf3   : > { %v742_v53 = vrot.slane %v740_v50, 4  ;;  %v741_v54 = vrot.slane %v738_v51, 4  ;;  %v6730_v55 = vcombine.high %v709_v44, %v727_v49  ;;  %v6729_v56 = vcombine.low %v709_v44, %v727_v49  ;;  %6854 = vmatpush3.bf16.msra.mxu1 %v7092_v52 }
  0xf5   : > { %v746_v57 = vsel %vm744_vm4, %v740_v50, %v742_v53  ;;  %v743_v58 = vsel %vm269_vm1, %v741_v54, %v742_v53  ;;  %1690 = vmatprep.subr.bf16.mxu0 %v6730_v55  ;;  %v6686_v53 = vcombine.low %v1105_v31, %v1105_v31 }
  0xf6   : > { %750 = vst.msk [vmem:[#allocation2 + $0x158] sm:$0xf] %vm257_vm0, %v746_v57  ;;  %v745_v59 = vsel %vm744_vm4, %v738_v51, %v743_v58  ;;  %v758_v60 = vpop.permute.xlu1 %757  ;;  %v756_v61 = vpop.permute.xlu0 %755  ;;  %1691 = vmatpush1.bf16.msra.mxu0 %v6729_v56  ;;  %v7115_v57 = vld [vmem:[%s10336_s2 + $0xc] ss:$16 sps:$4 sm:$0xff]   ;;  %vm924_vm4 = vcmask 121856  }
  0xf7   : > { %v760_v62 = vrot.slane %v758_v60, 4  ;;  %v759_v63 = vrot.slane %v756_v61, 4 }
  0xf9   : > { %v764_v1 = vsel %vm762_vm8, %v758_v60, %v760_v62  ;;  %v761_v2 = vsel %vm269_vm1, %v759_v63, %v760_v62  ;;  %v7093_v3 = vld [vmem:[#allocation2 + $0x140] ss:$12 sps:$4 sm:$0xff]  }
  0xfa   : > { %768 = vst.msk [vmem:[#allocation2 + $0x164] sm:$0xf] %vm257_vm0, %v764_v1  ;;  %v763_v4 = vsel %vm762_vm8, %v756_v61, %v761_v2  ;;  %v776_v5 = vpop.permute.xlu1 %775  ;;  %v774_v6 = vpop.permute.xlu0 %773  ;;  %6855 = vmatprep.subr.bf16.mxu1 %v7093_v3  ;;  %vm10345_vm8 = vcmask 113664  }
  0xfb   : > { %v778_v8 = vrot.slane %v776_v5, 4  ;;  %v777_v9 = vrot.slane %v774_v6, 4  ;;  %v6733_v10 = vcombine.high %v745_v59, %v763_v4  ;;  %v6732_v11 = vcombine.low %v745_v59, %v763_v4  ;;  %6856 = vmatpush3.bf16.msra.mxu1 %v7094_v7 }
  0xfd   : > { %v782_v12 = vsel %vm780_vm9, %v776_v5, %v778_v8  ;;  %v779_v13 = vsel %vm269_vm1, %v777_v9, %v778_v8  ;;  %1692 = vmatprep.subr.bf16.mxu0 %v6733_v10 }
  0xfe   : > { %786 = vst.msk [vmem:[#allocation2 + $0x170] sm:$0xf] %vm257_vm0, %v782_v12  ;;  %v781_v15 = vsel %vm780_vm9, %v774_v6, %v779_v13  ;;  %v794_v16 = vpop.permute.xlu1 %793  ;;  %v792_v17 = vpop.permute.xlu0 %791  ;;  %1693 = vmatpush1.bf16.msra.mxu0 %v6732_v11  ;;  %vm960_vm9 = vcmask 105472  }
  0xff   : > { %v796_v18 = vrot.slane %v794_v16, 4  ;;  %v795_v19 = vrot.slane %v792_v17, 4 }
 0x101   : > { %v800_v20 = vsel %vm798_vm10, %v794_v16, %v796_v18  ;;  %v797_v21 = vsel %vm269_vm1, %v795_v19, %v796_v18  ;;  %v7095_v22 = vld [vmem:[#allocation2 + $0x158] ss:$12 sps:$4 sm:$0xff]  }
 0x102   : > { %804 = vst.msk [vmem:[#allocation2 + $0x17c] sm:$0xf] %vm257_vm0, %v800_v20  ;;  %v799_v23 = vsel %vm798_vm10, %v792_v17, %v797_v21  ;;  %v812_v24 = vpop.permute.xlu1 %811  ;;  %v810_v25 = vpop.permute.xlu0 %809  ;;  %6857 = vmatprep.subr.bf16.mxu1 %v7095_v22  ;;  %vm978_vm10 = vcmask 97280  }
 0x103   : > { %v814_v27 = vrot.slane %v812_v24, 4  ;;  %v813_v28 = vrot.slane %v810_v25, 4  ;;  %v6736_v29 = vcombine.high %v781_v15, %v799_v23  ;;  %v6735_v30 = vcombine.low %v781_v15, %v799_v23  ;;  %6858 = vmatpush3.bf16.msra.mxu1 %v7096_v26 }
 0x105   : > { %v818_v32 = vsel %vm816_vm11, %v812_v24, %v814_v27  ;;  %v815_v33 = vsel %vm269_vm1, %v813_v28, %v814_v27  ;;  %1694 = vmatprep.subr.bf16.mxu0 %v6736_v29 }
 0x106   : > { %822 = vst.msk [vmem:[#allocation2 + $0x188] sm:$0xf] %vm257_vm0, %v818_v32  ;;  %v817_v35 = vsel %vm816_vm11, %v810_v25, %v815_v33  ;;  %v830_v36 = vpop.permute.xlu1 %829  ;;  %v828_v37 = vpop.permute.xlu0 %827  ;;  %1695 = vmatpush1.bf16.msra.mxu0 %v6735_v30  ;;  %vm1095_vm11 = vcmask 965632  }
 0x107   : > { %v832_v40 = vrot.slane %v830_v36, 4  ;;  %v831_v42 = vrot.slane %v828_v37, 4 }
 0x109   : > { %v836_v43 = vsel %vm834_vm12, %v830_v36, %v832_v40  ;;  %v833_v44 = vsel %vm269_vm1, %v831_v42, %v832_v40  ;;  %v7097_v45 = vld [vmem:[#allocation2 + $0x170] ss:$12 sps:$4 sm:$0xff]   ;;  %1697 = vmatmul.mubr.bf16.vlgmr.msra.gmra.mrb[0].mxu0 %v7099_v34 }
 0x10a   : > { %840 = vst.msk [vmem:[#allocation2 + $0x194] sm:$0xf] %vm257_vm0, %v836_v43  ;;  %v835_v46 = vsel %vm834_vm12, %v828_v37, %v833_v44  ;;  %v848_v41 = vpop.permute.xlu1 %847  ;;  %v846_v0 = vpop.permute.xlu0 %845  ;;  %1706 = vmatprep.mubr.bf16.mxu0 %v6687_v38  ;;  %6859 = vmatprep.subr.bf16.mxu1 %v7097_v45 }
 0x10b   : > { %v850_v47 = vrot.slane %v848_v41, 4  ;;  %v849_v48 = vrot.slane %v846_v0, 4  ;;  %v6738_v49 = vcombine.low %v817_v35, %v835_v46  ;;  %v6739_v50 = vcombine.high %v817_v35, %v835_v46  ;;  %6860 = vmatpush3.bf16.msra.mxu1 %v7098_v14 }
 0x10c   : > { %1814 = vmatprep.subr.bf16.mxu1 %v7230_v39 }
 0x10d   : > { %v854_v51 = vsel %vm852_vm13, %v848_v41, %v850_v47  ;;  %v851_v52 = vsel %vm269_vm1, %v849_v48, %v850_v47  ;;  %1715 = vmatprep.subr.bf16.mxu0 %v6739_v50 }
 0x10e   : > { %858 = vst.msk [vmem:[#allocation2 + $0x1a0] sm:$0xf] %vm257_vm0, %v854_v51  ;;  %v853_v54 = vsel %vm852_vm13, %v846_v0, %v851_v52  ;;  %v866_v55 = vpop.permute.xlu1 %865  ;;  %v864_v56 = vpop.permute.xlu0 %863  ;;  %1716 = vmatpush1.bf16.msra.mxu0 %v6738_v49  ;;  %1799 = vmatmul.mubr.bf16.vlgmr.msra.gmra.mrb[0].mxu1 %v7099_v34  ;;  %vm4987_vm13 = vcmask 130055  }
 0x10f   : > { %v868_v58 = vrot.slane %v866_v55, 4  ;;  %v867_v59 = vrot.slane %v864_v56, 4  ;;  %1806 = vmatprep.mubr.bf16.mxu1 %v6687_v38 }
 0x111   : > { %v872_v60 = vsel %vm870_vm14, %v866_v55, %v868_v58  ;;  %v869_v61 = vsel %vm269_vm1, %v867_v59, %v868_v58  ;;  %v7102_v62 = vld [vmem:[#allocation2 + $0x188] ss:$12 sps:$4 sm:$0xff]   ;;  %1707 = vmatmul.mubr.bf16.gmra.mrb[4].mxu0 %v6686_v53 }
 0x112   : > { %876 = vst.msk [vmem:[#allocation2 + $0x1ac] sm:$0xf] %vm257_vm0, %v872_v60  ;;  %v871_v63 = vsel %vm870_vm14, %v864_v56, %v869_v61  ;;  %v884_v1 = vpop.permute.xlu1 %883  ;;  %v882_v2 = vpop.permute.xlu0 %881  ;;  %6766 = vmatprep.mubr.msk.bf16.mxu0 %vm10341_vm15, %v7115_v57  ;;  %1815 = vmatpush1.bf16.msra.mxu1 %v7102_v62  ;;  %vm4988_vm14 = vsmask.f32 7424 }
 0x113   : > { %v886_v3 = vrot.slane %v884_v1, 4  ;;  %v885_v4 = vrot.slane %v882_v2, 4  ;;  %v6741_v5 = vcombine.low %v853_v54, %v871_v63  ;;  %v6742_v6 = vcombine.high %v853_v54, %v871_v63  ;;  %1816 = vmatprep.subr.bf16.mxu1 %v7230_v39 }
 0x115   : > { %v890_v7 = vsel %vm888_vm2, %v884_v1, %v886_v3  ;;  %v887_v8 = vsel %vm269_vm1, %v885_v4, %v886_v3  ;;  %1717 = vmatprep.subr.bf16.mxu0 %v6742_v6 }
 0x116   : > { %894 = vst.msk [vmem:[#allocation2 + $0x1b8] sm:$0xf] %vm257_vm0, %v890_v7  ;;  %v889_v9 = vsel %vm888_vm2, %v882_v2, %v887_v8  ;;  %v902_v10 = vpop.permute.xlu1 %901  ;;  %v900_v11 = vpop.permute.xlu0 %899  ;;  %1718 = vmatpush1.bf16.msra.mxu0 %v6741_v5  ;;  %1807 = vmatmul.mubr.bf16.gmra.mrb[4].mxu1 %v6686_v53  ;;  %vm4694_vm2 = vcmask 129030  }
 0x117   : > { %v904_v12 = vrot.slane %v902_v10, 4  ;;  %v903_v13 = vrot.slane %v900_v11, 4  ;;  %6768 = vmatprep.mubr.msk.bf16.mxu1 %vm10341_vm15, %v7115_v57 }
 0x119   : > { %v908_v15 = vsel %vm10344_vm3, %v902_v10, %v904_v12  ;;  %v905_v16 = vsel %vm269_vm1, %v903_v13, %v904_v12  ;;  %v7103_v17 = vld [vmem:[#allocation2 + $0x1a0] ss:$12 sps:$4 sm:$0xff]  }
 0x11a   : > { %912 = vst.msk [vmem:[#allocation2 + $0x1c4] sm:$0xf] %vm257_vm0, %v908_v15  ;;  %v907_v18 = vsel %vm10344_vm3, %v900_v11, %v905_v16  ;;  %v920_v19 = vpop.permute.xlu1 %919  ;;  %v918_v20 = vpop.permute.xlu0 %917  ;;  %1817 = vmatpush1.bf16.msra.mxu1 %v7103_v17  ;;  %vm10347_vm3 = vcmask 126980  }
 0x11b   : > { %v922_v21 = vrot.slane %v920_v19, 4  ;;  %v921_v22 = vrot.slane %v918_v20, 4  ;;  %v6744_v23 = vcombine.low %v889_v9, %v907_v18  ;;  %v6745_v24 = vcombine.high %v889_v9, %v907_v18  ;;  %1818 = vmatprep.subr.bf16.mxu1 %v7230_v39 }
 0x11d   : > { %v926_v25 = vsel %vm924_vm4, %v920_v19, %v922_v21  ;;  %v923_v26 = vsel %vm269_vm1, %v921_v22, %v922_v21  ;;  %1719 = vmatprep.subr.bf16.mxu0 %v6745_v24 }
 0x11e   : > { %930 = vst.msk [vmem:[#allocation2 + $0x1d0] sm:$0xf] %vm257_vm0, %v926_v25  ;;  %v925_v27 = vsel %vm924_vm4, %v918_v20, %v923_v26  ;;  %v938_v28 = vpop.permute.xlu1 %937  ;;  %v936_v29 = vpop.permute.xlu0 %935  ;;  %1720 = vmatpush1.bf16.msra.mxu0 %v6744_v23  ;;  %vm4695_vm4 = vsmask.f32 6400 }
 0x11f   : > { %v940_v30 = vrot.slane %v938_v28, 4  ;;  %v939_v31 = vrot.slane %v936_v29, 4 }
 0x121   : > { %v944_v32 = vsel %vm10345_vm8, %v938_v28, %v940_v30  ;;  %v941_v33 = vsel %vm269_vm1, %v939_v31, %v940_v30  ;;  %v7104_v34 = vld [vmem:[#allocation2 + $0x1b8] ss:$12 sps:$4 sm:$0xff]  }
 0x122   : > { %948 = vst.msk [vmem:[#allocation2 + $0x1dc] sm:$0xf] %vm257_vm0, %v944_v32  ;;  %v943_v35 = vsel %vm10345_vm8, %v936_v29, %v941_v33  ;;  %v956_v36 = vpop.permute.xlu1 %955  ;;  %v954_v37 = vpop.permute.xlu0 %953  ;;  %1819 = vmatpush1.bf16.msra.mxu1 %v7104_v34  ;;  %vm3503_vm8 = vsmask.f32 4352 }
 0x123   : > { %v958_v38 = vrot.slane %v956_v36, 4  ;;  %v957_v40 = vrot.slane %v954_v37, 4  ;;  %v6747_v42 = vcombine.low %v925_v27, %v943_v35  ;;  %v6748_v43 = vcombine.high %v925_v27, %v943_v35  ;;  %1820 = vmatprep.subr.bf16.mxu1 %v7230_v39 }
 0x125   : > { %v962_v44 = vsel %vm960_vm9, %v956_v36, %v958_v38  ;;  %v959_v45 = vsel %vm269_vm1, %v957_v40, %v958_v38  ;;  %1721 = vmatprep.subr.bf16.mxu0 %v6748_v43 }
 0x126   : > { %966 = vst.msk [vmem:[#allocation2 + $0x1e8] sm:$0xf] %vm257_vm0, %v962_v44  ;;  %v961_v46 = vsel %vm960_vm9, %v954_v37, %v959_v45  ;;  %v974_v41 = vpop.permute.xlu1 %973  ;;  %v972_v0 = vpop.permute.xlu0 %971  ;;  %1722 = vmatpush1.bf16.msra.mxu0 %v6747_v42  ;;  %vm7958_vm9 = vmand %vm4987_vm13, %vm4988_vm14  ;;  %vm2698_vm14 = vsmask.f32 2304 }
 0x127   : > { %v976_v14 = vrot.slane %v974_v41, 4  ;;  %v975_v47 = vrot.slane %v972_v0, 4 }
 0x129   : > { %v980_v48 = vsel %vm978_vm10, %v974_v41, %v976_v14  ;;  %v977_v49 = vsel %vm269_vm1, %v975_v47, %v976_v14  ;;  %v7105_v50 = vld [vmem:[#allocation2 + $0x1d0] ss:$12 sps:$4 sm:$0xff]   ;;  %v7113_v14 = vld [vmem:[%s10336_s2 + $0x8] ss:$16 sps:$4 sm:$0xff]  }
 0x12a   : > { %984 = vst.msk [vmem:[#allocation2 + $0x1f4] sm:$0xf] %vm257_vm0, %v980_v48  ;;  %v979_v51 = vsel %vm978_vm10, %v972_v0, %v977_v49  ;;  %v992_v52 = vpop.permute.xlu1 %991  ;;  %v990_v53 = vpop.permute.xlu0 %989  ;;  %1821 = vmatpush1.bf16.msra.mxu1 %v7105_v50  ;;  %v1106_v0 = vld [vmem:[%s10336_s2 + $0x28] sm:$0xff]  ;;  %vm7965_vm10 = vmand %vm4694_vm2, %vm4695_vm4  ;;  %vm2405_vm4 = vsmask.f32 1280 }
 0x12b   : > { %v994_v54 = vrot.slane %v992_v52, 4  ;;  %1000 = vst.msk [vmem:[#allocation2 + $0x200] sm:$0xf] %vm257_vm0, %v992_v52  ;;  %v993_v55 = vrot.slane %v990_v53, 4  ;;  %v6750_v56 = vcombine.low %v961_v46, %v979_v51  ;;  %v6751_v57 = vcombine.high %v961_v46, %v979_v51  ;;  %1822 = vmatprep.subr.bf16.mxu1 %v7230_v39 }
 0x12c   : > { %v6689_v49 = vcombine.high %v1106_v0, %v1106_v0  ;;  %v6688_v51 = vcombine.low %v1106_v0, %v1106_v0 }
 0x12d   : > { %v995_v58 = vsel %vm269_vm1, %v993_v55, %v994_v54  ;;  %1723 = vmatprep.subr.bf16.mxu0 %v6751_v57 }
 0x12e   : > { %v996_v59 = vsel %vm322_vm5, %v990_v53, %v995_v58  ;;  %v1008_v60 = vpop.permute.xlu1 %1007  ;;  %v1006_v61 = vpop.permute.xlu0 %1005  ;;  %1724 = vmatpush1.bf16.msra.mxu0 %v6750_v56  ;;  %vm1044_vm5 = vcmask 990208  }
 0x12f   : > { %v1010_v62 = vrot.slane %v1008_v60, 4  ;;  %1016 = vst.msk [vmem:[#allocation2 + $0x20c] sm:$0xf] %vm257_vm0, %v1008_v60  ;;  %v1009_v63 = vrot.slane %v1006_v61, 4 }
 0x131   : > { %v1011_v1 = vsel %vm269_vm1, %v1009_v63, %v1010_v62  ;;  %v7106_v2 = vld [vmem:[#allocation2 + $0x1e8] ss:$12 sps:$4 sm:$0xff]  }
 0x132   : > { %v1012_v3 = vsel %vm339_vm6, %v1006_v61, %v1011_v1  ;;  %v1024_v4 = vpop.permute.xlu1 %1023  ;;  %v1022_v5 = vpop.permute.xlu0 %1021  ;;  %1823 = vmatpush1.bf16.msra.mxu1 %v7106_v2  ;;  %vm1061_vm6 = vcmask 982016  }
 0x133   : > { %v1026_v6 = vrot.slane %v1024_v4, 4  ;;  %1032 = vst.msk [vmem:[#allocation2 + $0x218] sm:$0xf] %vm257_vm0, %v1024_v4  ;;  %v1025_v7 = vrot.slane %v1022_v5, 4  ;;  %v6753_v8 = vcombine.low %v996_v59, %v1012_v3  ;;  %v6754_v9 = vcombine.high %v996_v59, %v1012_v3  ;;  %1824 = vmatprep.subr.bf16.mxu1 %v7230_v39 }
 0x135   : > { %v1027_v10 = vsel %vm269_vm1, %v1025_v7, %v1026_v6  ;;  %1725 = vmatprep.subr.bf16.mxu0 %v6754_v9 }
 0x136   : > { %v1028_v11 = vsel %vm356_vm7, %v1022_v5, %v1027_v10  ;;  %v1040_v12 = vpop.permute.xlu1 %1039  ;;  %v1038_v13 = vpop.permute.xlu0 %1037  ;;  %v7107_v15 = vld [vmem:[#allocation2 + $0x200] ss:$12 sps:$4 sm:$0xff]   ;;  %1726 = vmatpush1.bf16.msra.mxu0 %v6753_v8  ;;  %vm1078_vm7 = vcmask 973824  }
 0x137   : > { %v1042_v16 = vrot.slane %v1040_v12, 4  ;;  %1049 = vst.msk [vmem:[#allocation2 + $0x224] sm:$0xf] %vm257_vm0, %v1040_v12  ;;  %v1041_v17 = vrot.slane %v1038_v13, 4  ;;  %1825 = vmatpush1.bf16.msra.mxu1 %v7107_v15 }
 0x138   : > { %1826 = vmatprep.subr.bf16.mxu1 %v7230_v39 }
 0x139   : > { %v1043_v18 = vsel %vm269_vm1, %v1041_v17, %v1042_v16 }
 0x13a   : > { %v1045_v19 = vsel %vm1044_vm5, %v1038_v13, %v1043_v18  ;;  %v1057_v20 = vpop.permute.xlu1 %1056  ;;  %v1055_v21 = vpop.permute.xlu0 %1054  ;;  %vm10342_vm5 = vmmov 0  }
 0x13b   : > { %v1059_v22 = vrot.slane %v1057_v20, 4  ;;  %1066 = vst.msk [vmem:[#allocation2 + $0x230] sm:$0xf] %vm257_vm0, %v1057_v20  ;;  %v1058_v23 = vrot.slane %v1055_v21, 4  ;;  %v6756_v24 = vcombine.low %v1028_v11, %v1045_v19  ;;  %v6757_v25 = vcombine.high %v1028_v11, %v1045_v19 }
 0x13d   : > { %v1060_v26 = vsel %vm269_vm1, %v1058_v23, %v1059_v22  ;;  %1727 = vmatprep.subr.bf16.mxu0 %v6757_v25  ;;  %v1874_v23 = vlaneseq }
 0x13e   : > { %v1062_v27 = vsel %vm1061_vm6, %v1055_v21, %v1060_v26  ;;  %v1074_v28 = vpop.permute.xlu1 %1073  ;;  %v1072_v29 = vpop.permute.xlu0 %1071  ;;  %v7108_v30 = vld [vmem:[#allocation2 + $0x218] ss:$12 sps:$4 sm:$0xff]   ;;  %1728 = vmatpush1.bf16.msra.mxu0 %v6756_v24  ;;  %v7244_v21 = vmov 1966171168   ;;  %vm4841_vm6 = vsmask.f32 7962 }
 0x13f   : > { %v1076_v31 = vrot.slane %v1074_v28, 4  ;;  %1083 = vst.msk [vmem:[#allocation2 + $0x23c] sm:$0xf] %vm257_vm0, %v1074_v28  ;;  %v1075_v32 = vrot.slane %v1072_v29, 4  ;;  %1827 = vmatpush1.bf16.msra.mxu1 %v7108_v30  ;;  %v1872_v22 = vunpack.c.l.s4 %v7244_v21 }
 0x140   : > { %1828 = vmatprep.subr.bf16.mxu1 %v7230_v39 }
 0x141   : > { %v1077_v33 = vsel %vm269_vm1, %v1075_v32, %v1076_v31  ;;  %v1873_v28 = vunpack.c.0.s8 %v1872_v22 }
 0x142   : > { %v1079_v34 = vsel %vm1078_vm7, %v1072_v29, %v1077_v33  ;;  %v1091_v35 = vpop.permute.xlu1 %1090  ;;  %v1089_v36 = vpop.permute.xlu0 %1088  ;;  %v7632_v29 = vshrl.u32 %v1874_v23, 7  ;;  %vm7990_vm7 = vmand %vm4694_vm2, %vm4841_vm6  ;;  %vm2404_vm2 = vcmask 123905  }
 0x143   : > { %v1093_v37 = vrot.slane %v1091_v35, 4  ;;  %1100 = vst.msk [vmem:[#allocation2 + $0x248] sm:$0xf] %vm257_vm0, %v1091_v35  ;;  %v1092_v38 = vrot.slane %v1089_v36, 4  ;;  %v6759_v40 = vcombine.low %v1062_v27, %v1079_v34  ;;  %v6760_v42 = vcombine.high %v1062_v27, %v1079_v34 }
 0x144   : > { %v7637_v32 = vsub.s32 %v1873_v28, %v7632_v29  ;;  %vm2111_vm0 = vcmask 122880   ;;  %v2117_v28 = vld [vmem:[#allocation3 + $0x8] sm:$0x1] }
 0x145   : > { %v1094_v43 = vsel %vm269_vm1, %v1092_v38, %v1093_v37  ;;  %1729 = vmatprep.subr.bf16.mxu0 %v6760_v42  ;;  %v7654_v42 = vsub.s32 0, %v7632_v29 }
 0x146   : > { %v1096_v44 = vsel %vm1095_vm11, %v1089_v36, %v1094_v43  ;;  %v7111_v45 = vld [vmem:[#allocation2 + $0x230] ss:$12 sps:$4 sm:$0xff]   ;;  %1730 = vmatpush1.bf16.msra.mxu0 %v6759_v40  ;;  %10397 = vst [vmem:[#allocation9_spill] sm:$0xff] %v7637_v32  ;;  %vm5134_vm11 = vsmask.f32 7966 }
 0x147   : > { %v6763_v46 = vcombine.high %v1096_v44, %v1096_v44  ;;  %v6762_v41 = vcombine.low %v1096_v44, %v1096_v44  ;;  %1829 = vmatpush1.bf16.msra.mxu1 %v7111_v45 }
 0x148   : > { %1830 = vmatprep.subr.bf16.mxu1 %v7230_v39 }
 0x149   : > { %6765 = vmatprep.subr.msk.bf16.mxu0 %vm269_vm1, %v6763_v46  ;;  %v1656_v47 = vsel %vm269_vm1, %v6762_v41, 0 }
 0x14a   : > { %v7112_v48 = vld [vmem:[#allocation2 + $0x248] ss:$0 sps:$4 sm:$0xff]   ;;  %1732 = vmatpush1.bf16.msra.mxu0 %v1656_v47 }
 0x14b   : > { %v1662_v50 = vsel %vm269_vm1, %v7112_v48, 0  ;;  %vm2112_vm1 = vsmask.f32 256 }
 0x14c   : > { %1831 = vmatpush1.bf16.msra.mxu1 %v1662_v50  ;;  %vm7698_vm12 = vmand %vm2111_vm0, %vm2112_vm1 }
 0x14d   : > { %1748 = vmatmul.mubr.bf16.vlgmr.msra.gmra.mrb[0].mxu0 %v7113_v14  ;;  %vm8003_vm1 = vmand %vm4987_vm13, %vm5134_vm11  ;;  %vm2697_vm13 = vcmask 124930  }
 0x14e   : > { %6767 = vmatprep.mubr.msk.bf16.mxu0 %vm10341_vm15, %v6689_v49  ;;  %vm8150_vm6 = vmand %vm2697_vm13, %vm2698_vm14  ;;  %vm2258_vm14 = vsmask.f32 7938 }
 0x14f   : > { %1847 = vmatmul.mubr.bf16.vlgmr.msra.gmra.mrb[8].mxu1 %v7113_v14  ;;  %vm8159_vm11 = vmand %vm2404_vm2, %vm2405_vm4  ;;  %vm2551_vm4 = vsmask.f32 7942 }
 0x150   : > { %6769 = vmatprep.mubr.msk.bf16.mxu1 %vm10341_vm15, %v6689_v49  ;;  %vm8188_vm15 = vmand %vm2111_vm0, %vm2258_vm14  ;;  %vm2844_vm0 = vsmask.f32 7946  ;;  %vm10346_vm14 = vcmask 125955  }
 0x153   : > { %v1211_v62 = vpop.permute.xlu1 %1210  ;;  %v1216_v1 = vpop.permute.xlu0 %1215 }
 0x155   : > { %1758 = vmatmul.mubr.bf16.gmra.mrb[4].mxu0 %v6688_v51 }
 0x157   : > { %1855 = vmatmul.mubr.bf16.gmra.mrb[12].mxu1 %v6688_v51 }
 0x1e1   : > { %v6861_v39 = vpop.f32.mrb[0].mxu1 }
 0x1e2   : > { %v6862_v52 = vpop.f32.mrb[1].mxu1 }
 0x1e3   : > { %v6863_v53 = vadd.f32 %v6862_v52, %v6861_v39  ;;  %v6864_v54 = vpop.f32.mrb[2].mxu1 }
 0x1e4   : > { %v6865_v55 = vpop.f32.mrb[3].mxu1 }
 0x1e5   : > { %v6866_v56 = vadd.f32 %v6865_v55, %v6864_v54  ;;  %v1801_v4 = vadd.f32 %v6863_v53, %v1211_v62 }
 0x1e7   : > { %v1804_v12 = vadd.f32 %v6866_v56, %v1216_v1 }
 0x1e9   : > { %v6867_v57 = vpop.f32.mrb[4].mxu1 }
 0x1ea   : > { %v6868_v58 = vpop.f32.mrb[5].mxu1 }
 0x1eb   : > { %v7612_v59 = vadd.f32 %v6868_v58, %v6867_v57  ;;  %v6870_v60 = vpop.f32.mrb[6].mxu1 }
 0x1ec   : > { %v6871_v61 = vpop.f32.mrb[7].mxu1 }
 0x1ed   : > { %10394 = vst [vmem:[#allocation6_spill] sm:$0xff] %v7612_v59 }
 0x220   : > { %v1749_v63 = vpop.f32.mrb[0].mxu0 }
 0x221   : > { %v7001_v2 = vadd.f32 %v1749_v63, %v1211_v62  ;;  %v1751_v3 = vpop.f32.mrb[1].mxu0 }
 0x222   : > { %v7614_v5 = vadd.f32 %v1751_v3, %v1211_v62  ;;  %v1753_v6 = vpop.f32.mrb[2].mxu0  ;;  %v1848_v7 = vpop.f32.mrb[8].mxu1 }
 0x223   : > { %v7003_v8 = vadd.f32 %v1753_v6, %v1216_v1  ;;  %v1755_v9 = vpop.f32.mrb[3].mxu0  ;;  %v7616_v10 = vadd.f32 %v1848_v7, %v1801_v4  ;;  %v1850_v11 = vpop.f32.mrb[9].mxu1  ;;  %v10398_v4 = vmov 0  ;;  %v2114_v6 = vld [vmem:[#allocation3] sm:$0x1] }
 0x224   : > { %v7618_v13 = vadd.f32 %v1755_v9, %v1216_v1  ;;  %v1851_v15 = vpop.f32.mrb[10].mxu1  ;;  %v10399_v4 = vsel %vm7698_vm12, 4294967295, %v10398_v4  ;;  %v2138_v7 = vld [vmem:[#allocation3 + $0x40] sm:$0x1] }
 0x225   : > { %v1862_v16 = vpack.c.bf16 %v7003_v8, %v7001_v2  ;;  %v7620_v17 = vadd.f32 %v1851_v15, %v1804_v12  ;;  %v1853_v18 = vpop.f32.mrb[11].mxu1  ;;  %v6796_v19 = vpack.c.bf16 %v7616_v10, %v7614_v5  ;;  %v6770_v35 = vpack.c.bf16 %v7003_v8, %v7003_v8  ;;  %10400 = vst [vmem:[#allocation10_spill] sm:$0xff] %v10399_v4  ;;  %v2141_v8 = vld [vmem:[#allocation3 + $0x48] sm:$0x1] }
 0x226   : > { %v1863_v20 = vpack.c.bf16 %v7618_v13, %v7614_v5 }
 0x227   : > { %v1864_v24 = vpack.c.bf16 %v7620_v17, %v7616_v10  ;;  %v6811_v31 = vpack.c.bf16 %v7620_v17, %v7620_v17  ;;  %v1884_v38 = vrot.slane %v6770_v35, %v7637_v32  ;;  %v6797_v40 = vpack.c.bf16 %v7620_v17, %v7618_v13 }
 0x228   : > { %v7628_v25 = vpop.f32.mrb[4].mxu0  ;;  %v1877_v44 = vrot.slane %v1862_v16, %v7637_v32 }
 0x229   : > { %10395 = vst [vmem:[#allocation7_spill] sm:$0xff] %v7628_v25  ;;  %v7630_v26 = vpop.f32.mrb[5].mxu0  ;;  %v4419_v33 = vrot.slane %v6811_v31, %v7637_v32  ;;  %v7641_v34 = vrot.slane %v1864_v24, %v7637_v32  ;;  %v1900_v41 = vrot.slane %v1884_v38, %v7637_v32  ;;  %v1886_v0 = vcombine.high %v1884_v38, %v1884_v38 }
 0x22a   : > { %10396 = vst [vmem:[#allocation8_spill] sm:$0xff] %v7630_v26  ;;  %v1763_v27 = vpop.f32.mrb[6].mxu0  ;;  %v7666_v47 = vrot.slane %v1877_v44, %v7637_v32  ;;  %v1885_v49 = vcombine.high %v1877_v44, %v1877_v44  ;;  %v7923_v5 = vrot.slane %v6797_v40, %v7637_v32 }
 0x22b   : > { %v1764_v30 = vpop.f32.mrb[7].mxu0  ;;  %v7644_v36 = vrot.slane %v4419_v33, %v7637_v32  ;;  %v7648_v37 = vrot.slane %v7641_v34, %v7637_v32  ;;  %v4421_v14 = vcombine.high %v4419_v33, %v4419_v33  ;;  %v1952_v50 = vunpack.i.h.s16 %v1900_v41  ;;  %v2144_v27 = vld [vmem:[#allocation3 + $0x50] sm:$0x1] }
 0x22c   : > { %v1914_v51 = vrot.slane %v1886_v0, %v7637_v32  ;;  %v6771_v52 = vpack.i.b16 %v7666_v47, %v7666_v47  ;;  %v6775_v53 = vpack.i.b16 %v1900_v41, %v1900_v41  ;;  %v7679_v55 = vrot.slane %v1885_v49, %v7637_v32  ;;  %v2120_v30 = vld [vmem:[#allocation3 + $0x10] sm:$0x1] }
 0x22d   : > { %v6816_v43 = vpack.i.b16 %v7644_v36, %v7644_v36  ;;  %v6812_v46 = vpack.i.b16 %v7648_v37, %v7648_v37  ;;  %v7673_v39 = vrot.slane %v4421_v14, %v7637_v32  ;;  %v4487_v54 = vunpack.i.h.s16 %v7644_v36 }
 0x22e   : > { %v1944_v56 = vunpack.i.h.s16 %v7666_v47  ;;  %v1976_v57 = vpack.i.b16 %v1952_v50, %v1952_v50  ;;  %v6776_v58 = vpack.i.b16 %v1914_v51, %v1914_v51  ;;  %v7685_v60 = vrot.slane %v6771_v52, %v7654_v42 }
 0x22f   : > { %v4561_v45 = vrot.slane %v6816_v43, %v7654_v42  ;;  %v4529_v48 = vrot.slane %v6812_v46, %v7654_v42  ;;  %v7688_v61 = vrot.slane %v6775_v53, %v7654_v42  ;;  %v4511_v62 = vpack.i.b16 %v4487_v54, %v4487_v54 }
 0x230   : > { %v6817_v63 = vpack.i.b16 %v7673_v39, %v7673_v39  ;;  %v1968_v1 = vpack.i.b16 %v1944_v56, %v1944_v56  ;;  %v6772_v2 = vpack.i.b16 %v7679_v55, %v7679_v55  ;;  %v7695_v3 = vrot.slane %v1976_v57, %v7654_v42 }
 0x231   : > { %4931 = vrot.lane.b32.xlu1 %v4561_v45, %s7245_s20  ;;  %4638 = vrot.lane.b32.xlu0 %v4561_v45, %s7241_s9  ;;  %v7705_v9 = vrot.slane %v6776_v58, %v7654_v42  ;;  %v4479_v11 = vunpack.i.h.s16 %v7648_v37  ;;  %v4565_v12 = vrot.slane %v4511_v62, %v7654_v42  ;;  %v2115_v16 = vsel %vm7698_vm12, %v7685_v60, %v2114_v6 }
 0x232   : > { %v7710_v15 = vrot.slane %v6817_v63, %v7654_v42  ;;  %v2139_v18 = vsel %vm7698_vm12, %v7688_v61, %v2138_v7  ;;  %v1954_v21 = vunpack.i.h.s16 %v1914_v51  ;;  %v7719_v22 = vrot.slane %v1968_v1, %v7654_v42  ;;  %2116 = vst [vmem:[#allocation3] sm:$0x1] %v2115_v16  ;;  %v2150_v63 = vld [vmem:[#allocation3 + $0x60] sm:$0x1] }
 0x233   : > { %v7722_v23 = vrot.slane %v6772_v2, %v7654_v42  ;;  %2140 = vst [vmem:[#allocation3 + $0x40] sm:$0x1] %v2139_v18  ;;  %v2142_v24 = vsel %vm7698_vm12, %v7695_v3, %v2141_v8  ;;  %v4420_v31 = vcombine.high %v7641_v34, %v7641_v34  ;;  %v4503_v33 = vpack.i.b16 %v4479_v11, %v4479_v11 }
 0x234   : > { %2143 = vst [vmem:[#allocation3 + $0x48] sm:$0x1] %v2142_v24  ;;  %v2145_v35 = vsel %vm7698_vm12, %v7705_v9, %v2144_v27  ;;  %v1916_v38 = vcombine.high %v1900_v41, %v1900_v41  ;;  %v1978_v43 = vpack.i.b16 %v1954_v21, %v1954_v21  ;;  %v2118_v44 = vsel %vm7698_vm12, %v7719_v22, %v2117_v28  ;;  %v2123_v27 = vld [vmem:[#allocation3 + $0x18] sm:$0x1]  ;;  %v2153_v28 = vld [vmem:[#allocation3 + $0x68] sm:$0x1] }
 0x235   : > { %4785 = vrot.lane.b32.xlu1 %v4561_v45, %s7246_s8  ;;  %4622 = vrot.lane.b32.xlu0 %v4529_v48, %s7241_s9  ;;  %2146 = vst [vmem:[#allocation3 + $0x50] sm:$0x1] %v2145_v35  ;;  %2119 = vst [vmem:[#allocation3 + $0x8] sm:$0x1] %v2118_v44  ;;  %v1915_v34 = vcombine.high %v7666_v47, %v7666_v47  ;;  %v7747_v46 = vrot.slane %v4420_v31, %v7637_v32  ;;  %v1946_v0 = vunpack.i.h.s16 %v7679_v55  ;;  %v2147_v47 = vld [vmem:[#allocation3 + $0x58] sm:$0x1] }
 0x236   : > { %v1917_v41 = vcombine.high %v7679_v55, %v7679_v55  ;;  %v7753_v14 = vrot.slane %v4503_v33, %v7654_v42  ;;  %v1956_v49 = vunpack.i.h.s16 %v1916_v38  ;;  %v6777_v50 = vpack.i.b16 %v1916_v38, %v1916_v38  ;;  %v2126_v38 = vld [vmem:[#allocation3 + $0x20] sm:$0x1] }
 0x237   : > { %v7756_v52 = vrot.slane %v1978_v43, %v7654_v42  ;;  %v1948_v53 = vunpack.i.h.s16 %v1915_v34  ;;  %v1970_v56 = vpack.i.b16 %v1946_v0, %v1946_v0  ;;  %v6813_v55 = vpack.i.b16 %v7747_v46, %v7747_v46  ;;  %v2129_v0 = vld [vmem:[#allocation3 + $0x28] sm:$0x1] }
 0x238   : > { %v1950_v54 = vunpack.i.h.s16 %v1917_v41  ;;  %v1980_v58 = vpack.i.b16 %v1956_v49, %v1956_v49  ;;  %v6773_v1 = vpack.i.b16 %v1915_v34, %v1915_v34  ;;  %v6774_v6 = vpack.i.b16 %v1917_v41, %v1917_v41  ;;  %v2156_v41 = vld [vmem:[#allocation3 + $0x70] sm:$0x1] }
 0x239   : > { %4769 = vrot.lane.b32.xlu1 %v4529_v48, %s7246_s8  ;;  %4915 = vrot.lane.b32.xlu0 %v4529_v48, %s7245_s20  ;;  %v2148_v62 = vsel %vm7698_vm12, %v7756_v52, %v2147_v47  ;;  %v1972_v2 = vpack.i.b16 %v1948_v53, %v1948_v53  ;;  %v7773_v8 = vrot.slane %v1970_v56, %v7654_v42  ;;  %v2132_v49 = vld [vmem:[#allocation3 + $0x30] sm:$0x1] }
 0x23a   : > { %2149 = vst [vmem:[#allocation3 + $0x58] sm:$0x1] %v2148_v62  ;;  %v4537_v11 = vrot.slane %v6813_v55, %v7654_v42  ;;  %v4451_v16 = vcombine.high %v7644_v36, %v7644_v36  ;;  %v1974_v18 = vpack.i.b16 %v1950_v54, %v1950_v54  ;;  %v7800_v43 = vrot.slane %v6774_v6, %v7654_v42 }
 0x23b   : > { %v7791_v36 = vrot.slane %v1972_v2, %v7654_v42  ;;  %v2124_v35 = vsel %vm7698_vm12, %v7773_v8, %v2123_v27 }
 0x23c   : > { %v6818_v33 = vpack.i.b16 %v4451_v16, %v4451_v16  ;;  %2125 = vst [vmem:[#allocation3 + $0x18] sm:$0x1] %v2124_v35  ;;  %v2133_v55 = vsel %vm7698_vm12, %v7800_v43, %v2132_v49  ;;  %v4491_v62 = vunpack.i.h.s16 %v4451_v16 }
 0x23d   : > { %5062 = vrot.lane.b32.xlu1 %v4529_v48, %s7247_s22  ;;  %5078 = vrot.lane.b32.xlu0 %v4561_v45, %s7247_s22  ;;  %v2121_v45 = vsel %vm7698_vm12, %v7722_v23, %v2120_v30  ;;  %v1918_v48 = vcombine.high %v1914_v51, %v1914_v51  ;;  %v7764_v51 = vrot.slane %v6777_v50, %v7654_v42  ;;  %v2135_v50 = vld [vmem:[#allocation3 + $0x38] sm:$0x1] }
 0x23e   : > { %2122 = vst [vmem:[#allocation3 + $0x10] sm:$0x1] %v2121_v45  ;;  %v7788_v30 = vrot.slane %v6773_v1, %v7654_v42  ;;  %v7806_v45 = vrot.slane %v1974_v18, %v7654_v42  ;;  %v7818_v53 = vrot.slane %v6818_v33, %v7654_v42  ;;  %2134 = vst [vmem:[#allocation3 + $0x30] sm:$0x1] %v2133_v55 }
 0x23f   : > { %v1958_v57 = vunpack.i.h.s16 %v1918_v48  ;;  %v6778_v7 = vpack.i.b16 %v1918_v48, %v1918_v48  ;;  %v2151_v24 = vsel %vm7698_vm12, %v7764_v51, %v2150_v63  ;;  %v2159_v48 = vld [vmem:[#allocation3 + $0x78] sm:$0x1]  ;;  %v4515_v1 = vpack.i.b16 %v4491_v62, %v4491_v62 }
 0x240   : > { %2152 = vst [vmem:[#allocation3 + $0x60] sm:$0x1] %v2151_v24  ;;  %v2127_v47 = vsel %vm7698_vm12, %v7788_v30, %v2126_v38 }
 0x241   : > { %4640 = vrot.lane.b32.xlu1 %v4565_v12, %s7241_s9  ;;  %4642 = vrot.lane.b32.xlu0 %v7710_v15, %s7241_s9  ;;  %v1982_v21 = vpack.i.b16 %v1958_v57, %v1958_v57  ;;  %v7794_v31 = vrot.slane %v6778_v7, %v7654_v42  ;;  %2128 = vst [vmem:[#allocation3 + $0x20] sm:$0x1] %v2127_v47  ;;  %v4481_v7 = vunpack.i.h.s16 %v7747_v46 }
 0x242   : > { %v2136_v57 = vsel %vm7698_vm12, %v7806_v45, %v2135_v50  ;;  %v7848_v6 = vrot.slane %v4515_v1, %v7654_v42 }
 0x243   : > { %v7803_v44 = vrot.slane %v1982_v21, %v7654_v42  ;;  %v2157_v54 = vsel %vm7698_vm12, %v7794_v31, %v2156_v41  ;;  %2137 = vst [vmem:[#allocation3 + $0x38] sm:$0x1] %v2136_v57 }
 0x244   : > { %2158 = vst [vmem:[#allocation3 + $0x70] sm:$0x1] %v2157_v54  ;;  %v5014_v54 = vld [vmem:[#allocation3 + $0x40] sm:$0x80] }
 0x245   : > { %4933 = vrot.lane.b32.xlu1 %v4565_v12, %s7245_s20  ;;  %4935 = vrot.lane.b32.xlu0 %v7710_v15, %s7245_s20  ;;  %v2160_v56 = vsel %vm7698_vm12, %v7803_v44, %v2159_v48  ;;  %v10355_v48 = vmov 0.0  }
 0x246   : > { %2161 = vst [vmem:[#allocation3 + $0x78] sm:$0x1] %v2160_v56  ;;  %6905 = vmatprep.subr.bf16.mxu1 %v10355_v48  ;;  %6929 = vmatprep.subr.bf16.mxu0 %v10355_v48  ;;  %v4721_v56 = vld [vmem:[#allocation3 + $0x40] sm:$0x40] }
 0x247   : > { %6907 = vmatprep.mubr.msk.bf16.mxu1 %vm10342_vm5, %v10355_v48  ;;  %6931 = vmatprep.mubr.msk.bf16.mxu0 %vm10342_vm5, %v10355_v48  ;;  %vm8193_vm5 = vmand %vm2404_vm2, %vm2551_vm4  ;;  %vm3210_vm4 = vsmask.f32 3328 }
 0x248   : > { %vm8218_vm2 = vmand %vm2697_vm13, %vm2844_vm0 }
 0x249   : > { %4787 = vrot.lane.b32.xlu0 %v4565_v12, %s7246_s8  ;;  %4624 = vrot.lane.b32.xlu1 %v7753_v14, %s7241_s9  ;;  %vm8230_vm13 = vmand %vm10346_vm14, %vm3210_vm4  ;;  %vm10348_vm4 = vcmask 128005   ;;  %vm3796_vm14 = vsmask.f32 5376 }
 0x24a   : > { %vm8240_vm0 = vmand %vm10347_vm3, %vm3503_vm8  ;;  %vm10425_vm3 = vcmask 125955  }
 0x24b   : > { %vm8255_vm8 = vmand %vm10348_vm4, %vm3796_vm14  ;;  %vm3356_vm14 = vsmask.f32 7950 }
 0x24c   : > { %vm8277_vm4 = vmand %vm10425_vm3, %vm3356_vm14  ;;  %vm10428_vm3 = vcmask 128005  }
 0x24d   : > { %5080 = vrot.lane.b32.xlu0 %v4565_v12, %s7247_s22  ;;  %4917 = vrot.lane.b32.xlu1 %v7753_v14, %s7245_s20  ;;  %v7779_v12 = vrot.slane %v1980_v58, %v7654_v42  ;;  %v4489_v58 = vunpack.i.h.s16 %v7673_v39 }
 0x24f   : > { %v2154_v34 = vsel %vm7698_vm12, %v7779_v12, %v2153_v28  ;;  %v4513_v63 = vpack.i.b16 %v4489_v58, %v4489_v58  ;;  %v7903_v28 = vrot.slane %v1863_v20, %v7637_v32 }
 0x250   : > { %2155 = vst [vmem:[#allocation3 + $0x68] sm:$0x1] %v2154_v34  ;;  %v7933_v34 = vrot.slane %v7923_v5, %v7637_v32 }
 0x251   : > { %4789 = vrot.lane.b32.xlu0 %v7710_v15, %s7246_s8  ;;  %4626 = vrot.lane.b32.xlu1 %v4537_v11, %s7241_s9  ;;  %v4573_v2 = vrot.slane %v4513_v63, %v7654_v42  ;;  %v7915_v35 = vrot.slane %v7903_v28, %v7637_v32 }
 0x252   : > { %v6803_v17 = vpack.i.b16 %v7933_v34, %v7933_v34 }
 0x253   : > { %v6784_v20 = vpack.i.b16 %v7915_v35, %v7915_v35 }
 0x255   : > { %5082 = vrot.lane.b32.xlu0 %v7710_v15, %s7247_s22  ;;  %4919 = vrot.lane.b32.xlu1 %v4537_v11, %s7245_s20  ;;  %v2130_v15 = vsel %vm7698_vm12, %v7791_v36, %v2129_v0  ;;  %vm4331_vm12 = vsmask.f32 7958 }
 0x256   : > { %2131 = vst [vmem:[#allocation3 + $0x28] sm:$0x1] %v2130_v15  ;;  %v10403_v15 = vmov 0  ;;  %vm8290_vm14 = vmand %vm10428_vm3, %vm4331_vm12  ;;  %vm10432_vm12 = vcmask 126980  }
 0x257   : > { %v10404_v15 = vsel %vm7965_vm10, 4294967295, %v10403_v15 }
 0x259   : > { %4646 = vrot.lane.b32.xlu0 %v7818_v53, %s7241_s9  ;;  %4771 = vrot.lane.b32.xlu1 %v7753_v14, %s7246_s8 }
 0x25d   : > { %4773 = vrot.lane.b32.xlu0 %v4537_v11, %s7246_s8  ;;  %5064 = vrot.lane.b32.xlu1 %v7753_v14, %s7247_s22  ;;  %v3880_v14 = vrot.slane %v6796_v19, %v7637_v32  ;;  %v7873_v19 = vsub.s32 1, %v7632_v29  ;;  %v6783_v29 = vpack.c.bf16 %v7618_v13, %v7618_v13  ;;  %v3044_v13 = vrot.slane %v6784_v20, %v7654_v42 }
 0x25f   : > { %v7862_v16 = vrot.slane %v3880_v14, %v7637_v32  ;;  %v7893_v27 = vrot.slane %v6783_v29, %v7637_v32  ;;  %v4066_v40 = vrot.slane %v6803_v17, %v7873_v19  ;;  %v4990_v29 = vld [vmem:[#allocation3] sm:$0x80] }
 0x261   : > { %5066 = vrot.lane.b32.xlu0 %v4537_v11, %s7247_s22  ;;  %4939 = vrot.lane.b32.xlu1 %v7818_v53, %s7245_s20  ;;  %v4505_v11 = vpack.i.b16 %v4481_v7, %v4481_v7  ;;  %v6799_v10 = vpack.i.b16 %v7862_v16, %v7862_v16  ;;  %v7907_v33 = vrot.slane %v7893_v27, %v7637_v32  ;;  %v3948_v0 = vunpack.i.h.s16 %v7862_v16  ;;  %v4697_v7 = vld [vmem:[#allocation3] sm:$0x40] }
 0x263   : > { %v7865_v18 = vrot.slane %v4505_v11, %v7654_v42  ;;  %v4002_v21 = vrot.slane %v6799_v10, %v7873_v19  ;;  %v3998_v24 = vrot.slane %v6799_v10, %v7654_v42  ;;  %v6788_v38 = vpack.i.b16 %v7907_v33, %v7907_v33 }
 0x264   : > { %v3972_v50 = vpack.i.b16 %v3948_v0, %v3948_v0 }
 0x265   : > { %4644 = vrot.lane.b32.xlu0 %v4573_v2, %s7241_s9  ;;  %4648 = vrot.lane.b32.xlu1 %v7848_v6, %s7241_s9  ;;  %v3076_v41 = vrot.slane %v6788_v38, %v7654_v42  ;;  %v10405_v38 = vmov 0 }
 0x266   : > { %v4006_v58 = vrot.slane %v3972_v50, %v7654_v42  ;;  %v4010_v62 = vrot.slane %v3972_v50, %v7873_v19  ;;  %v10406_v38 = vsel %vm7990_vm7, 4294967295, %v10405_v38 }
 0x269   : > { %4937 = vrot.lane.b32.xlu0 %v4573_v2, %s7245_s20  ;;  %4941 = vrot.lane.b32.xlu1 %v7848_v6, %s7245_s20 }
 0x26d   : > { %4791 = vrot.lane.b32.xlu1 %v4573_v2, %s7246_s8  ;;  %4628 = vrot.lane.b32.xlu0 %v7865_v18, %s7241_s9 }
 0x271   : > { %5084 = vrot.lane.b32.xlu1 %v4573_v2, %s7247_s22  ;;  %4921 = vrot.lane.b32.xlu0 %v7865_v18, %s7245_s20 }
 0x275   : > { %4189 = vrot.lane.b32.xlu0 %v4002_v21, %s7237_s18  ;;  %4187 = vrot.lane.b32.xlu1 %v3998_v24, %s7237_s18 }
 0x279   : > { %2641 = vrot.lane.b32.xlu0 %v7688_v61, %s7225_s15  ;;  %2348 = vrot.lane.b32.xlu1 %v7688_v61, %s7211_s17 }
 0x27d   : > { %2495 = vrot.lane.b32.xlu1 %v7688_v61, %s7218_s26  ;;  %2332 = vrot.lane.b32.xlu0 %v7685_v60, %s7211_s17 }
 0x281   : > { %2186 = vrot.lane.b32.xlu1 %v7685_v60, %s7204_s10  ;;  %2625 = vrot.lane.b32.xlu0 %v7685_v60, %s7225_s15 }
 0x285   : > { %2479 = vrot.lane.b32.xlu1 %v7685_v60, %s7218_s26  ;;  %2202 = vrot.lane.b32.xlu0 %v7688_v61, %s7204_s10 }
 0x289   : > { %2772 = vrot.lane.b32.xlu1 %v7685_v60, %s7233_s30  ;;  %2788 = vrot.lane.b32.xlu0 %v7688_v61, %s7233_s30  ;;  %v3888_v60 = vcombine.high %v3880_v14, %v3880_v14  ;;  %v4062_v61 = vrot.slane %v6803_v17, %v7654_v42 }
 0x28b   : > { %v7955_v49 = vrot.slane %v3888_v60, %v7637_v32  ;;  %v10407_v60 = vmov 0 }
 0x28c   : > { %v10408_v60 = vsel %vm8003_vm1, 4294967295, %v10407_v60 }
 0x28d   : > { %3153 = vrot.lane.b32.xlu1 %v3076_v41, %s7201_s7  ;;  %3446 = vrot.lane.b32.xlu0 %v3076_v41, %s7215_s21  ;;  %v6800_v63 = vpack.i.b16 %v7955_v49, %v7955_v49 }
 0x28f   : > { %v4018_v10 = vrot.slane %v6800_v63, %v7873_v19  ;;  %v4014_v21 = vrot.slane %v6800_v63, %v7654_v42 }
 0x291   : > { %3739 = vrot.lane.b32.xlu1 %v3076_v41, %s7229_s25  ;;  %3137 = vrot.lane.b32.xlu0 %v3044_v13, %s7201_s7 }
 0x295   : > { %4221 = vrot.lane.b32.xlu1 %v4066_v40, %s7237_s18  ;;  %3430 = vrot.lane.b32.xlu0 %v3044_v13, %s7215_s21 }
 0x299   : > { %3300 = vrot.lane.b32.xlu1 %v3076_v41, %s7208_s14  ;;  %3723 = vrot.lane.b32.xlu0 %v3044_v13, %s7229_s25 }
 0x29d   : > { %3284 = vrot.lane.b32.xlu1 %v3044_v13, %s7208_s14  ;;  %4219 = vrot.lane.b32.xlu0 %v4062_v61, %s7237_s18 }
 0x2a1   : > { %3577 = vrot.lane.b32.xlu1 %v3044_v13, %s7222_s11  ;;  %3593 = vrot.lane.b32.xlu0 %v3076_v41, %s7222_s11 }
 0x2a3   : > { %v4932_v55 = vpop.permute.xlu1 %4931  ;;  %v4639_v57 = vpop.permute.xlu0 %4638 }
 0x2a4   : > { %v5015_v1 = vsel %vm7958_vm9, %v4932_v55, %v5014_v54  ;;  %v4722_v2 = vsel %vm7965_vm10, %v4639_v57, %v4721_v56  ;;  %v4724_v57 = vld [vmem:[#allocation3 + $0x48] sm:$0x40] }
 0x2a5   : > { %5016 = vst [vmem:[#allocation3 + $0x40] sm:$0x80] %v5015_v1  ;;  %4723 = vst [vmem:[#allocation3 + $0x40] sm:$0x40] %v4722_v2  ;;  %4191 = vrot.lane.b32.xlu1 %v4006_v58, %s7237_s18  ;;  %4193 = vrot.lane.b32.xlu0 %v4010_v62, %s7237_s18  ;;  %v4727_v58 = vld [vmem:[#allocation3 + $0x50] sm:$0x40] }
 0x2a7   : > { %v4786_v14 = vpop.permute.xlu1 %4785  ;;  %v4623_v11 = vpop.permute.xlu0 %4622 }
 0x2a8   : > { %v4698_v24 = vsel %vm7965_vm10, %v4623_v11, %v4697_v7  ;;  %v5017_v11 = vld [vmem:[#allocation3 + $0x48] sm:$0x80] }
 0x2a9   : > { %4699 = vst [vmem:[#allocation3] sm:$0x40] %v4698_v24  ;;  %4197 = vrot.lane.b32.xlu1 %v4018_v10, %s7237_s18  ;;  %4195 = vrot.lane.b32.xlu0 %v4014_v21, %s7237_s18  ;;  %v5020_v10 = vld [vmem:[#allocation3 + $0x50] sm:$0x80] }
 0x2ab   : > { %v4770_v20 = vpop.permute.xlu1 %4769  ;;  %v4916_v41 = vpop.permute.xlu0 %4915 }
 0x2ac   : > { %v4867_v13 = vld [vmem:[#allocation3 + $0x40] sm:$0x40]  ;;  %v4991_v17 = vsel %vm7958_vm9, %v4916_v41, %v4990_v29  ;;  %v5160_v0 = vld [vmem:[#allocation3 + $0x40] sm:$0x80]  ;;  %v4700_v41 = vld [vmem:[#allocation3 + $0x8] sm:$0x40] }
 0x2ad   : > { %v4868_v40 = vsel %vm7990_vm7, %v4786_v14, %v4867_v13  ;;  %4992 = vst [vmem:[#allocation3] sm:$0x80] %v4991_v17  ;;  %2350 = vrot.lane.b32.xlu1 %v7695_v3, %s7211_s17  ;;  %2352 = vrot.lane.b32.xlu0 %v7705_v9, %s7211_s17 }
 0x2ae   : > { %4869 = vst [vmem:[#allocation3 + $0x40] sm:$0x40] %v4868_v40 }
 0x2af   : > { %v5063_v61 = vpop.permute.xlu1 %5062  ;;  %v5079_v50 = vpop.permute.xlu0 %5078 }
 0x2b0   : > { %v4843_v54 = vld [vmem:[#allocation3] sm:$0x40]  ;;  %v5161_v56 = vsel %vm8003_vm1, %v5079_v50, %v5160_v0  ;;  %v4993_v50 = vld [vmem:[#allocation3 + $0x8] sm:$0x80] }
 0x2b1   : > { %v4844_v55 = vsel %vm7990_vm7, %v4770_v20, %v4843_v54  ;;  %5162 = vst [vmem:[#allocation3 + $0x40] sm:$0x80] %v5161_v56  ;;  %2643 = vrot.lane.b32.xlu1 %v7695_v3, %s7225_s15  ;;  %2645 = vrot.lane.b32.xlu0 %v7705_v9, %s7225_s15 }
 0x2b2   : > { %4845 = vst [vmem:[#allocation3] sm:$0x40] %v4844_v55 }
 0x2b3   : > { %v4641_v62 = vpop.permute.xlu1 %4640  ;;  %v4643_v63 = vpop.permute.xlu0 %4642 }
 0x2b4   : > { %v5136_v1 = vld [vmem:[#allocation3] sm:$0x80]  ;;  %v4725_v2 = vsel %vm7965_vm10, %v4641_v62, %v4724_v57  ;;  %v4728_v7 = vsel %vm7965_vm10, %v4643_v63, %v4727_v58 }
 0x2b5   : > { %v5137_v14 = vsel %vm8003_vm1, %v5063_v61, %v5136_v1  ;;  %4726 = vst [vmem:[#allocation3 + $0x48] sm:$0x40] %v4725_v2  ;;  %4729 = vst [vmem:[#allocation3 + $0x50] sm:$0x40] %v4728_v7  ;;  %2204 = vrot.lane.b32.xlu0 %v7695_v3, %s7204_s10  ;;  %2334 = vrot.lane.b32.xlu1 %v7719_v22, %s7211_s17 }
 0x2b6   : > { %5138 = vst [vmem:[#allocation3] sm:$0x80] %v5137_v14  ;;  %v4996_v14 = vld [vmem:[#allocation3 + $0x10] sm:$0x80] }
 0x2b7   : > { %v4934_v21 = vpop.permute.xlu1 %4933  ;;  %v4936_v24 = vpop.permute.xlu0 %4935 }
 0x2b8   : > { %v5018_v29 = vsel %vm7958_vm9, %v4934_v21, %v5017_v11  ;;  %v5021_v20 = vsel %vm7958_vm9, %v4936_v24, %v5020_v10 }
 0x2b9   : > { %5019 = vst [vmem:[#allocation3 + $0x48] sm:$0x80] %v5018_v29  ;;  %5022 = vst [vmem:[#allocation3 + $0x50] sm:$0x80] %v5021_v20  ;;  %2497 = vrot.lane.b32.xlu0 %v7695_v3, %s7218_s26  ;;  %2627 = vrot.lane.b32.xlu1 %v7719_v22, %s7225_s15  ;;  %v4733_v20 = vld [vmem:[#allocation3 + $0x60] sm:$0x40] }
 0x2bb   : > { %v4788_v13 = vpop.permute.xlu0 %4787  ;;  %v4625_v17 = vpop.permute.xlu1 %4624 }
 0x2bc   : > { %v4870_v40 = vld [vmem:[#allocation3 + $0x48] sm:$0x40]  ;;  %v4701_v61 = vsel %vm7965_vm10, %v4625_v17, %v4700_v41  ;;  %v4873_v62 = vld [vmem:[#allocation3 + $0x50] sm:$0x40]  ;;  %v3002_v41 = vunpack.i.h.s16 %v7907_v33 }
 0x2bd   : > { %v4871_v0 = vsel %vm7990_vm7, %v4788_v13, %v4870_v40  ;;  %4702 = vst [vmem:[#allocation3 + $0x8] sm:$0x40] %v4701_v61  ;;  %2790 = vrot.lane.b32.xlu0 %v7695_v3, %s7233_s30  ;;  %2336 = vrot.lane.b32.xlu1 %v7722_v23, %s7211_s17  ;;  %v4703_v3 = vld [vmem:[#allocation3 + $0x10] sm:$0x40] }
 0x2be   : > { %4872 = vst [vmem:[#allocation3 + $0x48] sm:$0x40] %v4871_v0 }
 0x2bf   : > { %v5081_v54 = vpop.permute.xlu0 %5080  ;;  %v4918_v56 = vpop.permute.xlu1 %4917 }
 0x2c0   : > { %v5163_v55 = vld [vmem:[#allocation3 + $0x48] sm:$0x80]  ;;  %v4994_v57 = vsel %vm7958_vm9, %v4918_v56, %v4993_v50  ;;  %v5166_v11 = vld [vmem:[#allocation3 + $0x50] sm:$0x80] }
 0x2c1   : > { %v5164_v58 = vsel %vm8003_vm1, %v5081_v54, %v5163_v55  ;;  %4995 = vst [vmem:[#allocation3 + $0x8] sm:$0x80] %v4994_v57  ;;  %2206 = vrot.lane.b32.xlu0 %v7705_v9, %s7204_s10  ;;  %2629 = vrot.lane.b32.xlu1 %v7722_v23, %s7225_s15  ;;  %v3026_v55 = vpack.i.b16 %v3002_v41, %v3002_v41 }
 0x2c2   : > { %5165 = vst [vmem:[#allocation3 + $0x48] sm:$0x80] %v5164_v58 }
 0x2c3   : > { %v4790_v63 = vpop.permute.xlu0 %4789  ;;  %v4627_v1 = vpop.permute.xlu1 %4626 }
 0x2c4   : > { %v4874_v2 = vsel %vm7990_vm7, %v4790_v63, %v4873_v62  ;;  %v4704_v7 = vsel %vm7965_vm10, %v4627_v1, %v4703_v3  ;;  %v4846_v17 = vld [vmem:[#allocation3 + $0x8] sm:$0x40]  ;;  %v2936_v3 = vcombine.high %v7893_v27, %v7893_v27  ;;  %v4730_v27 = vld [vmem:[#allocation3 + $0x58] sm:$0x40] }
 0x2c5   : > { %4875 = vst [vmem:[#allocation3 + $0x50] sm:$0x40] %v4874_v2  ;;  %4705 = vst [vmem:[#allocation3 + $0x10] sm:$0x40] %v4704_v7  ;;  %2499 = vrot.lane.b32.xlu0 %v7705_v9, %s7218_s26  ;;  %2188 = vrot.lane.b32.xlu1 %v7719_v22, %s7204_s10  ;;  %v8085_v2 = vrot.slane %v3026_v55, %v7654_v42 }
 0x2c7   : > { %v5083_v10 = vpop.permute.xlu0 %5082  ;;  %v4920_v21 = vpop.permute.xlu1 %4919 }
 0x2c8   : > { %v5167_v24 = vsel %vm8003_vm1, %v5083_v10, %v5166_v11  ;;  %v4997_v29 = vsel %vm7958_vm9, %v4920_v21, %v4996_v14  ;;  %v5139_v54 = vld [vmem:[#allocation3 + $0x8] sm:$0x80]  ;;  %v4736_v11 = vld [vmem:[#allocation3 + $0x68] sm:$0x40]  ;;  %v8096_v10 = vrot.slane %v2936_v3, %v7637_v32  ;;  %v2994_v21 = vunpack.i.h.s16 %v7915_v35 }
 0x2c9   : > { %5168 = vst [vmem:[#allocation3 + $0x50] sm:$0x80] %v5167_v24  ;;  %4998 = vst [vmem:[#allocation3 + $0x10] sm:$0x80] %v4997_v29  ;;  %2792 = vrot.lane.b32.xlu0 %v7705_v9, %s7233_s30  ;;  %2481 = vrot.lane.b32.xlu1 %v7719_v22, %s7218_s26 }
 0x2cb   : > { %v4647_v13 = vpop.permute.xlu0 %4646  ;;  %v4772_v40 = vpop.permute.xlu1 %4771 }
 0x2cc   : > { %v4734_v61 = vsel %vm7965_vm10, %v4647_v13, %v4733_v20  ;;  %v4847_v0 = vsel %vm7990_vm7, %v4772_v40, %v4846_v17  ;;  %v4849_v50 = vld [vmem:[#allocation3 + $0x10] sm:$0x40]  ;;  %v5023_v13 = vld [vmem:[#allocation3 + $0x58] sm:$0x80]  ;;  %v5029_v17 = vld [vmem:[#allocation3 + $0x68] sm:$0x80] }
 0x2cd   : > { %4735 = vst [vmem:[#allocation3 + $0x60] sm:$0x40] %v4734_v61  ;;  %4848 = vst [vmem:[#allocation3 + $0x8] sm:$0x40] %v4847_v0  ;;  %2649 = vrot.lane.b32.xlu0 %v7764_v51, %s7225_s15  ;;  %2774 = vrot.lane.b32.xlu1 %v7719_v22, %s7233_s30  ;;  %v5026_v22 = vld [vmem:[#allocation3 + $0x60] sm:$0x80]  ;;  %v6789_v0 = vpack.i.b16 %v8096_v10, %v8096_v10 }
 0x2cf   : > { %v4774_v9 = vpop.permute.xlu0 %4773  ;;  %v5065_v56 = vpop.permute.xlu1 %5064 }
 0x2d0   : > { %v4850_v57 = vsel %vm7990_vm7, %v4774_v9, %v4849_v50  ;;  %v5140_v58 = vsel %vm8003_vm1, %v5065_v56, %v5139_v54  ;;  %v5142_v63 = vld [vmem:[#allocation3 + $0x10] sm:$0x80]  ;;  %v3018_v9 = vpack.i.b16 %v2994_v21, %v2994_v21 }
 0x2d1   : > { %4851 = vst [vmem:[#allocation3 + $0x10] sm:$0x40] %v4850_v57  ;;  %5141 = vst [vmem:[#allocation3 + $0x8] sm:$0x80] %v5140_v58  ;;  %2190 = vrot.lane.b32.xlu0 %v7722_v23, %s7204_s10  ;;  %2356 = vrot.lane.b32.xlu1 %v7764_v51, %s7211_s17  ;;  %v8118_v57 = vrot.slane %v6789_v0, %v7654_v42  ;;  %v3889_v0 = vcombine.high %v7923_v5, %v7923_v5  ;;  %v2407_v5 = vld [vmem:[#allocation3] sm:$0x2] }
 0x2d2   : > { %v8121_v58 = vrot.slane %v3018_v9, %v7654_v42 }
 0x2d3   : > { %v5067_v62 = vpop.permute.xlu0 %5066  ;;  %v4940_v1 = vpop.permute.xlu1 %4939 }
 0x2d4   : > { %v5143_v7 = vsel %vm8003_vm1, %v5067_v62, %v5142_v63  ;;  %v5027_v14 = vsel %vm7958_vm9, %v4940_v1, %v5026_v22  ;;  %v4999_v63 = vld [vmem:[#allocation3 + $0x18] sm:$0x80]  ;;  %v2935_v1 = vcombine.high %v7903_v28, %v7903_v28 }
 0x2d5   : > { %5144 = vst [vmem:[#allocation3 + $0x10] sm:$0x80] %v5143_v7  ;;  %5028 = vst [vmem:[#allocation3 + $0x60] sm:$0x80] %v5027_v14  ;;  %2483 = vrot.lane.b32.xlu0 %v7722_v23, %s7218_s26  ;;  %3155 = vrot.lane.b32.xlu1 %v8085_v2, %s7201_s7 }
 0x2d6   : > { %v8143_v28 = vrot.slane %v2935_v1, %v7637_v32 }
 0x2d7   : > { %v4645_v24 = vpop.permute.xlu0 %4644  ;;  %v4649_v29 = vpop.permute.xlu1 %4648 }
 0x2d8   : > { %v4731_v20 = vsel %vm7965_vm10, %v4645_v24, %v4730_v27  ;;  %v4737_v41 = vsel %vm7965_vm10, %v4649_v29, %v4736_v11  ;;  %v3956_v27 = vunpack.i.h.s16 %v7933_v34 }
 0x2d9   : > { %4732 = vst [vmem:[#allocation3 + $0x58] sm:$0x40] %v4731_v20  ;;  %4738 = vst [vmem:[#allocation3 + $0x68] sm:$0x40] %v4737_v41  ;;  %2776 = vrot.lane.b32.xlu0 %v7722_v23, %s7233_s30  ;;  %3448 = vrot.lane.b32.xlu1 %v8085_v2, %s7215_s21  ;;  %v4706_v23 = vld [vmem:[#allocation3 + $0x18] sm:$0x40] }
 0x2da   : > { %v3980_v41 = vpack.i.b16 %v3956_v27, %v3956_v27  ;;  %v2700_v27 = vld [vmem:[#allocation3] sm:$0x4] }
 0x2db   : > { %v4938_v40 = vpop.permute.xlu0 %4937  ;;  %v4942_v61 = vpop.permute.xlu1 %4941 }
 0x2dc   : > { %v5024_v50 = vsel %vm7958_vm9, %v4938_v40, %v5023_v13  ;;  %v5030_v54 = vsel %vm7958_vm9, %v4942_v61, %v5029_v17  ;;  %v2724_v17 = vld [vmem:[#allocation3 + $0x40] sm:$0x4]  ;;  %v2431_v61 = vld [vmem:[#allocation3 + $0x40] sm:$0x2]  ;;  %v3281_v40 = vld [vmem:[#allocation3 + $0xb8] sm:$0x8] }
 0x2dd   : > { %5025 = vst [vmem:[#allocation3 + $0x58] sm:$0x80] %v5024_v50  ;;  %5031 = vst [vmem:[#allocation3 + $0x68] sm:$0x80] %v5030_v54  ;;  %2340 = vrot.lane.b32.xlu0 %v7788_v30, %s7211_s17  ;;  %3741 = vrot.lane.b32.xlu1 %v8085_v2, %s7229_s25  ;;  %v4074_v54 = vrot.slane %v3980_v41, %v7873_v19  ;;  %v3574_v13 = vld [vmem:[#allocation3 + $0xb8] sm:$0x10] }
 0x2df   : > { %v4792_v56 = vpop.permute.xlu1 %4791  ;;  %v4629_v55 = vpop.permute.xlu0 %4628 }
 0x2e0   : > { %v4876_v22 = vld [vmem:[#allocation3 + $0x58] sm:$0x40]  ;;  %v4707_v3 = vsel %vm7965_vm10, %v4629_v55, %v4706_v23  ;;  %v4070_v23 = vrot.slane %v3980_v41, %v7654_v42 }
 0x2e1   : > { %v4877_v62 = vsel %vm7990_vm7, %v4792_v56, %v4876_v22  ;;  %4708 = vst [vmem:[#allocation3 + $0x18] sm:$0x40] %v4707_v3  ;;  %3157 = vrot.lane.b32.xlu0 %v8118_v57, %s7201_s7  ;;  %3139 = vrot.lane.b32.xlu1 %v8121_v58, %s7201_s7  ;;  %v6785_v56 = vpack.i.b16 %v8143_v28, %v8143_v28  ;;  %vm10431_vm7 = vcmask 113664  }
 0x2e2   : > { %4878 = vst [vmem:[#allocation3 + $0x58] sm:$0x40] %v4877_v62  ;;  %v8176_v3 = vrot.slane %v3889_v0, %v7637_v32 }
 0x2e3   : > { %v5085_v7 = vpop.permute.xlu1 %5084  ;;  %v4922_v14 = vpop.permute.xlu0 %4921  ;;  %v8179_v1 = vrot.slane %v6785_v56, %v7654_v42 }
 0x2e4   : > { %v5169_v11 = vld [vmem:[#allocation3 + $0x58] sm:$0x80]  ;;  %v5000_v21 = vsel %vm7958_vm9, %v4922_v14, %v4999_v63  ;;  %v10413_v14 = vmov 0  ;;  %v3958_v4 = vunpack.i.h.s16 %v8176_v3 }
 0x2e5   : > { %v5170_v24 = vsel %vm8003_vm1, %v5085_v7, %v5169_v11  ;;  %5001 = vst [vmem:[#allocation3 + $0x18] sm:$0x80] %v5000_v21  ;;  %3450 = vrot.lane.b32.xlu0 %v8118_v57, %s7215_s21  ;;  %3432 = vrot.lane.b32.xlu1 %v8121_v58, %s7215_s21  ;;  %v10414_v14 = vsel %vm8188_vm15, 4294967295, %v10413_v14  ;;  %vm3649_vm1 = vsmask.f32 7954 }
 0x2e6   : > { %5171 = vst [vmem:[#allocation3 + $0x58] sm:$0x80] %v5170_v24  ;;  %v2260_v24 = vld [vmem:[#allocation3] sm:$0x1]  ;;  %vm8304_vm3 = vmand %vm10432_vm12, %vm3649_vm1  ;;  %vm10435_vm1 = vcmask 130048   ;;  %v3982_v32 = vpack.i.b16 %v3958_v4, %v3958_v4 }
 0x2e7   : > { %v8145_v29 = vpop.permute.xlu0 %4189  ;;  %v8147_v20 = vpop.permute.xlu1 %4187  ;;  %vm10436_vm12 = vmmov %vm10435_vm1 }
 0x2e8   : > { %v4090_v4 = vrot.slane %v3982_v32, %v7873_v19 }
 0x2e9   : > { %3743 = vrot.lane.b32.xlu0 %v8118_v57, %s7229_s25  ;;  %3725 = vrot.lane.b32.xlu1 %v8121_v58, %s7229_s25 }
 0x2eb   : > { %v2642_v9 = vpop.permute.xlu0 %2641  ;;  %v2349_v50 = vpop.permute.xlu1 %2348 }
 0x2ec   : > { %v2725_v55 = vsel %vm8150_vm6, %v2642_v9, %v2724_v17  ;;  %v2432_v22 = vsel %vm8159_vm11, %v2349_v50, %v2431_v61  ;;  %v6804_v17 = vpack.i.b16 %v8176_v3, %v8176_v3 }
 0x2ed   : > { %2726 = vst [vmem:[#allocation3 + $0x40] sm:$0x4] %v2725_v55  ;;  %2433 = vst [vmem:[#allocation3 + $0x40] sm:$0x2] %v2432_v22  ;;  %4225 = vrot.lane.b32.xlu0 %v4074_v54, %s7237_s18  ;;  %4223 = vrot.lane.b32.xlu1 %v4070_v23, %s7237_s18  ;;  %v2284_v23 = vld [vmem:[#allocation3 + $0x40] sm:$0x1] }
 0x2ee   : > { %v4082_v55 = vrot.slane %v6804_v17, %v7873_v19 }
 0x2ef   : > { %v2496_v62 = vpop.permute.xlu1 %2495  ;;  %v2333_v63 = vpop.permute.xlu0 %2332 }
 0x2f0   : > { %v2408_v7 = vsel %vm8159_vm11, %v2333_v63, %v2407_v5  ;;  %v8224_v63 = vcombine.high %v7907_v33, %v7907_v33  ;;  %v3236_v33 = vld [vmem:[#allocation3 + $0x40] sm:$0x8] }
 0x2f1   : > { %2409 = vst [vmem:[#allocation3] sm:$0x2] %v2408_v7  ;;  %3302 = vrot.lane.b32.xlu0 %v8085_v2, %s7208_s14  ;;  %3141 = vrot.lane.b32.xlu1 %v8179_v1, %s7201_s7 }
 0x2f3   : > { %v2187_v21 = vpop.permute.xlu1 %2186  ;;  %v2626_v41 = vpop.permute.xlu0 %2625 }
 0x2f4   : > { %v2577_v61 = vld [vmem:[#allocation3 + $0x40] sm:$0x2]  ;;  %v2261_v0 = vsel %vm8188_vm15, %v2187_v21, %v2260_v24  ;;  %v2701_v9 = vsel %vm8150_vm6, %v2626_v41, %v2700_v27  ;;  %v2870_v27 = vld [vmem:[#allocation3 + $0x40] sm:$0x4]  ;;  %v4078_v24 = vrot.slane %v6804_v17, %v7654_v42  ;;  %v10421_v17 = vmov 0 }
 0x2f5   : > { %v2578_v50 = vsel %vm8193_vm5, %v2496_v62, %v2577_v61  ;;  %2262 = vst [vmem:[#allocation3] sm:$0x1] %v2261_v0  ;;  %2702 = vst [vmem:[#allocation3] sm:$0x4] %v2701_v9  ;;  %3595 = vrot.lane.b32.xlu0 %v8085_v2, %s7222_s11  ;;  %3434 = vrot.lane.b32.xlu1 %v8179_v1, %s7215_s21  ;;  %v10422_v17 = vsel %vm8240_vm0, 4294967295, %v10421_v17 }
 0x2f6   : > { %2579 = vst [vmem:[#allocation3 + $0x40] sm:$0x2] %v2578_v50  ;;  %v3529_v50 = vld [vmem:[#allocation3 + $0x40] sm:$0x10]  ;;  %v3867_v0 = vld [vmem:[#allocation3 + $0xb8] sm:$0x20] }
 0x2f7   : > { %v2480_v54 = vpop.permute.xlu1 %2479  ;;  %v2203_v56 = vpop.permute.xlu0 %2202 }
 0x2f8   : > { %v2553_v22 = vld [vmem:[#allocation3] sm:$0x2]  ;;  %v2285_v5 = vsel %vm8188_vm15, %v2203_v56, %v2284_v23  ;;  %v6790_v56 = vpack.i.b16 %v8224_v63, %v8224_v63 }
 0x2f9   : > { %v2554_v62 = vsel %vm8193_vm5, %v2480_v54, %v2553_v22  ;;  %2286 = vst [vmem:[#allocation3 + $0x40] sm:$0x1] %v2285_v5  ;;  %4229 = vrot.lane.b32.xlu0 %v4082_v55, %s7237_s18  ;;  %3727 = vrot.lane.b32.xlu1 %v8179_v1, %s7229_s25 }
 0x2fa   : > { %2555 = vst [vmem:[#allocation3] sm:$0x2] %v2554_v62  ;;  %v3822_v62 = vld [vmem:[#allocation3 + $0x40] sm:$0x20] }
 0x2fb   : > { %v2773_v7 = vpop.permute.xlu1 %2772  ;;  %v2789_v21 = vpop.permute.xlu0 %2788 }
 0x2fc   : > { %v2846_v41 = vld [vmem:[#allocation3] sm:$0x4]  ;;  %v2871_v61 = vsel %vm8218_vm2, %v2789_v21, %v2870_v27 }
 0x2fd   : > { %v2847_v9 = vsel %vm8218_vm2, %v2773_v7, %v2846_v41  ;;  %2872 = vst [vmem:[#allocation3 + $0x40] sm:$0x4] %v2871_v61  ;;  %3304 = vrot.lane.b32.xlu0 %v8118_v57, %s7208_s14  ;;  %4227 = vrot.lane.b32.xlu1 %v4078_v24, %s7237_s18  ;;  %v3212_v7 = vld [vmem:[#allocation3] sm:$0x8]  ;;  %v8260_v24 = vrot.slane %v6790_v56, %v7654_v42  ;;  %v3505_v61 = vld [vmem:[#allocation3] sm:$0x10] }
 0x2fe   : > { %2848 = vst [vmem:[#allocation3] sm:$0x4] %v2847_v9 }
 0x2ff   : > { %v3154_v54 = vpop.permute.xlu1 %3153  ;;  %v3447_v23 = vpop.permute.xlu0 %3446 }
 0x300   : > { %v3237_v55 = vsel %vm8230_vm13, %v3154_v54, %v3236_v33  ;;  %v3530_v22 = vsel %vm8240_vm0, %v3447_v23, %v3529_v50 }
 0x301   : > { %3238 = vst [vmem:[#allocation3 + $0x40] sm:$0x8] %v3237_v55  ;;  %3531 = vst [vmem:[#allocation3 + $0x40] sm:$0x10] %v3530_v22  ;;  %3597 = vrot.lane.b32.xlu0 %v8118_v57, %s7222_s11  ;;  %3286 = vrot.lane.b32.xlu1 %v8121_v58, %s7208_s14 }
 0x303   : > { %v3740_v27 = vpop.permute.xlu1 %3739  ;;  %v3138_v21 = vpop.permute.xlu0 %3137 }
 0x304   : > { %v3823_v41 = vsel %vm8255_vm8, %v3740_v27, %v3822_v62  ;;  %v3213_v57 = vsel %vm8230_vm13, %v3138_v21, %v3212_v7 }
 0x305   : > { %3824 = vst [vmem:[#allocation3 + $0x40] sm:$0x20] %v3823_v41  ;;  %3214 = vst [vmem:[#allocation3] sm:$0x8] %v3213_v57  ;;  %3454 = vrot.lane.b32.xlu0 %v8260_v24, %s7215_s21  ;;  %3579 = vrot.lane.b32.xlu1 %v8121_v58, %s7222_s11  ;;  %v3798_v58 = vld [vmem:[#allocation3] sm:$0x20] }
 0x307   : > { %v4222_v9 = vpop.permute.xlu1 %4221  ;;  %v3431_v33 = vpop.permute.xlu0 %3430 }
 0x308   : > { %v3506_v50 = vsel %vm8240_vm0, %v3431_v33, %v3505_v61  ;;  %v3382_v23 = vld [vmem:[#allocation3 + $0x40] sm:$0x8] }
 0x309   : > { %3507 = vst [vmem:[#allocation3] sm:$0x10] %v3506_v50  ;;  %3288 = vrot.lane.b32.xlu0 %v8179_v1, %s7208_s14  ;;  %3161 = vrot.lane.b32.xlu1 %v8260_v24, %s7201_s7  ;;  %v10433_v50 = vmov 0 }
 0x30a   : > { %v10434_v50 = vsel %vm8304_vm3, 4294967295, %v10433_v50 }
 0x30b   : > { %v3301_v56 = vpop.permute.xlu1 %3300  ;;  %v3724_v55 = vpop.permute.xlu0 %3723 }
 0x30c   : > { %v3383_v22 = vsel %vm8277_vm4, %v3301_v56, %v3382_v23  ;;  %v3799_v62 = vsel %vm8255_vm8, %v3724_v55, %v3798_v58  ;;  %v3358_v21 = vld [vmem:[#allocation3] sm:$0x8]  ;;  %v4357_v61 = vld [vmem:[#allocation3 + $0x40] sm:$0x20]  ;;  %v3675_v56 = vld [vmem:[#allocation3 + $0x40] sm:$0x10]  ;;  %v4283_v55 = vsel %vm10431_vm7, %v8147_v20, %v8145_v29 }
 0x30d   : > { %3384 = vst [vmem:[#allocation3 + $0x40] sm:$0x8] %v3383_v22  ;;  %3800 = vst [vmem:[#allocation3] sm:$0x20] %v3799_v62  ;;  %3581 = vrot.lane.b32.xlu0 %v8179_v1, %s7222_s11  ;;  %3747 = vrot.lane.b32.xlu1 %v8260_v24, %s7229_s25 }
 0x30f   : > { %v3285_v27 = vpop.permute.xlu1 %3284  ;;  %v4220_v41 = vpop.permute.xlu0 %4219 }
 0x310   : > { %v3359_v57 = vsel %vm8277_vm4, %v3285_v27, %v3358_v21  ;;  %v4291_v33 = vsel %vm10431_vm7, %v4220_v41, %v4222_v9  ;;  %v3651_v23 = vld [vmem:[#allocation3] sm:$0x10]  ;;  %v3004_v41 = vunpack.i.h.s16 %v8096_v10  ;;  %vm10438_vm7 = vmmov 0  }
 0x311   : > { %3360 = vst [vmem:[#allocation3] sm:$0x8] %v3359_v57  ;;  %v4358_v1 = vsel %vm8290_vm14, %v4291_v33, %v4357_v61  ;;  %2354 = vrot.lane.b32.xlu0 %v7756_v52, %s7211_s17  ;;  %2358 = vrot.lane.b32.xlu1 %v7779_v12, %s7211_s17 }
 0x312   : > { %4359 = vst [vmem:[#allocation3 + $0x40] sm:$0x20] %v4358_v1  ;;  %v3028_v33 = vpack.i.b16 %v3004_v41, %v3004_v41  ;;  %v2727_v41 = vld [vmem:[#allocation3 + $0x48] sm:$0x4] }
 0x313   : > { %v3578_v58 = vpop.permute.xlu1 %3577  ;;  %v3594_v9 = vpop.permute.xlu0 %3593 }
 0x314   : > { %v4333_v22 = vld [vmem:[#allocation3] sm:$0x20]  ;;  %v3652_v62 = vsel %vm8304_vm3, %v3578_v58, %v3651_v23  ;;  %v3676_v27 = vsel %vm8304_vm3, %v3594_v9, %v3675_v56  ;;  %v2434_v23 = vld [vmem:[#allocation3 + $0x48] sm:$0x2]  ;;  %v2437_v56 = vld [vmem:[#allocation3 + $0x50] sm:$0x2] }
 0x315   : > { %v4334_v21 = vsel %vm8290_vm14, %v4283_v55, %v4333_v22  ;;  %3653 = vst [vmem:[#allocation3] sm:$0x10] %v3652_v62  ;;  %3677 = vst [vmem:[#allocation3 + $0x40] sm:$0x10] %v3676_v27  ;;  %2647 = vrot.lane.b32.xlu0 %v7756_v52, %s7225_s15  ;;  %2651 = vrot.lane.b32.xlu1 %v7779_v12, %s7225_s15  ;;  %v8340_v22 = vrot.slane %v3028_v33, %v7654_v42  ;;  %v3006_v62 = vunpack.i.h.s16 %v8224_v63  ;;  %v2730_v33 = vld [vmem:[#allocation3 + $0x50] sm:$0x4] }
 0x316   : > { %4335 = vst [vmem:[#allocation3] sm:$0x20] %v4334_v21 }
 0x317   : > { %v8321_v29 = vpop.permute.xlu1 %4191  ;;  %v8323_v20 = vpop.permute.xlu0 %4193 }
 0x319   : > { %2208 = vrot.lane.b32.xlu1 %v7756_v52, %s7204_s10  ;;  %2338 = vrot.lane.b32.xlu0 %v7773_v8, %s7211_s17 }
 0x31b   : > { %v8330_v57 = vpop.permute.xlu1 %4197  ;;  %v8332_v61 = vpop.permute.xlu0 %4195 }
 0x31c   : > { %v5216_v1 = vld [vmem:[#allocation3 + $0x40] sm:$0xff] }
 0x31d   : > { %2501 = vrot.lane.b32.xlu1 %v7756_v52, %s7218_s26  ;;  %2631 = vrot.lane.b32.xlu0 %v7773_v8, %s7225_s15  ;;  %v5237_v58 = vsel %vm10435_vm1, %v5216_v1, 0  ;;  %vm10439_vm1 = vcmask 113664  }
 0x31e   : > { %6906 = vmatpush3.bf16.xpose.msra.mxu1 %v5237_v58  ;;  %v3030_v58 = vpack.i.b16 %v3006_v62, %v3006_v62  ;;  %v2287_v62 = vld [vmem:[#allocation3 + $0x48] sm:$0x1] }
 0x31f   : > { %v2351_v9 = vpop.permute.xlu1 %2350  ;;  %v2353_v55 = vpop.permute.xlu0 %2352  ;;  %6911 = vmatprep.subr.bf16.mxu1 %v10355_v48 }
 0x320   : > { %v2435_v27 = vsel %vm8159_vm11, %v2351_v9, %v2434_v23  ;;  %v2438_v21 = vsel %vm8159_vm11, %v2353_v55, %v2437_v56  ;;  %v5208_v56 = vld [vmem:[#allocation3] sm:$0xff]  ;;  %v2996_v9 = vunpack.i.h.s16 %v8143_v28  ;;  %v10437_v55 = vmov 0.0  }
 0x321   : > { %2436 = vst [vmem:[#allocation3 + $0x48] sm:$0x2] %v2435_v27  ;;  %2439 = vst [vmem:[#allocation3 + $0x50] sm:$0x2] %v2438_v21  ;;  %2794 = vrot.lane.b32.xlu1 %v7756_v52, %s7233_s30  ;;  %3159 = vrot.lane.b32.xlu0 %v8340_v22, %s7201_s7  ;;  %v2410_v52 = vld [vmem:[#allocation3 + $0x8] sm:$0x2] }
 0x323   : > { %v2644_v1 = vpop.permute.xlu1 %2643  ;;  %v2646_v63 = vpop.permute.xlu0 %2645 }
 0x324   : > { %v2728_v48 = vsel %vm8150_vm6, %v2644_v1, %v2727_v41  ;;  %v2731_v23 = vsel %vm8150_vm6, %v2646_v63, %v2730_v33  ;;  %v8365_v41 = vrot.slane %v3030_v58, %v7654_v42  ;;  %v3020_v1 = vpack.i.b16 %v2996_v9, %v2996_v9  ;;  %v2703_v63 = vld [vmem:[#allocation3 + $0x8] sm:$0x4] }
 0x325   : > { %2729 = vst [vmem:[#allocation3 + $0x48] sm:$0x4] %v2728_v48  ;;  %2732 = vst [vmem:[#allocation3 + $0x50] sm:$0x4] %v2731_v23  ;;  %6908 = vmatmul.mubr.msk.bf16.vlgmr.msra.gmra.mrb[16].mxu1 %vm10436_vm12, %v5208_v56  ;;  %2360 = vrot.lane.b32.xlu1 %v7794_v31, %s7211_s17 }
 0x326   : > { %3452 = vrot.lane.b32.xlu0 %v8340_v22, %s7215_s21  ;;  %6913 = vmatprep.mubr.msk.bf16.mxu1 %vm10438_vm7, %v10437_v55  ;;  %vm10440_vm12 = vmmov %vm10439_vm1 }
 0x327   : > { %v2205_v27 = vpop.permute.xlu0 %2204  ;;  %v2335_v21 = vpop.permute.xlu1 %2334 }
 0x328   : > { %v2288_v48 = vsel %vm8188_vm15, %v2205_v27, %v2287_v62  ;;  %v2411_v33 = vsel %vm8159_vm11, %v2335_v21, %v2410_v52  ;;  %v2580_v23 = vld [vmem:[#allocation3 + $0x48] sm:$0x2]  ;;  %v8381_v52 = vrot.slane %v3020_v1, %v7654_v42  ;;  %v2413_v27 = vld [vmem:[#allocation3 + $0x10] sm:$0x2] }
 0x329   : > { %2289 = vst [vmem:[#allocation3 + $0x48] sm:$0x1] %v2288_v48  ;;  %2412 = vst [vmem:[#allocation3 + $0x8] sm:$0x2] %v2411_v33  ;;  %3163 = vrot.lane.b32.xlu1 %v8365_v41, %s7201_s7 }
 0x32a   : > { %3745 = vrot.lane.b32.xlu0 %v8340_v22, %s7229_s25 }
 0x32b   : > { %v2498_v56 = vpop.permute.xlu0 %2497  ;;  %v2628_v58 = vpop.permute.xlu1 %2627 }
 0x32c   : > { %v2581_v62 = vsel %vm8193_vm5, %v2498_v56, %v2580_v23  ;;  %v2704_v9 = vsel %vm8150_vm6, %v2628_v58, %v2703_v63  ;;  %v2873_v21 = vld [vmem:[#allocation3 + $0x48] sm:$0x4]  ;;  %v2706_v63 = vld [vmem:[#allocation3 + $0x10] sm:$0x4]  ;;  %v2290_v56 = vld [vmem:[#allocation3 + $0x50] sm:$0x1] }
 0x32d   : > { %2582 = vst [vmem:[#allocation3 + $0x48] sm:$0x2] %v2581_v62  ;;  %2705 = vst [vmem:[#allocation3 + $0x8] sm:$0x4] %v2704_v9  ;;  %3456 = vrot.lane.b32.xlu1 %v8365_v41, %s7215_s21 }
 0x32e   : > { %3143 = vrot.lane.b32.xlu0 %v8381_v52, %s7201_s7 }
 0x32f   : > { %v2791_v48 = vpop.permute.xlu0 %2790  ;;  %v2337_v33 = vpop.permute.xlu1 %2336 }
 0x330   : > { %v2874_v23 = vsel %vm8218_vm2, %v2791_v48, %v2873_v21  ;;  %v2414_v1 = vsel %vm8159_vm11, %v2337_v33, %v2413_v27  ;;  %v2583_v21 = vld [vmem:[#allocation3 + $0x50] sm:$0x2]  ;;  %v2263_v33 = vld [vmem:[#allocation3 + $0x8] sm:$0x1] }
 0x331   : > { %2875 = vst [vmem:[#allocation3 + $0x48] sm:$0x4] %v2874_v23  ;;  %2415 = vst [vmem:[#allocation3 + $0x10] sm:$0x2] %v2414_v1  ;;  %3749 = vrot.lane.b32.xlu1 %v8365_v41, %s7229_s25  ;;  %v8405_v1 = vcombine.high %v7915_v35, %v7915_v35  ;;  %v2876_v35 = vld [vmem:[#allocation3 + $0x50] sm:$0x4] }
 0x332   : > { %3436 = vrot.lane.b32.xlu0 %v8381_v52, %s7215_s21 }
 0x333   : > { %v2207_v58 = vpop.permute.xlu0 %2206  ;;  %v2630_v62 = vpop.permute.xlu1 %2629 }
 0x334   : > { %v2291_v9 = vsel %vm8188_vm15, %v2207_v58, %v2290_v56  ;;  %v2707_v27 = vsel %vm8150_vm6, %v2630_v62, %v2706_v63  ;;  %v4086_v58 = vrot.slane %v3982_v32, %v7654_v42  ;;  %v8417_v62 = vcombine.high %v8096_v10, %v8096_v10  ;;  %v2736_v10 = vld [vmem:[#allocation3 + $0x60] sm:$0x4] }
 0x335   : > { %2292 = vst [vmem:[#allocation3 + $0x50] sm:$0x1] %v2291_v9  ;;  %2708 = vst [vmem:[#allocation3 + $0x10] sm:$0x4] %v2707_v27  ;;  %4233 = vrot.lane.b32.xlu1 %v4090_v4, %s7237_s18  ;;  %v2556_v9 = vld [vmem:[#allocation3 + $0x8] sm:$0x2] }
 0x336   : > { %3729 = vrot.lane.b32.xlu0 %v8381_v52, %s7229_s25 }
 0x337   : > { %v2500_v48 = vpop.permute.xlu0 %2499  ;;  %v2189_v23 = vpop.permute.xlu1 %2188 }
 0x338   : > { %v2584_v56 = vsel %vm8193_vm5, %v2500_v48, %v2583_v21  ;;  %v2264_v63 = vsel %vm8188_vm15, %v2189_v23, %v2263_v33  ;;  %v6786_v48 = vpack.i.b16 %v8405_v1, %v8405_v1  ;;  %v2849_v23 = vld [vmem:[#allocation3 + $0x8] sm:$0x4] }
 0x339   : > { %2585 = vst [vmem:[#allocation3 + $0x50] sm:$0x2] %v2584_v56  ;;  %2265 = vst [vmem:[#allocation3 + $0x8] sm:$0x1] %v2264_v63  ;;  %3306 = vrot.lane.b32.xlu1 %v8340_v22, %s7208_s14  ;;  %v6791_v63 = vpack.i.b16 %v8417_v62, %v8417_v62 }
 0x33a   : > { %4231 = vrot.lane.b32.xlu0 %v4086_v58, %s7237_s18 }
 0x33b   : > { %v2793_v4 = vpop.permute.xlu0 %2792  ;;  %v2482_v27 = vpop.permute.xlu1 %2481 }
 0x33c   : > { %v2877_v21 = vsel %vm8218_vm2, %v2793_v4, %v2876_v35  ;;  %v2557_v32 = vsel %vm8193_vm5, %v2482_v27, %v2556_v9  ;;  %v8436_v4 = vrot.slane %v6786_v48, %v7654_v42  ;;  %v2266_v27 = vld [vmem:[#allocation3 + $0x10] sm:$0x1] }
 0x33d   : > { %2878 = vst [vmem:[#allocation3 + $0x50] sm:$0x4] %v2877_v21  ;;  %2558 = vst [vmem:[#allocation3 + $0x8] sm:$0x2] %v2557_v32  ;;  %3599 = vrot.lane.b32.xlu1 %v8340_v22, %s7222_s11  ;;  %v2443_v22 = vld [vmem:[#allocation3 + $0x60] sm:$0x2]  ;;  %v8443_v32 = vrot.slane %v6791_v63, %v7654_v42 }
 0x33e   : > { %2633 = vrot.lane.b32.xlu0 %v7788_v30, %s7225_s15  ;;  %v2559_v63 = vld [vmem:[#allocation3 + $0x10] sm:$0x2] }
 0x33f   : > { %v2650_v33 = vpop.permute.xlu0 %2649  ;;  %v2775_v56 = vpop.permute.xlu1 %2774 }
 0x340   : > { %v2737_v58 = vsel %vm8150_vm6, %v2650_v33, %v2736_v10  ;;  %v2850_v35 = vsel %vm8218_vm2, %v2775_v56, %v2849_v23  ;;  %v8451_v33 = vcombine.high %v7933_v34, %v7933_v34  ;;  %v3239_v23 = vld [vmem:[#allocation3 + $0x48] sm:$0x8] }
 0x341   : > { %2738 = vst [vmem:[#allocation3 + $0x60] sm:$0x4] %v2737_v58  ;;  %2851 = vst [vmem:[#allocation3 + $0x8] sm:$0x4] %v2850_v35  ;;  %2653 = vrot.lane.b32.xlu1 %v7794_v31, %s7225_s15 }
 0x342   : > { %3145 = vrot.lane.b32.xlu0 %v8436_v4, %s7201_s7  ;;  %v6805_v34 = vpack.i.b16 %v8451_v33, %v8451_v33 }
 0x343   : > { %v2191_v9 = vpop.permute.xlu0 %2190  ;;  %v2357_v21 = vpop.permute.xlu1 %2356 }
 0x344   : > { %v2267_v10 = vsel %vm8188_vm15, %v2191_v9, %v2266_v27  ;;  %v2444_v48 = vsel %vm8159_vm11, %v2357_v21, %v2443_v22  ;;  %v8465_v9 = vcombine.high %v7648_v37, %v7648_v37  ;;  %v3532_v27 = vld [vmem:[#allocation3 + $0x48] sm:$0x10] }
 0x345   : > { %2268 = vst [vmem:[#allocation3 + $0x10] sm:$0x1] %v2267_v10  ;;  %2445 = vst [vmem:[#allocation3 + $0x60] sm:$0x2] %v2444_v48  ;;  %3165 = vrot.lane.b32.xlu1 %v8443_v32, %s7201_s7  ;;  %v2852_v10 = vld [vmem:[#allocation3 + $0x10] sm:$0x4] }
 0x346   : > { %3438 = vrot.lane.b32.xlu0 %v8436_v4, %s7215_s21 }
 0x347   : > { %v2484_v56 = vpop.permute.xlu0 %2483  ;;  %v3156_v58 = vpop.permute.xlu1 %3155 }
 0x348   : > { %v2560_v35 = vsel %vm8193_vm5, %v2484_v56, %v2559_v63  ;;  %v3240_v22 = vsel %vm8230_vm13, %v3156_v58, %v3239_v23  ;;  %v8473_v23 = vcombine.high %v7673_v39, %v7673_v39  ;;  %v4094_v63 = vrot.slane %v6805_v34, %v7654_v42 }
 0x349   : > { %2561 = vst [vmem:[#allocation3 + $0x10] sm:$0x2] %v2560_v35  ;;  %3241 = vst [vmem:[#allocation3 + $0x48] sm:$0x8] %v3240_v22  ;;  %3458 = vrot.lane.b32.xlu1 %v8443_v32, %s7215_s21  ;;  %v6814_v58 = vpack.i.b16 %v8465_v9, %v8465_v9  ;;  %v2419_v35 = vld [vmem:[#allocation3 + $0x20] sm:$0x2] }
 0x34a   : > { %3731 = vrot.lane.b32.xlu0 %v8436_v4, %s7229_s25  ;;  %v3825_v22 = vld [vmem:[#allocation3 + $0x48] sm:$0x20] }
 0x34b   : > { %v2777_v21 = vpop.permute.xlu0 %2776  ;;  %v3449_v48 = vpop.permute.xlu1 %3448 }
 0x34c   : > { %v2853_v37 = vsel %vm8218_vm2, %v2777_v21, %v2852_v10  ;;  %v3533_v56 = vsel %vm8240_vm0, %v3449_v48, %v3532_v27  ;;  %v4098_v21 = vrot.slane %v6805_v34, %v7873_v19  ;;  %v6819_v27 = vpack.i.b16 %v8473_v23, %v8473_v23 }
 0x34d   : > { %2854 = vst [vmem:[#allocation3 + $0x10] sm:$0x4] %v2853_v37  ;;  %3534 = vst [vmem:[#allocation3 + $0x48] sm:$0x10] %v3533_v56  ;;  %3751 = vrot.lane.b32.xlu1 %v8443_v32, %s7229_s25  ;;  %v8493_v37 = vrot.slane %v6814_v58, %v7654_v42  ;;  %v3242_v56 = vld [vmem:[#allocation3 + $0x50] sm:$0x8] }
 0x34e   : > { %4235 = vrot.lane.b32.xlu0 %v4094_v63, %s7237_s18  ;;  %v3215_v63 = vld [vmem:[#allocation3 + $0x8] sm:$0x8]  ;;  %v8499_v25 = vrot.slane %v6819_v27, %v7654_v42 }
 0x34f   : > { %v2341_v39 = vpop.permute.xlu0 %2340  ;;  %v3742_v59 = vpop.permute.xlu1 %3741 }
 0x350   : > { %v2420_v10 = vsel %vm8159_vm11, %v2341_v39, %v2419_v35  ;;  %v3826_v48 = vsel %vm8255_vm8, %v3742_v59, %v3825_v22  ;;  %v3535_v35 = vld [vmem:[#allocation3 + $0x50] sm:$0x10]  ;;  %v3508_v22 = vld [vmem:[#allocation3 + $0x8] sm:$0x10] }
 0x351   : > { %2421 = vst [vmem:[#allocation3 + $0x20] sm:$0x2] %v2420_v10  ;;  %3827 = vst [vmem:[#allocation3 + $0x48] sm:$0x20] %v3826_v48  ;;  %4237 = vrot.lane.b32.xlu1 %v4098_v21, %s7237_s18  ;;  %v3801_v48 = vld [vmem:[#allocation3 + $0x8] sm:$0x20] }
 0x352   : > { %4630 = vrot.lane.b32.xlu0 %v8493_v37, %s7241_s9 }
 0x353   : > { %v3158_v34 = vpop.permute.xlu0 %3157  ;;  %v3140_v26 = vpop.permute.xlu1 %3139 }
 0x354   : > { %v3243_v59 = vsel %vm8230_vm13, %v3158_v34, %v3242_v56  ;;  %v3216_v58 = vsel %vm8230_vm13, %v3140_v26, %v3215_v63  ;;  %v3828_v26 = vld [vmem:[#allocation3 + $0x50] sm:$0x20] }
 0x355   : > { %3244 = vst [vmem:[#allocation3 + $0x50] sm:$0x8] %v3243_v59  ;;  %3217 = vst [vmem:[#allocation3 + $0x8] sm:$0x8] %v3216_v58  ;;  %4650 = vrot.lane.b32.xlu1 %v8499_v25, %s7241_s9 }
 0x356   : > { %4923 = vrot.lane.b32.xlu0 %v8493_v37, %s7245_s20 }
 0x357   : > { %v3451_v39 = vpop.permute.xlu0 %3450  ;;  %v3433_v21 = vpop.permute.xlu1 %3432 }
 0x358   : > { %v3536_v27 = vsel %vm8240_vm0, %v3451_v39, %v3535_v35  ;;  %v3509_v10 = vsel %vm8240_vm0, %v3433_v21, %v3508_v22  ;;  %v2998_v22 = vunpack.i.h.s16 %v8405_v1  ;;  %v4360_v39 = vld [vmem:[#allocation3 + $0x48] sm:$0x20] }
 0x359   : > { %3537 = vst [vmem:[#allocation3 + $0x50] sm:$0x10] %v3536_v27  ;;  %3510 = vst [vmem:[#allocation3 + $0x8] sm:$0x10] %v3509_v10  ;;  %4943 = vrot.lane.b32.xlu1 %v8499_v25, %s7245_s20  ;;  %v3008_v27 = vunpack.i.h.s16 %v8417_v62 }
 0x35a   : > { %2210 = vrot.lane.b32.xlu0 %v7764_v51, %s7204_s10  ;;  %v3022_v1 = vpack.i.b16 %v2998_v22, %v2998_v22  ;;  %v3511_v22 = vld [vmem:[#allocation3 + $0x10] sm:$0x10] }
 0x35b   : > { %v3744_v56 = vpop.permute.xlu0 %3743  ;;  %v3726_v63 = vpop.permute.xlu1 %3725 }
 0x35c   : > { %v3829_v34 = vsel %vm8255_vm8, %v3744_v56, %v3828_v26  ;;  %v3802_v59 = vsel %vm8255_vm8, %v3726_v63, %v3801_v48  ;;  %v3218_v26 = vld [vmem:[#allocation3 + $0x10] sm:$0x8]  ;;  %v3385_v56 = vld [vmem:[#allocation3 + $0x48] sm:$0x8] }
 0x35d   : > { %3830 = vst [vmem:[#allocation3 + $0x50] sm:$0x20] %v3829_v34  ;;  %3803 = vst [vmem:[#allocation3 + $0x8] sm:$0x20] %v3802_v59  ;;  %2342 = vrot.lane.b32.xlu1 %v7791_v36, %s7211_s17  ;;  %v4284_v34 = vsel %vm10440_vm12, %v8321_v29, %v8323_v20  ;;  %v3678_v20 = vld [vmem:[#allocation3 + $0x48] sm:$0x10] }
 0x35e   : > { %2362 = vrot.lane.b32.xlu0 %v7803_v44, %s7211_s17  ;;  %vm10441_vm12 = vcmask 130048  }
 0x35f   : > { %v4226_v58 = vpop.permute.xlu0 %4225  ;;  %v4224_v35 = vpop.permute.xlu1 %4223 }
 0x360   : > { %v4292_v21 = vsel %vm10439_vm1, %v4224_v35, %v4226_v58  ;;  %v3032_v35 = vpack.i.b16 %v3008_v27, %v3008_v27 }
 0x361   : > { %v4361_v10 = vsel %vm8290_vm14, %v4292_v21, %v4360_v39  ;;  %2503 = vrot.lane.b32.xlu1 %v7764_v51, %s7218_s26 }
 0x362   : > { %4362 = vst [vmem:[#allocation3 + $0x48] sm:$0x20] %v4361_v10  ;;  %2635 = vrot.lane.b32.xlu0 %v7791_v36, %s7225_s15  ;;  %v8548_v10 = vrot.slane %v3022_v1, %v7654_v42 }
 0x363   : > { %v3303_v48 = vpop.permute.xlu0 %3302  ;;  %v3142_v63 = vpop.permute.xlu1 %3141 }
 0x364   : > { %v4336_v62 = vld [vmem:[#allocation3 + $0x8] sm:$0x20]  ;;  %v3386_v59 = vsel %vm8277_vm4, %v3303_v48, %v3385_v56  ;;  %v3219_v58 = vsel %vm8230_vm13, %v3142_v63, %v3218_v26  ;;  %v8555_v48 = vrot.slane %v3032_v35, %v7654_v42 }
 0x365   : > { %v4337_v39 = vsel %vm8290_vm14, %v4284_v34, %v4336_v62  ;;  %3387 = vst [vmem:[#allocation3 + $0x48] sm:$0x8] %v3386_v59  ;;  %3220 = vst [vmem:[#allocation3 + $0x10] sm:$0x8] %v3219_v58  ;;  %2655 = vrot.lane.b32.xlu1 %v7803_v44, %s7225_s15  ;;  %v3388_v34 = vld [vmem:[#allocation3 + $0x50] sm:$0x8]  ;;  %v3950_v58 = vunpack.i.h.s16 %v7955_v49 }
 0x366   : > { %4338 = vst [vmem:[#allocation3 + $0x8] sm:$0x20] %v4337_v39  ;;  %2796 = vrot.lane.b32.xlu0 %v7764_v51, %s7233_s30  ;;  %v3804_v51 = vld [vmem:[#allocation3 + $0x10] sm:$0x20] }
 0x367   : > { %v3596_v29 = vpop.permute.xlu0 %3595  ;;  %v3435_v21 = vpop.permute.xlu1 %3434  ;;  %v4363_v39 = vld [vmem:[#allocation3 + $0x50] sm:$0x20] }
 0x368   : > { %v3679_v27 = vsel %vm8304_vm3, %v3596_v29, %v3678_v20  ;;  %v3512_v26 = vsel %vm8240_vm0, %v3435_v21, %v3511_v22 }
 0x369   : > { %3680 = vst [vmem:[#allocation3 + $0x48] sm:$0x10] %v3679_v27  ;;  %3513 = vst [vmem:[#allocation3 + $0x10] sm:$0x10] %v3512_v26  ;;  %3147 = vrot.lane.b32.xlu1 %v8548_v10, %s7201_s7  ;;  %v3681_v27 = vld [vmem:[#allocation3 + $0x50] sm:$0x10] }
 0x36a   : > { %3167 = vrot.lane.b32.xlu0 %v8555_v48, %s7201_s7 }
 0x36b   : > { %v4230_v56 = vpop.permute.xlu0 %4229  ;;  %v3728_v63 = vpop.permute.xlu1 %3727 }
 0x36c   : > { %v3805_v1 = vsel %vm8255_vm8, %v3728_v63, %v3804_v51  ;;  %v3361_v51 = vld [vmem:[#allocation3 + $0x8] sm:$0x8] }
 0x36d   : > { %3806 = vst [vmem:[#allocation3 + $0x10] sm:$0x20] %v3805_v1  ;;  %3308 = vrot.lane.b32.xlu1 %v8260_v24, %s7208_s14  ;;  %v3960_v1 = vunpack.i.h.s16 %v8451_v33  ;;  %v3541_v33 = vld [vmem:[#allocation3 + $0x60] sm:$0x10] }
 0x36e   : > { %3440 = vrot.lane.b32.xlu0 %v8548_v10, %s7215_s21 }
 0x36f   : > { %v3305_v62 = vpop.permute.xlu0 %3304  ;;  %v4228_v59 = vpop.permute.xlu1 %4227 }
 0x370   : > { %v3389_v35 = vsel %vm8277_vm4, %v3305_v62, %v3388_v34  ;;  %v4293_v22 = vsel %vm10439_vm1, %v4228_v59, %v4230_v56  ;;  %v5217_v29 = vld [vmem:[#allocation3 + $0x48] sm:$0xff]  ;;  %v3974_v56 = vpack.i.b16 %v3950_v58, %v3950_v58  ;;  %v4285_v34 = vsel %vm10439_vm1, %v8332_v61, %v8330_v57  ;;  %v8593_v57 = vpop.f32.mrb[12].mxu1  ;;  %vm10442_vm1 = vmmov %vm10441_vm12 }
 0x371   : > { %3390 = vst [vmem:[#allocation3 + $0x50] sm:$0x8] %v3389_v35  ;;  %v4364_v20 = vsel %vm8290_vm14, %v4293_v22, %v4363_v39  ;;  %3460 = vrot.lane.b32.xlu1 %v8555_v48, %s7215_s21  ;;  %v5284_v21 = vsel %vm10441_vm12, %v5217_v29, 0  ;;  %v3654_v58 = vld [vmem:[#allocation3 + $0x8] sm:$0x10]  ;;  %v3984_v29 = vpack.i.b16 %v3960_v1, %v3960_v1 }
 0x372   : > { %4365 = vst [vmem:[#allocation3 + $0x50] sm:$0x20] %v4364_v20  ;;  %3601 = vrot.lane.b32.xlu0 %v8260_v24, %s7222_s11  ;;  %6912 = vmatpush3.bf16.xpose.msra.mxu1 %v5284_v21  ;;  %v4022_v22 = vrot.slane %v3974_v56, %v7654_v42  ;;  %v4483_v20 = vunpack.i.h.s16 %v8465_v9 }
 0x373   : > { %v3598_v26 = vpop.permute.xlu0 %3597  ;;  %v3287_v63 = vpop.permute.xlu1 %3286  ;;  %6917 = vmatprep.subr.bf16.mxu1 %v10437_v55 }
 0x374   : > { %v4339_v62 = vld [vmem:[#allocation3 + $0x10] sm:$0x20]  ;;  %v3682_v59 = vsel %vm8304_vm3, %v3598_v26, %v3681_v27  ;;  %v3362_v24 = vsel %vm8277_vm4, %v3287_v63, %v3361_v51  ;;  %v4026_v26 = vrot.slane %v3974_v56, %v7873_v19  ;;  %v4493_v51 = vunpack.i.h.s16 %v8473_v23  ;;  %v1858_v63 = vpop.f32.mrb[13].mxu1 }
 0x375   : > { %v4340_v35 = vsel %vm8290_vm14, %v4285_v34, %v4339_v62  ;;  %3683 = vst [vmem:[#allocation3 + $0x50] sm:$0x10] %v3682_v59  ;;  %3363 = vst [vmem:[#allocation3 + $0x8] sm:$0x8] %v3362_v24  ;;  %3733 = vrot.lane.b32.xlu1 %v8548_v10, %s7229_s25  ;;  %v3248_v34 = vld [vmem:[#allocation3 + $0x60] sm:$0x8] }
 0x376   : > { %4341 = vst [vmem:[#allocation3 + $0x10] sm:$0x20] %v4340_v35  ;;  %3753 = vrot.lane.b32.xlu0 %v8555_v48, %s7229_s25  ;;  %v1859_v62 = vpop.f32.mrb[14].mxu1  ;;  %v3364_v59 = vld [vmem:[#allocation3 + $0x10] sm:$0x8]  ;;  %v4102_v35 = vrot.slane %v3984_v29, %v7654_v42 }
 0x377   : > { %v3455_v61 = vpop.permute.xlu0 %3454  ;;  %v3580_v39 = vpop.permute.xlu1 %3579 }
 0x378   : > { %v3542_v21 = vsel %vm8240_vm0, %v3455_v61, %v3541_v33  ;;  %v3655_v27 = vsel %vm8304_vm3, %v3580_v39, %v3654_v58  ;;  %v1860_v9 = vpop.f32.mrb[15].mxu1  ;;  %v4507_v33 = vpack.i.b16 %v4483_v20, %v4483_v20  ;;  %v4106_v61 = vrot.slane %v3984_v29, %v7873_v19  ;;  %v3834_v39 = vld [vmem:[#allocation3 + $0x60] sm:$0x20] }
 0x379   : > { %3543 = vst [vmem:[#allocation3 + $0x60] sm:$0x10] %v3542_v21  ;;  %3656 = vst [vmem:[#allocation3 + $0x8] sm:$0x10] %v3655_v27  ;;  %4199 = vrot.lane.b32.xlu1 %v4022_v22, %s7237_s18  ;;  %v4517_v58 = vpack.i.b16 %v4493_v51, %v4493_v51  ;;  %v3657_v27 = vld [vmem:[#allocation3 + $0x10] sm:$0x10] }
 0x37a   : > { %4201 = vrot.lane.b32.xlu0 %v4026_v26, %s7237_s18  ;;  %v8614_v26 = vrot.slane %v4507_v33, %v7654_v42  ;;  %v2440_v9 = vld [vmem:[#allocation3 + $0x58] sm:$0x2] }
 0x37b   : > { %v3289_v1 = vpop.permute.xlu0 %3288  ;;  %v3162_v24 = vpop.permute.xlu1 %3161 }
 0x37c   : > { %v3365_v56 = vsel %vm8277_vm4, %v3289_v1, %v3364_v59  ;;  %v3249_v23 = vsel %vm8230_vm13, %v3162_v24, %v3248_v34  ;;  %v5218_v22 = vld [vmem:[#allocation3 + $0x50] sm:$0xff]  ;;  %v8621_v34 = vrot.slane %v4517_v58, %v7654_v42  ;;  %v2446_v1 = vld [vmem:[#allocation3 + $0x68] sm:$0x2] }
 0x37d   : > { %3366 = vst [vmem:[#allocation3 + $0x10] sm:$0x8] %v3365_v56  ;;  %3250 = vst [vmem:[#allocation3 + $0x60] sm:$0x8] %v3249_v23  ;;  %4239 = vrot.lane.b32.xlu1 %v4102_v35, %s7237_s18  ;;  %v5331_v62 = vsel %vm10442_vm1, %v5218_v22, 0 }
 0x37e   : > { %4241 = vrot.lane.b32.xlu0 %v4106_v61, %s7237_s18  ;;  %v2733_v56 = vld [vmem:[#allocation3 + $0x58] sm:$0x4]  ;;  %v2739_v23 = vld [vmem:[#allocation3 + $0x68] sm:$0x4] }
 0x37f   : > { %v3582_v21 = vpop.permute.xlu0 %3581  ;;  %v3748_v20 = vpop.permute.xlu1 %3747 }
 0x380   : > { %v3658_v63 = vsel %vm8304_vm3, %v3582_v21, %v3657_v27  ;;  %v3835_v29 = vsel %vm8255_vm8, %v3748_v20, %v3834_v39  ;;  %v5209_v51 = vld [vmem:[#allocation3 + $0x8] sm:$0xff]  ;;  %v2416_v27 = vld [vmem:[#allocation3 + $0x18] sm:$0x2]  ;;  %v2293_v20 = vld [vmem:[#allocation3 + $0x58] sm:$0x1] }
 0x381   : > { %3659 = vst [vmem:[#allocation3 + $0x10] sm:$0x10] %v3658_v63  ;;  %3836 = vst [vmem:[#allocation3 + $0x60] sm:$0x20] %v3835_v29  ;;  %4632 = vrot.lane.b32.xlu1 %v8614_v26, %s7241_s9  ;;  %6914 = vmatmul.mubr.msk.bf16.vlgmr.msra.gmra.mrb[20].mxu1 %vm10441_vm12, %v5209_v51 }
 0x382   : > { %6918 = vmatpush3.bf16.xpose.msra.mxu1 %v5331_v62  ;;  %4652 = vrot.lane.b32.xlu0 %v8621_v34, %s7241_s9  ;;  %vm10443_vm12 = vmmov %vm10442_vm1  ;;  %vm10444_vm1 = vcmask 113664  }
 0x383   : > { %v2355_v59 = vpop.permute.xlu0 %2354  ;;  %v2359_v24 = vpop.permute.xlu1 %2358  ;;  %6919 = vmatprep.mubr.msk.bf16.mxu1 %vm10438_vm7, %v10437_v55  ;;  %6923 = vmatprep.subr.bf16.mxu1 %v10437_v55 }
 0x384   : > { %v2441_v35 = vsel %vm8159_vm11, %v2355_v59, %v2440_v9  ;;  %v2447_v33 = vsel %vm8159_vm11, %v2359_v24, %v2446_v1  ;;  %v2709_v9 = vld [vmem:[#allocation3 + $0x18] sm:$0x4] }
 0x385   : > { %2442 = vst [vmem:[#allocation3 + $0x58] sm:$0x2] %v2441_v35  ;;  %2448 = vst [vmem:[#allocation3 + $0x68] sm:$0x2] %v2447_v33  ;;  %4793 = vrot.lane.b32.xlu1 %v7818_v53, %s7246_s8  ;;  %v3245_v33 = vld [vmem:[#allocation3 + $0x58] sm:$0x8] }
 0x386   : > { %4925 = vrot.lane.b32.xlu0 %v8614_v26, %s7245_s20 }
 0x387   : > { %v2648_v61 = vpop.permute.xlu0 %2647  ;;  %v2652_v58 = vpop.permute.xlu1 %2651 }
 0x388   : > { %v2734_v39 = vsel %vm8150_vm6, %v2648_v61, %v2733_v56  ;;  %v2740_v22 = vsel %vm8150_vm6, %v2652_v58, %v2739_v23  ;;  %v5210_v21 = vld [vmem:[#allocation3 + $0x10] sm:$0xff] }
 0x389   : > { %2735 = vst [vmem:[#allocation3 + $0x58] sm:$0x4] %v2734_v39  ;;  %2741 = vst [vmem:[#allocation3 + $0x68] sm:$0x4] %v2740_v22  ;;  %4945 = vrot.lane.b32.xlu1 %v8621_v34, %s7245_s20  ;;  %6920 = vmatmul.mubr.msk.bf16.vlgmr.msra.gmra.mrb[24].mxu1 %vm10443_vm12, %v5210_v21  ;;  %v2449_v22 = vld [vmem:[#allocation3 + $0x70] sm:$0x2] }
 0x38a   : > { %5086 = vrot.lane.b32.xlu0 %v7818_v53, %s7247_s22  ;;  %6925 = vmatprep.mubr.msk.bf16.mxu1 %vm10438_vm7, %v10437_v55  ;;  %v3538_v21 = vld [vmem:[#allocation3 + $0x58] sm:$0x10] }
 0x38b   : > { %v2209_v63 = vpop.permute.xlu1 %2208  ;;  %v2339_v29 = vpop.permute.xlu0 %2338 }
 0x38c   : > { %v2294_v51 = vsel %vm8188_vm15, %v2209_v63, %v2293_v20  ;;  %v2417_v62 = vsel %vm8159_vm11, %v2339_v29, %v2416_v27  ;;  %v2586_v53 = vld [vmem:[#allocation3 + $0x58] sm:$0x2] }
 0x38d   : > { %2295 = vst [vmem:[#allocation3 + $0x58] sm:$0x1] %v2294_v51  ;;  %2418 = vst [vmem:[#allocation3 + $0x18] sm:$0x2] %v2417_v62  ;;  %2192 = vrot.lane.b32.xlu1 %v7773_v8, %s7204_s10  ;;  %v3251_v51 = vld [vmem:[#allocation3 + $0x68] sm:$0x8] }
 0x38e   : > { %2212 = vrot.lane.b32.xlu0 %v7779_v12, %s7204_s10 }
 0x38f   : > { %v2502_v1 = vpop.permute.xlu1 %2501  ;;  %v2632_v59 = vpop.permute.xlu0 %2631 }
 0x390   : > { %v2587_v24 = vsel %vm8193_vm5, %v2502_v1, %v2586_v53  ;;  %v2710_v35 = vsel %vm8150_vm6, %v2632_v59, %v2709_v9  ;;  %v2879_v56 = vld [vmem:[#allocation3 + $0x58] sm:$0x4]  ;;  %v3544_v1 = vld [vmem:[#allocation3 + $0x68] sm:$0x10]  ;;  %v3221_v59 = vld [vmem:[#allocation3 + $0x18] sm:$0x8] }
 0x391   : > { %2588 = vst [vmem:[#allocation3 + $0x58] sm:$0x2] %v2587_v24  ;;  %2711 = vst [vmem:[#allocation3 + $0x18] sm:$0x4] %v2710_v35  ;;  %2485 = vrot.lane.b32.xlu1 %v7773_v8, %s7218_s26 }
 0x392   : > { %2505 = vrot.lane.b32.xlu0 %v7779_v12, %s7218_s26 }
 0x393   : > { %v2795_v23 = vpop.permute.xlu1 %2794  ;;  %v3160_v61 = vpop.permute.xlu0 %3159 }
 0x394   : > { %v2880_v58 = vsel %vm8218_vm2, %v2795_v23, %v2879_v56  ;;  %v3246_v39 = vsel %vm8230_vm13, %v3160_v61, %v3245_v33  ;;  %v3837_v23 = vld [vmem:[#allocation3 + $0x68] sm:$0x20] }
 0x395   : > { %2881 = vst [vmem:[#allocation3 + $0x58] sm:$0x4] %v2880_v58  ;;  %3247 = vst [vmem:[#allocation3 + $0x58] sm:$0x8] %v3246_v39  ;;  %2778 = vrot.lane.b32.xlu1 %v7773_v8, %s7233_s30  ;;  %v3831_v8 = vld [vmem:[#allocation3 + $0x58] sm:$0x20] }
 0x396   : > { %2798 = vrot.lane.b32.xlu0 %v7779_v12, %s7233_s30 }
 0x397   : > { %v2361_v27 = vpop.permute.xlu1 %2360 }
 0x398   : > { %v2450_v20 = vsel %vm8159_vm11, %v2361_v27, %v2449_v22  ;;  %v3453_v63 = vpop.permute.xlu0 %3452 }
 0x399   : > { %2451 = vst [vmem:[#allocation3 + $0x70] sm:$0x2] %v2450_v20  ;;  %v3539_v29 = vsel %vm8240_vm0, %v3453_v63, %v3538_v21  ;;  %3290 = vrot.lane.b32.xlu1 %v8381_v52, %s7208_s14  ;;  %v3807_v21 = vld [vmem:[#allocation3 + $0x18] sm:$0x20]  ;;  %v8715_v20 = vcombine.high %v7862_v16, %v7862_v16 }
 0x39a   : > { %3540 = vst [vmem:[#allocation3 + $0x58] sm:$0x10] %v3539_v29  ;;  %3310 = vrot.lane.b32.xlu0 %v8365_v41, %s7208_s14 }
 0x39b   : > { %v3164_v12 = vpop.permute.xlu1 %3163 }
 0x39c   : > { %v3252_v62 = vsel %vm8230_vm13, %v3164_v12, %v3251_v51  ;;  %v3746_v9 = vpop.permute.xlu0 %3745  ;;  %v6801_v12 = vpack.i.b16 %v8715_v20, %v8715_v20 }
 0x39d   : > { %3253 = vst [vmem:[#allocation3 + $0x68] sm:$0x8] %v3252_v62  ;;  %v3832_v53 = vsel %vm8255_vm8, %v3746_v9, %v3831_v8  ;;  %3583 = vrot.lane.b32.xlu1 %v8381_v52, %s7222_s11  ;;  %v3514_v52 = vld [vmem:[#allocation3 + $0x18] sm:$0x10]  ;;  %v8732_v62 = vcombine.high %v8176_v3, %v8176_v3 }
 0x39e   : > { %3833 = vst [vmem:[#allocation3 + $0x58] sm:$0x20] %v3832_v53  ;;  %3603 = vrot.lane.b32.xlu0 %v8365_v41, %s7222_s11  ;;  %v8701_v41 = vcombine.high %v8143_v28, %v8143_v28 }
 0x39f   : > { %v3457_v24 = vpop.permute.xlu1 %3456 }
 0x3a0   : > { %v3545_v35 = vsel %vm8240_vm0, %v3457_v24, %v3544_v1  ;;  %v3144_v33 = vpop.permute.xlu0 %3143  ;;  %v6787_v28 = vpack.i.b16 %v8701_v41, %v8701_v41 }
 0x3a1   : > { %3546 = vst [vmem:[#allocation3 + $0x68] sm:$0x10] %v3545_v35  ;;  %v3222_v56 = vsel %vm8230_vm13, %v3144_v33, %v3221_v59  ;;  %4775 = vrot.lane.b32.xlu1 %v7865_v18, %s7246_s8  ;;  %v2712_v59 = vld [vmem:[#allocation3 + $0x20] sm:$0x4]  ;;  %v3684_v35 = vld [vmem:[#allocation3 + $0x58] sm:$0x10] }
 0x3a2   : > { %3223 = vst [vmem:[#allocation3 + $0x18] sm:$0x8] %v3222_v56  ;;  %4795 = vrot.lane.b32.xlu0 %v7848_v6, %s7246_s8  ;;  %v8724_v51 = vrot.slane %v6787_v28, %v7654_v42  ;;  %v4030_v56 = vrot.slane %v6801_v12, %v7654_v42 }
 0x3a3   : > { %v3750_v61 = vpop.permute.xlu1 %3749 }
 0x3a4   : > { %v3838_v58 = vsel %vm8255_vm8, %v3750_v61, %v3837_v23  ;;  %v3437_v39 = vpop.permute.xlu0 %3436  ;;  %v6806_v23 = vpack.i.b16 %v8732_v62, %v8732_v62 }
 0x3a5   : > { %3839 = vst [vmem:[#allocation3 + $0x68] sm:$0x20] %v3838_v58  ;;  %v3515_v22 = vsel %vm8240_vm0, %v3437_v39, %v3514_v52  ;;  %5068 = vrot.lane.b32.xlu1 %v7865_v18, %s7247_s22  ;;  %v3391_v18 = vld [vmem:[#allocation3 + $0x58] sm:$0x8]  ;;  %v4366_v9 = vld [vmem:[#allocation3 + $0x58] sm:$0x20]  ;;  %v8748_v52 = vcombine.high %v7747_v46, %v7747_v46 }
 0x3a6   : > { %3516 = vst [vmem:[#allocation3 + $0x18] sm:$0x10] %v3515_v22  ;;  %5088 = vrot.lane.b32.xlu0 %v7848_v6, %s7247_s22  ;;  %v2742_v58 = vld [vmem:[#allocation3 + $0x70] sm:$0x4]  ;;  %v3224_v39 = vld [vmem:[#allocation3 + $0x20] sm:$0x8]  ;;  %v4110_v28 = vrot.slane %v6806_v23, %v7654_v42 }
 0x3a7   : > { %v4234_v27 = vpop.permute.xlu1 %4233 }
 0x3a8   : > { %v3730_v63 = vpop.permute.xlu0 %3729 }
 0x3a9   : > { %v3808_v29 = vsel %vm8255_vm8, %v3730_v63, %v3807_v21  ;;  %2344 = vrot.lane.b32.xlu1 %v7800_v43, %s7211_s17  ;;  %v4034_v21 = vrot.slane %v6801_v12, %v7873_v19  ;;  %v6815_v63 = vpack.i.b16 %v8748_v52, %v8748_v52 }
 0x3aa   : > { %3809 = vst [vmem:[#allocation3 + $0x18] sm:$0x20] %v3808_v29  ;;  %2637 = vrot.lane.b32.xlu0 %v7800_v43, %s7225_s15 }
 0x3ab   : > { %v3307_v6 = vpop.permute.xlu1 %3306 }
 0x3ac   : > { %v3392_v16 = vsel %vm8277_vm4, %v3307_v6, %v3391_v18  ;;  %v4232_v8 = vpop.permute.xlu0 %4231  ;;  %v3254_v6 = vld [vmem:[#allocation3 + $0x70] sm:$0x8]  ;;  %v3517_v18 = vld [vmem:[#allocation3 + $0x20] sm:$0x10] }
 0x3ad   : > { %3393 = vst [vmem:[#allocation3 + $0x58] sm:$0x8] %v3392_v16  ;;  %v4294_v53 = vsel %vm10444_vm1, %v4232_v8, %v4234_v27  ;;  %3149 = vrot.lane.b32.xlu1 %v8724_v51, %s7201_s7  ;;  %v4114_v8 = vrot.slane %v6806_v23, %v7873_v19 }
 0x3ae   : > { %v4367_v1 = vsel %vm8290_vm14, %v4294_v53, %v4366_v9  ;;  %3442 = vrot.lane.b32.xlu0 %v8724_v51, %s7215_s21  ;;  %v8769_v53 = vrot.slane %v6815_v63, %v7654_v42 }
 0x3af   : > { %4368 = vst [vmem:[#allocation3 + $0x58] sm:$0x20] %v4367_v1  ;;  %v3600_v24 = vpop.permute.xlu1 %3599 }
 0x3b0   : > { %v3685_v3 = vsel %vm8304_vm3, %v3600_v24, %v3684_v35  ;;  %v2634_v33 = vpop.permute.xlu0 %2633  ;;  %v3547_v35 = vld [vmem:[#allocation3 + $0x70] sm:$0x10] }
 0x3b1   : > { %3686 = vst [vmem:[#allocation3 + $0x58] sm:$0x10] %v3685_v3  ;;  %v2713_v61 = vsel %vm8150_vm6, %v2634_v33, %v2712_v59  ;;  %3735 = vrot.lane.b32.xlu1 %v8724_v51, %s7229_s25  ;;  %v3810_v3 = vld [vmem:[#allocation3 + $0x20] sm:$0x20] }
 0x3b2   : > { %2714 = vst [vmem:[#allocation3 + $0x20] sm:$0x4] %v2713_v61  ;;  %4203 = vrot.lane.b32.xlu0 %v4030_v56, %s7237_s18 }
 0x3b3   : > { %v2654_v22 = vpop.permute.xlu1 %2653 }
 0x3b4   : > { %v2743_v27 = vsel %vm8150_vm6, %v2654_v22, %v2742_v58  ;;  %v3146_v46 = vpop.permute.xlu0 %3145  ;;  %v3840_v58 = vld [vmem:[#allocation3 + $0x70] sm:$0x20] }
 0x3b5   : > { %2744 = vst [vmem:[#allocation3 + $0x70] sm:$0x4] %v2743_v27  ;;  %v3225_v29 = vsel %vm8230_vm13, %v3146_v46, %v3224_v39  ;;  %4205 = vrot.lane.b32.xlu1 %v4034_v21, %s7237_s18  ;;  %v4709_v27 = vld [vmem:[#allocation3 + $0x20] sm:$0x40] }
 0x3b6   : > { %3226 = vst [vmem:[#allocation3 + $0x20] sm:$0x8] %v3225_v29  ;;  %4243 = vrot.lane.b32.xlu0 %v4110_v28, %s7237_s18  ;;  %v4369_v28 = vld [vmem:[#allocation3 + $0x60] sm:$0x20] }
 0x3b7   : > { %v3166_v16 = vpop.permute.xlu1 %3165 }
 0x3b8   : > { %v3255_v12 = vsel %vm8230_vm13, %v3166_v16, %v3254_v6  ;;  %v3439_v9 = vpop.permute.xlu0 %3438  ;;  %v5219_v1 = vld [vmem:[#allocation3 + $0x58] sm:$0xff]  ;;  %v3000_v6 = vunpack.i.h.s16 %v8701_v41 }
 0x3b9   : > { %3256 = vst [vmem:[#allocation3 + $0x70] sm:$0x8] %v3255_v12  ;;  %v3518_v59 = vsel %vm8240_vm0, %v3439_v9, %v3517_v18  ;;  %4245 = vrot.lane.b32.xlu1 %v4114_v8, %s7237_s18  ;;  %v5378_v24 = vsel %vm10443_vm12, %v5219_v1, 0  ;;  %v4739_v8 = vld [vmem:[#allocation3 + $0x70] sm:$0x40]  ;;  %vm10445_vm12 = vmmov %vm10444_vm1 }
 0x3ba   : > { %3519 = vst [vmem:[#allocation3 + $0x20] sm:$0x10] %v3518_v59  ;;  %4634 = vrot.lane.b32.xlu0 %v8769_v53, %s7241_s9  ;;  %6924 = vmatpush3.bf16.xpose.msra.mxu1 %v5378_v24  ;;  %v5002_v12 = vld [vmem:[#allocation3 + $0x20] sm:$0x80]  ;;  %v3024_v59 = vpack.i.b16 %v3000_v6, %v3000_v6 }
 0x3bb   : > { %v3459_v33 = vpop.permute.xlu1 %3458  ;;  %6935 = vmatprep.subr.bf16.mxu1 %v10437_v55 }
 0x3bc   : > { %v3548_v56 = vsel %vm8240_vm0, %v3459_v33, %v3547_v35  ;;  %v3732_v23 = vpop.permute.xlu0 %3731  ;;  %v5032_v35 = vld [vmem:[#allocation3 + $0x70] sm:$0x80] }
 0x3bd   : > { %3549 = vst [vmem:[#allocation3 + $0x70] sm:$0x10] %v3548_v56  ;;  %v3811_v61 = vsel %vm8255_vm8, %v3732_v23, %v3810_v3  ;;  %4927 = vrot.lane.b32.xlu1 %v8769_v53, %s7245_s20  ;;  %v2296_v56 = vld [vmem:[#allocation3 + $0x60] sm:$0x1] }
 0x3be   : > { %3812 = vst [vmem:[#allocation3 + $0x20] sm:$0x20] %v3811_v61  ;;  %2194 = vrot.lane.b32.xlu0 %v7788_v30, %s7204_s10  ;;  %v8813_v61 = vrot.slane %v3024_v59, %v7654_v42 }
 0x3bf   : > { %v3752_v39 = vpop.permute.xlu1 %3751 }
 0x3c0   : > { %v3841_v22 = vsel %vm8255_vm8, %v3752_v39, %v3840_v58  ;;  %v4236_v21 = vpop.permute.xlu0 %4235  ;;  %v2422_v39 = vld [vmem:[#allocation3 + $0x28] sm:$0x2] }
 0x3c1   : > { %3842 = vst [vmem:[#allocation3 + $0x70] sm:$0x20] %v3841_v22  ;;  %2214 = vrot.lane.b32.xlu1 %v7794_v31, %s7204_s10 }
 0x3c2   : > { %2346 = vrot.lane.b32.xlu0 %v7806_v45, %s7211_s17 }
 0x3c3   : > { %v4238_v46 = vpop.permute.xlu1 %4237 }
 0x3c4   : > { %v4295_v63 = vsel %vm10444_vm1, %v4236_v21, %v4238_v46  ;;  %v4631_v29 = vpop.permute.xlu0 %4630 }
 0x3c5   : > { %v4370_v18 = vsel %vm8290_vm14, %v4295_v63, %v4369_v28  ;;  %v4710_v16 = vsel %vm7965_vm10, %v4631_v29, %v4709_v27  ;;  %2487 = vrot.lane.b32.xlu1 %v7788_v30, %s7218_s26  ;;  %v2589_v28 = vld [vmem:[#allocation3 + $0x60] sm:$0x2]  ;;  %v3952_v29 = vunpack.i.h.s16 %v8715_v20  ;;  %v3962_v20 = vunpack.i.h.s16 %v8732_v62 }
 0x3c6   : > { %4371 = vst [vmem:[#allocation3 + $0x60] sm:$0x20] %v4370_v18  ;;  %4711 = vst [vmem:[#allocation3 + $0x20] sm:$0x40] %v4710_v16  ;;  %2507 = vrot.lane.b32.xlu0 %v7794_v31, %s7218_s26 }
 0x3c7   : > { %v4651_v9 = vpop.permute.xlu1 %4650 }
 0x3c8   : > { %v4740_v41 = vsel %vm7965_vm10, %v4651_v9, %v4739_v8  ;;  %v4924_v1 = vpop.permute.xlu0 %4923  ;;  %v2745_v8 = vld [vmem:[#allocation3 + $0x78] sm:$0x4]  ;;  %v3976_v9 = vpack.i.b16 %v3952_v29, %v3952_v29  ;;  %v3550_v29 = vld [vmem:[#allocation3 + $0x78] sm:$0x10] }
 0x3c9   : > { %4741 = vst [vmem:[#allocation3 + $0x70] sm:$0x40] %v4740_v41  ;;  %v5003_v24 = vsel %vm7958_vm9, %v4924_v1, %v5002_v12  ;;  %2639 = vrot.lane.b32.xlu1 %v7806_v45, %s7225_s15  ;;  %v2882_v1 = vld [vmem:[#allocation3 + $0x60] sm:$0x4] }
 0x3ca   : > { %5004 = vst [vmem:[#allocation3 + $0x20] sm:$0x80] %v5003_v24  ;;  %2780 = vrot.lane.b32.xlu0 %v7788_v30, %s7233_s30  ;;  %v2452_v30 = vld [vmem:[#allocation3 + $0x78] sm:$0x2]  ;;  %v4038_v62 = vrot.slane %v3976_v9, %v7654_v42 }
 0x3cb   : > { %v4944_v3 = vpop.permute.xlu1 %4943 }
 0x3cc   : > { %v5033_v33 = vsel %vm7958_vm9, %v4944_v3, %v5032_v35  ;;  %v2211_v23 = vpop.permute.xlu0 %2210  ;;  %v3227_v35 = vld [vmem:[#allocation3 + $0x28] sm:$0x8] }
 0x3cd   : > { %5034 = vst [vmem:[#allocation3 + $0x70] sm:$0x80] %v5033_v33  ;;  %v2297_v58 = vsel %vm8188_vm15, %v2211_v23, %v2296_v56  ;;  %2800 = vrot.lane.b32.xlu1 %v7794_v31, %s7233_s30  ;;  %v2715_v31 = vld [vmem:[#allocation3 + $0x28] sm:$0x4]  ;;  %v3986_v33 = vpack.i.b16 %v3962_v20, %v3962_v20  ;;  %v4485_v56 = vunpack.i.h.s16 %v8748_v52  ;;  %v3813_v20 = vld [vmem:[#allocation3 + $0x28] sm:$0x20] }
 0x3ce   : > { %2298 = vst [vmem:[#allocation3 + $0x60] sm:$0x1] %v2297_v58  ;;  %3151 = vrot.lane.b32.xlu0 %v8813_v61, %s7201_s7 }
 0x3cf   : > { %v2343_v22 = vpop.permute.xlu1 %2342  ;;  %v4118_v52 = vrot.slane %v3986_v33, %v7654_v42 }
 0x3d0   : > { %v2423_v21 = vsel %vm8159_vm11, %v2343_v22, %v2422_v39  ;;  %v2363_v27 = vpop.permute.xlu0 %2362  ;;  %v4042_v39 = vrot.slane %v3976_v9, %v7873_v19  ;;  %v3394_v22 = vld [vmem:[#allocation3 + $0x60] sm:$0x8] }
 0x3d1   : > { %2424 = vst [vmem:[#allocation3 + $0x28] sm:$0x2] %v2423_v21  ;;  %v2453_v46 = vsel %vm8159_vm11, %v2363_v27, %v2452_v30  ;;  %3292 = vrot.lane.b32.xlu1 %v8436_v4, %s7208_s14  ;;  %v3520_v30 = vld [vmem:[#allocation3 + $0x28] sm:$0x10]  ;;  %v4509_v27 = vpack.i.b16 %v4485_v56, %v4485_v56 }
 0x3d2   : > { %2454 = vst [vmem:[#allocation3 + $0x78] sm:$0x2] %v2453_v46  ;;  %3312 = vrot.lane.b32.xlu0 %v8443_v32, %s7208_s14 }
 0x3d3   : > { %v2504_v63 = vpop.permute.xlu1 %2503 }
 0x3d4   : > { %v2590_v6 = vsel %vm8193_vm5, %v2504_v63, %v2589_v28  ;;  %v2636_v18 = vpop.permute.xlu0 %2635  ;;  %v4122_v28 = vrot.slane %v3986_v33, %v7873_v19 }
 0x3d5   : > { %2591 = vst [vmem:[#allocation3 + $0x60] sm:$0x2] %v2590_v6  ;;  %v2716_v16 = vsel %vm8150_vm6, %v2636_v18, %v2715_v31  ;;  %3444 = vrot.lane.b32.xlu1 %v8813_v61, %s7215_s21  ;;  %v8865_v18 = vrot.slane %v4509_v27, %v7654_v42 }
 0x3d6   : > { %2717 = vst [vmem:[#allocation3 + $0x28] sm:$0x4] %v2716_v16  ;;  %3585 = vrot.lane.b32.xlu0 %v8436_v4, %s7222_s11  ;;  %v3257_v4 = vld [vmem:[#allocation3 + $0x78] sm:$0x8] }
 0x3d7   : > { %v2656_v12 = vpop.permute.xlu1 %2655 }
 0x3d8   : > { %v2746_v41 = vsel %vm8150_vm6, %v2656_v12, %v2745_v8  ;;  %v2797_v59 = vpop.permute.xlu0 %2796  ;;  %v3687_v8 = vld [vmem:[#allocation3 + $0x60] sm:$0x10] }
 0x3d9   : > { %2747 = vst [vmem:[#allocation3 + $0x78] sm:$0x4] %v2746_v41  ;;  %v2883_v24 = vsel %vm8218_vm2, %v2797_v59, %v2882_v1  ;;  %3605 = vrot.lane.b32.xlu1 %v8443_v32, %s7222_s11  ;;  %v3843_v41 = vld [vmem:[#allocation3 + $0x78] sm:$0x20] }
 0x3da   : > { %2884 = vst [vmem:[#allocation3 + $0x60] sm:$0x4] %v2883_v24  ;;  %3737 = vrot.lane.b32.xlu0 %v8813_v61, %s7229_s25 }
 0x3db   : > { %v3148_v3 = vpop.permute.xlu1 %3147 }
 0x3dc   : > { %v3228_v23 = vsel %vm8230_vm13, %v3148_v3, %v3227_v35  ;;  %v3168_v58 = vpop.permute.xlu0 %3167 }
 0x3dd   : > { %3229 = vst [vmem:[#allocation3 + $0x28] sm:$0x8] %v3228_v23  ;;  %v3258_v32 = vsel %vm8230_vm13, %v3168_v58, %v3257_v4  ;;  %4207 = vrot.lane.b32.xlu1 %v4038_v62, %s7237_s18  ;;  %v4342_v62 = vld [vmem:[#allocation3 + $0x18] sm:$0x20] }
 0x3de   : > { %3259 = vst [vmem:[#allocation3 + $0x78] sm:$0x8] %v3258_v32  ;;  %4209 = vrot.lane.b32.xlu0 %v4042_v39, %s7237_s18  ;;  %v4372_v39 = vld [vmem:[#allocation3 + $0x68] sm:$0x20] }
 0x3df   : > { %v3309_v21 = vpop.permute.xlu1 %3308 }
 0x3e0   : > { %v3395_v46 = vsel %vm8277_vm4, %v3309_v21, %v3394_v22  ;;  %v3441_v31 = vpop.permute.xlu0 %3440 }
 0x3e1   : > { %3396 = vst [vmem:[#allocation3 + $0x60] sm:$0x8] %v3395_v46  ;;  %v3521_v63 = vsel %vm8240_vm0, %v3441_v31, %v3520_v30  ;;  %4247 = vrot.lane.b32.xlu1 %v4118_v52, %s7237_s18  ;;  %v4712_v30 = vld [vmem:[#allocation3 + $0x28] sm:$0x40]  ;;  %v5005_v46 = vld [vmem:[#allocation3 + $0x28] sm:$0x80] }
 0x3e2   : > { %3522 = vst [vmem:[#allocation3 + $0x28] sm:$0x10] %v3521_v63  ;;  %4249 = vrot.lane.b32.xlu0 %v4122_v28, %s7237_s18  ;;  %v4879_v31 = vld [vmem:[#allocation3 + $0x60] sm:$0x40] }
 0x3e3   : > { %v3461_v6 = vpop.permute.xlu1 %3460 }
 0x3e4   : > { %v3551_v16 = vsel %vm8240_vm0, %v3461_v6, %v3550_v29  ;;  %v3602_v12 = vpop.permute.xlu0 %3601 }
 0x3e5   : > { %3552 = vst [vmem:[#allocation3 + $0x78] sm:$0x10] %v3551_v16  ;;  %v3688_v9 = vsel %vm8304_vm3, %v3602_v12, %v3687_v8  ;;  %4636 = vrot.lane.b32.xlu1 %v8865_v18, %s7241_s9  ;;  %v5035_v12 = vld [vmem:[#allocation3 + $0x78] sm:$0x80] }
 0x3e6   : > { %3689 = vst [vmem:[#allocation3 + $0x60] sm:$0x10] %v3688_v9  ;;  %4777 = vrot.lane.b32.xlu0 %v8493_v37, %s7246_s8 }
 0x3e7   : > { %v3734_v1 = vpop.permute.xlu1 %3733 }
 0x3e8   : > { %v3814_v59 = vsel %vm8255_vm8, %v3734_v1, %v3813_v20  ;;  %v3754_v24 = vpop.permute.xlu0 %3753 }
 0x3e9   : > { %3815 = vst [vmem:[#allocation3 + $0x28] sm:$0x20] %v3814_v59  ;;  %v3844_v35 = vsel %vm8255_vm8, %v3754_v24, %v3843_v41  ;;  %4797 = vrot.lane.b32.xlu1 %v8499_v25, %s7246_s8  ;;  %v5172_v59 = vld [vmem:[#allocation3 + $0x60] sm:$0x80] }
 0x3ea   : > { %3845 = vst [vmem:[#allocation3 + $0x78] sm:$0x20] %v3844_v35  ;;  %4929 = vrot.lane.b32.xlu0 %v8865_v18, %s7245_s20 }
 0x3eb   : > { %v4200_v4 = vpop.permute.xlu1 %4199 }
 0x3ec   : > { %v4202_v3 = vpop.permute.xlu0 %4201 }
 0x3ed   : > { %v4286_v33 = vsel %vm10445_vm12, %v4200_v4, %v4202_v3  ;;  %5070 = vrot.lane.b32.xlu1 %v8493_v37, %s7247_s22  ;;  %v4742_v37 = vld [vmem:[#allocation3 + $0x78] sm:$0x40]  ;;  %vm10446_vm12 = vnez %v10406_v38  ;;  %v2299_v3 = vld [vmem:[#allocation3 + $0x68] sm:$0x1] }
 0x3ee   : > { %v4343_v56 = vsel %vm8290_vm14, %v4286_v33, %v4342_v62  ;;  %5090 = vrot.lane.b32.xlu0 %v8499_v25, %s7247_s22 }
 0x3ef   : > { %4344 = vst [vmem:[#allocation3 + $0x18] sm:$0x20] %v4343_v56  ;;  %v4240_v23 = vpop.permute.xlu1 %4239 }
 0x3f0   : > { %v4242_v58 = vpop.permute.xlu0 %4241 }
 0x3f1   : > { %v4296_v32 = vsel %vm10444_vm1, %v4240_v23, %v4242_v58  ;;  %2196 = vrot.lane.b32.xlu1 %v7791_v36, %s7204_s10  ;;  %vm10447_vm1 = vnez %v10408_v60  ;;  %v2562_v23 = vld [vmem:[#allocation3 + $0x18] sm:$0x2]  ;;  %v3920_v58 = vcombine.high %v7955_v49, %v7955_v49 }
 0x3f2   : > { %v4373_v22 = vsel %vm8290_vm14, %v4296_v32, %v4372_v39  ;;  %2216 = vrot.lane.b32.xlu0 %v7803_v44, %s7204_s10  ;;  %v2592_v32 = vld [vmem:[#allocation3 + $0x68] sm:$0x2] }
 0x3f3   : > { %4374 = vst [vmem:[#allocation3 + $0x68] sm:$0x20] %v4373_v22  ;;  %v4633_v21 = vpop.permute.xlu1 %4632 }
 0x3f4   : > { %v4713_v25 = vsel %vm7965_vm10, %v4633_v21, %v4712_v30  ;;  %v4653_v52 = vpop.permute.xlu0 %4652  ;;  %v6802_v21 = vpack.i.b16 %v3920_v58, %v3920_v58 }
 0x3f5   : > { %4714 = vst [vmem:[#allocation3 + $0x28] sm:$0x40] %v4713_v25  ;;  %v4743_v27 = vsel %vm7965_vm10, %v4653_v52, %v4742_v37  ;;  %2489 = vrot.lane.b32.xlu1 %v7791_v36, %s7218_s26  ;;  %v2855_v37 = vld [vmem:[#allocation3 + $0x18] sm:$0x4]  ;;  %v2885_v52 = vld [vmem:[#allocation3 + $0x68] sm:$0x4] }
 0x3f6   : > { %4744 = vst [vmem:[#allocation3 + $0x78] sm:$0x40] %v4743_v27  ;;  %2509 = vrot.lane.b32.xlu0 %v7803_v44, %s7218_s26 }
 0x3f7   : > { %v4794_v28 = vpop.permute.xlu1 %4793 }
 0x3f8   : > { %v4880_v63 = vsel %vm10446_vm12, %v4794_v28, %v4879_v31  ;;  %v4926_v29 = vpop.permute.xlu0 %4925  ;;  %v8907_v6 = vpop.f32.mrb[16].mxu1  ;;  %v3367_v28 = vld [vmem:[#allocation3 + $0x18] sm:$0x8] }
 0x3f9   : > { %4881 = vst [vmem:[#allocation3 + $0x60] sm:$0x40] %v4880_v63  ;;  %v5006_v16 = vsel %vm7958_vm9, %v4926_v29, %v5005_v46  ;;  %v6909_v8 = vpop.f32.mrb[17].mxu1  ;;  %2782 = vrot.lane.b32.xlu1 %v7791_v36, %s7233_s30  ;;  %v4046_v63 = vrot.slane %v6802_v21, %v7654_v42 }
 0x3fa   : > { %5007 = vst [vmem:[#allocation3 + $0x28] sm:$0x80] %v5006_v16  ;;  %2802 = vrot.lane.b32.xlu0 %v7803_v44, %s7233_s30  ;;  %v8915_v9 = vpop.f32.mrb[18].mxu1  ;;  %v2269_v44 = vld [vmem:[#allocation3 + $0x18] sm:$0x1] }
 0x3fb   : > { %v6910_v20 = vpop.f32.mrb[19].mxu1  ;;  %v4946_v41 = vpop.permute.xlu1 %4945  ;;  %v3397_v16 = vld [vmem:[#allocation3 + $0x68] sm:$0x8] }
 0x3fc   : > { %v5036_v1 = vsel %vm7958_vm9, %v4946_v41, %v5035_v12  ;;  %v5087_v24 = vpop.permute.xlu0 %5086  ;;  %v4050_v12 = vrot.slane %v6802_v21, %v7873_v19 }
 0x3fd   : > { %5037 = vst [vmem:[#allocation3 + $0x78] sm:$0x80] %v5036_v1  ;;  %v5173_v35 = vsel %vm10447_vm1, %v5087_v24, %v5172_v59  ;;  %3294 = vrot.lane.b32.xlu1 %v8548_v10, %s7208_s14  ;;  %v3690_v1 = vld [vmem:[#allocation3 + $0x68] sm:$0x10]  ;;  %v3954_v24 = vunpack.i.h.s16 %v3920_v58 }
 0x3fe   : > { %5174 = vst [vmem:[#allocation3 + $0x60] sm:$0x80] %v5173_v35  ;;  %3314 = vrot.lane.b32.xlu0 %v8555_v48, %s7208_s14 }
 0x3ff   : > { %v2193_v36 = vpop.permute.xlu1 %2192 }
 0x400   : > { %v2270_v4 = vsel %vm8188_vm15, %v2193_v36, %v2269_v44  ;;  %v2213_v62 = vpop.permute.xlu0 %2212  ;;  %v4852_v36 = vld [vmem:[#allocation3 + $0x18] sm:$0x40] }
 0x401   : > { %2271 = vst [vmem:[#allocation3 + $0x18] sm:$0x1] %v2270_v4  ;;  %v2300_v33 = vsel %vm8188_vm15, %v2213_v62, %v2299_v3  ;;  %3587 = vrot.lane.b32.xlu1 %v8548_v10, %s7222_s11  ;;  %vm10448_vm15 = vcmask 130048   ;;  %v4882_v3 = vld [vmem:[#allocation3 + $0x68] sm:$0x40] }
 0x402   : > { %2301 = vst [vmem:[#allocation3 + $0x68] sm:$0x1] %v2300_v33  ;;  %3607 = vrot.lane.b32.xlu0 %v8555_v48, %s7222_s11  ;;  %v3978_v33 = vpack.i.b16 %v3954_v24, %v3954_v24 }
 0x403   : > { %v2486_v56 = vpop.permute.xlu1 %2485 }
 0x404   : > { %v2563_v39 = vsel %vm8193_vm5, %v2486_v56, %v2562_v23  ;;  %v2506_v30 = vpop.permute.xlu0 %2505  ;;  %v5145_v23 = vld [vmem:[#allocation3 + $0x18] sm:$0x80] }
 0x405   : > { %2564 = vst [vmem:[#allocation3 + $0x18] sm:$0x2] %v2563_v39  ;;  %v2593_v22 = vsel %vm8193_vm5, %v2506_v30, %v2592_v32  ;;  %4779 = vrot.lane.b32.xlu1 %v8614_v26, %s7246_s8  ;;  %v5220_v10 = vld [vmem:[#allocation3 + $0x60] sm:$0xff]  ;;  %v5175_v32 = vld [vmem:[#allocation3 + $0x68] sm:$0x80] }
 0x406   : > { %2594 = vst [vmem:[#allocation3 + $0x68] sm:$0x2] %v2593_v22  ;;  %4799 = vrot.lane.b32.xlu0 %v8621_v34, %s7246_s8  ;;  %v5425_v48 = vsel %vm10448_vm15, %v5220_v10, 0  ;;  %v4054_v22 = vrot.slane %v3978_v33, %v7654_v42 }
 0x407   : > { %6930 = vmatpush3.bf16.xpose.msra.mxu0 %v5425_v48  ;;  %v2779_v49 = vpop.permute.xlu1 %2778  ;;  %v2718_v48 = vld [vmem:[#allocation3 + $0x30] sm:$0x4] }
 0x408   : > { %v2856_v25 = vsel %vm8218_vm2, %v2779_v49, %v2855_v37  ;;  %v2799_v27 = vpop.permute.xlu0 %2798  ;;  %6941 = vmatprep.subr.bf16.mxu0 %v10437_v55  ;;  %v4058_v37 = vrot.slane %v3978_v33, %v7873_v19  ;;  %v5008_v33 = vld [vmem:[#allocation3 + $0x30] sm:$0x80] }
 0x409   : > { %2857 = vst [vmem:[#allocation3 + $0x18] sm:$0x4] %v2856_v25  ;;  %v2886_v46 = vsel %vm8218_vm2, %v2799_v27, %v2885_v52  ;;  %5072 = vrot.lane.b32.xlu1 %v8614_v26, %s7247_s22  ;;  %v3230_v27 = vld [vmem:[#allocation3 + $0x30] sm:$0x8] }
 0x40a   : > { %2887 = vst [vmem:[#allocation3 + $0x68] sm:$0x4] %v2886_v46  ;;  %5092 = vrot.lane.b32.xlu0 %v8621_v34, %s7247_s22  ;;  %v3660_v34 = vld [vmem:[#allocation3 + $0x18] sm:$0x10] }
 0x40b   : > { %v3291_v31 = vpop.permute.xlu1 %3290 }
 0x40c   : > { %v3368_v29 = vsel %vm8277_vm4, %v3291_v31, %v3367_v28  ;;  %v3311_v8 = vpop.permute.xlu0 %3310 }
 0x40d   : > { %3369 = vst [vmem:[#allocation3 + $0x18] sm:$0x8] %v3368_v29  ;;  %v3398_v20 = vsel %vm8277_vm4, %v3311_v8, %v3397_v16  ;;  %4211 = vrot.lane.b32.xlu1 %v4046_v63, %s7237_s18  ;;  %v3816_v8 = vld [vmem:[#allocation3 + $0x30] sm:$0x20] }
 0x40e   : > { %3399 = vst [vmem:[#allocation3 + $0x68] sm:$0x8] %v3398_v20  ;;  %4213 = vrot.lane.b32.xlu0 %v4050_v12, %s7237_s18 }
 0x40f   : > { %v3584_v26 = vpop.permute.xlu1 %3583 }
 0x410   : > { %v3661_v41 = vsel %vm8304_vm3, %v3584_v26, %v3660_v34  ;;  %v3604_v59 = vpop.permute.xlu0 %3603 }
 0x411   : > { %3662 = vst [vmem:[#allocation3 + $0x18] sm:$0x10] %v3661_v41  ;;  %v3691_v35 = vsel %vm8304_vm3, %v3604_v59, %v3690_v1  ;;  %2198 = vrot.lane.b32.xlu1 %v7800_v43, %s7204_s10  ;;  %v4345_v1 = vld [vmem:[#allocation3 + $0x20] sm:$0x20] }
 0x412   : > { %3692 = vst [vmem:[#allocation3 + $0x68] sm:$0x10] %v3691_v35  ;;  %2491 = vrot.lane.b32.xlu0 %v7800_v43, %s7218_s26  ;;  %v4715_v35 = vld [vmem:[#allocation3 + $0x30] sm:$0x40] }
 0x413   : > { %v4776_v44 = vpop.permute.xlu1 %4775 }
 0x414   : > { %v4853_v4 = vsel %vm10446_vm12, %v4776_v44, %v4852_v36  ;;  %v4796_v62 = vpop.permute.xlu0 %4795 }
 0x415   : > { %4854 = vst [vmem:[#allocation3 + $0x18] sm:$0x40] %v4853_v4  ;;  %v4883_v56 = vsel %vm10446_vm12, %v4796_v62, %v4882_v3  ;;  %2784 = vrot.lane.b32.xlu1 %v7800_v43, %s7233_s30  ;;  %v2425_v43 = vld [vmem:[#allocation3 + $0x30] sm:$0x2]  ;;  %v4375_v4 = vld [vmem:[#allocation3 + $0x70] sm:$0x20] }
 0x416   : > { %4884 = vst [vmem:[#allocation3 + $0x68] sm:$0x40] %v4883_v56  ;;  %3296 = vrot.lane.b32.xlu0 %v8724_v51, %s7208_s14  ;;  %v1207_v56 = vld [vmem:[%s10337_s3 + $0x10] sm:$0xff] }
 0x417   : > { %v5069_v58 = vpop.permute.xlu1 %5068 }
 0x418   : > { %v5146_v39 = vsel %vm10447_vm1, %v5069_v58, %v5145_v23  ;;  %v5089_v30 = vpop.permute.xlu0 %5088  ;;  %v2272_v23 = vld [vmem:[#allocation3 + $0x20] sm:$0x1] }
 0x419   : > { %5147 = vst [vmem:[#allocation3 + $0x18] sm:$0x80] %v5146_v39  ;;  %v5176_v10 = vsel %vm10447_vm1, %v5089_v30, %v5175_v32  ;;  %3589 = vrot.lane.b32.xlu1 %v8724_v51, %s7222_s11  ;;  %v3523_v51 = vld [vmem:[#allocation3 + $0x30] sm:$0x10]  ;;  %vm10449_vm1 = vmmov %vm10448_vm15  ;;  %v2428_v30 = vld [vmem:[#allocation3 + $0x38] sm:$0x2] }
 0x41a   : > { %5177 = vst [vmem:[#allocation3 + $0x68] sm:$0x80] %v5176_v10  ;;  %4215 = vrot.lane.b32.xlu0 %v4054_v22, %s7237_s18  ;;  %v2302_v22 = vld [vmem:[#allocation3 + $0x70] sm:$0x1] }
 0x41b   : > { %v2345_v49 = vpop.permute.xlu1 %2344 }
 0x41c   : > { %v2638_v21 = vpop.permute.xlu0 %2637  ;;  %v2426_v25 = vsel %vm8159_vm11, %v2345_v49, %v2425_v43  ;;  %v2565_v49 = vld [vmem:[#allocation3 + $0x20] sm:$0x2] }
 0x41d   : > { %v2719_v52 = vsel %vm8150_vm6, %v2638_v21, %v2718_v48  ;;  %2427 = vst [vmem:[#allocation3 + $0x30] sm:$0x2] %v2426_v25  ;;  %4217 = vrot.lane.b32.xlu1 %v4058_v37, %s7237_s18  ;;  %v2595_v25 = vld [vmem:[#allocation3 + $0x70] sm:$0x2] }
 0x41e   : > { %2720 = vst [vmem:[#allocation3 + $0x30] sm:$0x4] %v2719_v52  ;;  %4781 = vrot.lane.b32.xlu0 %v8769_v53, %s7246_s8 }
 0x41f   : > { %v3150_v46 = vpop.permute.xlu1 %3149 }
 0x420   : > { %v3443_v31 = vpop.permute.xlu0 %3442  ;;  %v3231_v28 = vsel %vm8230_vm13, %v3150_v46, %v3230_v27  ;;  %v5211_v63 = vld [vmem:[#allocation3 + $0x18] sm:$0xff] }
 0x421   : > { %v3524_v29 = vsel %vm8240_vm0, %v3443_v31, %v3523_v51  ;;  %3232 = vst [vmem:[#allocation3 + $0x30] sm:$0x8] %v3231_v28  ;;  %6926 = vmatmul.mubr.msk.bf16.vlgmr.msra.gmra.mrb[28].mxu1 %vm10448_vm15, %v5211_v63  ;;  %5074 = vrot.lane.b32.xlu1 %v8769_v53, %s7247_s22  ;;  %v5221_v16 = vld [vmem:[#allocation3 + $0x68] sm:$0xff]  ;;  %v2721_v51 = vld [vmem:[#allocation3 + $0x38] sm:$0x4] }
 0x422   : > { %3525 = vst [vmem:[#allocation3 + $0x30] sm:$0x10] %v3524_v29  ;;  %2200 = vrot.lane.b32.xlu0 %v7806_v45, %s7204_s10  ;;  %v5472_v12 = vsel %vm10449_vm1, %v5221_v16, 0  ;;  %6937 = vmatprep.mubr.msk.bf16.mxu1 %vm10438_vm7, %v10437_v55  ;;  %vm10450_vm1 = vcmask 113664   ;;  %v2858_v28 = vld [vmem:[#allocation3 + $0x20] sm:$0x4] }
 0x423   : > { %6936 = vmatpush3.bf16.xpose.msra.mxu1 %v5472_v12  ;;  %v3736_v20 = vpop.permute.xlu1 %3735  ;;  %vm10451_vm15 = vmmov %vm10450_vm1  ;;  %v3233_v16 = vld [vmem:[#allocation3 + $0x38] sm:$0x8] }
 0x424   : > { %v4204_v26 = vpop.permute.xlu0 %4203  ;;  %v3817_v34 = vsel %vm8255_vm8, %v3736_v20, %v3816_v8  ;;  %6947 = vmatprep.subr.bf16.mxu1 %v10437_v55  ;;  %v2888_v8 = vld [vmem:[#allocation3 + $0x70] sm:$0x4] }
 0x425   : > { %3818 = vst [vmem:[#allocation3 + $0x30] sm:$0x20] %v3817_v34  ;;  %2493 = vrot.lane.b32.xlu1 %v7806_v45, %s7218_s26 }
 0x426   : > { %2786 = vrot.lane.b32.xlu0 %v7806_v45, %s7233_s30 }
 0x427   : > { %v4206_v53 = vpop.permute.xlu1 %4205 }
 0x428   : > { %v4244_v41 = vpop.permute.xlu0 %4243  ;;  %v4287_v59 = vsel %vm10450_vm1, %v4204_v26, %v4206_v53  ;;  %vm10452_vm1 = vnez %v10414_v14  ;;  %v3370_v53 = vld [vmem:[#allocation3 + $0x20] sm:$0x8] }
 0x429   : > { %v4346_v24 = vsel %vm8290_vm14, %v4287_v59, %v4345_v1  ;;  %3298 = vrot.lane.b32.xlu1 %v8813_v61, %s7208_s14  ;;  %v3400_v59 = vld [vmem:[#allocation3 + $0x70] sm:$0x8] }
 0x42a   : > { %4347 = vst [vmem:[#allocation3 + $0x20] sm:$0x20] %v4346_v24  ;;  %3591 = vrot.lane.b32.xlu0 %v8813_v61, %s7222_s11 }
 0x42b   : > { %v4246_v36 = vpop.permute.xlu1 %4245 }
 0x42c   : > { %v4635_v44 = vpop.permute.xlu0 %4634  ;;  %v4297_v45 = vsel %vm10451_vm15, %v4244_v41, %v4246_v36  ;;  %v3526_v36 = vld [vmem:[#allocation3 + $0x38] sm:$0x10] }
 0x42d   : > { %v4716_v3 = vsel %vm7965_vm10, %v4635_v44, %v4715_v35  ;;  %v4376_v62 = vsel %vm8290_vm14, %v4297_v45, %v4375_v4  ;;  %4783 = vrot.lane.b32.xlu1 %v8865_v18, %s7246_s8  ;;  %v3663_v45 = vld [vmem:[#allocation3 + $0x20] sm:$0x10] }
 0x42e   : > { %4717 = vst [vmem:[#allocation3 + $0x30] sm:$0x40] %v4716_v3  ;;  %4377 = vst [vmem:[#allocation3 + $0x70] sm:$0x20] %v4376_v62  ;;  %5076 = vrot.lane.b32.xlu0 %v8865_v18, %s7247_s22 }
 0x42f   : > { %v4928_v61 = vpop.permute.xlu1 %4927 }
 0x430   : > { %v2195_v58 = vpop.permute.xlu0 %2194  ;;  %v5009_v39 = vsel %vm7958_vm9, %v4928_v61, %v5008_v33  ;;  %v3819_v33 = vld [vmem:[#allocation3 + $0x38] sm:$0x20]  ;;  %v3693_v61 = vld [vmem:[#allocation3 + $0x70] sm:$0x10] }
 0x431   : > { %v2273_v32 = vsel %vm10452_vm1, %v2195_v58, %v2272_v23  ;;  %5010 = vst [vmem:[#allocation3 + $0x30] sm:$0x80] %v5009_v39 }
 0x432   : > { %2274 = vst [vmem:[#allocation3 + $0x20] sm:$0x1] %v2273_v32  ;;  %1220 = vperm.xlu0 %7081, %v1207_v56  }
 0x433   : > { %v2215_v10 = vpop.permute.xlu1 %2214 }
 0x434   : > { %v2303_v18 = vsel %vm10452_vm1, %v2215_v10, %v2302_v22  ;;  %v2347_v43 = vpop.permute.xlu0 %2346  ;;  %v4348_v22 = vld [vmem:[#allocation3 + $0x28] sm:$0x20] }
 0x435   : > { %2304 = vst [vmem:[#allocation3 + $0x70] sm:$0x1] %v2303_v18  ;;  %v2429_v48 = vsel %vm8159_vm11, %v2347_v43, %v2428_v30 }
 0x436   : > { %2430 = vst [vmem:[#allocation3 + $0x38] sm:$0x2] %v2429_v48 }
 0x437   : > { %v2488_v37 = vpop.permute.xlu1 %2487 }
 0x438   : > { %v2566_v21 = vsel %vm8193_vm5, %v2488_v37, %v2565_v49  ;;  %v2508_v52 = vpop.permute.xlu0 %2507  ;;  %v4378_v37 = vld [vmem:[#allocation3 + $0x78] sm:$0x20] }
 0x439   : > { %2567 = vst [vmem:[#allocation3 + $0x20] sm:$0x2] %v2566_v21  ;;  %v2596_v27 = vsel %vm8193_vm5, %v2508_v52, %v2595_v25  ;;  %v4718_v52 = vld [vmem:[#allocation3 + $0x38] sm:$0x40] }
 0x43a   : > { %2597 = vst [vmem:[#allocation3 + $0x70] sm:$0x2] %v2596_v27 }
 0x43b   : > { %v2640_v46 = vpop.permute.xlu1 %2639 }
 0x43c   : > { %v2722_v31 = vsel %vm8150_vm6, %v2640_v46, %v2721_v51  ;;  %v2781_v63 = vpop.permute.xlu0 %2780 }
 0x43d   : > { %2723 = vst [vmem:[#allocation3 + $0x38] sm:$0x4] %v2722_v31  ;;  %v2859_v29 = vsel %vm8218_vm2, %v2781_v63, %v2858_v28  ;;  %v4855_v63 = vld [vmem:[#allocation3 + $0x20] sm:$0x40] }
 0x43e   : > { %2860 = vst [vmem:[#allocation3 + $0x20] sm:$0x4] %v2859_v29 }
 0x43f   : > { %v2801_v12 = vpop.permute.xlu1 %2800 }
 0x440   : > { %v2889_v20 = vsel %vm8218_vm2, %v2801_v12, %v2888_v8  ;;  %v3152_v26 = vpop.permute.xlu0 %3151  ;;  %v5011_v8 = vld [vmem:[#allocation3 + $0x38] sm:$0x80]  ;;  %v4885_v12 = vld [vmem:[#allocation3 + $0x70] sm:$0x40] }
 0x441   : > { %2890 = vst [vmem:[#allocation3 + $0x70] sm:$0x4] %v2889_v20  ;;  %v3234_v34 = vsel %vm8230_vm13, %v3152_v26, %v3233_v16 }
 0x442   : > { %3235 = vst [vmem:[#allocation3 + $0x38] sm:$0x8] %v3234_v34 }
 0x443   : > { %v3293_v41 = vpop.permute.xlu1 %3292 }
 0x444   : > { %v3371_v1 = vsel %vm8277_vm4, %v3293_v41, %v3370_v53  ;;  %v3313_v24 = vpop.permute.xlu0 %3312 }
 0x445   : > { %3372 = vst [vmem:[#allocation3 + $0x20] sm:$0x8] %v3371_v1  ;;  %v3401_v35 = vsel %vm8277_vm4, %v3313_v24, %v3400_v59 }
 0x446   : > { %3402 = vst [vmem:[#allocation3 + $0x70] sm:$0x8] %v3401_v35  ;;  %v5148_v35 = vld [vmem:[#allocation3 + $0x20] sm:$0x80] }
 0x447   : > { %v3445_v44 = vpop.permute.xlu1 %3444 }
 0x448   : > { %v3527_v4 = vsel %vm8240_vm0, %v3445_v44, %v3526_v36  ;;  %v3586_v3 = vpop.permute.xlu0 %3585  ;;  %vm10453_vm0 = vmmov %vm10451_vm15 }
 0x449   : > { %3528 = vst [vmem:[#allocation3 + $0x38] sm:$0x10] %v3527_v4  ;;  %v3664_v62 = vsel %vm8304_vm3, %v3586_v3, %v3663_v45  ;;  %v5178_v4 = vld [vmem:[#allocation3 + $0x70] sm:$0x80] }
 0x44a   : > { %3665 = vst [vmem:[#allocation3 + $0x20] sm:$0x10] %v3664_v62  ;;  %v2275_v62 = vld [vmem:[#allocation3 + $0x28] sm:$0x1] }
 0x44b   : > { %v3606_v56 = vpop.permute.xlu1 %3605 }
 0x44c   : > { %v3694_v23 = vsel %vm8304_vm3, %v3606_v56, %v3693_v61  ;;  %v3738_v58 = vpop.permute.xlu0 %3737  ;;  %v2305_v56 = vld [vmem:[#allocation3 + $0x78] sm:$0x1] }
 0x44d   : > { %3695 = vst [vmem:[#allocation3 + $0x70] sm:$0x10] %v3694_v23  ;;  %v3820_v39 = vsel %vm8255_vm8, %v3738_v58, %v3819_v33 }
 0x44e   : > { %3821 = vst [vmem:[#allocation3 + $0x38] sm:$0x20] %v3820_v39  ;;  %v2568_v39 = vld [vmem:[#allocation3 + $0x28] sm:$0x2] }
 0x44f   : > { %v4208_v32 = vpop.permute.xlu1 %4207 }
 0x450   : > { %v4210_v30 = vpop.permute.xlu0 %4209 }
 0x451   : > { %v4288_v10 = vsel %vm10451_vm15, %v4208_v32, %v4210_v30  ;;  %vm10455_vm15 = vcmask 130048  }
 0x452   : > { %v4349_v18 = vsel %vm8290_vm14, %v4288_v10, %v4348_v22  ;;  %v2598_v22 = vld [vmem:[#allocation3 + $0x78] sm:$0x2] }
 0x453   : > { %4350 = vst [vmem:[#allocation3 + $0x28] sm:$0x20] %v4349_v18  ;;  %v4248_v43 = vpop.permute.xlu1 %4247 }
 0x454   : > { %v4250_v48 = vpop.permute.xlu0 %4249  ;;  %v9066_v49 = vpop.f32.mrb[20].mxu1 }
 0x455   : > { %v4298_v21 = vsel %vm10453_vm0, %v4248_v43, %v4250_v48  ;;  %v6915_v25 = vpop.f32.mrb[21].mxu1  ;;  %vm10454_vm0 = vnez %v10408_v60 }
 0x456   : > { %v4379_v27 = vsel %vm8290_vm14, %v4298_v21, %v4378_v37  ;;  %v9071_v51 = vpop.f32.mrb[22].mxu1  ;;  %v2861_v21 = vld [vmem:[#allocation3 + $0x28] sm:$0x4] }
 0x457   : > { %4380 = vst [vmem:[#allocation3 + $0x78] sm:$0x20] %v4379_v27  ;;  %v6916_v46 = vpop.f32.mrb[23].mxu1  ;;  %v4637_v31 = vpop.permute.xlu1 %4636  ;;  %v2891_v27 = vld [vmem:[#allocation3 + $0x78] sm:$0x4] }
 0x458   : > { %v4719_v28 = vsel %vm7965_vm10, %v4637_v31, %v4718_v52  ;;  %v4778_v29 = vpop.permute.xlu0 %4777  ;;  %vm10456_vm10 = vmmov %vm10455_vm15 }
 0x459   : > { %4720 = vst [vmem:[#allocation3 + $0x38] sm:$0x40] %v4719_v28  ;;  %v4856_v16 = vsel %vm10446_vm12, %v4778_v29, %v4855_v63  ;;  %v3373_v28 = vld [vmem:[#allocation3 + $0x28] sm:$0x8] }
 0x45a   : > { %4857 = vst [vmem:[#allocation3 + $0x20] sm:$0x40] %v4856_v16  ;;  %v3403_v16 = vld [vmem:[#allocation3 + $0x78] sm:$0x8] }
 0x45b   : > { %v4798_v20 = vpop.permute.xlu1 %4797 }
 0x45c   : > { %v4886_v26 = vsel %vm10446_vm12, %v4798_v20, %v4885_v12  ;;  %v4930_v34 = vpop.permute.xlu0 %4929  ;;  %v9079_v53 = vpop.f32.mrb[24].mxu1  ;;  %v3666_v20 = vld [vmem:[#allocation3 + $0x28] sm:$0x10] }
 0x45d   : > { %4887 = vst [vmem:[#allocation3 + $0x70] sm:$0x40] %v4886_v26  ;;  %v5012_v41 = vsel %vm7958_vm9, %v4930_v34, %v5011_v8  ;;  %v6921_v1 = vpop.f32.mrb[25].mxu1 }
 0x45e   : > { %5013 = vst [vmem:[#allocation3 + $0x38] sm:$0x80] %v5012_v41  ;;  %v9083_v59 = vpop.f32.mrb[26].mxu1  ;;  %v3696_v41 = vld [vmem:[#allocation3 + $0x78] sm:$0x10] }
 0x45f   : > { %v6922_v24 = vpop.f32.mrb[27].mxu1  ;;  %v5071_v36 = vpop.permute.xlu1 %5070 }
 0x460   : > { %v5149_v44 = vsel %vm10454_vm0, %v5071_v36, %v5148_v35  ;;  %v5091_v45 = vpop.permute.xlu0 %5090  ;;  %v4858_v35 = vld [vmem:[#allocation3 + $0x28] sm:$0x40] }
 0x461   : > { %5150 = vst [vmem:[#allocation3 + $0x20] sm:$0x80] %v5149_v44  ;;  %v5179_v3 = vsel %vm10454_vm0, %v5091_v45, %v5178_v4  ;;  %v4888_v4 = vld [vmem:[#allocation3 + $0x78] sm:$0x40] }
 0x462   : > { %5180 = vst [vmem:[#allocation3 + $0x70] sm:$0x80] %v5179_v3 }
 0x463   : > { %v2197_v33 = vpop.permute.xlu1 %2196 }
 0x464   : > { %v2276_v61 = vsel %vm10452_vm1, %v2197_v33, %v2275_v62  ;;  %v2217_v23 = vpop.permute.xlu0 %2216  ;;  %v5151_v62 = vld [vmem:[#allocation3 + $0x28] sm:$0x80] }
 0x465   : > { %2277 = vst [vmem:[#allocation3 + $0x28] sm:$0x1] %v2276_v61  ;;  %v2306_v58 = vsel %vm10452_vm1, %v2217_v23, %v2305_v56  ;;  %v5181_v56 = vld [vmem:[#allocation3 + $0x78] sm:$0x80] }
 0x466   : > { %2307 = vst [vmem:[#allocation3 + $0x78] sm:$0x1] %v2306_v58 }
 0x467   : > { %v2490_v32 = vpop.permute.xlu1 %2489 }
 0x468   : > { %v2569_v30 = vsel %vm8193_vm5, %v2490_v32, %v2568_v39  ;;  %v2510_v10 = vpop.permute.xlu0 %2509  ;;  %v5212_v18 = vld [vmem:[#allocation3 + $0x20] sm:$0xff] }
 0x469   : > { %2570 = vst [vmem:[#allocation3 + $0x28] sm:$0x2] %v2569_v30  ;;  %v2599_v43 = vsel %vm8193_vm5, %v2510_v10, %v2598_v22  ;;  %6932 = vmatmul.mubr.msk.bf16.vlgmr.msra.gmra.mrb[8].mxu0 %vm10455_vm15, %v5212_v18  ;;  %v5222_v48 = vld [vmem:[#allocation3 + $0x70] sm:$0xff] }
 0x46a   : > { %2600 = vst [vmem:[#allocation3 + $0x78] sm:$0x2] %v2599_v43  ;;  %v5519_v37 = vsel %vm10456_vm10, %v5222_v48, 0  ;;  %6943 = vmatprep.mubr.msk.bf16.mxu0 %vm10438_vm7, %v10437_v55  ;;  %v4351_v30 = vld [vmem:[#allocation3 + $0x30] sm:$0x20]  ;;  %vm10457_vm10 = vcmask 113664  }
 0x46b   : > { %6942 = vmatpush3.bf16.xpose.msra.mxu0 %v5519_v37  ;;  %v2783_v25 = vpop.permute.xlu1 %2782  ;;  %v2278_v18 = vld [vmem:[#allocation3 + $0x30] sm:$0x1]  ;;  %v2571_v37 = vld [vmem:[#allocation3 + $0x30] sm:$0x2] }
 0x46c   : > { %v2862_v52 = vsel %vm8218_vm2, %v2783_v25, %v2861_v21  ;;  %v2803_v46 = vpop.permute.xlu0 %2802  ;;  %6953 = vmatprep.subr.bf16.mxu0 %v10437_v55 }
 0x46d   : > { %2863 = vst [vmem:[#allocation3 + $0x28] sm:$0x4] %v2862_v52  ;;  %v2892_v31 = vsel %vm8218_vm2, %v2803_v46, %v2891_v27 }
 0x46e   : > { %2893 = vst [vmem:[#allocation3 + $0x78] sm:$0x4] %v2892_v31  ;;  %v2864_v31 = vld [vmem:[#allocation3 + $0x30] sm:$0x4] }
 0x46f   : > { %v3295_v63 = vpop.permute.xlu1 %3294 }
 0x470   : > { %v3374_v29 = vsel %vm8277_vm4, %v3295_v63, %v3373_v28  ;;  %v3315_v8 = vpop.permute.xlu0 %3314 }
 0x471   : > { %3375 = vst [vmem:[#allocation3 + $0x28] sm:$0x8] %v3374_v29  ;;  %v3404_v12 = vsel %vm8277_vm4, %v3315_v8, %v3403_v16  ;;  %v3376_v29 = vld [vmem:[#allocation3 + $0x30] sm:$0x8] }
 0x472   : > { %3405 = vst [vmem:[#allocation3 + $0x78] sm:$0x8] %v3404_v12  ;;  %v3669_v12 = vld [vmem:[#allocation3 + $0x30] sm:$0x10] }
 0x473   : > { %v3588_v26 = vpop.permute.xlu1 %3587 }
 0x474   : > { %v3667_v34 = vsel %vm8304_vm3, %v3588_v26, %v3666_v20  ;;  %v3608_v1 = vpop.permute.xlu0 %3607 }
 0x475   : > { %3668 = vst [vmem:[#allocation3 + $0x28] sm:$0x10] %v3667_v34  ;;  %v3697_v24 = vsel %vm8304_vm3, %v3608_v1, %v3696_v41 }
 0x476   : > { %3698 = vst [vmem:[#allocation3 + $0x78] sm:$0x10] %v3697_v24  ;;  %v4354_v24 = vld [vmem:[#allocation3 + $0x38] sm:$0x20] }
 0x477   : > { %v4780_v36 = vpop.permute.xlu1 %4779 }
 0x478   : > { %v4859_v44 = vsel %vm10446_vm12, %v4780_v36, %v4858_v35  ;;  %v4800_v45 = vpop.permute.xlu0 %4799  ;;  %v4861_v35 = vld [vmem:[#allocation3 + $0x30] sm:$0x40] }
 0x479   : > { %4860 = vst [vmem:[#allocation3 + $0x28] sm:$0x40] %v4859_v44  ;;  %v4889_v3 = vsel %vm10446_vm12, %v4800_v45, %v4888_v4  ;;  %v5154_v45 = vld [vmem:[#allocation3 + $0x30] sm:$0x80] }
 0x47a   : > { %4890 = vst [vmem:[#allocation3 + $0x78] sm:$0x40] %v4889_v3 }
 0x47b   : > { %v5073_v33 = vpop.permute.xlu1 %5072 }
 0x47c   : > { %v5152_v61 = vsel %vm10454_vm0, %v5073_v33, %v5151_v62  ;;  %v5093_v23 = vpop.permute.xlu0 %5092 }
 0x47d   : > { %5153 = vst [vmem:[#allocation3 + $0x28] sm:$0x80] %v5152_v61  ;;  %v5182_v58 = vsel %vm10454_vm0, %v5093_v23, %v5181_v56  ;;  %v2281_v61 = vld [vmem:[#allocation3 + $0x38] sm:$0x1] }
 0x47e   : > { %5183 = vst [vmem:[#allocation3 + $0x78] sm:$0x80] %v5182_v58  ;;  %v2574_v58 = vld [vmem:[#allocation3 + $0x38] sm:$0x2] }
 0x47f   : > { %v4212_v39 = vpop.permute.xlu1 %4211 }
 0x480   : > { %v4214_v32 = vpop.permute.xlu0 %4213 }
 0x481   : > { %v4289_v22 = vsel %vm10457_vm10, %v4212_v39, %v4214_v32  ;;  %vm10458_vm10 = vmmov %vm10455_vm15  ;;  %v2867_v32 = vld [vmem:[#allocation3 + $0x38] sm:$0x4] }
 0x482   : > { %v4352_v10 = vsel %vm8290_vm14, %v4289_v22, %v4351_v30 }
 0x483   : > { %4353 = vst [vmem:[#allocation3 + $0x30] sm:$0x20] %v4352_v10  ;;  %v2199_v43 = vpop.permute.xlu1 %2198 }
 0x484   : > { %v2279_v48 = vsel %vm10452_vm1, %v2199_v43, %v2278_v18  ;;  %v2492_v21 = vpop.permute.xlu0 %2491  ;;  %v5213_v25 = vld [vmem:[#allocation3 + $0x28] sm:$0xff]  ;;  %v3379_v18 = vld [vmem:[#allocation3 + $0x38] sm:$0x8] }
 0x485   : > { %2280 = vst [vmem:[#allocation3 + $0x30] sm:$0x1] %v2279_v48  ;;  %v2572_v52 = vsel %vm8193_vm5, %v2492_v21, %v2571_v37  ;;  %6938 = vmatmul.mubr.msk.bf16.vlgmr.msra.gmra.mrb[32].mxu1 %vm10455_vm15, %v5213_v25  ;;  %v5223_v27 = vld [vmem:[#allocation3 + $0x78] sm:$0xff]  ;;  %vm10459_vm15 = vcmask 113664  }
 0x486   : > { %2573 = vst [vmem:[#allocation3 + $0x30] sm:$0x2] %v2572_v52  ;;  %v5566_v46 = vsel %vm10458_vm10, %v5223_v27, 0  ;;  %6949 = vmatprep.mubr.msk.bf16.mxu1 %vm10438_vm7, %v10437_v55  ;;  %v3672_v48 = vld [vmem:[#allocation3 + $0x38] sm:$0x10] }
 0x487   : > { %6948 = vmatpush3.bf16.xpose.msra.mxu1 %v5566_v46  ;;  %v2785_v28 = vpop.permute.xlu1 %2784  ;;  %v4864_v52 = vld [vmem:[#allocation3 + $0x38] sm:$0x40] }
 0x488   : > { %v2865_v63 = vsel %vm8218_vm2, %v2785_v28, %v2864_v31  ;;  %v3297_v16 = vpop.permute.xlu0 %3296  ;;  %6959 = vmatprep.subr.bf16.mxu1 %v10437_v55  ;;  %v5157_v31 = vld [vmem:[#allocation3 + $0x38] sm:$0x80] }
 0x489   : > { %2866 = vst [vmem:[#allocation3 + $0x30] sm:$0x4] %v2865_v63  ;;  %v3377_v8 = vsel %vm8277_vm4, %v3297_v16, %v3376_v29 }
 0x48a   : > { %3378 = vst [vmem:[#allocation3 + $0x30] sm:$0x8] %v3377_v8  ;;  %v10461_v8 = vld [vmem:[#allocation7_spill] sm:$0xff] }
 0x48b   : > { %v3590_v20 = vpop.permute.xlu1 %3589 }
 0x48c   : > { %v3670_v26 = vsel %vm8304_vm3, %v3590_v20, %v3669_v12  ;;  %v4216_v34 = vpop.permute.xlu0 %4215  ;;  %v10462_v20 = vld [vmem:[#allocation8_spill] sm:$0xff] }
 0x48d   : > { %3671 = vst [vmem:[#allocation3 + $0x30] sm:$0x10] %v3670_v26 }
 0x48f   : > { %v4218_v41 = vpop.permute.xlu1 %4217 }
 0x490   : > { %v4290_v1 = vsel %vm10459_vm15, %v4216_v34, %v4218_v41  ;;  %v4782_v36 = vpop.permute.xlu0 %4781  ;;  %vm10460_vm15 = vmmov %vm10458_vm10  ;;  %v10463_v34 = vld [vmem:[#allocation6_spill] sm:$0xff] }
 0x491   : > { %v4355_v44 = vsel %vm8290_vm14, %v4290_v1, %v4354_v24  ;;  %v4862_v4 = vsel %vm10446_vm12, %v4782_v36, %v4861_v35  ;;  %v10464_v36 = vld [vmem:[#allocation9_spill] sm:$0xff] }
 0x492   : > { %4356 = vst [vmem:[#allocation3 + $0x38] sm:$0x20] %v4355_v44  ;;  %4863 = vst [vmem:[#allocation3 + $0x30] sm:$0x40] %v4862_v4 }
 0x493   : > { %v5075_v3 = vpop.permute.xlu1 %5074 }
 0x494   : > { %v5155_v62 = vsel %vm10454_vm0, %v5075_v3, %v5154_v45  ;;  %v2201_v33 = vpop.permute.xlu0 %2200 }
 0x495   : > { %5156 = vst [vmem:[#allocation3 + $0x30] sm:$0x80] %v5155_v62  ;;  %v2282_v56 = vsel %vm10452_vm1, %v2201_v33, %v2281_v61 }
 0x496   : > { %2283 = vst [vmem:[#allocation3 + $0x38] sm:$0x1] %v2282_v56 }
 0x497   : > { %v2494_v23 = vpop.permute.xlu1 %2493 }
 0x498   : > { %v2575_v39 = vsel %vm8193_vm5, %v2494_v23, %v2574_v58  ;;  %v2787_v30 = vpop.permute.xlu0 %2786 }
 0x499   : > { %2576 = vst [vmem:[#allocation3 + $0x38] sm:$0x2] %v2575_v39  ;;  %v2868_v22 = vsel %vm8218_vm2, %v2787_v30, %v2867_v32 }
 0x49a   : > { %2869 = vst [vmem:[#allocation3 + $0x38] sm:$0x4] %v2868_v22 }
 0x49b   : > { %v3299_v10 = vpop.permute.xlu1 %3298 }
 0x49c   : > { %v3380_v43 = vsel %vm8277_vm4, %v3299_v10, %v3379_v18  ;;  %v3592_v37 = vpop.permute.xlu0 %3591  ;;  %v5214_v21 = vld [vmem:[#allocation3 + $0x30] sm:$0xff] }
 0x49d   : > { %3381 = vst [vmem:[#allocation3 + $0x38] sm:$0x8] %v3380_v43  ;;  %v3673_v25 = vsel %vm8304_vm3, %v3592_v37, %v3672_v48  ;;  %6944 = vmatmul.mubr.msk.bf16.vlgmr.msra.gmra.mrb[12].mxu0 %vm10458_vm10, %v5214_v21 }
 0x49e   : > { %3674 = vst [vmem:[#allocation3 + $0x38] sm:$0x10] %v3673_v25  ;;  %6955 = vmatprep.mubr.msk.bf16.mxu0 %vm10438_vm7, %v10437_v55 }
 0x49f   : > { %v4784_v27 = vpop.permute.xlu1 %4783 }
 0x4a0   : > { %v4865_v46 = vsel %vm10446_vm12, %v4784_v27, %v4864_v52  ;;  %v5077_v28 = vpop.permute.xlu0 %5076 }
 0x4a1   : > { %4866 = vst [vmem:[#allocation3 + $0x38] sm:$0x40] %v4865_v46  ;;  %v5158_v63 = vsel %vm10454_vm0, %v5077_v28, %v5157_v31  ;;  %v2162_v46 = vld [vmem:[#allocation3 + $0x80] sm:$0x1] }
 0x4a2   : > { %5159 = vst [vmem:[#allocation3 + $0x38] sm:$0x80] %v5158_v63  ;;  %v2165_v63 = vld [vmem:[#allocation3 + $0x88] sm:$0x1] }
 0x4a9   : > { %v5215_v29 = vld [vmem:[#allocation3 + $0x38] sm:$0xff] }
 0x4aa   : > { %6950 = vmatmul.mubr.msk.bf16.vlgmr.msra.gmra.mrb[36].mxu1 %vm10460_vm15, %v5215_v29 }
 0x4ab   : > { %6961 = vmatprep.mubr.msk.bf16.mxu1 %vm10438_vm7, %v10437_v55 }
 0x4b1   : > { %v1221_v16 = vpop.permute.xlu0 %1220 }
 0x4b2   : > { %v7005_v12 = vadd.f32 %v10461_v8, %v1221_v16  ;;  %v9169_v26 = vadd.f32 %v10462_v20, %v1221_v16  ;;  %v1809_v41 = vadd.f32 %v10463_v34, %v1221_v16 }
 0x4b4   : > { %v9173_v1 = vadd.f32 %v8593_v57, %v1809_v41  ;;  %v1865_v24 = vpack.c.bf16 %v7005_v12, %v7005_v12  ;;  %v1866_v35 = vpack.c.bf16 %v9169_v26, %v9169_v26  ;;  %v10465_v12 = vld [vmem:[#allocation10_spill] sm:$0xff] }
 0x4b5   : > { %vm10466_vm10 = vnez %v10465_v12  ;;  %v9293_v12 = vmul.f32 0.35355338, %v9079_v53  ;;  %v9306_v53 = vmul.f32 0.35355338, %v8907_v6  ;;  %v5038_v6 = vld [vmem:[#allocation3 + $0x80] sm:$0x80] }
 0x4b6   : > { %v1925_v44 = vrot.slane %v1865_v24, %v10464_v36  ;;  %v6798_v4 = vpack.c.bf16 %v9173_v1, %v9169_v26  ;;  %v1867_v45 = vpack.c.bf16 %v9173_v1, %v9173_v1  ;;  %v9183_v3 = vrot.slane %v1866_v35, %v10464_v36 }
 0x4b8   : > { %v1933_v62 = vrot.slane %v1925_v44, %v10464_v36  ;;  %v1926_v57 = vcombine.high %v1925_v44, %v1925_v44  ;;  %v9188_v61 = vrot.slane %v9183_v3, %v10464_v36  ;;  %v9191_v56 = vrot.slane %v1867_v45, %v10464_v36 }
 0x4ba   : > { %v6779_v33 = vpack.i.b16 %v1933_v62, %v1933_v62  ;;  %v1960_v58 = vunpack.i.h.s16 %v1933_v62  ;;  %v1940_v39 = vrot.slane %v1926_v57, %v10464_v36  ;;  %v9199_v32 = vrot.slane %v9191_v56, %v10464_v36  ;;  %v2168_v57 = vld [vmem:[#allocation3 + $0x90] sm:$0x1] }
 0x4bb   : > { %v6792_v30 = vpack.i.b16 %v9188_v61, %v9188_v61  ;;  %v1941_v18 = vcombine.high %v1933_v62, %v1933_v62  ;;  %v3010_v21 = vunpack.i.h.s16 %v9188_v61 }
 0x4bc   : > { %v9194_v23 = vrot.slane %v6779_v33, %v7654_v42  ;;  %v6820_v10 = vpack.i.b16 %v9199_v32, %v9199_v32  ;;  %v1984_v43 = vpack.i.b16 %v1960_v58, %v1960_v58  ;;  %v1942_v48 = vcombine.high %v1940_v39, %v1940_v39 }
 0x4bd   : > { %v9208_v22 = vrot.slane %v6792_v30, %v7654_v42  ;;  %v1962_v25 = vunpack.i.h.s16 %v1940_v39  ;;  %v1964_v52 = vunpack.i.h.s16 %v1941_v18  ;;  %v3034_v28 = vpack.i.b16 %v3010_v21, %v3010_v21  ;;  %v2174_v30 = vld [vmem:[#allocation3 + $0xa0] sm:$0x1]  ;;  %v2180_v21 = vld [vmem:[#allocation3 + $0xb0] sm:$0x1] }
 0x4be   : > { %2657 = vrot.lane.b32.xlu0 %v9194_v23, %s7225_s15  ;;  %2364 = vrot.lane.b32.xlu1 %v9194_v23, %s7211_s17  ;;  %v9215_v37 = vrot.slane %v6820_v10, %v7654_v42  ;;  %v9221_v27 = vrot.slane %v1984_v43, %v7654_v42  ;;  %v1966_v31 = vunpack.i.h.s16 %v1942_v48  ;;  %v6780_v29 = vpack.i.b16 %v1940_v39, %v1940_v39  ;;  %v2171_v39 = vld [vmem:[#allocation3 + $0x98] sm:$0x1]  ;;  %v2177_v43 = vld [vmem:[#allocation3 + $0xa8] sm:$0x1] }
 0x4bf   : > { %v1986_v16 = vpack.i.b16 %v1962_v25, %v1962_v25  ;;  %v6781_v8 = vpack.i.b16 %v1941_v18, %v1941_v18  ;;  %v2163_v20 = vsel %vm10466_vm10, %v9194_v23, %v2162_v46  ;;  %v1988_v34 = vpack.i.b16 %v1964_v52, %v1964_v52  ;;  %v2183_v25 = vld [vmem:[#allocation3 + $0xb8] sm:$0x1] }
 0x4c0   : > { %2164 = vst [vmem:[#allocation3 + $0x80] sm:$0x1] %v2163_v20  ;;  %v2166_v41 = vsel %vm10466_vm10, %v9221_v27, %v2165_v63  ;;  %v6782_v24 = vpack.i.b16 %v1942_v48, %v1942_v48  ;;  %v1990_v35 = vpack.i.b16 %v1966_v31, %v1966_v31  ;;  %v9236_v44 = vrot.slane %v3034_v28, %v7654_v42 }
 0x4c1   : > { %2167 = vst [vmem:[#allocation3 + $0x88] sm:$0x1] %v2166_v41  ;;  %v9239_v45 = vrot.slane %v6780_v29, %v7654_v42  ;;  %v9244_v62 = vrot.slane %v1986_v16, %v7654_v42  ;;  %v9247_v33 = vrot.slane %v6781_v8, %v7654_v42  ;;  %v9250_v58 = vrot.slane %v1988_v34, %v7654_v42 }
 0x4c2   : > { %3169 = vrot.lane.b32.xlu1 %v9208_v22, %s7201_s7  ;;  %4947 = vrot.lane.b32.xlu0 %v9215_v37, %s7245_s20  ;;  %v9255_v10 = vrot.slane %v6782_v24, %v7654_v42  ;;  %v9258_v18 = vrot.slane %v1990_v35, %v7654_v42  ;;  %v9285_v29 = vmul.f32 0.35355338, %v8915_v9  ;;  %v9288_v16 = vmul.f32 0.35355338, %v9066_v49 }
 0x4c3   : > { %v2169_v48 = vsel %vm10466_vm10, %v9239_v45, %v2168_v57  ;;  %v2172_v52 = vsel %vm10466_vm10, %v9244_v62, %v2171_v39  ;;  %v2175_v46 = vsel %vm10466_vm10, %v9247_v33, %v2174_v30  ;;  %v2178_v31 = vsel %vm10466_vm10, %v9250_v58, %v2177_v43  ;;  %v2748_v30 = vld [vmem:[#allocation3 + $0x80] sm:$0x4]  ;;  %v2455_v43 = vld [vmem:[#allocation3 + $0x80] sm:$0x2] }
 0x4c4   : > { %10467 = vst [vmem:[#allocation7_spill] sm:$0xff] %v9255_v10  ;;  %10468 = vst [vmem:[#allocation8_spill] sm:$0xff] %v9258_v18  ;;  %v2181_v28 = vsel %vm10466_vm10, %v9255_v10, %v2180_v21  ;;  %v2184_v63 = vsel %vm10466_vm10, %v9258_v18, %v2183_v25  ;;  %v5628_v8 = vsel %vm10460_vm15, %v9285_v29, -inf }
 0x4c5   : > { %2170 = vst [vmem:[#allocation3 + $0x90] sm:$0x1] %v2169_v48  ;;  %2173 = vst [vmem:[#allocation3 + $0x98] sm:$0x1] %v2172_v52 }
 0x4c6   : > { %3462 = vrot.lane.b32.xlu1 %v9208_v22, %s7215_s21  ;;  %2366 = vrot.lane.b32.xlu0 %v9221_v27, %s7211_s17  ;;  %2176 = vst [vmem:[#allocation3 + $0xa0] sm:$0x1] %v2175_v46  ;;  %2179 = vst [vmem:[#allocation3 + $0xa8] sm:$0x1] %v2178_v31  ;;  %v3260_v46 = vld [vmem:[#allocation3 + $0x80] sm:$0x8] }
 0x4c7   : > { %2182 = vst [vmem:[#allocation3 + $0xb0] sm:$0x1] %v2181_v28  ;;  %2185 = vst [vmem:[#allocation3 + $0xb8] sm:$0x1] %v2184_v63 }
 0x4c8   : > { %vm10469_vm10 = vmmov %vm10460_vm15 }
 0x4c9   : > { %v5631_v20 = vsel %vm10469_vm10, %v9288_v16, -inf  ;;  %vm10470_vm7 = vmmov %vm10469_vm10 }
 0x4ca   : > { %3755 = vrot.lane.b32.xlu1 %v9208_v22, %s7229_s25  ;;  %3464 = vrot.lane.b32.xlu0 %v9236_v44, %s7215_s21  ;;  %v5637_v34 = vsel %vm10470_vm7, %v9293_v12, -inf  ;;  %vm10471_vm15 = vmmov %vm10470_vm7 }
 0x4cb   : > { %vm10472_vm10 = vmmov %vm10470_vm7  ;;  %vm10473_vm7 = vnez %v10422_v17 }
 0x4cc   : > { %v5625_v39 = vsel %vm10472_vm10, %v9306_v53, -inf }
 0x4ce   : > { %4654 = vrot.lane.b32.xlu1 %v9215_v37, %s7241_s9  ;;  %v2329_v7 = vld [vmem:[#allocation3 + $0xb8] sm:$0x1] }
 0x4d2   : > { %2659 = vrot.lane.b32.xlu1 %v9221_v27, %s7225_s15 }
 0x4d6   : > { %3171 = vrot.lane.b32.xlu1 %v9236_v44, %s7201_s7 }
 0x4da   : > { %3757 = vrot.lane.b32.xlu1 %v9236_v44, %s7229_s25 }
 0x4e9   : > { %5629 = vmax.xlane.f32.xlu0 %v5628_v8  ;;  %v3553_v8 = vld [vmem:[#allocation3 + $0x80] sm:$0x10] }
 0x4ed   : > { %5632 = vmax.xlane.f32.xlu0 %v5631_v20 }
 0x4f1   : > { %5638 = vmax.xlane.f32.xlu0 %v5637_v34 }
 0x4f4   : > { %v5414_v9 = vpop.f32.mrb[28].mxu1 }
 0x4f5   : > { %v9299_v41 = vmul.f32 0.35355338, %v5414_v9  ;;  %v6927_v49 = vpop.f32.mrb[29].mxu1  ;;  %v2458_v9 = vld [vmem:[#allocation3 + $0x88] sm:$0x2] }
 0x4f6   : > { %v9301_v24 = vpop.f32.mrb[30].mxu1 }
 0x4f7   : > { %v6928_v35 = vpop.f32.mrb[31].mxu1  ;;  %v5643_v57 = vsel %vm10471_vm15, %v9299_v41, -inf  ;;  %vm10474_vm15 = vmmov %vm10472_vm10  ;;  %vm10475_vm10 = vnez %v10404_v15 }
 0x4f8   : > { %5644 = vmax.xlane.f32.xlu0 %v5643_v57  ;;  %v3846_v57 = vld [vmem:[#allocation3 + $0x80] sm:$0x20]  ;;  %vm10476_vm0 = vmmov %vm10474_vm15 }
 0x4f9   : > { %vm10479_vm12 = vmmov %vm10476_vm0 }
 0x4fa   : > { %vm10483_vm3 = vmmov %vm10476_vm0 }
 0x4fe   : > { %5626 = vmax.xlane.f32.xlu1 %v5625_v39 }
 0x530   : > { %v2658_v48 = vpop.permute.xlu0 %2657  ;;  %v2365_v21 = vpop.permute.xlu1 %2364 }
 0x531   : > { %v2749_v25 = vsel %vm8150_vm6, %v2658_v48, %v2748_v30  ;;  %v2456_v52 = vsel %vm8159_vm11, %v2365_v21, %v2455_v43  ;;  %v3556_v48 = vld [vmem:[#allocation3 + $0x88] sm:$0x10] }
 0x532   : > { %2750 = vst [vmem:[#allocation3 + $0x80] sm:$0x4] %v2749_v25  ;;  %2457 = vst [vmem:[#allocation3 + $0x80] sm:$0x2] %v2456_v52 }
 0x534   : > { %v3170_v31 = vpop.permute.xlu1 %3169  ;;  %v4948_v63 = vpop.permute.xlu0 %4947 }
 0x535   : > { %v3261_v28 = vsel %vm8230_vm13, %v3170_v31, %v3260_v46  ;;  %v5039_v20 = vsel %vm7958_vm9, %v4948_v63, %v5038_v6  ;;  %v4745_v63 = vld [vmem:[#allocation3 + $0x80] sm:$0x40] }
 0x536   : > { %3262 = vst [vmem:[#allocation3 + $0x80] sm:$0x8] %v3261_v28  ;;  %5040 = vst [vmem:[#allocation3 + $0x80] sm:$0x80] %v5039_v20 }
 0x538   : > { %v3463_v34 = vpop.permute.xlu1 %3462  ;;  %v2367_v35 = vpop.permute.xlu0 %2366 }
 0x539   : > { %v3554_v49 = vsel %vm10473_vm7, %v3463_v34, %v3553_v8  ;;  %v2459_v39 = vsel %vm8159_vm11, %v2367_v35, %v2458_v9  ;;  %v2751_v35 = vld [vmem:[#allocation3 + $0x88] sm:$0x4] }
 0x53a   : > { %3555 = vst [vmem:[#allocation3 + $0x80] sm:$0x10] %v3554_v49  ;;  %2460 = vst [vmem:[#allocation3 + $0x88] sm:$0x2] %v2459_v39  ;;  %v9335_v49 = vmul.f32 0.35355338, %v9071_v51 }
 0x53c   : > { %v5461_v30 = vpop.f32.mrb[8].mxu0  ;;  %v3756_v43 = vpop.permute.xlu1 %3755 }
 0x53d   : > { %v9322_v21 = vmul.f32 0.35355338, %v5461_v30  ;;  %v6933_v25 = vpop.f32.mrb[9].mxu0  ;;  %v3847_v52 = vsel %vm8255_vm8, %v3756_v43, %v3846_v57  ;;  %v3465_v31 = vpop.permute.xlu0 %3464  ;;  %v3263_v43 = vld [vmem:[#allocation3 + $0x88] sm:$0x8] }
 0x53e   : > { %v5464_v46 = vpop.f32.mrb[10].mxu0  ;;  %3848 = vst [vmem:[#allocation3 + $0x80] sm:$0x20] %v3847_v52  ;;  %v3557_v20 = vsel %vm10473_vm7, %v3465_v31, %v3556_v48  ;;  %v3849_v52 = vld [vmem:[#allocation3 + $0x88] sm:$0x20] }
 0x53f   : > { %v9326_v6 = vmul.f32 0.35355338, %v5464_v46  ;;  %v6934_v28 = vpop.f32.mrb[11].mxu0  ;;  %v5649_v8 = vsel %vm10474_vm15, %v9322_v21, -inf  ;;  %3558 = vst [vmem:[#allocation3 + $0x88] sm:$0x10] %v3557_v20  ;;  %vm10477_vm15 = vmmov %vm10476_vm0 }
 0x540   : > { %5650 = vmax.xlane.f32.xlu1 %v5649_v8  ;;  %v4655_v34 = vpop.permute.xlu1 %4654  ;;  %v5634_v48 = vsel %vm10477_vm15, %v9335_v49, -inf  ;;  %vm10478_vm15 = vmmov %vm10476_vm0 }
 0x541   : > { %v4746_v9 = vsel %vm10475_vm10, %v4655_v34, %v4745_v63  ;;  %v5652_v57 = vsel %vm10476_vm0, %v9326_v6, -inf }
 0x542   : > { %4747 = vst [vmem:[#allocation3 + $0x80] sm:$0x40] %v4746_v9 }
 0x544   : > { %5653 = vmax.xlane.f32.xlu1 %v5652_v57  ;;  %v2660_v39 = vpop.permute.xlu1 %2659 }
 0x545   : > { %v2752_v30 = vsel %vm8150_vm6, %v2660_v39, %v2751_v35 }
 0x546   : > { %2753 = vst [vmem:[#allocation3 + $0x88] sm:$0x4] %v2752_v30 }
 0x548   : > { %5635 = vmax.xlane.f32.xlu1 %v5634_v48  ;;  %v3172_v25 = vpop.permute.xlu1 %3171  ;;  %v9354_v48 = vmul.f32 0.35355338, %v9083_v59 }
 0x549   : > { %v3264_v51 = vsel %vm8230_vm13, %v3172_v25, %v3263_v43 }
 0x54a   : > { %3265 = vst [vmem:[#allocation3 + $0x88] sm:$0x8] %v3264_v51  ;;  %v9359_v51 = vmul.f32 0.35355338, %v9301_v24 }
 0x54c   : > { %v3758_v46 = vpop.permute.xlu1 %3757  ;;  %v5646_v59 = vsel %vm10476_vm0, %v9359_v51, -inf }
 0x54d   : > { %v3850_v31 = vsel %vm8255_vm8, %v3758_v46, %v3849_v52  ;;  %v5640_v52 = vsel %vm10479_vm12, %v9354_v48, -inf  ;;  %vm10482_vm12 = vmmov %vm10476_vm0 }
 0x54e   : > { %3851 = vst [vmem:[#allocation3 + $0x88] sm:$0x20] %v3850_v31 }
 0x558   : > { %v5508_v28 = vpop.f32.mrb[32].mxu1 }
 0x559   : > { %v6939_v63 = vpop.f32.mrb[33].mxu1 }
 0x55a   : > { %v5511_v8 = vpop.f32.mrb[34].mxu1 }
 0x55b   : > { %v6940_v20 = vpop.f32.mrb[35].mxu1 }
 0x55c   : > { %v9365_v20 = vmul.f32 0.35355338, %v5508_v28 }
 0x570   : > { %v5555_v34 = vpop.f32.mrb[12].mxu0 }
 0x571   : > { %v9347_v9 = vmul.f32 0.35355338, %v5555_v34  ;;  %v6945_v35 = vpop.f32.mrb[13].mxu0 }
 0x572   : > { %v5558_v57 = vpop.f32.mrb[14].mxu0 }
 0x573   : > { %v9349_v39 = vmul.f32 0.35355338, %v5558_v57  ;;  %v6946_v30 = vpop.f32.mrb[15].mxu0  ;;  %v5661_v43 = vsel %vm10476_vm0, %v9347_v9, -inf  ;;  %v9371_v57 = vmul.f32 0.35355338, %v5511_v8 }
 0x574   : > { %5662 = vmax.xlane.f32.xlu1 %v5661_v43  ;;  %v5655_v30 = vsel %vm10482_vm12, %v9365_v20, -inf  ;;  %v4495_v43 = vunpack.i.h.s16 %v9199_v32  ;;  %vm10489_vm12 = vmmov %vm10476_vm0 }
 0x575   : > { %v5664_v25 = vsel %vm10478_vm15, %v9349_v39, -inf  ;;  %vm10481_vm15 = vmmov %vm10476_vm0  ;;  %v5658_v28 = vsel %vm10483_vm3, %v9371_v57, -inf }
 0x576   : > { %vm10486_vm3 = vmmov %vm10476_vm0 }
 0x578   : > { %5665 = vmax.xlane.f32.xlu1 %v5664_v25  ;;  %v2976_v25 = vcombine.high %v9183_v3, %v9183_v3 }
 0x57c   : > { %5641 = vmax.xlane.f32.xlu1 %v5640_v52  ;;  %v4519_v52 = vpack.i.b16 %v4495_v43, %v4495_v43 }
 0x57d   : > { %v5602_v46 = vpop.f32.mrb[36].mxu1 }
 0x57e   : > { %v9363_v31 = vmul.f32 0.35355338, %v5602_v46  ;;  %v6951_v63 = vpop.f32.mrb[37].mxu1  ;;  %v9381_v46 = vrot.slane %v2976_v25, %v10464_v36  ;;  %v9384_v8 = vrot.slane %v4519_v52, %v7654_v42 }
 0x57f   : > { %v5605_v34 = vpop.f32.mrb[38].mxu1  ;;  %v9392_v63 = vrot.slane %v6798_v4, %v10464_v36 }
 0x580   : > { %10480 = vst [vmem:[#allocation6_spill] sm:$0xff] %v9363_v31  ;;  %v6952_v35 = vpop.f32.mrb[39].mxu1  ;;  %5647 = vmax.xlane.f32.xlu1 %v5646_v59  ;;  %v5667_v24 = vsel %vm10481_vm15, %v9363_v31, -inf  ;;  %v6793_v3 = vpack.i.b16 %v9381_v46, %v9381_v46  ;;  %vm10488_vm15 = vmmov %vm10476_vm0 }
 0x581   : > { %5668 = vmax.xlane.f32.xlu0 %v5667_v24  ;;  %v9402_v59 = vrot.slane %v9392_v63, %v10464_v36  ;;  %v4461_v35 = vcombine.high %v9191_v56, %v9191_v56 }
 0x582   : > { %v9409_v26 = vrot.slane %v6793_v3, %v7654_v42 }
 0x583   : > { %v6807_v1 = vpack.i.b16 %v9402_v59, %v9402_v59  ;;  %v9416_v4 = vrot.slane %v4461_v35, %v10464_v36 }
 0x584   : > { %5656 = vmax.xlane.f32.xlu1 %v5655_v30 }
 0x585   : > { %v4130_v56 = vrot.slane %v6807_v1, %v7873_v19  ;;  %v6821_v24 = vpack.i.b16 %v9416_v4, %v9416_v4 }
 0x587   : > { %v9425_v30 = vrot.slane %v6821_v24, %v7654_v42  ;;  %v4126_v24 = vrot.slane %v6807_v1, %v7654_v42 }
 0x588   : > { %5659 = vmax.xlane.f32.xlu1 %v5658_v28  ;;  %v9429_v28 = vmul.f32 0.35355338, %v5605_v34 }
 0x589   : > { %10484 = vst [vmem:[#allocation9_spill] sm:$0xff] %v9425_v30 }
 0x58a   : > { %10485 = vst [vmem:[#allocation10_spill] sm:$0xff] %v9429_v28  ;;  %v5670_v43 = vsel %vm10486_vm3, %v9429_v28, -inf  ;;  %vm10491_vm3 = vmmov %vm10476_vm0 }
 0x58b   : > { %v5627_v25 = vpop.xlane.xlu1 %5626 }
 0x597   : > { %4656 = vrot.lane.b32.xlu0 %v9384_v8, %s7241_s9 }
 0x599   : > { %4949 = vrot.lane.b32.xlu1 %v9384_v8, %s7245_s20 }
 0x59b   : > { %2368 = vrot.lane.b32.xlu0 %v9239_v45, %s7211_s17 }
 0x59d   : > { %2661 = vrot.lane.b32.xlu1 %v9239_v45, %s7225_s15 }
 0x59f   : > { %3173 = vrot.lane.b32.xlu0 %v9409_v26, %s7201_s7 }
 0x5a3   : > { %3759 = vrot.lane.b32.xlu0 %v9409_v26, %s7229_s25 }
 0x5a7   : > { %4253 = vrot.lane.b32.xlu0 %v4130_v56, %s7237_s18 }
 0x5ab   : > { %4951 = vrot.lane.b32.xlu0 %v9425_v30, %s7245_s20 }
 0x5c1   : > { %5671 = vmax.xlane.f32.xlu1 %v5670_v43 }
 0x5cd   : > { %v5651_v52 = vpop.xlane.xlu1 %5650 }
 0x5ce   : > { %v5681_v1 = vsub.f32 %v9322_v21, %v5651_v52 }
 0x5d0   : > { %v5705_v28 = vmul.f32 1.442695, %v5681_v1 }
 0x5d1   : > { %v5654_v3 = vpop.xlane.xlu1 %5653 }
 0x5d2   : > { %v5682_v35 = vsub.f32 %v9326_v6, %v5654_v3  ;;  %3466 = vrot.lane.b32.xlu1 %v9409_v26, %s7215_s21  ;;  %v5673_v6 = vsub.f32 %v9306_v53, %v5627_v25  ;;  %v5630_v3 = vpop.xlane.xlu0 %5629 }
 0x5d3   : > { %v5674_v18 = vsub.f32 %v9285_v29, %v5630_v3 }
 0x5d4   : > { %v5707_v56 = vmul.f32 1.442695, %v5682_v35  ;;  %v5689_v35 = vmul.f32 1.442695, %v5673_v6 }
 0x5d5   : > { %v5691_v10 = vmul.f32 1.442695, %v5674_v18  ;;  %v5636_v31 = vpop.xlane.xlu1 %5635 }
 0x5d6   : > { %7118 = vpow2.f32 %v5707_v56  ;;  %4251 = vrot.lane.b32.xlu1 %v4126_v24, %s7237_s18  ;;  %v5633_v56 = vpop.xlane.xlu0 %5632 }
 0x5d7   : > { %7120 = vpow2.f32 %v5689_v35  ;;  %v5675_v24 = vsub.f32 %v9288_v16, %v5633_v56 }
 0x5d8   : > { %7122 = vpow2.f32 %v5691_v10 }
 0x5d9   : > { %7124 = vpow2.f32 %v5705_v28 }
 0x5da   : > { %4658 = vrot.lane.b32.xlu1 %v9425_v30, %s7241_s9  ;;  %v5693_v30 = vmul.f32 1.442695, %v5675_v24 }
 0x5dc   : > { %7126 = vpow2.f32 %v5693_v30 }
 0x5e0   : > { %v9440_v34 = vpop.eup %7118 }
 0x5e1   : > { %10487 = vst [vmem:[#allocation11_spill] sm:$0xff] %v9440_v34  ;;  %v5748_v43 = vsel %vm10476_vm0, %v9440_v34, 0.0  ;;  %v5639_v34 = vpop.xlane.xlu0 %5638  ;;  %v9449_v53 = vpop.eup %7120 }
 0x5e2   : > { %5749 = vadd.xlane.f32.xlu0 %v5748_v43  ;;  %v5676_v43 = vsub.f32 %v9335_v49, %v5636_v31  ;;  %v5677_v29 = vsub.f32 %v9293_v12, %v5639_v34  ;;  %v5721_v21 = vsel %vm10488_vm15, %v9449_v53, 0.0  ;;  %v9454_v25 = vpop.eup %7122  ;;  %vm10492_vm15 = vmmov %vm10476_vm0 }
 0x5e3   : > { %v5724_v49 = vsel %vm10489_vm12, %v9454_v25, 0.0  ;;  %v9460_v31 = vpop.eup %7124  ;;  %vm10494_vm12 = vmmov %vm10476_vm0 }
 0x5e4   : > { %v5695_v18 = vmul.f32 1.442695, %v5676_v43  ;;  %v5697_v10 = vmul.f32 1.442695, %v5677_v29  ;;  %10490 = vst [vmem:[#allocation12_spill] sm:$0xff] %v9460_v31  ;;  %v5745_v28 = vsel %vm10491_vm3, %v9460_v31, 0.0  ;;  %vm10495_vm3 = vmmov %vm10476_vm0 }
 0x5e5   : > { %v5645_v30 = vpop.xlane.xlu0 %5644 }
 0x5e6   : > { %7128 = vpow2.f32 %v5695_v18  ;;  %v9466_v52 = vpop.eup %7126  ;;  %v5679_v34 = vsub.f32 %v9299_v41, %v5645_v30 }
 0x5e7   : > { %7130 = vpow2.f32 %v5697_v10  ;;  %v5727_v3 = vsel %vm10476_vm0, %v9466_v52, 0.0 }
 0x5e8   : > { %v5701_v56 = vmul.f32 1.442695, %v5679_v34 }
 0x5f0   : > { %v9471_v35 = vpop.eup %7128 }
 0x5f1   : > { %v5730_v29 = vsel %vm10492_vm15, %v9471_v35, 0.0  ;;  %v9476_v18 = vpop.eup %7130  ;;  %vm10498_vm15 = vmmov %vm10476_vm0 }
 0x5f2   : > { %10493 = vst [vmem:[#allocation13_spill] sm:$0xff] %v9476_v18 }
 0x5fe   : > { %5722 = vadd.xlane.f32.xlu1 %v5721_v21 }
 0x601   : > { %v9456_v16 = vpop.xlane.xlu1 %5662 }
 0x602   : > { %5725 = vadd.xlane.f32.xlu1 %v5724_v49  ;;  %v4748_v49 = vld [vmem:[#allocation3 + $0x88] sm:$0x40] }
 0x605   : > { %v9462_v12 = vpop.xlane.xlu1 %5665 }
 0x606   : > { %5746 = vadd.xlane.f32.xlu1 %v5745_v28 }
 0x609   : > { %v5642_v6 = vpop.xlane.xlu1 %5641 }
 0x60a   : > { %v5678_v1 = vsub.f32 %v9354_v48, %v5642_v6  ;;  %5728 = vadd.xlane.f32.xlu1 %v5727_v3  ;;  %v5733_v48 = vsel %vm10494_vm12, %v9476_v18, 0.0  ;;  %v2461_v6 = vld [vmem:[#allocation3 + $0x90] sm:$0x2]  ;;  %vm10499_vm12 = vcmask 113664  }
 0x60c   : > { %v5699_v24 = vmul.f32 1.442695, %v5678_v1 }
 0x60d   : > { %v5648_v43 = vpop.xlane.xlu1 %5647 }
 0x60e   : > { %7132 = vpow2.f32 %v5699_v24  ;;  %v5680_v41 = vsub.f32 %v9359_v51, %v5648_v43  ;;  %v9479_v21 = vpop.xlane.xlu0 %5668  ;;  %5731 = vadd.xlane.f32.xlu1 %v5730_v29  ;;  %v3266_v43 = vld [vmem:[#allocation3 + $0x90] sm:$0x8] }
 0x60f   : > { %7134 = vpow2.f32 %v5701_v56  ;;  %v5041_v56 = vld [vmem:[#allocation3 + $0x88] sm:$0x80] }
 0x610   : > { %v5703_v10 = vmul.f32 1.442695, %v5680_v41 }
 0x611   : > { %v9481_v30 = vpop.xlane.xlu1 %5656 }
 0x612   : > { %7136 = vpow2.f32 %v5703_v10  ;;  %v4657_v28 = vpop.permute.xlu0 %4656  ;;  %5734 = vadd.xlane.f32.xlu1 %v5733_v48 }
 0x613   : > { %v4749_v34 = vsel %vm10475_vm10, %v4657_v28, %v4748_v49 }
 0x614   : > { %4750 = vst [vmem:[#allocation3 + $0x88] sm:$0x40] %v4749_v34  ;;  %v2754_v34 = vld [vmem:[#allocation3 + $0x90] sm:$0x4] }
 0x615   : > { %v9487_v51 = vpop.xlane.xlu1 %5659 }
 0x616   : > { %v2369_v3 = vpop.permute.xlu0 %2368 }
 0x617   : > { %v2462_v1 = vsel %vm8159_vm11, %v2369_v3, %v2461_v6  ;;  %v3852_v3 = vld [vmem:[#allocation3 + $0x90] sm:$0x20] }
 0x618   : > { %v9491_v24 = vpop.eup %7132  ;;  %2463 = vst [vmem:[#allocation3 + $0x90] sm:$0x2] %v2462_v1 }
 0x619   : > { %v4950_v29 = vpop.permute.xlu1 %4949  ;;  %v5736_v41 = vsel %vm10495_vm3, %v9491_v24, 0.0  ;;  %v9495_v10 = vpop.eup %7134  ;;  %vm10502_vm3 = vmmov %vm10476_vm0 }
 0x61a   : > { %10496 = vst [vmem:[#allocation14_spill] sm:$0xff] %v9495_v10  ;;  %v5042_v49 = vsel %vm7958_vm9, %v4950_v29, %v5041_v56  ;;  %v3174_v48 = vpop.permute.xlu0 %3173  ;;  %5737 = vadd.xlane.f32.xlu0 %v5736_v41  ;;  %v5739_v31 = vsel %vm10476_vm0, %v9495_v10, 0.0  ;;  %v4754_v10 = vld [vmem:[#allocation3 + $0x98] sm:$0x40] }
 0x61b   : > { %5043 = vst [vmem:[#allocation3 + $0x88] sm:$0x80] %v5042_v49  ;;  %v3267_v28 = vsel %vm8230_vm13, %v3174_v48, %v3266_v43  ;;  %v5044_v49 = vld [vmem:[#allocation3 + $0x90] sm:$0x80] }
 0x61c   : > { %v9501_v6 = vpop.eup %7136  ;;  %3268 = vst [vmem:[#allocation3 + $0x90] sm:$0x8] %v3267_v28 }
 0x61d   : > { %10497 = vst [vmem:[#allocation15_spill] sm:$0xff] %v9501_v6  ;;  %v2662_v1 = vpop.permute.xlu1 %2661  ;;  %v5742_v18 = vsel %vm10498_vm15, %v9501_v6, 0.0  ;;  %v2894_v6 = vld [vmem:[#allocation3 + $0x80] sm:$0x4]  ;;  %vm10505_vm15 = vmmov %vm10476_vm0 }
 0x61e   : > { %v2755_v56 = vsel %vm8150_vm6, %v2662_v1, %v2754_v34  ;;  %v3760_v29 = vpop.permute.xlu0 %3759  ;;  %5740 = vadd.xlane.f32.xlu0 %v5739_v31  ;;  %5743 = vadd.xlane.f32.xlu1 %v5742_v18  ;;  %v3012_v34 = vunpack.i.h.s16 %v9381_v46  ;;  %v3964_v18 = vunpack.i.h.s16 %v9402_v59 }
 0x61f   : > { %2756 = vst [vmem:[#allocation3 + $0x90] sm:$0x4] %v2755_v56  ;;  %v3853_v43 = vsel %vm8255_vm8, %v3760_v29, %v3852_v3  ;;  %v4497_v56 = vunpack.i.h.s16 %v9416_v4 }
 0x620   : > { %3854 = vst [vmem:[#allocation3 + $0x90] sm:$0x20] %v3853_v43  ;;  %v3036_v31 = vpack.i.b16 %v3012_v34, %v3012_v34  ;;  %v3988_v1 = vpack.i.b16 %v3964_v18, %v3964_v18  ;;  %v4381_v18 = vld [vmem:[#allocation3 + $0x80] sm:$0x20] }
 0x621   : > { %v4521_v29 = vpack.i.b16 %v4497_v56, %v4497_v56  ;;  %v5683_v56 = vsub.f32 %v9365_v20, %v9481_v30 }
 0x622   : > { %v4254_v41 = vpop.permute.xlu0 %4253  ;;  %v9526_v3 = vrot.slane %v3036_v31, %v7654_v42 }
 0x623   : > { %v9542_v43 = vrot.slane %v4521_v29, %v7654_v42  ;;  %v4751_v29 = vld [vmem:[#allocation3 + $0x90] sm:$0x40] }
 0x626   : > { %v4952_v48 = vpop.permute.xlu0 %4951 }
 0x627   : > { %v5045_v28 = vsel %vm7958_vm9, %v4952_v48, %v5044_v49  ;;  %v4138_v49 = vrot.slane %v3988_v1, %v7873_v19  ;;  %v3559_v48 = vld [vmem:[#allocation3 + $0x90] sm:$0x10] }
 0x628   : > { %5046 = vst [vmem:[#allocation3 + $0x90] sm:$0x80] %v5045_v28 }
 0x62f   : > { %2370 = vrot.lane.b32.xlu1 %v9244_v62, %s7211_s17 }
 0x633   : > { %2511 = vrot.lane.b32.xlu1 %v9194_v23, %s7218_s26 }
 0x634   : > { %2218 = vrot.lane.b32.xlu0 %v9194_v23, %s7204_s10 }
 0x637   : > { %2804 = vrot.lane.b32.xlu1 %v9194_v23, %s7233_s30  ;;  %v4134_v23 = vrot.slane %v3988_v1, %v7654_v42 }
 0x638   : > { %2663 = vrot.lane.b32.xlu0 %v9244_v62, %s7225_s15 }
 0x63b   : > { %3316 = vrot.lane.b32.xlu1 %v9208_v22, %s7208_s14 }
 0x63c   : > { %3175 = vrot.lane.b32.xlu0 %v9526_v3, %s7201_s7 }
 0x63f   : > { %3609 = vrot.lane.b32.xlu1 %v9208_v22, %s7222_s11 }
 0x640   : > { %3468 = vrot.lane.b32.xlu0 %v9526_v3, %s7215_s21 }
 0x643   : > { %4255 = vrot.lane.b32.xlu1 %v4134_v23, %s7237_s18 }
 0x644   : > { %3761 = vrot.lane.b32.xlu0 %v9526_v3, %s7229_s25 }
 0x647   : > { %4660 = vrot.lane.b32.xlu1 %v9542_v43, %s7241_s9 }
 0x648   : > { %4257 = vrot.lane.b32.xlu0 %v4138_v49, %s7237_s18 }
 0x64b   : > { %4953 = vrot.lane.b32.xlu1 %v9542_v43, %s7245_s20 }
 0x64c   : > { %4801 = vrot.lane.b32.xlu0 %v9215_v37, %s7246_s8 }
 0x64e   : > { %v9552_v22 = vpop.xlane.xlu1 %5671 }
 0x650   : > { %5094 = vrot.lane.b32.xlu0 %v9215_v37, %s7247_s22  ;;  %v5684_v37 = vsub.f32 %v9371_v57, %v9487_v51  ;;  %v3930_v51 = vcombine.high %v9392_v63, %v9392_v63 }
 0x652   : > { %v3467_v28 = vpop.permute.xlu1 %3466 }
 0x653   : > { %v3560_v34 = vsel %vm10473_vm7, %v3467_v28, %v3559_v48  ;;  %v5709_v28 = vmul.f32 1.442695, %v5683_v56 }
 0x654   : > { %3561 = vst [vmem:[#allocation3 + $0x90] sm:$0x10] %v3560_v34  ;;  %v5711_v34 = vmul.f32 1.442695, %v5684_v37 }
 0x655   : > { %7138 = vpow2.f32 %v5709_v28 }
 0x656   : > { %v4252_v31 = vpop.permute.xlu1 %4251  ;;  %7140 = vpow2.f32 %v5711_v34 }
 0x657   : > { %v4299_v1 = vsel %vm10499_vm12, %v4252_v31, %v4254_v41  ;;  %v9589_v31 = vcombine.high %v9188_v61, %v9188_v61  ;;  %vm10506_vm12 = vmmov %vm10476_vm0 }
 0x658   : > { %v4382_v23 = vsel %vm8290_vm14, %v4299_v1, %v4381_v18 }
 0x659   : > { %4383 = vst [vmem:[#allocation3 + $0x80] sm:$0x20] %v4382_v23 }
 0x65a   : > { %v4659_v49 = vpop.permute.xlu1 %4658 }
 0x65b   : > { %v4752_v48 = vsel %vm10475_vm10, %v4659_v49, %v4751_v29 }
 0x65c   : > { %4753 = vst [vmem:[#allocation3 + $0x90] sm:$0x40] %v4752_v48 }
 0x65f   : > { %v9567_v41 = vpop.eup %7138 }
 0x660   : > { %10500 = vst [vmem:[#allocation16_spill] sm:$0xff] %v9567_v41  ;;  %v9569_v20 = vpop.eup %7140  ;;  %v5751_v57 = vsel %vm10476_vm0, %v9567_v41, 0.0  ;;  %vm10508_vm0 = vcmask 113664  }
 0x661   : > { %10501 = vst [vmem:[#allocation17_spill] sm:$0xff] %v9569_v20  ;;  %v5754_v30 = vsel %vm10502_vm3, %v9569_v20, 0.0  ;;  %vm10507_vm3 = vnez %v10434_v50 }
 0x66f   : > { %5755 = vadd.xlane.f32.xlu0 %v5754_v30  ;;  %5752 = vadd.xlane.f32.xlu1 %v5751_v57  ;;  %v9642_v48 = vpop.xlane.xlu0 %5749  ;;  %v5685_v30 = vsub.f32 %v9347_v9, %v9456_v16  ;;  %v5686_v57 = vsub.f32 %v9349_v39, %v9462_v12  ;;  %v2757_v9 = vld [vmem:[#allocation3 + $0x98] sm:$0x4]  ;;  %v2601_v16 = vld [vmem:[#allocation3 + $0x80] sm:$0x2] }
 0x670   : > { %10504 = vst [vmem:[#allocation19_spill] sm:$0xff] %v9642_v48 }
 0x680   : > { %2513 = vrot.lane.b32.xlu1 %v9221_v27, %s7218_s26 }
 0x684   : > { %2806 = vrot.lane.b32.xlu1 %v9221_v27, %s7233_s30 }
 0x685   : > { %2220 = vrot.lane.b32.xlu0 %v9221_v27, %s7204_s10  ;;  %v9598_v27 = vrot.slane %v3930_v51, %v10464_v36  ;;  %v9615_v36 = vcombine.high %v9199_v32, %v9199_v32 }
 0x687   : > { %v6822_v23 = vpack.i.b16 %v9615_v36, %v9615_v36 }
 0x688   : > { %3611 = vrot.lane.b32.xlu1 %v9236_v44, %s7222_s11 }
 0x689   : > { %3318 = vrot.lane.b32.xlu0 %v9236_v44, %s7208_s14  ;;  %v6794_v44 = vpack.i.b16 %v9589_v31, %v9589_v31  ;;  %v9630_v32 = vrot.slane %v6822_v23, %v7654_v42  ;;  %v5715_v23 = vmul.f32 1.442695, %v5686_v57 }
 0x68b   : > { %v9591_v18 = vpop.xlane.xlu1 %5722  ;;  %v9609_v61 = vrot.slane %v6794_v44, %v7654_v42 }
 0x68c   : > { %5096 = vrot.lane.b32.xlu1 %v9384_v8, %s7247_s22 }
 0x68d   : > { %4803 = vrot.lane.b32.xlu0 %v9384_v8, %s7246_s8  ;;  %v6808_v8 = vpack.i.b16 %v9598_v27, %v9598_v27 }
 0x68f   : > { %v9602_v1 = vpop.xlane.xlu1 %5725  ;;  %v4142_v56 = vrot.slane %v6808_v8, %v7654_v42  ;;  %v4146_v37 = vrot.slane %v6808_v8, %v7873_v19  ;;  %v5713_v8 = vmul.f32 1.442695, %v5685_v30 }
 0x690   : > { %2665 = vrot.lane.b32.xlu1 %v9247_v33, %s7225_s15 }
 0x691   : > { %2372 = vrot.lane.b32.xlu0 %v9247_v33, %s7211_s17  ;;  %7142 = vpow2.f32 %v5713_v8  ;;  %v3562_v8 = vld [vmem:[#allocation3 + $0x98] sm:$0x10] }
 0x692   : > { %7144 = vpow2.f32 %v5715_v23 }
 0x693   : > { %v9619_v63 = vpop.xlane.xlu1 %5746  ;;  %7146 = vrcp.f32 %v9602_v1  ;;  %v5184_v1 = vld [vmem:[#allocation3 + $0x80] sm:$0x80] }
 0x694   : > { %3470 = vrot.lane.b32.xlu1 %v9609_v61, %s7215_s21  ;;  %10503 = vst [vmem:[#allocation18_spill] sm:$0xff] %v9619_v63  ;;  %7148 = vrcp.f32 %v9591_v18 }
 0x695   : > { %3177 = vrot.lane.b32.xlu0 %v9609_v61, %s7201_s7 }
 0x697   : > { %v9632_v29 = vpop.xlane.xlu1 %5728 }
 0x698   : > { %4259 = vrot.lane.b32.xlu1 %v4142_v56, %s7237_s18  ;;  %v2464_v56 = vld [vmem:[#allocation3 + $0x98] sm:$0x2] }
 0x699   : > { %3763 = vrot.lane.b32.xlu0 %v9609_v61, %s7229_s25 }
 0x69b   : > { %v9638_v49 = vpop.xlane.xlu1 %5731 }
 0x69c   : > { %4662 = vrot.lane.b32.xlu1 %v9630_v32, %s7241_s9 }
 0x69d   : > { %4261 = vrot.lane.b32.xlu0 %v4146_v37, %s7237_s18  ;;  %v2308_v37 = vld [vmem:[#allocation3 + $0x80] sm:$0x1] }
 0x69f   : > { %v9644_v28 = vpop.xlane.xlu1 %5734 }
 0x6a1   : > { %4955 = vrot.lane.b32.xlu0 %v9630_v32, %s7245_s20 }
 0x6a7   : > { %v9646_v34 = vpop.xlane.xlu0 %5737 }
 0x6ab   : > { %v9652_v51 = vpop.xlane.xlu0 %5740  ;;  %v9654_v44 = vpop.xlane.xlu1 %5743 }
 0x6af   : > { %v2219_v41 = vpop.permute.xlu0 %2218  ;;  %v2371_v20 = vpop.permute.xlu1 %2370 }
 0x6b0   : > { %v2309_v48 = vsel %vm10452_vm1, %v2219_v41, %v2308_v37  ;;  %v2465_v63 = vsel %vm8159_vm11, %v2371_v20, %v2464_v56  ;;  %v3269_v41 = vld [vmem:[#allocation3 + $0x98] sm:$0x8]  ;;  %v9668_v56 = vpop.eup %7142 }
 0x6b1   : > { %2310 = vst [vmem:[#allocation3 + $0x80] sm:$0x1] %v2309_v48  ;;  %2466 = vst [vmem:[#allocation3 + $0x98] sm:$0x2] %v2465_v63 }
 0x6b3   : > { %v2664_v39 = vpop.permute.xlu0 %2663  ;;  %v2512_v12 = vpop.permute.xlu1 %2511 }
 0x6b4   : > { %v2758_v30 = vsel %vm8150_vm6, %v2664_v39, %v2757_v9  ;;  %v2602_v57 = vsel %vm8193_vm5, %v2512_v12, %v2601_v16  ;;  %v3406_v9 = vld [vmem:[#allocation3 + $0x80] sm:$0x8]  ;;  %v9670_v16 = vpop.eup %7144 }
 0x6b5   : > { %2759 = vst [vmem:[#allocation3 + $0x98] sm:$0x4] %v2758_v30  ;;  %2603 = vst [vmem:[#allocation3 + $0x80] sm:$0x2] %v2602_v57  ;;  %v3855_v57 = vld [vmem:[#allocation3 + $0x98] sm:$0x20] }
 0x6b7   : > { %v3176_v37 = vpop.permute.xlu0 %3175  ;;  %v2805_v20 = vpop.permute.xlu1 %2804 }
 0x6b8   : > { %v3270_v63 = vsel %vm8230_vm13, %v3176_v37, %v3269_v41  ;;  %v2895_v48 = vsel %vm8218_vm2, %v2805_v20, %v2894_v6  ;;  %v3699_v41 = vld [vmem:[#allocation3 + $0x80] sm:$0x10]  ;;  %v5760_v20 = vsel %vm10505_vm15, %v9670_v16, 0.0  ;;  %vm10509_vm15 = vnez %v10406_v38 }
 0x6b9   : > { %3271 = vst [vmem:[#allocation3 + $0x98] sm:$0x8] %v3270_v63  ;;  %2896 = vst [vmem:[#allocation3 + $0x80] sm:$0x4] %v2895_v48  ;;  %v5757_v63 = vsel %vm10506_vm12, %v9668_v56, 0.0  ;;  %vm10510_vm12 = vnez %v10408_v60 }
 0x6bb   : > { %v3469_v23 = vpop.permute.xlu0 %3468  ;;  %v3317_v39 = vpop.permute.xlu1 %3316 }
 0x6bc   : > { %v3563_v12 = vsel %vm10473_vm7, %v3469_v23, %v3562_v8  ;;  %v3407_v30 = vsel %vm8277_vm4, %v3317_v39, %v3406_v9  ;;  %v4384_v39 = vld [vmem:[#allocation3 + $0x88] sm:$0x20] }
 0x6bd   : > { %3564 = vst [vmem:[#allocation3 + $0x98] sm:$0x10] %v3563_v12  ;;  %3408 = vst [vmem:[#allocation3 + $0x80] sm:$0x8] %v3407_v30 }
 0x6bf   : > { %v3762_v6 = vpop.permute.xlu0 %3761  ;;  %v3610_v37 = vpop.permute.xlu1 %3609 }
 0x6c0   : > { %v3856_v48 = vsel %vm8255_vm8, %v3762_v6, %v3855_v57  ;;  %v3700_v8 = vsel %vm10507_vm3, %v3610_v37, %v3699_v41  ;;  %5761 = vadd.xlane.f32.xlu0 %v5760_v20  ;;  %5758 = vadd.xlane.f32.xlu1 %v5757_v63  ;;  %v4891_v57 = vld [vmem:[#allocation3 + $0x80] sm:$0x40]  ;;  %v5047_v63 = vld [vmem:[#allocation3 + $0x98] sm:$0x80] }
 0x6c1   : > { %3857 = vst [vmem:[#allocation3 + $0x98] sm:$0x20] %v3856_v48  ;;  %3701 = vst [vmem:[#allocation3 + $0x80] sm:$0x10] %v3700_v8 }
 0x6c3   : > { %v4258_v23 = vpop.permute.xlu0 %4257  ;;  %v4256_v9 = vpop.permute.xlu1 %4255 }
 0x6c4   : > { %v4300_v12 = vsel %vm10508_vm0, %v4256_v9, %v4258_v23  ;;  %v7147_v9 = vpop.eup %7146  ;;  %vm10511_vm0 = vcmask 130048  }
 0x6c5   : > { %v4385_v30 = vsel %vm8290_vm14, %v4300_v12, %v4384_v39  ;;  %v7149_v39 = vpop.eup %7148 }
 0x6c6   : > { %4386 = vst [vmem:[#allocation3 + $0x88] sm:$0x20] %v4385_v30  ;;  %v5785_v12 = vmul.f32 %v7149_v39, %v9449_v53  ;;  %v3966_v53 = vunpack.i.h.s16 %v9598_v27 }
 0x6c7   : > { %v4802_v6 = vpop.permute.xlu0 %4801  ;;  %v4661_v41 = vpop.permute.xlu1 %4660 }
 0x6c8   : > { %v4892_v37 = vsel %vm10509_vm15, %v4802_v6, %v4891_v57  ;;  %v4755_v20 = vsel %vm10475_vm10, %v4661_v41, %v4754_v10  ;;  %v5786_v10 = vmul.f32 %v7147_v9, %v9454_v25  ;;  %v3014_v57 = vunpack.i.h.s16 %v9589_v31 }
 0x6c9   : > { %4893 = vst [vmem:[#allocation3 + $0x80] sm:$0x40] %v4892_v37  ;;  %4756 = vst [vmem:[#allocation3 + $0x98] sm:$0x40] %v4755_v20  ;;  %vm10512_vm10 = vmmov 0   ;;  %v3990_v31 = vpack.i.b16 %v3966_v53, %v3966_v53 }
 0x6ca   : > { %v5801_v6 = vpack.c.bf16 %v5786_v10, %v5785_v12  ;;  %v3038_v41 = vpack.i.b16 %v3014_v57, %v3014_v57  ;;  %v2311_v12 = vld [vmem:[#allocation3 + $0x88] sm:$0x1]  ;;  %v2604_v57 = vld [vmem:[#allocation3 + $0x88] sm:$0x2] }
 0x6cb   : > { %v5095_v48 = vpop.permute.xlu0 %5094  ;;  %v4954_v8 = vpop.permute.xlu1 %4953  ;;  %v4150_v37 = vrot.slane %v3990_v31, %v7654_v42 }
 0x6cc   : > { %v5185_v23 = vsel %vm10510_vm12, %v5095_v48, %v5184_v1  ;;  %v5048_v18 = vsel %vm7958_vm9, %v4954_v8, %v5047_v63  ;;  %v9716_v25 = vrot.slane %v3038_v41, %v7654_v42  ;;  %v4154_v1 = vrot.slane %v3990_v31, %v7873_v19  ;;  %v10515_v8 = vld [vmem:[#allocation10_spill] sm:$0xff]  ;;  %v2897_v31 = vld [vmem:[#allocation3 + $0x88] sm:$0x4] }
 0x6cd   : > { %5186 = vst [vmem:[#allocation3 + $0x80] sm:$0x80] %v5185_v23  ;;  %5049 = vst [vmem:[#allocation3 + $0x98] sm:$0x80] %v5048_v18  ;;  %v5688_v23 = vsub.f32 %v10515_v8, %v9552_v22 }
 0x6cf   : > { %v5719_v10 = vmul.f32 1.442695, %v5688_v23 }
 0x6d1   : > { %2374 = vrot.lane.b32.xlu1 %v9250_v58, %s7211_s17 }
 0x6d4   : > { %v5224_v30 = vld [vmem:[#allocation3 + $0x80] sm:$0xff] }
 0x6d5   : > { %2515 = vrot.lane.b32.xlu1 %v9239_v45, %s7218_s26  ;;  %6954 = vmatpush3.bf16.msra.mxu0 %v5224_v30 }
 0x6d6   : > { %2222 = vrot.lane.b32.xlu0 %v9239_v45, %s7204_s10  ;;  %6965 = vmatprep.subr.bf16.mxu0 %v10437_v55 }
 0x6d8   : > { %6956 = vmatmul.mubr.msk.bf16.vlgmr.msra.gmra.mrb[16].mxu0 %vm10511_vm0, %v5801_v6 }
 0x6d9   : > { %2808 = vrot.lane.b32.xlu1 %v9239_v45, %s7233_s30  ;;  %6967 = vmatprep.mubr.msk.bf16.mxu0 %vm10512_vm10, %v10437_v55  ;;  %v4499_v45 = vunpack.i.h.s16 %v9615_v36  ;;  %v10514_v36 = vld [vmem:[#allocation6_spill] sm:$0xff] }
 0x6da   : > { %2667 = vrot.lane.b32.xlu0 %v9250_v58, %s7225_s15  ;;  %v5687_v48 = vsub.f32 %v10514_v36, %v9479_v21  ;;  %v3409_v21 = vld [vmem:[#allocation3 + $0x88] sm:$0x8]  ;;  %v3702_v36 = vld [vmem:[#allocation3 + $0x88] sm:$0x10] }
 0x6db   : > { %v4523_v20 = vpack.i.b16 %v4499_v45, %v4499_v45 }
 0x6dc   : > { %v5717_v39 = vmul.f32 1.442695, %v5687_v48 }
 0x6dd   : > { %3320 = vrot.lane.b32.xlu1 %v9409_v26, %s7208_s14  ;;  %v9732_v63 = vrot.slane %v4523_v20, %v7654_v42 }
 0x6de   : > { %3179 = vrot.lane.b32.xlu0 %v9716_v25, %s7201_s7  ;;  %7150 = vpow2.f32 %v5717_v39  ;;  %v2467_v39 = vld [vmem:[#allocation3 + $0xa0] sm:$0x2] }
 0x6df   : > { %7152 = vpow2.f32 %v5719_v10 }
 0x6e0   : > { %7154 = vrcp.f32 %v9638_v49 }
 0x6e1   : > { %3613 = vrot.lane.b32.xlu1 %v9409_v26, %s7222_s11  ;;  %v10513_v26 = vld [vmem:[#allocation9_spill] sm:$0xff]  ;;  %7156 = vrcp.f32 %v9632_v29 }
 0x6e2   : > { %3472 = vrot.lane.b32.xlu0 %v9716_v25, %s7215_s21 }
 0x6e5   : > { %4263 = vrot.lane.b32.xlu1 %v4150_v37, %s7237_s18 }
 0x6e6   : > { %3765 = vrot.lane.b32.xlu0 %v9716_v25, %s7229_s25 }
 0x6e8   : > { %v9766_v10 = vpop.eup %7150 }
 0x6e9   : > { %4664 = vrot.lane.b32.xlu1 %v9732_v63, %s7241_s9 }
 0x6ea   : > { %4265 = vrot.lane.b32.xlu0 %v4154_v1, %s7237_s18  ;;  %v4894_v1 = vld [vmem:[#allocation3 + $0x88] sm:$0x40] }
 0x6ed   : > { %4957 = vrot.lane.b32.xlu1 %v9732_v63, %s7245_s20 }
 0x6ee   : > { %4805 = vrot.lane.b32.xlu0 %v10513_v26, %s7246_s8 }
 0x6f2   : > { %5098 = vrot.lane.b32.xlu0 %v10513_v26, %s7247_s22 }
 0x6fc   : > { %v9748_v18 = vpop.xlane.xlu0 %5755  ;;  %v9750_v9 = vpop.xlane.xlu1 %5752 }
 0x700   : > { %v2221_v30 = vpop.permute.xlu0 %2220  ;;  %v2514_v6 = vpop.permute.xlu1 %2513 }
 0x701   : > { %v2312_v41 = vsel %vm10452_vm1, %v2221_v30, %v2311_v12  ;;  %v2605_v53 = vsel %vm8193_vm5, %v2514_v6, %v2604_v57  ;;  %v5187_v12 = vld [vmem:[#allocation3 + $0x88] sm:$0x80]  ;;  %v9768_v57 = vpop.eup %7152 }
 0x702   : > { %2313 = vst [vmem:[#allocation3 + $0x88] sm:$0x1] %v2312_v41  ;;  %2606 = vst [vmem:[#allocation3 + $0x88] sm:$0x2] %v2605_v53  ;;  %v3272_v41 = vld [vmem:[#allocation3 + $0xa0] sm:$0x8] }
 0x703   : > { %v2760_v53 = vld [vmem:[#allocation3 + $0xa0] sm:$0x4] }
 0x704   : > { %v3319_v22 = vpop.permute.xlu0 %3318  ;;  %v2807_v45 = vpop.permute.xlu1 %2806 }
 0x705   : > { %v3410_v37 = vsel %vm8277_vm4, %v3319_v22, %v3409_v21  ;;  %v2898_v20 = vsel %vm8218_vm2, %v2807_v45, %v2897_v31  ;;  %v7155_v21 = vpop.eup %7154  ;;  %v5763_v45 = vsel %vm10511_vm0, %v9766_v10, 0.0 }
 0x706   : > { %3411 = vst [vmem:[#allocation3 + $0x88] sm:$0x8] %v3410_v37  ;;  %2899 = vst [vmem:[#allocation3 + $0x88] sm:$0x4] %v2898_v20 }
 0x708   : > { %v4804_v26 = vpop.permute.xlu0 %4803  ;;  %v3612_v48 = vpop.permute.xlu1 %3611 }
 0x709   : > { %v4895_v8 = vsel %vm10509_vm15, %v4804_v26, %v4894_v1  ;;  %v3703_v23 = vsel %vm10507_vm3, %v3612_v48, %v3702_v36  ;;  %vm10516_vm15 = vmmov %vm10511_vm0  ;;  %v7157_v26 = vpop.eup %7156  ;;  %v3858_v36 = vld [vmem:[#allocation3 + $0xa0] sm:$0x20]  ;;  %v3565_v48 = vld [vmem:[#allocation3 + $0xa0] sm:$0x10] }
 0x70a   : > { %4896 = vst [vmem:[#allocation3 + $0x88] sm:$0x40] %v4895_v8  ;;  %3704 = vst [vmem:[#allocation3 + $0x88] sm:$0x10] %v3703_v23  ;;  %v5766_v37 = vsel %vm10516_vm15, %v9768_v57, 0.0  ;;  %v5788_v8 = vmul.f32 %v7155_v21, %v9471_v35  ;;  %vm10517_vm15 = vcmask 113664  }
 0x70b   : > { %v4387_v35 = vld [vmem:[#allocation3 + $0x90] sm:$0x20] }
 0x70c   : > { %v2373_v49 = vpop.permute.xlu0 %2372  ;;  %v5097_v30 = vpop.permute.xlu1 %5096 }
 0x70d   : > { %v2468_v29 = vsel %vm8159_vm11, %v2373_v49, %v2467_v39  ;;  %v5188_v6 = vsel %vm10510_vm12, %v5097_v30, %v5187_v12  ;;  %v5787_v49 = vmul.f32 %v7157_v26, %v9466_v52  ;;  %vm10518_vm12 = vnez %v10404_v15 }
 0x70e   : > { %2469 = vst [vmem:[#allocation3 + $0xa0] sm:$0x2] %v2468_v29  ;;  %5189 = vst [vmem:[#allocation3 + $0x88] sm:$0x80] %v5188_v6  ;;  %v2992_v26 = vcombine.high %v9381_v46, %v9381_v46 }
 0x70f   : > { %v5802_v6 = vpack.c.bf16 %v5788_v8, %v5787_v49  ;;  %v4477_v8 = vcombine.high %v9416_v4, %v9416_v4  ;;  %v10520_v49 = vld [vmem:[#allocation8_spill] sm:$0xff] }
 0x710   : > { %v3178_v22 = vpop.permute.xlu0 %3177  ;;  %v2666_v31 = vpop.permute.xlu1 %2665  ;;  %v3016_v4 = vunpack.i.h.s16 %v2992_v26 }
 0x711   : > { %v3273_v20 = vsel %vm8230_vm13, %v3178_v22, %v3272_v41  ;;  %v2761_v1 = vsel %vm8150_vm6, %v2666_v31, %v2760_v53  ;;  %5764 = vadd.xlane.f32.xlu1 %v5763_v45  ;;  %5767 = vadd.xlane.f32.xlu0 %v5766_v37  ;;  %v5050_v22 = vld [vmem:[#allocation3 + $0xa0] sm:$0x80]  ;;  %v4757_v31 = vld [vmem:[#allocation3 + $0xa0] sm:$0x40] }
 0x712   : > { %3274 = vst [vmem:[#allocation3 + $0xa0] sm:$0x8] %v3273_v20  ;;  %2762 = vst [vmem:[#allocation3 + $0xa0] sm:$0x4] %v2761_v1 }
 0x714   : > { %v3764_v23 = vpop.permute.xlu0 %3763  ;;  %v3471_v39 = vpop.permute.xlu1 %3470 }
 0x715   : > { %v3859_v12 = vsel %vm8255_vm8, %v3764_v23, %v3858_v36  ;;  %v3566_v30 = vsel %vm10473_vm7, %v3471_v39, %v3565_v48  ;;  %v5225_v29 = vld [vmem:[#allocation3 + $0x88] sm:$0xff]  ;;  %v6795_v36 = vpack.i.b16 %v2992_v26, %v2992_v26  ;;  %v3945_v48 = vcombine.high %v9402_v59, %v9402_v59 }
 0x716   : > { %3860 = vst [vmem:[#allocation3 + $0xa0] sm:$0x20] %v3859_v12  ;;  %3567 = vst [vmem:[#allocation3 + $0xa0] sm:$0x10] %v3566_v30  ;;  %6960 = vmatpush3.bf16.msra.mxu1 %v5225_v29  ;;  %v3040_v12 = vpack.i.b16 %v3016_v4, %v3016_v4 }
 0x717   : > { %6971 = vmatprep.subr.bf16.mxu1 %v10437_v55  ;;  %v6809_v46 = vpack.i.b16 %v3945_v48, %v3945_v48  ;;  %v3968_v30 = vunpack.i.h.s16 %v3945_v48 }
 0x718   : > { %v4262_v41 = vpop.permute.xlu0 %4261  ;;  %v4260_v53 = vpop.permute.xlu1 %4259 }
 0x719   : > { %v4301_v21 = vsel %vm10517_vm15, %v4260_v53, %v4262_v41  ;;  %6962 = vmatmul.mubr.msk.bf16.vlgmr.msra.gmra.mrb[40].mxu1 %vm10511_vm0, %v5802_v6  ;;  %v4158_v59 = vrot.slane %v6809_v46, %v7654_v42  ;;  %v4162_v39 = vrot.slane %v6809_v46, %v7873_v19  ;;  %v9854_v41 = vrot.slane %v3040_v12, %v7654_v42  ;;  %v2470_v53 = vld [vmem:[#allocation3 + $0xa8] sm:$0x2] }
 0x71a   : > { %v4388_v52 = vsel %vm8290_vm14, %v4301_v21, %v4387_v35  ;;  %6973 = vmatprep.mubr.msk.bf16.mxu1 %vm10512_vm10, %v10437_v55  ;;  %v3992_v35 = vpack.i.b16 %v3968_v30, %v3968_v30  ;;  %v2314_v21 = vld [vmem:[#allocation3 + $0x90] sm:$0x1]  ;;  %v2900_v30 = vld [vmem:[#allocation3 + $0x90] sm:$0x4]  ;;  %vm10521_vm0 = vnez %v10406_v38 }
 0x71b   : > { %4389 = vst [vmem:[#allocation3 + $0x90] sm:$0x20] %v4388_v52 }
 0x71c   : > { %v4956_v45 = vpop.permute.xlu0 %4955  ;;  %v4663_v37 = vpop.permute.xlu1 %4662 }
 0x71d   : > { %v5051_v20 = vsel %vm7958_vm9, %v4956_v45, %v5050_v22  ;;  %v4758_v1 = vsel %vm10518_vm12, %v4663_v37, %v4757_v31  ;;  %v2763_v37 = vld [vmem:[#allocation3 + $0xa8] sm:$0x4] }
 0x71e   : > { %5052 = vst [vmem:[#allocation3 + $0xa0] sm:$0x80] %v5051_v20  ;;  %4759 = vst [vmem:[#allocation3 + $0xa0] sm:$0x40] %v4758_v1  ;;  %v4166_v20 = vrot.slane %v3992_v35, %v7654_v42 }
 0x722   : > { %2517 = vrot.lane.b32.xlu1 %v9244_v62, %s7218_s26 }
 0x726   : > { %2810 = vrot.lane.b32.xlu1 %v9244_v62, %s7233_s30 }
 0x727   : > { %2224 = vrot.lane.b32.xlu0 %v9244_v62, %s7204_s10  ;;  %v10519_v62 = vld [vmem:[#allocation7_spill] sm:$0xff] }
 0x72a   : > { %3615 = vrot.lane.b32.xlu1 %v9526_v3, %s7222_s11 }
 0x72b   : > { %3322 = vrot.lane.b32.xlu0 %v9526_v3, %s7208_s14  ;;  %v9822_v3 = vrot.slane %v6795_v36, %v7654_v42  ;;  %v2607_v36 = vld [vmem:[#allocation3 + $0x90] sm:$0x2] }
 0x72e   : > { %5100 = vrot.lane.b32.xlu1 %v9542_v43, %s7247_s22 }
 0x72f   : > { %4807 = vrot.lane.b32.xlu0 %v9542_v43, %s7246_s8  ;;  %v6823_v43 = vpack.i.b16 %v4477_v8, %v4477_v8 }
 0x731   : > { %v9835_v23 = vrot.slane %v6823_v43, %v7654_v42 }
 0x732   : > { %2669 = vrot.lane.b32.xlu1 %v10519_v62, %s7225_s15 }
 0x733   : > { %2376 = vrot.lane.b32.xlu0 %v10519_v62, %s7211_s17 }
 0x736   : > { %3474 = vrot.lane.b32.xlu1 %v9822_v3, %s7215_s21 }
 0x737   : > { %3181 = vrot.lane.b32.xlu0 %v9822_v3, %s7201_s7 }
 0x73a   : > { %4267 = vrot.lane.b32.xlu1 %v4158_v59, %s7237_s18 }
 0x73b   : > { %3767 = vrot.lane.b32.xlu0 %v9822_v3, %s7229_s25 }
 0x73e   : > { %4666 = vrot.lane.b32.xlu1 %v9835_v23, %s7241_s9 }
 0x73f   : > { %4269 = vrot.lane.b32.xlu0 %v4162_v39, %s7237_s18 }
 0x742   : > { %2226 = vrot.lane.b32.xlu1 %v9247_v33, %s7204_s10 }
 0x743   : > { %4959 = vrot.lane.b32.xlu0 %v9835_v23, %s7245_s20 }
 0x746   : > { %2519 = vrot.lane.b32.xlu1 %v9247_v33, %s7218_s26 }
 0x747   : > { %2378 = vrot.lane.b32.xlu0 %v10520_v49, %s7211_s17  ;;  %s7253_s17 = smov 96  }
 0x74a   : > { %2812 = vrot.lane.b32.xlu1 %v9247_v33, %s7233_s30  ;;  %v4501_v33 = vunpack.i.h.s16 %v4477_v8 }
 0x74b   : > { %2671 = vrot.lane.b32.xlu0 %v10520_v49, %s7225_s15 }
 0x74c   : > { %v4525_v1 = vpack.i.b16 %v4501_v33, %v4501_v33 }
 0x74d   : > { %v5762_v29 = vpop.xlane.xlu0 %5761  ;;  %v5759_v6 = vpop.xlane.xlu1 %5758 }
 0x74e   : > { %7158 = vrcp.f32 %v5762_v29  ;;  %3324 = vrot.lane.b32.xlu1 %v9609_v61, %s7208_s14  ;;  %v9877_v43 = vrot.slane %v4525_v1, %v7654_v42  ;;  %v3705_v1 = vld [vmem:[#allocation3 + $0x90] sm:$0x10] }
 0x74f   : > { %7160 = vrcp.f32 %v5759_v6  ;;  %3183 = vrot.lane.b32.xlu0 %v9854_v41, %s7201_s7  ;;  %v4170_v6 = vrot.slane %v3992_v35, %v7873_v19  ;;  %s7250_s7 = smov 32  }
 0x750   : > { %7162 = vrcp.f32 %v9646_v34 }
 0x751   : > { %v2223_v52 = vpop.permute.xlu0 %2222  ;;  %v2375_v22 = vpop.permute.xlu1 %2374  ;;  %7164 = vrcp.f32 %v9644_v28  ;;  %v5190_v28 = vld [vmem:[#allocation3 + $0x90] sm:$0x80] }
 0x752   : > { %v2315_v31 = vsel %vm10452_vm1, %v2223_v52, %v2314_v21  ;;  %v2471_v45 = vsel %vm8159_vm11, %v2375_v22, %v2470_v53  ;;  %3617 = vrot.lane.b32.xlu1 %v9609_v61, %s7222_s11  ;;  %v3275_v61 = vld [vmem:[#allocation3 + $0xa8] sm:$0x8] }
 0x753   : > { %2316 = vst [vmem:[#allocation3 + $0x90] sm:$0x1] %v2315_v31  ;;  %2472 = vst [vmem:[#allocation3 + $0xa8] sm:$0x2] %v2471_v45  ;;  %3476 = vrot.lane.b32.xlu0 %v9854_v41, %s7215_s21 }
 0x755   : > { %v2668_v26 = vpop.permute.xlu0 %2667  ;;  %v2516_v48 = vpop.permute.xlu1 %2515 }
 0x756   : > { %v2764_v46 = vsel %vm8150_vm6, %v2668_v26, %v2763_v37  ;;  %v2608_v8 = vsel %vm8193_vm5, %v2516_v48, %v2607_v36  ;;  %4271 = vrot.lane.b32.xlu1 %v4166_v20, %s7237_s18  ;;  %v3861_v37 = vld [vmem:[#allocation3 + $0xa8] sm:$0x20] }
 0x757   : > { %2765 = vst [vmem:[#allocation3 + $0xa8] sm:$0x4] %v2764_v46  ;;  %2609 = vst [vmem:[#allocation3 + $0x90] sm:$0x2] %v2608_v8  ;;  %3769 = vrot.lane.b32.xlu0 %v9854_v41, %s7229_s25 }
 0x758   : > { %v7159_v59 = vpop.eup %7158 }
 0x759   : > { %v7161_v39 = vpop.eup %7160  ;;  %v9880_v4 = vmul.f32 %v7159_v59, %v9670_v16  ;;  %v3180_v12 = vpop.permute.xlu0 %3179  ;;  %v3568_v16 = vld [vmem:[#allocation3 + $0xa8] sm:$0x10] }
 0x75a   : > { %v2809_v29 = vpop.permute.xlu1 %2808  ;;  %v9884_v53 = vmul.f32 %v7161_v39, %v9668_v56  ;;  %v3276_v33 = vsel %vm8230_vm13, %v3180_v12, %v3275_v61  ;;  %4668 = vrot.lane.b32.xlu1 %v9877_v43, %s7241_s9  ;;  %v3412_v56 = vld [vmem:[#allocation3 + $0x90] sm:$0x8]  ;;  %v4390_v61 = vld [vmem:[#allocation3 + $0x98] sm:$0x20]  ;;  %v4760_v12 = vld [vmem:[#allocation3 + $0xa8] sm:$0x40]  ;;  %s252_s9 = scalar_lea.vmem %s10340_s6, %s6843_s0 }
 0x75b   : > { %v2901_v21 = vsel %vm8218_vm2, %v2809_v29, %v2900_v30  ;;  %3277 = vst [vmem:[#allocation3 + $0xa8] sm:$0x8] %v3276_v33  ;;  %4273 = vrot.lane.b32.xlu0 %v4170_v6, %s7237_s18  ;;  %v4897_v29 = vld [vmem:[#allocation3 + $0x90] sm:$0x40] }
 0x75c   : > { %2902 = vst [vmem:[#allocation3 + $0x90] sm:$0x4] %v2901_v21  ;;  %v5807_v35 = vpack.c.bf16 %v9880_v4, %v9884_v53 }
 0x75d   : > { %v3473_v52 = vpop.permute.xlu0 %3472 }
 0x75e   : > { %v3321_v22 = vpop.permute.xlu1 %3320  ;;  %v3569_v31 = vsel %vm10473_vm7, %v3473_v52, %v3568_v16  ;;  %4961 = vrot.lane.b32.xlu1 %v9877_v43, %s7245_s20 }
 0x75f   : > { %v3413_v45 = vsel %vm8277_vm4, %v3321_v22, %v3412_v56  ;;  %3570 = vst [vmem:[#allocation3 + $0xa8] sm:$0x10] %v3569_v31  ;;  %4809 = vrot.lane.b32.xlu0 %v9630_v32, %s7246_s8  ;;  %v7163_v22 = vpop.eup %7162 }
 0x760   : > { %3414 = vst [vmem:[#allocation3 + $0x90] sm:$0x8] %v3413_v45  ;;  %v7165_v45 = vpop.eup %7164 }
 0x761   : > { %v3766_v20 = vpop.permute.xlu0 %3765 }
 0x762   : > { %v3614_v26 = vpop.permute.xlu1 %3613  ;;  %v3862_v36 = vsel %vm8255_vm8, %v3766_v20, %v3861_v37  ;;  %2228 = vrot.lane.b32.xlu1 %v9250_v58, %s7204_s10  ;;  %v5790_v37 = vmul.f32 %v7163_v22, %v9491_v24 }
 0x763   : > { %v3706_v48 = vsel %vm10507_vm3, %v3614_v26, %v3705_v1  ;;  %3863 = vst [vmem:[#allocation3 + $0xa8] sm:$0x20] %v3862_v36  ;;  %5102 = vrot.lane.b32.xlu0 %v9630_v32, %s7247_s22  ;;  %v3946_v32 = vcombine.high %v9598_v27, %v9598_v27  ;;  %v10523_v1 = vld [vmem:[#allocation13_spill] sm:$0xff] }
 0x764   : > { %3707 = vst [vmem:[#allocation3 + $0x90] sm:$0x10] %v3706_v48  ;;  %v5789_v26 = vmul.f32 %v7165_v45, %v10523_v1  ;;  %v2766_v1 = vld [vmem:[#allocation3 + $0xb0] sm:$0x4] }
 0x765   : > { %v4266_v46 = vpop.permute.xlu0 %4265  ;;  %v6810_v27 = vpack.i.b16 %v3946_v32, %v3946_v32  ;;  %v3970_v20 = vunpack.i.h.s16 %v3946_v32 }
 0x766   : > { %v4264_v8 = vpop.permute.xlu1 %4263  ;;  %2814 = vrot.lane.b32.xlu1 %v9250_v58, %s7233_s30 }
 0x767   : > { %v4302_v59 = vsel %vm10517_vm15, %v4264_v8, %v4266_v46  ;;  %2521 = vrot.lane.b32.xlu0 %v9250_v58, %s7218_s26  ;;  %v5053_v58 = vld [vmem:[#allocation3 + $0xa8] sm:$0x80]  ;;  %vm10522_vm15 = vnez %v10408_v60  ;;  %v4174_v31 = vrot.slane %v6810_v27, %v7654_v42  ;;  %v3994_v48 = vpack.i.b16 %v3970_v20, %v3970_v20  ;;  %v3278_v20 = vld [vmem:[#allocation3 + $0xb0] sm:$0x8] }
 0x768   : > { %v4391_v39 = vsel %vm8290_vm14, %v4302_v59, %v4390_v61  ;;  %v3415_v61 = vld [vmem:[#allocation3 + $0x98] sm:$0x8] }
 0x769   : > { %4392 = vst [vmem:[#allocation3 + $0x98] sm:$0x20] %v4391_v39  ;;  %v4806_v30 = vpop.permute.xlu0 %4805  ;;  %v4182_v24 = vrot.slane %v3994_v48, %v7654_v42  ;;  %v4186_v46 = vrot.slane %v3994_v48, %v7873_v19  ;;  %v2903_v39 = vld [vmem:[#allocation3 + $0x98] sm:$0x4] }
 0x76a   : > { %v4665_v6 = vpop.permute.xlu1 %4664  ;;  %v4898_v33 = vsel %vm10521_vm0, %v4806_v30, %v4897_v29  ;;  %3619 = vrot.lane.b32.xlu1 %v9716_v25, %s7222_s11 }
 0x76b   : > { %v4761_v34 = vsel %vm10518_vm12, %v4665_v6, %v4760_v12  ;;  %4899 = vst [vmem:[#allocation3 + $0x90] sm:$0x40] %v4898_v33  ;;  %3326 = vrot.lane.b32.xlu0 %v9716_v25, %s7208_s14  ;;  %v4178_v25 = vrot.slane %v6810_v27, %v7873_v19  ;;  %vm10524_vm12 = vcmask 130048  }
 0x76c   : > { %4762 = vst [vmem:[#allocation3 + $0xa8] sm:$0x40] %v4761_v34  ;;  %v4900_v34 = vld [vmem:[#allocation3 + $0x98] sm:$0x40] }
 0x76d   : > { %v5099_v21 = vpop.permute.xlu0 %5098 }
 0x76e   : > { %v4958_v16 = vpop.permute.xlu1 %4957  ;;  %v5191_v52 = vsel %vm10522_vm15, %v5099_v21, %v5190_v28  ;;  %5104 = vrot.lane.b32.xlu1 %v9732_v63, %s7247_s22 }
 0x76f   : > { %v5054_v56 = vsel %vm7958_vm9, %v4958_v16, %v5053_v58  ;;  %5192 = vst [vmem:[#allocation3 + $0x90] sm:$0x80] %v5191_v52  ;;  %4811 = vrot.lane.b32.xlu0 %v9732_v63, %s7246_s8  ;;  %v5803_v63 = vpack.c.bf16 %v5790_v37, %v5789_v26  ;;  %v3708_v58 = vld [vmem:[#allocation3 + $0x98] sm:$0x10] }
 0x770   : > { %5055 = vst [vmem:[#allocation3 + $0xa8] sm:$0x80] %v5054_v56 }
 0x772   : > { %4277 = vrot.lane.b32.xlu1 %v4178_v25, %s7237_s18 }
 0x773   : > { %4275 = vrot.lane.b32.xlu0 %v4174_v31, %s7237_s18  ;;  %v5193_v31 = vld [vmem:[#allocation3 + $0x98] sm:$0x80] }
 0x776   : > { %2523 = vrot.lane.b32.xlu1 %v10519_v62, %s7218_s26  ;;  %v5226_v36 = vld [vmem:[#allocation3 + $0x90] sm:$0xff] }
 0x777   : > { %2230 = vrot.lane.b32.xlu0 %v10519_v62, %s7204_s10  ;;  %6966 = vmatpush3.bf16.msra.mxu0 %v5226_v36 }
 0x778   : > { %6977 = vmatprep.subr.bf16.mxu0 %v10437_v55 }
 0x77a   : > { %3328 = vrot.lane.b32.xlu1 %v9822_v3, %s7208_s14  ;;  %6968 = vmatmul.mubr.msk.bf16.vlgmr.msra.gmra.mrb[20].mxu0 %vm10524_vm12, %v5803_v63  ;;  %vm10527_vm12 = vcmask 113664  }
 0x77b   : > { %2816 = vrot.lane.b32.xlu0 %v10519_v62, %s7233_s30  ;;  %6979 = vmatprep.mubr.msk.bf16.mxu0 %vm10512_vm10, %v10437_v55  ;;  %v2317_v62 = vld [vmem:[#allocation3 + $0x98] sm:$0x1] }
 0x77e   : > { %4279 = vrot.lane.b32.xlu1 %v4182_v24, %s7237_s18 }
 0x77f   : > { %3621 = vrot.lane.b32.xlu0 %v9822_v3, %s7222_s11 }
 0x782   : > { %4813 = vrot.lane.b32.xlu1 %v9835_v23, %s7246_s8 }
 0x783   : > { %4281 = vrot.lane.b32.xlu0 %v4186_v46, %s7237_s18 }
 0x786   : > { %2232 = vrot.lane.b32.xlu1 %v10520_v49, %s7204_s10  ;;  %s7251_s10 = smov 48  }
 0x787   : > { %5106 = vrot.lane.b32.xlu0 %v9835_v23, %s7247_s22  ;;  %v2610_v23 = vld [vmem:[#allocation3 + $0x98] sm:$0x2] }
 0x78a   : > { %2818 = vrot.lane.b32.xlu1 %v10520_v49, %s7233_s30 }
 0x78b   : > { %2525 = vrot.lane.b32.xlu0 %v10520_v49, %s7218_s26  ;;  %s7254_s26 = smov 112  }
 0x78e   : > { %3623 = vrot.lane.b32.xlu1 %v9854_v41, %s7222_s11 }
 0x78f   : > { %3330 = vrot.lane.b32.xlu0 %v9854_v41, %s7208_s14  ;;  %s7252_s14 = smov 64  }
 0x792   : > { %5108 = vrot.lane.b32.xlu1 %v9877_v43, %s7247_s22 }
 0x793   : > { %4815 = vrot.lane.b32.xlu0 %v9877_v43, %s7246_s8 }
 0x79e   : > { %v5768_v42 = vpop.xlane.xlu0 %5767  ;;  %v5765_v19 = vpop.xlane.xlu1 %5764 }
 0x79f   : > { %7166 = vrcp.f32 %v5768_v42  ;;  %v3864_v42 = vld [vmem:[#allocation3 + $0xb0] sm:$0x20] }
 0x7a0   : > { %7168 = vrcp.f32 %v5765_v19  ;;  %v3571_v19 = vld [vmem:[#allocation3 + $0xb0] sm:$0x10] }
 0x7a1   : > { %7170 = vrcp.f32 %v9652_v51 }
 0x7a2   : > { %v2225_v3 = vpop.permute.xlu0 %2224  ;;  %v2518_v49 = vpop.permute.xlu1 %2517  ;;  %7172 = vrcp.f32 %v9654_v44 }
 0x7a3   : > { %v2318_v8 = vsel %vm10452_vm1, %v2225_v3, %v2317_v62  ;;  %v2611_v41 = vsel %vm8193_vm5, %v2518_v49, %v2610_v23  ;;  %v10525_v62 = vld [vmem:[#allocation14_spill] sm:$0xff]  ;;  %v10526_v23 = vld [vmem:[#allocation15_spill] sm:$0xff] }
 0x7a4   : > { %2319 = vst [vmem:[#allocation3 + $0x98] sm:$0x1] %v2318_v8  ;;  %2612 = vst [vmem:[#allocation3 + $0x98] sm:$0x2] %v2611_v41 }
 0x7a6   : > { %v3323_v59 = vpop.permute.xlu0 %3322  ;;  %v2811_v43 = vpop.permute.xlu1 %2810 }
 0x7a7   : > { %v3416_v12 = vsel %vm8277_vm4, %v3323_v59, %v3415_v61  ;;  %v2904_v32 = vsel %vm8218_vm2, %v2811_v43, %v2903_v39 }
 0x7a8   : > { %3417 = vst [vmem:[#allocation3 + $0x98] sm:$0x8] %v3416_v12  ;;  %2905 = vst [vmem:[#allocation3 + $0x98] sm:$0x4] %v2904_v32 }
 0x7a9   : > { %v7167_v30 = vpop.eup %7166 }
 0x7aa   : > { %v7169_v29 = vpop.eup %7168  ;;  %v9991_v6 = vmul.f32 %v7167_v30, %v9768_v57  ;;  %v4808_v33 = vpop.permute.xlu0 %4807  ;;  %v2473_v57 = vld [vmem:[#allocation3 + $0xb0] sm:$0x2]  ;;  %v4393_v30 = vld [vmem:[#allocation3 + $0xa0] sm:$0x20] }
 0x7ab   : > { %v3616_v27 = vpop.permute.xlu1 %3615  ;;  %v9994_v28 = vmul.f32 %v7169_v29, %v9766_v10  ;;  %v4901_v21 = vsel %vm10521_vm0, %v4808_v33, %v4900_v34  ;;  %v10000_v16 = vpop.f32.mrb[16].mxu0  ;;  %v5056_v33 = vld [vmem:[#allocation3 + $0xb0] sm:$0x80]  ;;  %vm10529_vm0 = vnez %v10404_v15 }
 0x7ac   : > { %v3709_v51 = vsel %vm10507_vm3, %v3616_v27, %v3708_v58  ;;  %4902 = vst [vmem:[#allocation3 + $0x98] sm:$0x40] %v4901_v21  ;;  %v6957_v44 = vpop.f32.mrb[17].mxu0  ;;  %v7171_v26 = vpop.eup %7170  ;;  %v4763_v58 = vld [vmem:[#allocation3 + $0xb0] sm:$0x40] }
 0x7ad   : > { %3710 = vst [vmem:[#allocation3 + $0x98] sm:$0x10] %v3709_v51  ;;  %v10002_v52 = vpop.f32.mrb[18].mxu0  ;;  %v5808_v56 = vpack.c.bf16 %v9991_v6, %v9994_v28  ;;  %v7173_v63 = vpop.eup %7172  ;;  %v5791_v3 = vmul.f32 %v7171_v26, %v10525_v62  ;;  %v2613_v26 = vld [vmem:[#allocation3 + $0xa0] sm:$0x2] }
 0x7ae   : > { %v2377_v25 = vpop.permute.xlu0 %2376  ;;  %v6958_v10 = vpop.f32.mrb[19].mxu0  ;;  %v5792_v49 = vmul.f32 %v7173_v63, %v10526_v23  ;;  %v3418_v23 = vld [vmem:[#allocation3 + $0xa0] sm:$0x8] }
 0x7af   : > { %v2474_v22 = vsel %vm8159_vm11, %v2377_v25, %v2473_v57  ;;  %v5101_v45 = vpop.permute.xlu1 %5100  ;;  %v2476_v57 = vld [vmem:[#allocation3 + $0xb8] sm:$0x2] }
 0x7b0   : > { %2475 = vst [vmem:[#allocation3 + $0xb0] sm:$0x2] %v2474_v22  ;;  %v5194_v37 = vsel %vm10522_vm15, %v5101_v45, %v5193_v31  ;;  %v5804_v12 = vpack.c.bf16 %v5792_v49, %v5791_v3  ;;  %vm10528_vm15 = vcmask 130048   ;;  %v2320_v22 = vld [vmem:[#allocation3 + $0xa0] sm:$0x1] }
 0x7b1   : > { %5195 = vst [vmem:[#allocation3 + $0x98] sm:$0x80] %v5194_v37  ;;  %v2769_v37 = vld [vmem:[#allocation3 + $0xb8] sm:$0x4] }
 0x7b2   : > { %v3182_v36 = vpop.permute.xlu0 %3181 }
 0x7b3   : > { %v3279_v48 = vsel %vm8230_vm13, %v3182_v36, %v3278_v20  ;;  %v2670_v24 = vpop.permute.xlu1 %2669 }
 0x7b4   : > { %3280 = vst [vmem:[#allocation3 + $0xb0] sm:$0x8] %v3279_v48  ;;  %v2767_v46 = vsel %vm8150_vm6, %v2670_v24, %v2766_v1 }
 0x7b5   : > { %2768 = vst [vmem:[#allocation3 + $0xb0] sm:$0x4] %v2767_v46  ;;  %v2906_v46 = vld [vmem:[#allocation3 + $0xa0] sm:$0x4] }
 0x7b6   : > { %v3768_v8 = vpop.permute.xlu0 %3767 }
 0x7b7   : > { %v3865_v41 = vsel %vm8255_vm8, %v3768_v8, %v3864_v42  ;;  %v3475_v61 = vpop.permute.xlu1 %3474 }
 0x7b8   : > { %3866 = vst [vmem:[#allocation3 + $0xb0] sm:$0x20] %v3865_v41  ;;  %v3572_v59 = vsel %vm10473_vm7, %v3475_v61, %v3571_v19  ;;  %v5227_v39 = vld [vmem:[#allocation3 + $0x98] sm:$0xff] }
 0x7b9   : > { %3573 = vst [vmem:[#allocation3 + $0xb0] sm:$0x10] %v3572_v59  ;;  %6972 = vmatpush3.bf16.msra.mxu1 %v5227_v39  ;;  %v3711_v59 = vld [vmem:[#allocation3 + $0xa0] sm:$0x10] }
 0x7ba   : > { %v4270_v43 = vpop.permute.xlu0 %4269  ;;  %6983 = vmatprep.subr.bf16.mxu1 %v10437_v55 }
 0x7bb   : > { %v4268_v32 = vpop.permute.xlu1 %4267 }
 0x7bc   : > { %v4303_v29 = vsel %vm10527_vm12, %v4268_v32, %v4270_v43  ;;  %6974 = vmatmul.mubr.msk.bf16.vlgmr.msra.gmra.mrb[44].mxu1 %vm10528_vm15, %v5804_v12  ;;  %v10530_v12 = vld [vmem:[#allocation18_spill] sm:$0xff] }
 0x7bd   : > { %v4394_v34 = vsel %vm8290_vm14, %v4303_v29, %v4393_v30  ;;  %6985 = vmatprep.mubr.msk.bf16.mxu1 %vm10512_vm10, %v10437_v55  ;;  %7174 = vrcp.f32 %v10530_v12  ;;  %v4396_v30 = vld [vmem:[#allocation3 + $0xa8] sm:$0x20]  ;;  %v4906_v12 = vld [vmem:[#allocation3 + $0xa8] sm:$0x40] }
 0x7be   : > { %4395 = vst [vmem:[#allocation3 + $0xa0] sm:$0x20] %v4394_v34  ;;  %v4960_v27 = vpop.permute.xlu0 %4959  ;;  %v4766_v34 = vld [vmem:[#allocation3 + $0xb8] sm:$0x40] }
 0x7bf   : > { %v5057_v21 = vsel %vm7958_vm9, %v4960_v27, %v5056_v33  ;;  %v4667_v51 = vpop.permute.xlu1 %4666  ;;  %v10532_v33 = vld [vmem:[#allocation19_spill] sm:$0xff]  ;;  %v4903_v27 = vld [vmem:[#allocation3 + $0xa0] sm:$0x40] }
 0x7c0   : > { %5058 = vst [vmem:[#allocation3 + $0xb0] sm:$0x80] %v5057_v21  ;;  %v4764_v44 = vsel %vm10529_vm0, %v4667_v51, %v4763_v58  ;;  %7176 = vrcp.f32 %v10532_v33 }
 0x7c1   : > { %4765 = vst [vmem:[#allocation3 + $0xb0] sm:$0x40] %v4764_v44  ;;  %7178 = vrcp.f32 %v9748_v18  ;;  %v6230_v18 = vrot.slane %v10000_v16, 3 }
 0x7c2   : > { %v2379_v25 = vpop.permute.xlu0 %2378  ;;  %7180 = vrcp.f32 %v9750_v9  ;;  %v6268_v9 = vrot.slane %v10000_v16, 5 }
 0x7c3   : > { %v2477_v10 = vsel %vm8159_vm11, %v2379_v25, %v2476_v57  ;;  %v2227_v31 = vpop.permute.xlu1 %2226  ;;  %vm10533_vm11 = vnez %v10406_v38  ;;  %v5059_v57 = vld [vmem:[#allocation3 + $0xb8] sm:$0x80]  ;;  %v5196_v25 = vld [vmem:[#allocation3 + $0xa0] sm:$0x80] }
 0x7c4   : > { %2478 = vst [vmem:[#allocation3 + $0xb8] sm:$0x2] %v2477_v10  ;;  %v2321_v45 = vsel %vm10452_vm1, %v2227_v31, %v2320_v22 }
 0x7c5   : > { %2322 = vst [vmem:[#allocation3 + $0xa0] sm:$0x1] %v2321_v45 }
 0x7c6   : > { %v2672_v20 = vpop.permute.xlu0 %2671 }
 0x7c7   : > { %v2770_v1 = vsel %vm8150_vm6, %v2672_v20, %v2769_v37  ;;  %v2520_v36 = vpop.permute.xlu1 %2519  ;;  %vm10531_vm6 = vmmov %vm10527_vm12  ;;  %v7175_v37 = vpop.eup %7174  ;;  %vm6188_vm12 = vcmask 1047559  }
 0x7c8   : > { %2771 = vst [vmem:[#allocation3 + $0xb8] sm:$0x4] %v2770_v1  ;;  %v2614_v63 = vsel %vm8193_vm5, %v2520_v36, %v2613_v26  ;;  %v2616_v1 = vld [vmem:[#allocation3 + $0xa8] sm:$0x2]  ;;  %v2323_v36 = vld [vmem:[#allocation3 + $0xa8] sm:$0x1] }
 0x7c9   : > { %2615 = vst [vmem:[#allocation3 + $0xa0] sm:$0x2] %v2614_v63 }
 0x7ca   : > { %v3184_v48 = vpop.permute.xlu0 %3183  ;;  %v7177_v26 = vpop.eup %7176 }
 0x7cb   : > { %v3282_v24 = vsel %vm8230_vm13, %v3184_v48, %v3281_v40  ;;  %v2813_v42 = vpop.permute.xlu1 %2812  ;;  %vm10534_vm13 = vnez %v10408_v60  ;;  %v10535_v40 = vld [vmem:[#allocation12_spill] sm:$0xff] }
 0x7cc   : > { %3283 = vst [vmem:[#allocation3 + $0xb8] sm:$0x8] %v3282_v24  ;;  %v2907_v19 = vsel %vm8218_vm2, %v2813_v42, %v2906_v46  ;;  %v5793_v48 = vmul.f32 %v7175_v37, %v10535_v40  ;;  %v10536_v46 = vld [vmem:[#allocation11_spill] sm:$0xff]  ;;  %v3421_v42 = vld [vmem:[#allocation3 + $0xa8] sm:$0x8] }
 0x7cd   : > { %2908 = vst [vmem:[#allocation3 + $0xa0] sm:$0x4] %v2907_v19  ;;  %v5794_v47 = vmul.f32 %v7177_v26, %v10536_v46  ;;  %v5199_v26 = vld [vmem:[#allocation3 + $0xa8] sm:$0x80] }
 0x7ce   : > { %v3477_v62 = vpop.permute.xlu0 %3476 }
 0x7cf   : > { %v3575_v3 = vsel %vm10473_vm7, %v3477_v62, %v3574_v13  ;;  %v3325_v49 = vpop.permute.xlu1 %3324  ;;  %v2909_v62 = vld [vmem:[#allocation3 + $0xa8] sm:$0x4]  ;;  %vm10538_vm7 = vmmov %vm10531_vm6 }
 0x7d0   : > { %3576 = vst [vmem:[#allocation3 + $0xb8] sm:$0x10] %v3575_v3  ;;  %v3419_v8 = vsel %vm8277_vm4, %v3325_v49, %v3418_v23 }
 0x7d1   : > { %3420 = vst [vmem:[#allocation3 + $0xa0] sm:$0x8] %v3419_v8  ;;  %v5805_v8 = vpack.c.bf16 %v5794_v47, %v5793_v48 }
 0x7d2   : > { %v3770_v41 = vpop.permute.xlu0 %3769 }
 0x7d3   : > { %v3868_v61 = vsel %vm8255_vm8, %v3770_v41, %v3867_v0  ;;  %v3618_v39 = vpop.permute.xlu1 %3617  ;;  %v6192_v0 = vrot.slane %v10000_v16, 1  ;;  %v6211_v41 = vrot.slane %v10000_v16, 2  ;;  %vm10537_vm8 = vmmov %vm10528_vm15 }
 0x7d4   : > { %3869 = vst [vmem:[#allocation3 + $0xb8] sm:$0x20] %v3868_v61  ;;  %v3712_v43 = vsel %vm10507_vm3, %v3618_v39, %v3711_v59  ;;  %v6249_v61 = vrot.slane %v10000_v16, 4  ;;  %v6287_v59 = vrot.slane %v10000_v16, 6  ;;  %v6306_v39 = vrot.slane %v10000_v16, 7  ;;  %vm10542_vm15 = vmmov %vm10531_vm6 }
 0x7d5   : > { %3713 = vst [vmem:[#allocation3 + $0xa0] sm:$0x10] %v3712_v43  ;;  %v6349_v43 = vrot.slane %v10002_v52, 1 }
 0x7d6   : > { %v4274_v17 = vpop.permute.xlu0 %4273 }
 0x7d7   : > { %v4272_v32 = vpop.permute.xlu1 %4271 }
 0x7d8   : > { %v4304_v29 = vsel %vm10531_vm6, %v4272_v32, %v4274_v17  ;;  %v6367_v32 = vrot.slane %v10002_v52, 2 }
 0x7d9   : > { %v4397_v5 = vsel %vm8290_vm14, %v4304_v29, %v4396_v30  ;;  %v6385_v30 = vrot.slane %v10002_v52, 3  ;;  %v6403_v29 = vrot.slane %v10002_v52, 4 }
 0x7da   : > { %4398 = vst [vmem:[#allocation3 + $0xa8] sm:$0x20] %v4397_v5  ;;  %v4810_v58 = vpop.permute.xlu0 %4809  ;;  %v3714_v5 = vld [vmem:[#allocation3 + $0xa8] sm:$0x10] }
 0x7db   : > { %v4904_v21 = vsel %vm10533_vm11, %v4810_v58, %v4903_v27  ;;  %v4669_v51 = vpop.permute.xlu1 %4668  ;;  %v6421_v58 = vrot.slane %v10002_v52, 5  ;;  %v6439_v27 = vrot.slane %v10002_v52, 6 }
 0x7dc   : > { %4905 = vst [vmem:[#allocation3 + $0xa0] sm:$0x40] %v4904_v21  ;;  %v4767_v44 = vsel %vm10529_vm0, %v4669_v51, %v4766_v34  ;;  %v6457_v21 = vrot.slane %v10002_v52, 7  ;;  %vm10541_vm0 = vmmov %vm10537_vm8 }
 0x7dd   : > { %4768 = vst [vmem:[#allocation3 + $0xb8] sm:$0x40] %v4767_v44  ;;  %vm10545_vm6 = vmmov %vm10541_vm0 }
 0x7de   : > { %v5103_v10 = vpop.permute.xlu0 %5102 }
 0x7df   : > { %v5197_v22 = vsel %vm10534_vm13, %v5103_v10, %v5196_v25  ;;  %v4962_v31 = vpop.permute.xlu1 %4961 }
 0x7e0   : > { %5198 = vst [vmem:[#allocation3 + $0xa0] sm:$0x80] %v5197_v22  ;;  %v5060_v45 = vsel %vm7958_vm9, %v4962_v31, %v5059_v57  ;;  %vm6170_vm9 = vcmask 1041409  }
 0x7e1   : > { %5061 = vst [vmem:[#allocation3 + $0xb8] sm:$0x80] %v5060_v45 }
 0x7e2   : > { %v2522_v20 = vpop.permute.xlu0 %2521 }
 0x7e3   : > { %v2617_v15 = vsel %vm8193_vm5, %v2522_v20, %v2616_v1  ;;  %v2229_v63 = vpop.permute.xlu1 %2228 }
 0x7e4   : > { %2618 = vst [vmem:[#allocation3 + $0xa8] sm:$0x2] %v2617_v15  ;;  %v2324_v24 = vsel %vm10452_vm1, %v2229_v63, %v2323_v36 }
 0x7e5   : > { %2325 = vst [vmem:[#allocation3 + $0xa8] sm:$0x1] %v2324_v24 }
 0x7e6   : > { %v3327_v19 = vpop.permute.xlu0 %3326 }
 0x7e7   : > { %v3422_v13 = vsel %vm8277_vm4, %v3327_v19, %v3421_v42  ;;  %v2815_v3 = vpop.permute.xlu1 %2814  ;;  %v5228_v23 = vld [vmem:[#allocation3 + $0xa0] sm:$0xff] }
 0x7e8   : > { %3423 = vst [vmem:[#allocation3 + $0xa8] sm:$0x8] %v3422_v13  ;;  %v2910_v49 = vsel %vm8218_vm2, %v2815_v3, %v2909_v62  ;;  %6978 = vmatpush3.bf16.msra.mxu0 %v5228_v23  ;;  %v7179_v3 = vpop.eup %7178  ;;  %v5205_v2 = vld [vmem:[#allocation3 + $0xb8] sm:$0x80] }
 0x7e9   : > { %2911 = vst [vmem:[#allocation3 + $0xa8] sm:$0x4] %v2910_v49  ;;  %6989 = vmatprep.subr.bf16.mxu0 %v10437_v55 }
 0x7ea   : > { %v4812_v17 = vpop.permute.xlu0 %4811 }
 0x7eb   : > { %v4907_v33 = vsel %vm10533_vm11, %v4812_v17, %v4906_v12  ;;  %v3620_v34 = vpop.permute.xlu1 %3619  ;;  %6980 = vmatmul.mubr.msk.bf16.vlgmr.msra.gmra.mrb[24].mxu0 %vm10537_vm8, %v5805_v8  ;;  %v7181_v17 = vpop.eup %7180  ;;  %v2326_v12 = vld [vmem:[#allocation3 + $0xb0] sm:$0x1]  ;;  %vm6247_vm8 = vcmask 523648  }
 0x7ec   : > { %4908 = vst [vmem:[#allocation3 + $0xa8] sm:$0x40] %v4907_v33  ;;  %v3715_v51 = vsel %vm10507_vm3, %v3620_v34, %v3714_v5  ;;  %v5890_v44 = vpop.f32.mrb[40].mxu1  ;;  %6991 = vmatprep.mubr.msk.bf16.mxu0 %vm10512_vm10, %v10437_v55 }
 0x7ed   : > { %3716 = vst [vmem:[#allocation3 + $0xa8] sm:$0x10] %v3715_v51  ;;  %v6169_v57 = vrot.slane %v5890_v44, 7  ;;  %v6212_v25 = vrot.slane %v5890_v44, 1  ;;  %v6231_v10 = vrot.slane %v5890_v44, 2  ;;  %v6250_v22 = vrot.slane %v5890_v44, 3 }
 0x7ee   : > { %v6963_v31 = vpop.f32.mrb[41].mxu1  ;;  %v6269_v45 = vrot.slane %v5890_v44, 4  ;;  %v6288_v37 = vrot.slane %v5890_v44, 5  ;;  %v6307_v20 = vrot.slane %v5890_v44, 6  ;;  %v4276_v1 = vpop.permute.xlu0 %4275  ;;  %v10099_v36 = vsel %vm6170_vm9, %v5890_v44, %v6192_v0 }
 0x7ef   : > { %v5893_v15 = vpop.f32.mrb[42].mxu1  ;;  %v5105_v63 = vpop.permute.xlu1 %5104  ;;  %v10107_v49 = vsel %vm6170_vm9, %v6212_v25, %v6211_v41  ;;  %v10113_v0 = vsel %vm6170_vm9, %v6231_v10, %v6230_v18  ;;  %v10119_v34 = vsel %vm6170_vm9, %v6250_v22, %v6249_v61  ;;  %v4399_v61 = vld [vmem:[#allocation3 + $0xb0] sm:$0x20]  ;;  %v10539_v10 = vld [vmem:[#allocation17_spill] sm:$0xff]  ;;  %v10540_v31 = vld [vmem:[#allocation16_spill] sm:$0xff] }
 0x7f0   : > { %v6333_v40 = vrot.slane %v5893_v15, 7  ;;  %v6368_v48 = vrot.slane %v5893_v15, 1  ;;  %v6386_v24 = vrot.slane %v5893_v15, 2  ;;  %v6404_v46 = vrot.slane %v5893_v15, 3  ;;  %v6964_v47 = vpop.f32.mrb[43].mxu1 }
 0x7f1   : > { %v5200_v42 = vsel %vm10534_vm13, %v5105_v63, %v5199_v26  ;;  %v6422_v19 = vrot.slane %v5893_v15, 4  ;;  %v6440_v13 = vrot.slane %v5893_v15, 5  ;;  %v6458_v62 = vrot.slane %v5893_v15, 6  ;;  %v3717_v26 = vld [vmem:[#allocation3 + $0xb0] sm:$0x10] }
 0x7f2   : > { %5201 = vst [vmem:[#allocation3 + $0xa8] sm:$0x80] %v5200_v42  ;;  %v10104_v23 = vsel %vm6170_vm9, %v5893_v15, %v6349_v43  ;;  %v10110_v8 = vsel %vm6170_vm9, %v6368_v48, %v6367_v32  ;;  %v2231_v33 = vpop.permute.xlu0 %2230  ;;  %v10116_v5 = vsel %vm6170_vm9, %v6386_v24, %v6385_v30  ;;  %v10122_v43 = vsel %vm6170_vm9, %v6404_v46, %v6403_v29  ;;  %v4402_v42 = vld [vmem:[#allocation3 + $0xb8] sm:$0x20] }
 0x7f3   : > { %v10125_v41 = vsel %vm6170_vm9, %v6269_v45, %v6268_v9  ;;  %v2327_v32 = vsel %vm10452_vm1, %v2231_v33, %v2326_v12  ;;  %v4278_v18 = vpop.permute.xlu1 %4277  ;;  %v10130_v51 = vsel %vm6170_vm9, %v6422_v19, %v6421_v58  ;;  %v10133_v44 = vsel %vm6170_vm9, %v6288_v37, %v6287_v59  ;;  %v2912_v37 = vld [vmem:[#allocation3 + $0xb0] sm:$0x4]  ;;  %v4909_v12 = vld [vmem:[#allocation3 + $0xb0] sm:$0x40] }
 0x7f4   : > { %v10136_v30 = vsel %vm6170_vm9, %v6440_v13, %v6439_v27  ;;  %2328 = vst [vmem:[#allocation3 + $0xb0] sm:$0x1] %v2327_v32  ;;  %v4305_v29 = vsel %vm10538_vm7, %v4276_v1, %v4278_v18  ;;  %v10142_v9 = vsel %vm6170_vm9, %v6307_v20, %v6306_v39  ;;  %v10145_v25 = vsel %vm6170_vm9, %v6458_v62, %v6457_v21  ;;  %v2619_v20 = vld [vmem:[#allocation3 + $0xb0] sm:$0x2]  ;;  %v5202_v62 = vld [vmem:[#allocation3 + $0xb0] sm:$0x80] }
 0x7f5   : > { %v10149_v58 = vsel %vm6170_vm9, %v6169_v57, %v10000_v16  ;;  %v4400_v59 = vsel %vm8290_vm14, %v4305_v29, %v4399_v61  ;;  %v10155_v27 = vsel %vm6170_vm9, %v6333_v40, %v10002_v52  ;;  %v5796_v22 = vmul.f32 %v7179_v3, %v10539_v10  ;;  %v3424_v40 = vld [vmem:[#allocation3 + $0xb0] sm:$0x8]  ;;  %v2622_v18 = vld [vmem:[#allocation3 + $0xb8] sm:$0x2] }
 0x7f6   : > { %v5795_v45 = vmul.f32 %v7181_v17, %v10540_v31  ;;  %4401 = vst [vmem:[#allocation3 + $0xb0] sm:$0x20] %v4400_v59  ;;  %v2817_v39 = vpop.permute.xlu0 %2816  ;;  %vm6228_vm9 = vcmask 392448   ;;  %vm6266_vm7 = vcmask 654848  }
 0x7f7   : > { %v2913_v21 = vsel %vm8218_vm2, %v2817_v39, %v2912_v37  ;;  %v2524_v16 = vpop.permute.xlu1 %2523  ;;  %v2915_v39 = vld [vmem:[#allocation3 + $0xb8] sm:$0x4] }
 0x7f8   : > { %2914 = vst [vmem:[#allocation3 + $0xb0] sm:$0x4] %v2913_v21  ;;  %v2620_v57 = vsel %vm8193_vm5, %v2524_v16, %v2619_v20  ;;  %v5806_v15 = vpack.c.bf16 %v5796_v22, %v5795_v45  ;;  %v3427_v22 = vld [vmem:[#allocation3 + $0xb8] sm:$0x8]  ;;  %v4912_v16 = vld [vmem:[#allocation3 + $0xb8] sm:$0x40] }
 0x7f9   : > { %v5229_v1 = vld [vmem:[#allocation3 + $0xa8] sm:$0xff]  ;;  %2621 = vst [vmem:[#allocation3 + $0xb0] sm:$0x2] %v2620_v57  ;;  %v3720_v57 = vld [vmem:[#allocation3 + $0xb8] sm:$0x10] }
 0x7fa   : > { %6984 = vmatpush3.bf16.msra.mxu1 %v5229_v1  ;;  %v3622_v52 = vpop.permute.xlu0 %3621 }
 0x7fb   : > { %6995 = vmatprep.subr.bf16.mxu1 %v10437_v55  ;;  %v3718_v63 = vsel %vm10507_vm3, %v3622_v52, %v3717_v26  ;;  %v3329_v48 = vpop.permute.xlu1 %3328 }
 0x7fc   : > { %3719 = vst [vmem:[#allocation3 + $0xb0] sm:$0x10] %v3718_v63  ;;  %v3425_v24 = vsel %vm8277_vm4, %v3329_v48, %v3424_v40 }
 0x7fd   : > { %6986 = vmatmul.mubr.msk.bf16.vlgmr.msra.gmra.mrb[48].mxu1 %vm10541_vm0, %v5806_v15  ;;  %3426 = vst [vmem:[#allocation3 + $0xb0] sm:$0x8] %v3425_v24 }
 0x7fe   : > { %6997 = vmatprep.mubr.msk.bf16.mxu1 %vm10512_vm10, %v10437_v55  ;;  %v4282_v46 = vpop.permute.xlu0 %4281  ;;  %vm6182_vm10 = vcmask 1045509  }
 0x7ff   : > { %v4280_v47 = vpop.permute.xlu1 %4279 }
 0x800   : > { %v4306_v19 = vsel %vm10542_vm15, %v4280_v47, %v4282_v46  ;;  %vm6304_vm15 = vcmask 917248  }
 0x801   : > { %v4403_v13 = vsel %vm8290_vm14, %v4306_v19, %v4402_v42  ;;  %vm6176_vm14 = vcmask 1043459  }
 0x802   : > { %4404 = vst [vmem:[#allocation3 + $0xb8] sm:$0x20] %v4403_v13  ;;  %v5107_v3 = vpop.permute.xlu0 %5106 }
 0x803   : > { %v5203_v17 = vsel %vm10534_vm13, %v5107_v3, %v5202_v62  ;;  %v4814_v33 = vpop.permute.xlu1 %4813 }
 0x804   : > { %5204 = vst [vmem:[#allocation3 + $0xb0] sm:$0x80] %v5203_v17  ;;  %v4910_v32 = vsel %vm10533_vm11, %v4814_v33, %v4909_v12 }
 0x805   : > { %4911 = vst [vmem:[#allocation3 + $0xb0] sm:$0x40] %v4910_v32 }
 0x806   : > { %v2526_v61 = vpop.permute.xlu0 %2525 }
 0x807   : > { %v2623_v29 = vsel %vm8193_vm5, %v2526_v61, %v2622_v18  ;;  %v2233_v59 = vpop.permute.xlu1 %2232  ;;  %vm10543_vm5 = vmmov %vm10541_vm0 }
 0x808   : > { %2624 = vst [vmem:[#allocation3 + $0xb8] sm:$0x2] %v2623_v29  ;;  %v2330_v10 = vsel %vm10452_vm1, %v2233_v59, %v2329_v7  ;;  %vm6179_vm1 = vcmask 1044484  }
 0x809   : > { %2331 = vst [vmem:[#allocation3 + $0xb8] sm:$0x1] %v2330_v10 }
 0x80a   : > { %v3331_v31 = vpop.permute.xlu0 %3330 }
 0x80b   : > { %v3428_v45 = vsel %vm8277_vm4, %v3331_v31, %v3427_v22  ;;  %v2819_v37 = vpop.permute.xlu1 %2818  ;;  %vm6173_vm4 = vcmask 1042434  }
 0x80c   : > { %3429 = vst [vmem:[#allocation3 + $0xb8] sm:$0x8] %v3428_v45  ;;  %v2916_v21 = vsel %vm8218_vm2, %v2819_v37, %v2915_v39  ;;  %v5230_v11 = vld [vmem:[#allocation3 + $0xb0] sm:$0xff]  ;;  %vm10544_vm2 = vmmov %vm10541_vm0 }
 0x80d   : > { %2917 = vst [vmem:[#allocation3 + $0xb8] sm:$0x4] %v2916_v21  ;;  %6990 = vmatpush3.bf16.msra.mxu0 %v5230_v11 }
 0x80e   : > { %v4816_v20 = vpop.permute.xlu0 %4815 }
 0x80f   : > { %v4913_v14 = vsel %vm10533_vm11, %v4816_v20, %v4912_v16  ;;  %v3624_v1 = vpop.permute.xlu1 %3623  ;;  %vm10546_vm11 = vmmov %vm10541_vm0  ;;  %vm6285_vm0 = vcmask 786048  }
 0x810   : > { %4914 = vst [vmem:[#allocation3 + $0xb8] sm:$0x40] %v4913_v14  ;;  %v3721_v54 = vsel %vm10507_vm3, %v3624_v1, %v3720_v57  ;;  %6992 = vmatmul.mubr.msk.bf16.vlgmr.msra.gmra.mrb[28].mxu0 %vm10543_vm5, %v5807_v35  ;;  %vm6185_vm3 = vcmask 1046534   ;;  %vm6323_vm5 = vcmask 1048448  }
 0x811   : > { %3722 = vst [vmem:[#allocation3 + $0xb8] sm:$0x10] %v3721_v54  ;;  %6609 = vmatprep.mubr.f32.mxu0 %v10437_v55 }
 0x813   : > { %v5109_v52 = vpop.permute.xlu1 %5108 }
 0x814   : > { %v5206_v38 = vsel %vm10534_vm13, %v5109_v52, %v5205_v2  ;;  %vm6209_vm13 = vcmask 261248  }
 0x815   : > { %5207 = vst [vmem:[#allocation3 + $0xb8] sm:$0x80] %v5206_v38 }
 0x81c   : > { %v5231_v26 = vld [vmem:[#allocation3 + $0xb8] sm:$0xff] }
 0x81d   : > { %6996 = vmatpush3.bf16.msra.mxu1 %v5231_v26 }
 0x820   : > { %6998 = vmatmul.mubr.msk.bf16.vlgmr.msra.gmra.mrb[52].mxu1 %vm10544_vm2, %v5808_v56 }
 0x84d   : > { %v5934_v50 = vpop.f32.mrb[20].mxu0 }
 0x84e   : > { %v6172_v4 = vrot.slane %v5934_v50, 6  ;;  %v6969_v53 = vpop.f32.mrb[21].mxu0  ;;  %v6194_v35 = vrot.slane %v5934_v50, 7  ;;  %v6214_v55 = vsel %vm6173_vm4, %v5934_v50, %v10107_v49  ;;  %v6233_v15 = vrot.slane %v5934_v50, 1 }
 0x84f   : > { %v5937_v63 = vpop.f32.mrb[22].mxu0  ;;  %v6252_v60 = vrot.slane %v5934_v50, 2  ;;  %v6271_v40 = vrot.slane %v5934_v50, 3  ;;  %v6290_v48 = vrot.slane %v5934_v50, 4  ;;  %v6309_v24 = vrot.slane %v5934_v50, 5 }
 0x850   : > { %v6335_v46 = vrot.slane %v5937_v63, 6  ;;  %v6970_v47 = vpop.f32.mrb[23].mxu0  ;;  %v6195_v6 = vsel %vm6173_vm4, %v6194_v35, %v10099_v36  ;;  %v6351_v28 = vrot.slane %v5937_v63, 7  ;;  %v6370_v56 = vsel %vm6173_vm4, %v5937_v63, %v10110_v8 }
 0x851   : > { %v6234_v42 = vsel %vm6173_vm4, %v6233_v15, %v10113_v0  ;;  %v6388_v19 = vrot.slane %v5937_v63, 1  ;;  %v6253_v49 = vsel %vm6173_vm4, %v6252_v60, %v10119_v34  ;;  %v6406_v13 = vrot.slane %v5937_v63, 2 }
 0x852   : > { %v6352_v62 = vsel %vm6173_vm4, %v6351_v28, %v10104_v23  ;;  %v6272_v3 = vsel %vm6173_vm4, %v6271_v40, %v10125_v41  ;;  %v6424_v17 = vrot.slane %v5937_v63, 3  ;;  %v6291_v36 = vsel %vm6173_vm4, %v6290_v48, %v10133_v44 }
 0x853   : > { %v6389_v8 = vsel %vm6173_vm4, %v6388_v19, %v10116_v5  ;;  %v6407_v0 = vsel %vm6173_vm4, %v6406_v13, %v10122_v43  ;;  %v6442_v12 = vrot.slane %v5937_v63, 4  ;;  %v6310_v34 = vsel %vm6173_vm4, %v6309_v24, %v10142_v9 }
 0x854   : > { %v6425_v23 = vsel %vm6173_vm4, %v6424_v17, %v10130_v51  ;;  %v6460_v33 = vrot.slane %v5937_v63, 5  ;;  %v6174_v41 = vsel %vm6173_vm4, %v6172_v4, %v10149_v58  ;;  %v6336_v44 = vsel %vm6173_vm4, %v6335_v46, %v10155_v27 }
 0x855   : > { %v6443_v5 = vsel %vm6173_vm4, %v6442_v12, %v10136_v30 }
 0x856   : > { %v6461_v43 = vsel %vm6173_vm4, %v6460_v33, %v10145_v25 }
 0x88f   : > { %v5978_v32 = vpop.f32.mrb[44].mxu1 }
 0x890   : > { %v6975_v18 = vpop.f32.mrb[45].mxu1  ;;  %v6196_v9 = vrot.slane %v5978_v32, 6  ;;  %v6215_v61 = vrot.slane %v5978_v32, 7  ;;  %v6235_v51 = vsel %vm6176_vm14, %v5978_v32, %v6234_v42  ;;  %v6254_v29 = vrot.slane %v5978_v32, 1 }
 0x891   : > { %v5981_v7 = vpop.f32.mrb[46].mxu1  ;;  %v6273_v59 = vrot.slane %v5978_v32, 2  ;;  %v6292_v58 = vrot.slane %v5978_v32, 3  ;;  %v6311_v10 = vrot.slane %v5978_v32, 4  ;;  %v6175_v22 = vrot.slane %v5978_v32, 5 }
 0x892   : > { %v6976_v27 = vpop.f32.mrb[47].mxu1  ;;  %v6197_v31 = vsel %vm6176_vm14, %v6196_v9, %v6195_v6  ;;  %v6353_v30 = vrot.slane %v5981_v7, 6  ;;  %v6216_v45 = vsel %vm6176_vm14, %v6215_v61, %v6214_v55  ;;  %v6371_v25 = vrot.slane %v5981_v7, 7 }
 0x893   : > { %v6390_v39 = vsel %vm6176_vm14, %v5981_v7, %v6389_v8  ;;  %v6255_v37 = vsel %vm6176_vm14, %v6254_v29, %v6253_v49  ;;  %v6408_v21 = vrot.slane %v5981_v7, 1  ;;  %v6274_v11 = vsel %vm6176_vm14, %v6273_v59, %v6272_v3 }
 0x894   : > { %v6354_v20 = vsel %vm6176_vm14, %v6353_v30, %v6352_v62  ;;  %v6372_v16 = vsel %vm6176_vm14, %v6371_v25, %v6370_v56  ;;  %v6426_v14 = vrot.slane %v5981_v7, 2  ;;  %v6293_v57 = vsel %vm6176_vm14, %v6292_v58, %v6291_v36 }
 0x895   : > { %v6409_v1 = vsel %vm6176_vm14, %v6408_v21, %v6407_v0  ;;  %v6444_v54 = vrot.slane %v5981_v7, 3  ;;  %v6312_v2 = vsel %vm6176_vm14, %v6311_v10, %v6310_v34  ;;  %v6462_v52 = vrot.slane %v5981_v7, 4 }
 0x896   : > { %v6427_v38 = vsel %vm6176_vm14, %v6426_v14, %v6425_v23  ;;  %v6177_v26 = vsel %vm6176_vm14, %v6175_v22, %v6174_v41  ;;  %v6337_v50 = vrot.slane %v5981_v7, 5 }
 0x897   : > { %v6445_v4 = vsel %vm6176_vm14, %v6444_v54, %v6443_v5  ;;  %v6463_v53 = vsel %vm6176_vm14, %v6462_v52, %v6461_v43 }
 0x898   : > { %v6338_v35 = vsel %vm6176_vm14, %v6337_v50, %v6336_v44  ;;  %vm10547_vm14 = vcmask 64512  }
 0x8be   : > { %v6022_v55 = vpop.f32.mrb[24].mxu0 }
 0x8bf   : > { %v6981_v15 = vpop.f32.mrb[25].mxu0  ;;  %v6198_v63 = vrot.slane %v6022_v55, 5  ;;  %v6217_v60 = vrot.slane %v6022_v55, 6  ;;  %v6236_v40 = vrot.slane %v6022_v55, 7  ;;  %v6256_v48 = vsel %vm6179_vm1, %v6022_v55, %v6255_v37 }
 0x8c0   : > { %v6025_v24 = vpop.f32.mrb[26].mxu0  ;;  %v6275_v46 = vrot.slane %v6022_v55, 1  ;;  %v6294_v47 = vrot.slane %v6022_v55, 2  ;;  %v6313_v6 = vrot.slane %v6022_v55, 3  ;;  %v6178_v28 = vrot.slane %v6022_v55, 4 }
 0x8c1   : > { %v6982_v56 = vpop.f32.mrb[27].mxu0  ;;  %v6199_v42 = vsel %vm6179_vm1, %v6198_v63, %v6197_v31  ;;  %v6355_v19 = vrot.slane %v6025_v24, 5  ;;  %v6218_v49 = vsel %vm6179_vm1, %v6217_v60, %v6216_v45  ;;  %v6373_v13 = vrot.slane %v6025_v24, 6 }
 0x8c2   : > { %v6237_v62 = vsel %vm6179_vm1, %v6236_v40, %v6235_v51  ;;  %v6391_v3 = vrot.slane %v6025_v24, 7  ;;  %v6410_v17 = vsel %vm6179_vm1, %v6025_v24, %v6409_v1  ;;  %v6276_v36 = vsel %vm6179_vm1, %v6275_v46, %v6274_v11 }
 0x8c3   : > { %v6356_v8 = vsel %vm6179_vm1, %v6355_v19, %v6354_v20  ;;  %v6374_v0 = vsel %vm6179_vm1, %v6373_v13, %v6372_v16  ;;  %v6428_v12 = vrot.slane %v6025_v24, 1  ;;  %v6295_v34 = vsel %vm6179_vm1, %v6294_v47, %v6293_v57 }
 0x8c4   : > { %v6392_v23 = vsel %vm6179_vm1, %v6391_v3, %v6390_v39  ;;  %v6446_v33 = vrot.slane %v6025_v24, 2  ;;  %v6314_v41 = vsel %vm6179_vm1, %v6313_v6, %v6312_v2  ;;  %v6464_v44 = vrot.slane %v6025_v24, 3 }
 0x8c5   : > { %v6429_v5 = vsel %vm6179_vm1, %v6428_v12, %v6427_v38  ;;  %v6180_v43 = vsel %vm6179_vm1, %v6178_v28, %v6177_v26  ;;  %v6339_v32 = vrot.slane %v6025_v24, 4 }
 0x8c6   : > { %v6447_v18 = vsel %vm6179_vm1, %v6446_v33, %v6445_v4  ;;  %v6465_v9 = vsel %vm6179_vm1, %v6464_v44, %v6463_v53 }
 0x8c7   : > { %v6340_v61 = vsel %vm6179_vm1, %v6339_v32, %v6338_v35 }
 0x8d0   : > { %v6066_v51 = vpop.f32.mrb[48].mxu1 }
 0x8d1   : > { %v6987_v29 = vpop.f32.mrb[49].mxu1  ;;  %v6200_v7 = vrot.slane %v6066_v51, 4  ;;  %v6219_v59 = vrot.slane %v6066_v51, 5  ;;  %v6238_v58 = vrot.slane %v6066_v51, 6  ;;  %v6257_v10 = vrot.slane %v6066_v51, 7 }
 0x8d2   : > { %v6069_v22 = vpop.f32.mrb[50].mxu1  ;;  %v6277_v27 = vsel %vm6182_vm10, %v6066_v51, %v6276_v36  ;;  %v6296_v31 = vrot.slane %v6066_v51, 1  ;;  %v6315_v30 = vrot.slane %v6066_v51, 2  ;;  %v6181_v45 = vrot.slane %v6066_v51, 3 }
 0x8d3   : > { %v6988_v25 = vpop.f32.mrb[51].mxu1  ;;  %v6201_v39 = vsel %vm6182_vm10, %v6200_v7, %v6199_v42  ;;  %v6357_v37 = vrot.slane %v6069_v22, 4  ;;  %v6220_v21 = vsel %vm6182_vm10, %v6219_v59, %v6218_v49  ;;  %v6375_v11 = vrot.slane %v6069_v22, 5 }
 0x8d4   : > { %v6239_v20 = vsel %vm6182_vm10, %v6238_v58, %v6237_v62  ;;  %v6393_v16 = vrot.slane %v6069_v22, 6  ;;  %v6258_v14 = vsel %vm6182_vm10, %v6257_v10, %v6256_v48  ;;  %v6411_v57 = vrot.slane %v6069_v22, 7 }
 0x8d5   : > { %v6358_v1 = vsel %vm6182_vm10, %v6357_v37, %v6356_v8  ;;  %v6376_v54 = vsel %vm6182_vm10, %v6375_v11, %v6374_v0  ;;  %v6430_v2 = vsel %vm6182_vm10, %v6069_v22, %v6429_v5  ;;  %v6297_v52 = vsel %vm6182_vm10, %v6296_v31, %v6295_v34 }
 0x8d6   : > { %v6394_v38 = vsel %vm6182_vm10, %v6393_v16, %v6392_v23  ;;  %v6412_v26 = vsel %vm6182_vm10, %v6411_v57, %v6410_v17  ;;  %v6448_v50 = vrot.slane %v6069_v22, 1  ;;  %v6316_v4 = vsel %vm6182_vm10, %v6315_v30, %v6314_v41 }
 0x8d7   : > { %v6466_v53 = vrot.slane %v6069_v22, 2  ;;  %v6183_v35 = vsel %vm6182_vm10, %v6181_v45, %v6180_v43  ;;  %v6341_v55 = vrot.slane %v6069_v22, 3 }
 0x8d8   : > { %v6449_v15 = vsel %vm6182_vm10, %v6448_v50, %v6447_v18 }
 0x8d9   : > { %v6467_v63 = vsel %vm6182_vm10, %v6466_v53, %v6465_v9  ;;  %v6342_v60 = vsel %vm6182_vm10, %v6341_v55, %v6340_v61 }
 0x8e3   : > { %v6110_v40 = vpop.f32.mrb[28].mxu0 }
 0x8e4   : > { %v6993_v48 = vpop.f32.mrb[29].mxu0  ;;  %v6202_v24 = vrot.slane %v6110_v40, 3  ;;  %v6221_v46 = vrot.slane %v6110_v40, 4  ;;  %v6240_v47 = vrot.slane %v6110_v40, 5  ;;  %v6259_v6 = vrot.slane %v6110_v40, 6 }
 0x8e5   : > { %v6113_v28 = vpop.f32.mrb[30].mxu0  ;;  %v6278_v56 = vrot.slane %v6110_v40, 7  ;;  %v6298_v42 = vsel %vm6185_vm3, %v6110_v40, %v6297_v52  ;;  %v6317_v19 = vrot.slane %v6110_v40, 1  ;;  %v6184_v49 = vrot.slane %v6110_v40, 2 }
 0x8e6   : > { %v6994_v13 = vpop.f32.mrb[31].mxu0  ;;  %v6203_v62 = vsel %vm6185_vm3, %v6202_v24, %v6201_v39  ;;  %v6359_v3 = vrot.slane %v6113_v28, 3  ;;  %v6222_v17 = vsel %vm6185_vm3, %v6221_v46, %v6220_v21  ;;  %v6377_v36 = vrot.slane %v6113_v28, 4 }
 0x8e7   : > { %v6241_v8 = vsel %vm6185_vm3, %v6240_v47, %v6239_v20  ;;  %v6395_v0 = vrot.slane %v6113_v28, 5  ;;  %v6260_v12 = vsel %vm6185_vm3, %v6259_v6, %v6258_v14  ;;  %v6413_v34 = vrot.slane %v6113_v28, 6  ;;  %v6536_v47 = vld [vmem:[%s10339_s5] sm:$0xff] }
 0x8e8   : > { %v6360_v23 = vsel %vm6185_vm3, %v6359_v3, %v6358_v1  ;;  %v6378_v33 = vsel %vm6185_vm3, %v6377_v36, %v6376_v54  ;;  %v6279_v41 = vsel %vm6185_vm3, %v6278_v56, %v6277_v27  ;;  %v6431_v44 = vrot.slane %v6113_v28, 7 }
 0x8e9   : > { %v6396_v5 = vsel %vm6185_vm3, %v6395_v0, %v6394_v38  ;;  %v6414_v43 = vsel %vm6185_vm3, %v6413_v34, %v6412_v26  ;;  %v6450_v32 = vsel %vm6185_vm3, %v6113_v28, %v6449_v15  ;;  %v6318_v18 = vsel %vm6185_vm3, %v6317_v19, %v6316_v4 }
 0x8ea   : > { %v6432_v9 = vsel %vm6185_vm3, %v6431_v44, %v6430_v2  ;;  %v6468_v61 = vrot.slane %v6113_v28, 1  ;;  %v6186_v51 = vsel %vm6185_vm3, %v6184_v49, %v6183_v35  ;;  %v6343_v29 = vrot.slane %v6113_v28, 2 }
 0x8ec   : > { %v6469_v7 = vsel %vm6185_vm3, %v6468_v61, %v6467_v63  ;;  %v6344_v59 = vsel %vm6185_vm3, %v6343_v29, %v6342_v60 }
 0x8f3   : > { %v6154_v58 = vpop.f32.mrb[52].mxu1 }
 0x8f4   : > { %v6999_v10 = vpop.f32.mrb[53].mxu1  ;;  %v6204_v22 = vrot.slane %v6154_v58, 2  ;;  %v6223_v27 = vrot.slane %v6154_v58, 3  ;;  %v6242_v31 = vrot.slane %v6154_v58, 4  ;;  %v6261_v30 = vrot.slane %v6154_v58, 5 }
 0x8f5   : > { %v6157_v45 = vpop.f32.mrb[54].mxu1  ;;  %v6280_v25 = vrot.slane %v6154_v58, 6  ;;  %v6299_v39 = vrot.slane %v6154_v58, 7  ;;  %v6319_v37 = vsel %vm6188_vm12, %v6154_v58, %v6318_v18  ;;  %v6187_v21 = vrot.slane %v6154_v58, 1 }
 0x8f6   : > { %v7000_v11 = vpop.f32.mrb[55].mxu1  ;;  %v6205_v20 = vsel %vm6188_vm12, %v6204_v22, %v6203_v62  ;;  %v6361_v16 = vrot.slane %v6157_v45, 2  ;;  %v6224_v14 = vsel %vm6188_vm12, %v6223_v27, %v6222_v17  ;;  %v6379_v57 = vrot.slane %v6157_v45, 3 }
 0x8f7   : > { %6206 = vrot.lane.b32.xlu1 %v6205_v20, %s7235_s13  ;;  %v6243_v1 = vsel %vm6188_vm12, %v6242_v31, %v6241_v8  ;;  %v6397_v54 = vrot.slane %v6157_v45, 4  ;;  %v6262_v2 = vsel %vm6188_vm12, %v6261_v30, %v6260_v12  ;;  %v6415_v52 = vrot.slane %v6157_v45, 5 }
 0x8f8   : > { %v6362_v38 = vsel %vm6188_vm12, %v6361_v16, %v6360_v23  ;;  %v6380_v26 = vsel %vm6188_vm12, %v6379_v57, %v6378_v33  ;;  %v6281_v50 = vsel %vm6188_vm12, %v6280_v25, %v6279_v41  ;;  %v6433_v4 = vrot.slane %v6157_v45, 6 }
 0x8f9   : > { %6363 = vrot.lane.b32.xlu0 %v6362_v38, %s7235_s13  ;;  %v6398_v53 = vsel %vm6188_vm12, %v6397_v54, %v6396_v5  ;;  %v6416_v35 = vsel %vm6188_vm12, %v6415_v52, %v6414_v43  ;;  %v6300_v55 = vsel %vm6188_vm12, %v6299_v39, %v6298_v42  ;;  %v6451_v15 = vrot.slane %v6157_v45, 7 }
 0x8fa   : > { %v6434_v63 = vsel %vm6188_vm12, %v6433_v4, %v6432_v9  ;;  %v6470_v60 = vsel %vm6188_vm12, %v6157_v45, %v6469_v7  ;;  %v6189_v40 = vsel %vm6188_vm12, %v6187_v21, %v6186_v51  ;;  %v6345_v48 = vrot.slane %v6157_v45, 1 }
 0x8fb   : > { %6225 = vrot.lane.b32.xlu1 %v6224_v14, %s7250_s7  ;;  %v6452_v24 = vsel %vm6188_vm12, %v6451_v15, %v6450_v32  ;;  %6191 = vst.msk [vmem:[#allocation4] sm:$0xff] %vm10545_vm6, %v6189_v40 }
 0x8fc   : > { %v6346_v46 = vsel %vm6188_vm12, %v6345_v48, %v6344_v59 }
 0x8fd   : > { %6381 = vrot.lane.b32.xlu0 %v6380_v26, %s7250_s7  ;;  %6348 = vst.msk [vmem:[#allocation4 + $0x8] sm:$0xff] %vm10546_vm11, %v6346_v46 }
 0x8ff   : > { %6244 = vrot.lane.b32.xlu1 %v6243_v1, %s7251_s10 }
 0x901   : > { %6399 = vrot.lane.b32.xlu0 %v6398_v53, %s7251_s10 }
 0x903   : > { %6263 = vrot.lane.b32.xlu1 %v6262_v2, %s7252_s14 }
 0x905   : > { %6417 = vrot.lane.b32.xlu0 %v6416_v35, %s7252_s14 }
 0x907   : > { %6282 = vrot.lane.b32.xlu1 %v6281_v50, %s7215_s21 }
 0x909   : > { %6435 = vrot.lane.b32.xlu0 %v6434_v63, %s7215_s21  ;;  %s6475_s21 = sld [smem:[#allocation5]] }
 0x90b   : > { %6301 = vrot.lane.b32.xlu1 %v6300_v55, %s7253_s17 }
 0x90d   : > { %6453 = vrot.lane.b32.xlu0 %v6452_v24, %s7253_s17 }
 0x90f   : > { %6320 = vrot.lane.b32.xlu1 %v6319_v37, %s7254_s26  ;;  %v6478_v34 = vstv %s6475_s21 }
 0x911   : > { %6471 = vrot.lane.b32.xlu0 %v6470_v60, %s7254_s26  ;;  %v7255_v60 = vmov -1.0  }
 0x915   : > { %6539 = vperm.xlu0 %7081, %v6536_v47  }
 0x969   : > { %v6207_v6 = vpop.permute.xlu1 %6206 }
 0x96a   : > { %6210 = vst.msk [vmem:[#allocation4] sm:$0xff] %vm6209_vm13, %v6207_v6 }
 0x96b   : > { %v6364_v28 = vpop.permute.xlu0 %6363 }
 0x96c   : > { %6366 = vst.msk [vmem:[#allocation4 + $0x8] sm:$0xff] %vm6209_vm13, %v6364_v28 }
 0x96d   : > { %v6226_v56 = vpop.permute.xlu1 %6225 }
 0x96e   : > { %6229 = vst.msk [vmem:[#allocation4] sm:$0xff] %vm6228_vm9, %v6226_v56 }
 0x96f   : > { %v6382_v42 = vpop.permute.xlu0 %6381 }
 0x970   : > { %6384 = vst.msk [vmem:[#allocation4 + $0x8] sm:$0xff] %vm6228_vm9, %v6382_v42 }
 0x971   : > { %v6245_v19 = vpop.permute.xlu1 %6244 }
 0x972   : > { %6248 = vst.msk [vmem:[#allocation4] sm:$0xff] %vm6247_vm8, %v6245_v19 }
 0x973   : > { %v6400_v49 = vpop.permute.xlu0 %6399 }
 0x974   : > { %6402 = vst.msk [vmem:[#allocation4 + $0x8] sm:$0xff] %vm6247_vm8, %v6400_v49 }
 0x975   : > { %v6264_v13 = vpop.permute.xlu1 %6263 }
 0x976   : > { %6267 = vst.msk [vmem:[#allocation4] sm:$0xff] %vm6266_vm7, %v6264_v13  ;;  %v6535_v13 = vld [vmem:[%s10338_s4] sm:$0xff] }
 0x977   : > { %v6418_v62 = vpop.permute.xlu0 %6417 }
 0x978   : > { %6420 = vst.msk [vmem:[#allocation4 + $0x8] sm:$0xff] %vm6266_vm7, %v6418_v62 }
 0x979   : > { %v6283_v3 = vpop.permute.xlu1 %6282 }
 0x97a   : > { %6286 = vst.msk [vmem:[#allocation4] sm:$0xff] %vm6285_vm0, %v6283_v3 }
 0x97b   : > { %v6436_v17 = vpop.permute.xlu0 %6435 }
 0x97c   : > { %6438 = vst.msk [vmem:[#allocation4 + $0x8] sm:$0xff] %vm6285_vm0, %v6436_v17 }
 0x97d   : > { %v6302_v36 = vpop.permute.xlu1 %6301 }
 0x97e   : > { %6305 = vst.msk [vmem:[#allocation4] sm:$0xff] %vm6304_vm15, %v6302_v36 }
 0x97f   : > { %v6454_v8 = vpop.permute.xlu0 %6453 }
 0x980   : > { %6456 = vst.msk [vmem:[#allocation4 + $0x8] sm:$0xff] %vm6304_vm15, %v6454_v8 }
 0x981   : > { %v6321_v0 = vpop.permute.xlu1 %6320 }
 0x982   : > { %6324 = vst.msk [vmem:[#allocation4] sm:$0xff] %vm6323_vm5, %v6321_v0 }
 0x983   : > { %v6472_v12 = vpop.permute.xlu0 %6471 }
 0x984   : > { %6474 = vst.msk [vmem:[#allocation4 + $0x8] sm:$0xff] %vm6323_vm5, %v6472_v12 }
 0x989   : > { %v6476_v23 = vld [vmem:[#allocation4] sm:$0xff] }
 0x98a   : > { %v6479_v33 = vmul.f32 %v6478_v34, %v6476_v23 }
 0x98b   : > { %v6477_v41 = vld [vmem:[#allocation4 + $0x8] sm:$0xff] }
 0x98c   : > { %v6480_v44 = vmul.f32 %v6478_v34, %v6477_v41  ;;  %v6481_v5 = vmul.f32 0.70710677, %v6479_v33  ;;  %v6529_v42 = vmul.f32 0.5, %v6479_v33 }
 0x98e   : > { %v6482_v43 = vmul.f32 0.70710677, %v6480_v44  ;;  %v6483_v32 = vand.u32 2147483647, %v6481_v5  ;;  %vm6485_vm2 = vcmp.ge.f32.partialorder %v6481_v5, 0.0  ;;  %v6530_v28 = vmul.f32 0.5, %v6480_v44 }
 0x98f   : > { %v6487_v40 = vsel %vm6485_vm2, 1.0, %v7255_v60 }
 0x990   : > { %v6484_v18 = vand.u32 2147483647, %v6482_v43  ;;  %v6489_v9 = vmul.f32 0.3275911, %v6483_v32  ;;  %v6515_v7 = vsub.f32 0.0, %v6483_v32  ;;  %vm6486_vm4 = vcmp.ge.f32.partialorder %v6482_v43, 0.0 }
 0x991   : > { %v6488_v46 = vsel %vm6486_vm4, 1.0, %v7255_v60 }
 0x992   : > { %v6490_v61 = vmul.f32 0.3275911, %v6484_v18  ;;  %v6491_v51 = vadd.f32 1.0, %v6489_v9  ;;  %v6516_v59 = vsub.f32 0.0, %v6484_v18  ;;  %v6517_v10 = vmul.f32 %v6515_v7, %v6483_v32 }
 0x994   : > { %v6492_v29 = vadd.f32 1.0, %v6490_v61  ;;  %7182 = vrcp.f32 %v6491_v51  ;;  %v6518_v31 = vmul.f32 %v6516_v59, %v6484_v18  ;;  %v6519_v25 = vmul.f32 1.442695, %v6517_v10  ;;  %v6540_v62 = vpop.permute.xlu0 %6539 }
 0x996   : > { %7184 = vrcp.f32 %v6492_v29  ;;  %v6521_v21 = vmul.f32 1.442695, %v6518_v31 }
 0x997   : > { %7186 = vpow2.f32 %v6519_v25 }
 0x998   : > { %7188 = vpow2.f32 %v6521_v21 }
 0x99e   : > { %v7183_v58 = vpop.eup %7182 }
 0x99f   : > { %v6497_v22 = vmul.f32 1.0614054, %v7183_v58 }
 0x9a0   : > { %v7185_v27 = vpop.eup %7184 }
 0x9a1   : > { %v6498_v30 = vmul.f32 1.0614054, %v7185_v27  ;;  %v6499_v45 = vadd.f32 -1.4531521, %v6497_v22  ;;  %v7187_v4 = vpop.eup %7186 }
 0x9a2   : > { %v7189_v55 = vpop.eup %7188 }
 0x9a3   : > { %v6500_v39 = vadd.f32 -1.4531521, %v6498_v30  ;;  %v6501_v37 = vmul.f32 %v7183_v58, %v6499_v45 }
 0x9a5   : > { %v6502_v11 = vmul.f32 %v7185_v27, %v6500_v39  ;;  %v6503_v20 = vadd.f32 1.4214138, %v6501_v37 }
 0x9a7   : > { %v6504_v16 = vadd.f32 1.4214138, %v6502_v11  ;;  %v6505_v14 = vmul.f32 %v7183_v58, %v6503_v20 }
 0x9a9   : > { %v6506_v57 = vmul.f32 %v7185_v27, %v6504_v16  ;;  %v6507_v1 = vadd.f32 -0.28449672, %v6505_v14 }
 0x9ab   : > { %v6508_v54 = vadd.f32 -0.28449672, %v6506_v57  ;;  %v6509_v2 = vmul.f32 %v7183_v58, %v6507_v1 }
 0x9ad   : > { %v6510_v52 = vmul.f32 %v7185_v27, %v6508_v54  ;;  %v6511_v38 = vadd.f32 0.2548296, %v6509_v2 }
 0x9af   : > { %v6512_v26 = vadd.f32 0.2548296, %v6510_v52  ;;  %v6513_v50 = vmul.f32 %v7183_v58, %v6511_v38 }
 0x9b1   : > { %v6514_v53 = vmul.f32 %v7185_v27, %v6512_v26  ;;  %v6523_v35 = vmul.f32 %v7187_v4, %v6513_v50 }
 0x9b3   : > { %v6524_v15 = vmul.f32 %v7189_v55, %v6514_v53  ;;  %v6525_v63 = vsub.f32 1.0, %v6523_v35 }
 0x9b5   : > { %v6526_v48 = vsub.f32 1.0, %v6524_v15  ;;  %v6527_v24 = vmul.f32 %v6525_v63, %v6487_v40 }
 0x9b7   : > { %v6528_v47 = vmul.f32 %v6526_v48, %v6488_v46  ;;  %v6531_v6 = vadd.f32 1.0, %v6527_v24 }
 0x9b9   : > { %v6532_v56 = vadd.f32 1.0, %v6528_v47  ;;  %v6533_v49 = vmul.f32 %v6531_v6, %v6529_v42 }
 0x9bb   : > { %v6534_v19 = vmul.f32 %v6532_v56, %v6530_v28 }
 0x9bd   : > { %6545 = vmatprep.subr.mxu0 %v6534_v19 }
 0x9be   : > { %6546 = vmatpush1.msra.mxu0 %v6533_v49 }
 0x9bf   : > { %6840 = vmatmul.mubr.msk.f32.vlgmr.msra.gmra.mrb[32].mxu0 %vm10547_vm14, %v6535_v13 }
 0xa92   : > { %v6611_v3 = vpop.f32.mrb[32].mxu0 }
 0xa93   : > { %v6612_v17 = vadd.f32 %v6611_v3, %v6540_v62  ;;  %v6613_v36 = vpop.f32.mrb[33].mxu0 }
 0xa94   : > { %v6614_v8 = vadd.f32 %v6613_v36, %v6540_v62 }
 0xa95   : > { %6616 = vst [vmem:[%s252_s9] sm:$0xff] %v6612_v17 }
 0xa96   : > { %6617 = vst [vmem:[%s252_s9 + $0x8] sm:$0xff] %v6614_v8 }
 0xa97 PF: > { %s17_s23 = sadd.s32 1, %s7196_s23  }
 0xa98   : > { %p14_p4 = scmp.ge.s32.totalorder %s17_s23, 4  }
 0xa9a   :  { %16 = sbr.rel (!%p14_p4) target bundleno = 2 (0x2), region = 74 }

</bundles_post_ra>
